<compile_context>
chip_gen: v7x
topology: tpu7x:2x2x1
jax: 0.10.0
libtpu: 0.0.40
codegen_flags: <defaults>
</compile_context>

<pallas_src>
import functools

import jax
import jax.numpy as jnp
from jax.experimental import pallas as pl
from jax.experimental.pallas import tpu as pltpu

D_MODEL = 320        # ESM2-t6-8M embedding dim (fixed by the module)
D_FF = 2048          # nn.TransformerEncoderLayer default dim_feedforward
LN_EPS = 1e-5        # PyTorch default layer_norm_eps
DHP = 128            # per-head dim padded to one lane tile (head_dim=80 -> 128)


# --------------------------------------------------------------------------
# Fused kernel: grid = (B//TB, L); one grid step = one encoder layer for a
# block of TB batch elements; the MLP head runs inside the last layer's step.
# --------------------------------------------------------------------------
def _fused_transformer_kernel(
        x_ref, wqkv_ref, bqkv_ref, wo_ref, bo_ref,
        ln1w_ref, ln1b_ref, ln2w_ref, ln2b_ref,
        w1_ref, b1_ref, w2_ref, b2_ref,
        fc1w_ref, fc1b_ref, fc2w_ref, fc2b_ref,
        o_ref, act_ref, oh_ref, *, num_heads, tb, seq):
    l = pl.program_id(1)
    num_layers = pl.num_programs(1)
    rows = tb * seq
    hd = num_heads * DHP

    # Layer 0: seed the resident activation slab with the ESM embeddings.
    @pl.when(l == 0)
    def _():
        act_ref[...] = x_ref[...].reshape(rows, D_MODEL)

    x = act_ref[...]                                   # [TB*S, D] f32 (resident)
    x_bf = x.astype(jnp.bfloat16)                      # bf16 MXU operands

    # ---- multi-head self-attention -------------------------------------
    # One fused QKV projection (N = 3*H*DHP); heads are padded to 128 lanes at
    # prep time, 1/sqrt(head_dim) is folded into the Q weights, so every slice
    # below is lane-tile aligned and numerically exact.
    qkv = jnp.dot(x_bf, wqkv_ref[...],
                  preferred_element_type=jnp.float32) + bqkv_ref[...]   # [R, 3*H*DHP]

    for h in range(num_heads):                         # static, small
        q = qkv[:, h * DHP:(h + 1) * DHP].astype(jnp.bfloat16).reshape(tb, seq, DHP)
        k = qkv[:, hd + h * DHP:hd + (h + 1) * DHP].astype(jnp.bfloat16).reshape(tb, seq, DHP)
        v = qkv[:, 2 * hd + h * DHP:2 * hd + (h + 1) * DHP].astype(jnp.bfloat16).reshape(tb, seq, DHP)
        # q @ k^T per batch element (batched dot, no materialized transpose).
        s = jnp.einsum('bqd,bkd->bqk', q, k,
                       preferred_element_type=jnp.float32)              # [TB, S, S]
        s = s - jnp.max(s, axis=-1, keepdims=True)
        p = jnp.exp(s)
        p = p * pl.reciprocal(jnp.sum(p, axis=-1, keepdims=True), approx=True)
        oh = jnp.einsum('bqk,bkd->bqd', p.astype(jnp.bfloat16), v,
                        preferred_element_type=jnp.float32)             # [TB, S, DHP]
        # Park the head output at a 128-aligned column of the bf16 scratch.
        oh_ref[:, h * DHP:(h + 1) * DHP] = oh.reshape(rows, DHP).astype(jnp.bfloat16)

    # Single fused output projection, K = H*DHP (padded rows of Wo are zero).
    attn = jnp.dot(oh_ref[...], wo_ref[...],
                   preferred_element_type=jnp.float32) + bo_ref[...]    # [R, D]

    # ---- residual + LayerNorm 1 (post-norm, f32) ----
    h1 = x + attn
    mu = jnp.mean(h1, axis=-1, keepdims=True)
    var = jnp.mean((h1 - mu) ** 2, axis=-1, keepdims=True)
    h1 = (h1 - mu) * jax.lax.rsqrt(var + LN_EPS) * ln1w_ref[...] + ln1b_ref[...]

    # ---- feed-forward (ReLU): bf16 MXU operands, f32 accumulation ----
    f = jnp.dot(h1.astype(jnp.bfloat16), w1_ref[...],
                preferred_element_type=jnp.float32) + b1_ref[...]
    f = jnp.maximum(f, 0.0)
    f = jnp.dot(f.astype(jnp.bfloat16), w2_ref[...],
                preferred_element_type=jnp.float32) + b2_ref[...]

    # ---- residual + LayerNorm 2 ----
    h2 = h1 + f
    mu2 = jnp.mean(h2, axis=-1, keepdims=True)
    var2 = jnp.mean((h2 - mu2) ** 2, axis=-1, keepdims=True)
    h2 = (h2 - mu2) * jax.lax.rsqrt(var2 + LN_EPS) * ln2w_ref[...] + ln2b_ref[...]

    act_ref[...] = h2                                  # carry to layer l+1

    # ---- fused MLP head after the last layer ----
    @pl.when(l == num_layers - 1)
    def _():
        g = jnp.dot(h2.astype(jnp.bfloat16), fc1w_ref[...],
                    preferred_element_type=jnp.float32) + fc1b_ref[...]  # [R, HIDP]
        g = jnp.maximum(g, 0.0)
        m = jnp.mean(g.reshape(tb, seq, -1), axis=1)                     # [TB, HIDP]
        o_ref[...] = (jnp.sum(m * fc2w_ref[...], axis=-1, keepdims=True)
                      + fc2b_ref[0, 0])                                  # [TB, 1]


# --------------------------------------------------------------------------
# VMEM budgeting: pick the batch block TB and the vmem limit from shapes.
# --------------------------------------------------------------------------
def _vmem_capacity_bytes():
    try:
        return int(pltpu.get_tpu_info().vmem_capacity_bytes)
    except Exception:
        return 64 * 1024 * 1024            # conservative default (v7x per-TC)


def _estimate_vmem_bytes(tb, seq, num_heads, hid_pad):
    rows = tb * seq
    hd = num_heads * DHP
    # bf16 per-layer weights + f32 biases/LN, double-buffered by the pipeline.
    per_layer_w = (2 * (D_MODEL * 3 * hd + hd * D_MODEL + 2 * D_MODEL * D_FF)
                   + 4 * (3 * hd + 6 * D_MODEL + D_FF))
    weights = 2 * per_layer_w
    act = rows * D_MODEL * 4                           # resident activation
    ohs = rows * hd * 2                                # per-head output scratch
    qkv = rows * 3 * hd * 4                            # fused QKV result (f32)
    scores = num_heads * tb * seq * seq * 4            # conservative: all heads live
    ffn = rows * D_FF * 4
    head = rows * hid_pad * 4 + 4 * D_MODEL * hid_pad
    slack = rows * D_MODEL * 8 + (4 << 20)             # bf16 copies, temporaries
    return weights + act + ohs + qkv + scores + ffn + head + slack


def _choose_batch_block(B, seq, num_heads, hid_pad, budget):
    best = 1
    for tb in range(1, B + 1):
        if B % tb:
            continue
        if _estimate_vmem_bytes(tb, seq, num_heads, hid_pad) <= budget:
            best = tb
    return best


def protein_transformer_forward(esm_embeddings, kernel_params, num_heads):
    (wqkv, bqkv, wo, bo, ln1w, ln1b, ln2w, ln2b,
     w1, b1, w2, b2, fc1w, fc1b, fc2w, fc2b) = kernel_params
    B, S, D = esm_embeddings.shape
    assert D == D_MODEL and D_MODEL % num_heads == 0
    L = wqkv.shape[0]
    hid_pad = fc1w.shape[1]

    capacity = _vmem_capacity_bytes()
    budget = int(0.85 * capacity)
    TB = _choose_batch_block(B, S, num_heads, hid_pad, budget)
    est = _estimate_vmem_bytes(TB, S, num_heads, hid_pad)
    vmem_limit = int(min(budget, max(est, 32 * 1024 * 1024)))

    def layer_spec(arr):                 # weight stacked over L; block = one layer
        zeros = (0,) * (arr.ndim - 1)
        return pl.BlockSpec((None,) + arr.shape[1:],
                            lambda b, l, _z=zeros: (l,) + _z)

    def const_spec(arr):                 # head params: same block every step
        zeros = (0,) * arr.ndim
        return pl.BlockSpec(arr.shape, lambda b, l, _z=zeros: _z)

    in_specs = [pl.BlockSpec((TB, S, D), lambda b, l: (b, 0, 0))]
    in_specs += [layer_spec(a) for a in (wqkv, bqkv, wo, bo, ln1w, ln1b,
                                         ln2w, ln2b, w1, b1, w2, b2)]
    in_specs += [const_spec(a) for a in (fc1w, fc1b, fc2w, fc2b)]

    out = pl.pallas_call(
        functools.partial(_fused_transformer_kernel,
                          num_heads=num_heads, tb=TB, seq=S),
        out_shape=jax.ShapeDtypeStruct((B, 1), jnp.float32),
        grid=(B // TB, L),
        in_specs=in_specs,
        out_specs=pl.BlockSpec((TB, 1), lambda b, l: (b, 0)),
        scratch_shapes=[
            pltpu.VMEM((TB * S, D_MODEL), jnp.float32),            # resident act
            pltpu.VMEM((TB * S, num_heads * DHP), jnp.bfloat16),   # head outputs
        ],
        compiler_params=pltpu.CompilerParams(
            # Batch-block axis is independent (megacore-shardable on v7x); the
            # layer axis carries the resident activation -> "arbitrary".
            dimension_semantics=("parallel", "arbitrary"),
            vmem_limit_bytes=vmem_limit),
    )(esm_embeddings, wqkv, bqkv, wo, bo, ln1w, ln1b, ln2w, ln2b,
      w1, b1, w2, b2, fc1w, fc1b, fc2w, fc2b)
    return out[:, 0]                                               # [B]


# --------------------------------------------------------------------------
# Parameters in PyTorch layout, conversion to the kernel layout, and a pure
# JAX f32 reference for a (loose, bf16-aware) correctness check.
# --------------------------------------------------------------------------
def init_torch_params(key, num_heads, num_layers, hidden_dim):
    """Random params in the nn.TransformerEncoderLayer / nn.Linear layout."""
    def rnd(k, shape, scale=0.02):
        return scale * jax.random.normal(k, shape, jnp.float32)

    layers = []
    for _ in range(num_layers):
        key, *ks = jax.random.split(key, 13)
        layers.append(dict(
            in_w=rnd(ks[0], (3 * D_MODEL, D_MODEL)),   # q,k,v row-stacked
            in_b=rnd(ks[1], (3 * D_MODEL,)),
            out_w=rnd(ks[2], (D_MODEL, D_MODEL)),
            out_b=rnd(ks[3], (D_MODEL,)),
            ln1_w=1.0 + rnd(ks[4], (D_MODEL,)),
            ln1_b=rnd(ks[5], (D_MODEL,)),
            lin1_w=rnd(ks[6], (D_FF, D_MODEL)),
            lin1_b=rnd(ks[7], (D_FF,)),
            lin2_w=rnd(ks[8], (D_MODEL, D_FF)),
            lin2_b=rnd(ks[9], (D_MODEL,)),
            ln2_w=1.0 + rnd(ks[10], (D_MODEL,)),
            ln2_b=rnd(ks[11], (D_MODEL,)),
        ))
    key, k1, k2, k3, k4 = jax.random.split(key, 5)
    head = dict(
        fc1_w=rnd(k1, (hidden_dim, D_MODEL)), fc1_b=rnd(k2, (hidden_dim,)),
        fc2_w=rnd(k3, (1, hidden_dim)), fc2_b=rnd(k4, (1,)),
    )
    return layers, head


def prepare_kernel_params(torch_layers, torch_head, num_heads):
    """PyTorch layout -> kernel layout.

    Per-head weights padded 80->128 lanes, softmax scale folded into Q, QKV
    fused to [D, 3*H*DHP], Wo fused to [H*DHP, D], MLP-head hidden padded to a
    lane multiple.  All MXU weights cast to bf16, everything [in, out]."""
    dh = D_MODEL // num_heads
    assert dh <= DHP
    scale = 1.0 / float(dh) ** 0.5
    pad = DHP - dh
    hd = num_heads * DHP

    def head_proj(w, b, s):
        # w: [D, D] (out, in) -> [D, H*DHP] (in, out) with per-head padding.
        w = w.reshape(num_heads, dh, D_MODEL).transpose(0, 2, 1) * s    # [H, D, dh]
        w = jnp.pad(w, ((0, 0), (0, 0), (0, pad)))                      # [H, D, DHP]
        w = w.transpose(1, 0, 2).reshape(D_MODEL, hd)                   # [D, H*DHP]
        b = jnp.pad(b.reshape(num_heads, dh) * s, ((0, 0), (0, pad)))
        return w, b.reshape(1, hd)

    stacks = {k: [] for k in ("wqkv", "bqkv", "wo", "bo", "ln1w", "ln1b",
                              "ln2w", "ln2b", "w1", "b1", "w2", "b2")}
    for p in torch_layers:
        wq, wk, wv = jnp.split(p["in_w"], 3, axis=0)       # [D, D] each (out, in)
        bq, bk, bv = jnp.split(p["in_b"], 3, axis=0)       # [D] each

        wqh, bqh = head_proj(wq, bq, scale)   # fold 1/sqrt(head_dim) into Q
        wkh, bkh = head_proj(wk, bk, 1.0)
        wvh, bvh = head_proj(wv, bv, 1.0)
        stacks["wqkv"].append(
            jnp.concatenate([wqh, wkh, wvh], axis=1).astype(jnp.bfloat16))  # [D, 3*H*DHP]
        stacks["bqkv"].append(jnp.concatenate([bqh, bkh, bvh], axis=1))     # [1, 3*H*DHP]

        wo = p["out_w"].T.reshape(num_heads, dh, D_MODEL)                   # [H, dh, D]
        wo = jnp.pad(wo, ((0, 0), (0, pad), (0, 0))).reshape(hd, D_MODEL)   # [H*DHP, D]
        stacks["wo"].append(wo.astype(jnp.bfloat16))
        stacks["bo"].append(p["out_b"].reshape(1, D_MODEL))

        stacks["ln1w"].append(p["ln1_w"].reshape(1, D_MODEL))
        stacks["ln1b"].append(p["ln1_b"].reshape(1, D_MODEL))
        stacks["ln2w"].append(p["ln2_w"].reshape(1, D_MODEL))
        stacks["ln2b"].append(p["ln2_b"].reshape(1, D_MODEL))

        stacks["w1"].append(p["lin1_w"].T.astype(jnp.bfloat16))             # [D, D_FF]
        stacks["b1"].append(p["lin1_b"].reshape(1, D_FF))
        stacks["w2"].append(p["lin2_w"].T.astype(jnp.bfloat16))             # [D_FF, D]
        stacks["b2"].append(p["lin2_b"].reshape(1, D_MODEL))

    stacked = {k: jnp.stack(v) for k, v in stacks.items()}

    hidden = torch_head["fc1_w"].shape[0]
    hid_pad = max(128, ((hidden + 127) // 128) * 128)
    hpad = hid_pad - hidden
    fc1w = jnp.pad(torch_head["fc1_w"].T, ((0, 0), (0, hpad))).astype(jnp.bfloat16)
    fc1b = jnp.pad(torch_head["fc1_b"], (0, hpad)).reshape(1, hid_pad)
    fc2w = jnp.pad(torch_head["fc2_w"].reshape(-1), (0, hpad)).reshape(1, hid_pad)
    fc2b = torch_head["fc2_b"].reshape(1, 1)

    return (stacked["wqkv"], stacked["bqkv"], stacked["wo"], stacked["bo"],
            stacked["ln1w"], stacked["ln1b"], stacked["ln2w"], stacked["ln2b"],
            stacked["w1"], stacked["b1"], stacked["w2"], stacked["b2"],
            fc1w, fc1b, fc2w, fc2b)


def reference_forward(x, torch_layers, torch_head, num_heads):
    """Pure-JAX f32 mirror of the PyTorch forward (post-ESM portion)."""
    dh = D_MODEL // num_heads

    def ln(t, w, b):
        mu = t.mean(-1, keepdims=True)
        var = ((t - mu) ** 2).mean(-1, keepdims=True)
        return (t - mu) / jnp.sqrt(var + LN_EPS) * w + b

    def layer(x, p):
        B, S, _ = x.shape
        qkv = x @ p["in_w"].T + p["in_b"]
        q, k, v = jnp.split(qkv, 3, axis=-1)
        split = lambda t: t.reshape(B, S, num_heads, dh).transpose(0, 2, 1, 3)
        qh, kh, vh = split(q), split(k), split(v)
        s = jnp.einsum("bhqd,bhkd->bhqk", qh, kh) / jnp.sqrt(float(dh))
        a = jax.nn.softmax(s, axis=-1)
        o = jnp.einsum("bhqk,bhkd->bhqd", a, vh).transpose(0, 2, 1, 3).reshape(B, S, D_MODEL)
        attn = o @ p["out_w"].T + p["out_b"]
        h1 = ln(x + attn, p["ln1_w"], p["ln1_b"])
        ff = jnp.maximum(h1 @ p["lin1_w"].T + p["lin1_b"], 0.0) @ p["lin2_w"].T + p["lin2_b"]
        return ln(h1 + ff, p["ln2_w"], p["ln2_b"])

    for p in torch_layers:
        x = layer(x, p)
    h = jnp.maximum(x @ torch_head["fc1_w"].T + torch_head["fc1_b"], 0.0)
    y = (h @ torch_head["fc2_w"].T + torch_head["fc2_b"])[..., 0]
    return y.mean(axis=1)


if __name__ == "__main__":
    B, S = 2, 8
    num_heads, num_layers, hidden_dim = 4, 2, 32

    key = jax.random.PRNGKey(0)
    key, kx = jax.random.split(key)
    # Stand-in for the frozen ESM-2 embeddings (external checkpoint): [B, S, 320]
    esm_embeddings = jax.random.normal(kx, (B, S, D_MODEL), jnp.float32)

    torch_layers, torch_head = init_torch_params(key, num_heads, num_layers, hidden_dim)
    kernel_params = prepare_kernel_params(torch_layers, torch_head, num_heads)

    out = protein_transformer_forward(esm_embeddings, kernel_params, num_heads)
    out = jax.block_until_ready(out)
    assert out.shape == (B,), out.shape

    # Loose check vs an f32 reference (kernel matmuls are bf16 + approx recip).
    ref = reference_forward(esm_embeddings, torch_layers, torch_head, num_heads)
    max_err = float(jnp.max(jnp.abs(out - ref)))
    tol = 2e-2 + 5e-2 * float(jnp.max(jnp.abs(ref)))
    assert max_err < tol, (max_err, tol)

    print("KERNEL_OK")
</pallas_src>

<mosaic_0001>
module attributes {stable_mosaic.version = 11 : i64} {
  func.func @_fused_transformer_kernel(%arg0: i32, %arg1: i32, %arg2: memref<2x8x320xf32, #tpu.memory_space<vmem>>, %arg3: memref<1x320x1536xbf16, #tpu.memory_space<vmem>>, %arg4: memref<1x1x1536xf32, #tpu.memory_space<vmem>>, %arg5: memref<1x512x320xbf16, #tpu.memory_space<vmem>>, %arg6: memref<1x1x320xf32, #tpu.memory_space<vmem>>, %arg7: memref<1x1x320xf32, #tpu.memory_space<vmem>>, %arg8: memref<1x1x320xf32, #tpu.memory_space<vmem>>, %arg9: memref<1x1x320xf32, #tpu.memory_space<vmem>>, %arg10: memref<1x1x320xf32, #tpu.memory_space<vmem>>, %arg11: memref<1x320x2048xbf16, #tpu.memory_space<vmem>>, %arg12: memref<1x1x2048xf32, #tpu.memory_space<vmem>>, %arg13: memref<1x2048x320xbf16, #tpu.memory_space<vmem>>, %arg14: memref<1x1x320xf32, #tpu.memory_space<vmem>>, %arg15: memref<320x128xbf16, #tpu.memory_space<vmem>>, %arg16: memref<1x128xf32, #tpu.memory_space<vmem>>, %arg17: memref<1x128xf32, #tpu.memory_space<vmem>>, %arg18: memref<1x1xf32, #tpu.memory_space<vmem>>, %arg19: memref<2x1xf32, #tpu.memory_space<vmem>>, %arg20: memref<16x320xf32, #tpu.memory_space<vmem>>, %arg21: memref<16x512xbf16, #tpu.memory_space<vmem>>) attributes {dimension_semantics = [#tpu.dimension_semantics<parallel>, #tpu.dimension_semantics<arbitrary>], iteration_bounds = array<i64: 1, 2>, scalar_prefetch = 0 : i64, scratch_operands = 2 : i64, tpu.core_type = #tpu.core_type<tc>, window_params = [{transform_indices = @transform_0, window_bounds = array<i64: 2, 8, 320>}, {transform_indices = @transform_1, window_bounds = array<i64: 1, 320, 1536>}, {transform_indices = @transform_2, window_bounds = array<i64: 1, 1, 1536>}, {transform_indices = @transform_3, window_bounds = array<i64: 1, 512, 320>}, {transform_indices = @transform_4, window_bounds = array<i64: 1, 1, 320>}, {transform_indices = @transform_5, window_bounds = array<i64: 1, 1, 320>}, {transform_indices = @transform_6, window_bounds = array<i64: 1, 1, 320>}, {transform_indices = @transform_7, window_bounds = array<i64: 1, 1, 320>}, {transform_indices = @transform_8, window_bounds = array<i64: 1, 1, 320>}, {transform_indices = @transform_9, window_bounds = array<i64: 1, 320, 2048>}, {transform_indices = @transform_10, window_bounds = array<i64: 1, 1, 2048>}, {transform_indices = @transform_11, window_bounds = array<i64: 1, 2048, 320>}, {transform_indices = @transform_12, window_bounds = array<i64: 1, 1, 320>}, {pipeline_mode = #tpu.pipeline_mode<synchronous>, transform_indices = @transform_13, window_bounds = array<i64: 320, 128>}, {pipeline_mode = #tpu.pipeline_mode<synchronous>, transform_indices = @transform_14, window_bounds = array<i64: 1, 128>}, {pipeline_mode = #tpu.pipeline_mode<synchronous>, transform_indices = @transform_15, window_bounds = array<i64: 1, 128>}, {pipeline_mode = #tpu.pipeline_mode<synchronous>, transform_indices = @transform_16, window_bounds = array<i64: 1, 1>}, {transform_indices = @transform_17, window_bounds = array<i64: 2, 1>}]} {
    %c0_i32 = arith.constant 0 : i32
    %0 = arith.cmpi eq, %arg1, %c0_i32 : i32
    %1 = arith.extui %0 : i1 to i32
    %c0_i32_0 = arith.constant 0 : i32
    %2 = arith.cmpi ne, %1, %c0_i32_0 : i32
    scf.if %2 {
      %c0_78 = arith.constant 0 : index
      %c0_79 = arith.constant 0 : index
      %c0_80 = arith.constant 0 : index
      %196 = vector.load %arg2[%c0_78, %c0_79, %c0_80] : memref<2x8x320xf32, #tpu.memory_space<vmem>>, vector<2x8x320xf32>
      %197 = vector.shape_cast %196 : vector<2x8x320xf32> to vector<16x320xf32>
      %c0_81 = arith.constant 0 : index
      %c0_82 = arith.constant 0 : index
      %198 = vector.load %arg20[%c0_81, %c0_82] : memref<16x320xf32, #tpu.memory_space<vmem>>, vector<16x320xf32>
      tpu.vector_store %arg20[%c0_81, %c0_82], %197 {strides = array<i32>} : memref<16x320xf32, #tpu.memory_space<vmem>>, vector<16x320xf32>,
    } else {
    }
    %c0 = arith.constant 0 : index
    %c0_1 = arith.constant 0 : index
    %3 = vector.load %arg20[%c0, %c0_1] : memref<16x320xf32, #tpu.memory_space<vmem>>, vector<16x320xf32>
    %4 = arith.truncf %3 : vector<16x320xf32> to vector<16x320xbf16>
    %c0_2 = arith.constant 0 : index
    %c0_3 = arith.constant 0 : index
    %c0_4 = arith.constant 0 : index
    %5 = vector.load %arg3[%c0_2, %c0_3, %c0_4] : memref<1x320x1536xbf16, #tpu.memory_space<vmem>>, vector<1x320x1536xbf16>
    %6 = vector.shape_cast %5 : vector<1x320x1536xbf16> to vector<320x1536xbf16>
    %cst = arith.constant dense<0.000000e+00> : vector<16x1536xf32>
    %7 = tpu.matmul %4, %6, %cst {dimension_numbers = #tpu.dot_dimension_numbers<[1], [0], [0], [1], [0, 0, 1, 1], [], []>} : vector<16x320xbf16>, vector<320x1536xbf16>, vector<16x1536xf32> -> vector<16x1536xf32>
    %c0_5 = arith.constant 0 : index
    %c0_6 = arith.constant 0 : index
    %c0_7 = arith.constant 0 : index
    %8 = vector.load %arg4[%c0_5, %c0_6, %c0_7] : memref<1x1x1536xf32, #tpu.memory_space<vmem>>, vector<1x1x1536xf32>
    %9 = vector.shape_cast %8 : vector<1x1x1536xf32> to vector<1x1536xf32>
    %10 = vector.broadcast %9 : vector<1x1536xf32> to vector<16x1536xf32>
    %11 = arith.addf %7, %10 : vector<16x1536xf32>
    %12 = vector.extract_strided_slice %11 {offsets = [0, 0], sizes = [16, 128], strides = [1, 1]} : vector<16x1536xf32> to vector<16x128xf32>
    %13 = arith.truncf %12 : vector<16x128xf32> to vector<16x128xbf16>
    %14 = vector.shape_cast %13 : vector<16x128xbf16> to vector<2x8x128xbf16>
    %15 = vector.extract_strided_slice %11 {offsets = [0, 512], sizes = [16, 128], strides = [1, 1]} : vector<16x1536xf32> to vector<16x128xf32>
    %16 = arith.truncf %15 : vector<16x128xf32> to vector<16x128xbf16>
    %17 = vector.shape_cast %16 : vector<16x128xbf16> to vector<2x8x128xbf16>
    %18 = vector.extract_strided_slice %11 {offsets = [0, 1024], sizes = [16, 128], strides = [1, 1]} : vector<16x1536xf32> to vector<16x128xf32>
    %19 = arith.truncf %18 : vector<16x128xf32> to vector<16x128xbf16>
    %20 = vector.shape_cast %19 : vector<16x128xbf16> to vector<2x8x128xbf16>
    "tpu.trace_start"() <{level = 10 : i32, message = "bqd,bkd->bqk"}> : () -> ()
    %cst_8 = arith.constant dense<0.000000e+00> : vector<2x8x8xf32>
    %21 = tpu.matmul %14, %17, %cst_8 {dimension_numbers = #tpu.dot_dimension_numbers<[2], [2], [1], [1], [0, 0, 0, 1, 1, 1], [0], [0]>} : vector<2x8x128xbf16>, vector<2x8x128xbf16>, vector<2x8x8xf32> -> vector<2x8x8xf32>
    "tpu.trace_stop"() : () -> ()
    %cst_9 = arith.constant dense<0xFF800000> : vector<2x8xf32>
    %22 = vector.multi_reduction <maximumf>, %21, %cst_9 [2] : vector<2x8x8xf32> to vector<2x8xf32>
    %23 = vector.shape_cast %22 : vector<2x8xf32> to vector<2x8x1xf32>
    %24 = vector.broadcast %23 : vector<2x8x1xf32> to vector<2x8x8xf32>
    %25 = arith.subf %21, %24 : vector<2x8x8xf32>
    %26 = math.exp %25 : vector<2x8x8xf32>
    %cst_10 = arith.constant dense<0.000000e+00> : vector<2x8xf32>
    %27 = vector.multi_reduction <add>, %26, %cst_10 [2] : vector<2x8x8xf32> to vector<2x8xf32>
    %28 = vector.shape_cast %27 : vector<2x8xf32> to vector<2x8x1xf32>
    %29 = tpu.reciprocal %28 {approx = true} : vector<2x8x1xf32> -> vector<2x8x1xf32>
    %30 = vector.broadcast %29 : vector<2x8x1xf32> to vector<2x8x8xf32>
    %31 = arith.mulf %26, %30 : vector<2x8x8xf32>
    %32 = arith.truncf %31 : vector<2x8x8xf32> to vector<2x8x8xbf16>
    "tpu.trace_start"() <{level = 10 : i32, message = "bqk,bkd->bqd"}> : () -> ()
    %cst_11 = arith.constant dense<0.000000e+00> : vector<2x8x128xf32>
    %33 = tpu.matmul %32, %20, %cst_11 {dimension_numbers = #tpu.dot_dimension_numbers<[2], [1], [1], [2], [0, 0, 0, 1, 1, 2], [0], [0]>} : vector<2x8x8xbf16>, vector<2x8x128xbf16>, vector<2x8x128xf32> -> vector<2x8x128xf32>
    "tpu.trace_stop"() : () -> ()
    %34 = vector.shape_cast %33 : vector<2x8x128xf32> to vector<16x128xf32>
    %35 = arith.truncf %34 : vector<16x128xf32> to vector<16x128xbf16>
    %c0_12 = arith.constant 0 : index
    %c0_13 = arith.constant 0 : index
    %36 = vector.load %arg21[%c0_12, %c0_13] : memref<16x512xbf16, #tpu.memory_space<vmem>>, vector<16x128xbf16>
    tpu.vector_store %arg21[%c0_12, %c0_13], %35 {strides = array<i32>} : memref<16x512xbf16, #tpu.memory_space<vmem>>, vector<16x128xbf16>,
    %37 = vector.extract_strided_slice %11 {offsets = [0, 128], sizes = [16, 128], strides = [1, 1]} : vector<16x1536xf32> to vector<16x128xf32>
    %38 = arith.truncf %37 : vector<16x128xf32> to vector<16x128xbf16>
    %39 = vector.shape_cast %38 : vector<16x128xbf16> to vector<2x8x128xbf16>
    %40 = vector.extract_strided_slice %11 {offsets = [0, 640], sizes = [16, 128], strides = [1, 1]} : vector<16x1536xf32> to vector<16x128xf32>
    %41 = arith.truncf %40 : vector<16x128xf32> to vector<16x128xbf16>
    %42 = vector.shape_cast %41 : vector<16x128xbf16> to vector<2x8x128xbf16>
    %43 = vector.extract_strided_slice %11 {offsets = [0, 1152], sizes = [16, 128], strides = [1, 1]} : vector<16x1536xf32> to vector<16x128xf32>
    %44 = arith.truncf %43 : vector<16x128xf32> to vector<16x128xbf16>
    %45 = vector.shape_cast %44 : vector<16x128xbf16> to vector<2x8x128xbf16>
    "tpu.trace_start"() <{level = 10 : i32, message = "bqd,bkd->bqk"}> : () -> ()
    %cst_14 = arith.constant dense<0.000000e+00> : vector<2x8x8xf32>
    %46 = tpu.matmul %39, %42, %cst_14 {dimension_numbers = #tpu.dot_dimension_numbers<[2], [2], [1], [1], [0, 0, 0, 1, 1, 1], [0], [0]>} : vector<2x8x128xbf16>, vector<2x8x128xbf16>, vector<2x8x8xf32> -> vector<2x8x8xf32>
    "tpu.trace_stop"() : () -> ()
    %cst_15 = arith.constant dense<0xFF800000> : vector<2x8xf32>
    %47 = vector.multi_reduction <maximumf>, %46, %cst_15 [2] : vector<2x8x8xf32> to vector<2x8xf32>
    %48 = vector.shape_cast %47 : vector<2x8xf32> to vector<2x8x1xf32>
    %49 = vector.broadcast %48 : vector<2x8x1xf32> to vector<2x8x8xf32>
    %50 = arith.subf %46, %49 : vector<2x8x8xf32>
    %51 = math.exp %50 : vector<2x8x8xf32>
    %cst_16 = arith.constant dense<0.000000e+00> : vector<2x8xf32>
    %52 = vector.multi_reduction <add>, %51, %cst_16 [2] : vector<2x8x8xf32> to vector<2x8xf32>
    %53 = vector.shape_cast %52 : vector<2x8xf32> to vector<2x8x1xf32>
    %54 = tpu.reciprocal %53 {approx = true} : vector<2x8x1xf32> -> vector<2x8x1xf32>
    %55 = vector.broadcast %54 : vector<2x8x1xf32> to vector<2x8x8xf32>
    %56 = arith.mulf %51, %55 : vector<2x8x8xf32>
    %57 = arith.truncf %56 : vector<2x8x8xf32> to vector<2x8x8xbf16>
    "tpu.trace_start"() <{level = 10 : i32, message = "bqk,bkd->bqd"}> : () -> ()
    %cst_17 = arith.constant dense<0.000000e+00> : vector<2x8x128xf32>
    %58 = tpu.matmul %57, %45, %cst_17 {dimension_numbers = #tpu.dot_dimension_numbers<[2], [1], [1], [2], [0, 0, 0, 1, 1, 2], [0], [0]>} : vector<2x8x8xbf16>, vector<2x8x128xbf16>, vector<2x8x128xf32> -> vector<2x8x128xf32>
    "tpu.trace_stop"() : () -> ()
    %59 = vector.shape_cast %58 : vector<2x8x128xf32> to vector<16x128xf32>
    %60 = arith.truncf %59 : vector<16x128xf32> to vector<16x128xbf16>
    %c0_18 = arith.constant 0 : index
    %c128 = arith.constant 128 : index
    %61 = vector.load %arg21[%c0_18, %c128] : memref<16x512xbf16, #tpu.memory_space<vmem>>, vector<16x128xbf16>
    tpu.vector_store %arg21[%c0_18, %c128], %60 {strides = array<i32>} : memref<16x512xbf16, #tpu.memory_space<vmem>>, vector<16x128xbf16>,
    %62 = vector.extract_strided_slice %11 {offsets = [0, 256], sizes = [16, 128], strides = [1, 1]} : vector<16x1536xf32> to vector<16x128xf32>
    %63 = arith.truncf %62 : vector<16x128xf32> to vector<16x128xbf16>
    %64 = vector.shape_cast %63 : vector<16x128xbf16> to vector<2x8x128xbf16>
    %65 = vector.extract_strided_slice %11 {offsets = [0, 768], sizes = [16, 128], strides = [1, 1]} : vector<16x1536xf32> to vector<16x128xf32>
    %66 = arith.truncf %65 : vector<16x128xf32> to vector<16x128xbf16>
    %67 = vector.shape_cast %66 : vector<16x128xbf16> to vector<2x8x128xbf16>
    %68 = vector.extract_strided_slice %11 {offsets = [0, 1280], sizes = [16, 128], strides = [1, 1]} : vector<16x1536xf32> to vector<16x128xf32>
    %69 = arith.truncf %68 : vector<16x128xf32> to vector<16x128xbf16>
    %70 = vector.shape_cast %69 : vector<16x128xbf16> to vector<2x8x128xbf16>
    "tpu.trace_start"() <{level = 10 : i32, message = "bqd,bkd->bqk"}> : () -> ()
    %cst_19 = arith.constant dense<0.000000e+00> : vector<2x8x8xf32>
    %71 = tpu.matmul %64, %67, %cst_19 {dimension_numbers = #tpu.dot_dimension_numbers<[2], [2], [1], [1], [0, 0, 0, 1, 1, 1], [0], [0]>} : vector<2x8x128xbf16>, vector<2x8x128xbf16>, vector<2x8x8xf32> -> vector<2x8x8xf32>
    "tpu.trace_stop"() : () -> ()
    %cst_20 = arith.constant dense<0xFF800000> : vector<2x8xf32>
    %72 = vector.multi_reduction <maximumf>, %71, %cst_20 [2] : vector<2x8x8xf32> to vector<2x8xf32>
    %73 = vector.shape_cast %72 : vector<2x8xf32> to vector<2x8x1xf32>
    %74 = vector.broadcast %73 : vector<2x8x1xf32> to vector<2x8x8xf32>
    %75 = arith.subf %71, %74 : vector<2x8x8xf32>
    %76 = math.exp %75 : vector<2x8x8xf32>
    %cst_21 = arith.constant dense<0.000000e+00> : vector<2x8xf32>
    %77 = vector.multi_reduction <add>, %76, %cst_21 [2] : vector<2x8x8xf32> to vector<2x8xf32>
    %78 = vector.shape_cast %77 : vector<2x8xf32> to vector<2x8x1xf32>
    %79 = tpu.reciprocal %78 {approx = true} : vector<2x8x1xf32> -> vector<2x8x1xf32>
    %80 = vector.broadcast %79 : vector<2x8x1xf32> to vector<2x8x8xf32>
    %81 = arith.mulf %76, %80 : vector<2x8x8xf32>
    %82 = arith.truncf %81 : vector<2x8x8xf32> to vector<2x8x8xbf16>
    "tpu.trace_start"() <{level = 10 : i32, message = "bqk,bkd->bqd"}> : () -> ()
    %cst_22 = arith.constant dense<0.000000e+00> : vector<2x8x128xf32>
    %83 = tpu.matmul %82, %70, %cst_22 {dimension_numbers = #tpu.dot_dimension_numbers<[2], [1], [1], [2], [0, 0, 0, 1, 1, 2], [0], [0]>} : vector<2x8x8xbf16>, vector<2x8x128xbf16>, vector<2x8x128xf32> -> vector<2x8x128xf32>
    "tpu.trace_stop"() : () -> ()
    %84 = vector.shape_cast %83 : vector<2x8x128xf32> to vector<16x128xf32>
    %85 = arith.truncf %84 : vector<16x128xf32> to vector<16x128xbf16>
    %c0_23 = arith.constant 0 : index
    %c256 = arith.constant 256 : index
    %86 = vector.load %arg21[%c0_23, %c256] : memref<16x512xbf16, #tpu.memory_space<vmem>>, vector<16x128xbf16>
    tpu.vector_store %arg21[%c0_23, %c256], %85 {strides = array<i32>} : memref<16x512xbf16, #tpu.memory_space<vmem>>, vector<16x128xbf16>,
    %87 = vector.extract_strided_slice %11 {offsets = [0, 384], sizes = [16, 128], strides = [1, 1]} : vector<16x1536xf32> to vector<16x128xf32>
    %88 = arith.truncf %87 : vector<16x128xf32> to vector<16x128xbf16>
    %89 = vector.shape_cast %88 : vector<16x128xbf16> to vector<2x8x128xbf16>
    %90 = vector.extract_strided_slice %11 {offsets = [0, 896], sizes = [16, 128], strides = [1, 1]} : vector<16x1536xf32> to vector<16x128xf32>
    %91 = arith.truncf %90 : vector<16x128xf32> to vector<16x128xbf16>
    %92 = vector.shape_cast %91 : vector<16x128xbf16> to vector<2x8x128xbf16>
    %93 = vector.extract_strided_slice %11 {offsets = [0, 1408], sizes = [16, 128], strides = [1, 1]} : vector<16x1536xf32> to vector<16x128xf32>
    %94 = arith.truncf %93 : vector<16x128xf32> to vector<16x128xbf16>
    %95 = vector.shape_cast %94 : vector<16x128xbf16> to vector<2x8x128xbf16>
    "tpu.trace_start"() <{level = 10 : i32, message = "bqd,bkd->bqk"}> : () -> ()
    %cst_24 = arith.constant dense<0.000000e+00> : vector<2x8x8xf32>
    %96 = tpu.matmul %89, %92, %cst_24 {dimension_numbers = #tpu.dot_dimension_numbers<[2], [2], [1], [1], [0, 0, 0, 1, 1, 1], [0], [0]>} : vector<2x8x128xbf16>, vector<2x8x128xbf16>, vector<2x8x8xf32> -> vector<2x8x8xf32>
    "tpu.trace_stop"() : () -> ()
    %cst_25 = arith.constant dense<0xFF800000> : vector<2x8xf32>
    %97 = vector.multi_reduction <maximumf>, %96, %cst_25 [2] : vector<2x8x8xf32> to vector<2x8xf32>
    %98 = vector.shape_cast %97 : vector<2x8xf32> to vector<2x8x1xf32>
    %99 = vector.broadcast %98 : vector<2x8x1xf32> to vector<2x8x8xf32>
    %100 = arith.subf %96, %99 : vector<2x8x8xf32>
    %101 = math.exp %100 : vector<2x8x8xf32>
    %cst_26 = arith.constant dense<0.000000e+00> : vector<2x8xf32>
    %102 = vector.multi_reduction <add>, %101, %cst_26 [2] : vector<2x8x8xf32> to vector<2x8xf32>
    %103 = vector.shape_cast %102 : vector<2x8xf32> to vector<2x8x1xf32>
    %104 = tpu.reciprocal %103 {approx = true} : vector<2x8x1xf32> -> vector<2x8x1xf32>
    %105 = vector.broadcast %104 : vector<2x8x1xf32> to vector<2x8x8xf32>
    %106 = arith.mulf %101, %105 : vector<2x8x8xf32>
    %107 = arith.truncf %106 : vector<2x8x8xf32> to vector<2x8x8xbf16>
    "tpu.trace_start"() <{level = 10 : i32, message = "bqk,bkd->bqd"}> : () -> ()
    %cst_27 = arith.constant dense<0.000000e+00> : vector<2x8x128xf32>
    %108 = tpu.matmul %107, %95, %cst_27 {dimension_numbers = #tpu.dot_dimension_numbers<[2], [1], [1], [2], [0, 0, 0, 1, 1, 2], [0], [0]>} : vector<2x8x8xbf16>, vector<2x8x128xbf16>, vector<2x8x128xf32> -> vector<2x8x128xf32>
    "tpu.trace_stop"() : () -> ()
    %109 = vector.shape_cast %108 : vector<2x8x128xf32> to vector<16x128xf32>
    %110 = arith.truncf %109 : vector<16x128xf32> to vector<16x128xbf16>
    %c0_28 = arith.constant 0 : index
    %c384 = arith.constant 384 : index
    %111 = vector.load %arg21[%c0_28, %c384] : memref<16x512xbf16, #tpu.memory_space<vmem>>, vector<16x128xbf16>
    tpu.vector_store %arg21[%c0_28, %c384], %110 {strides = array<i32>} : memref<16x512xbf16, #tpu.memory_space<vmem>>, vector<16x128xbf16>,
    %c0_29 = arith.constant 0 : index
    %c0_30 = arith.constant 0 : index
    %112 = vector.load %arg21[%c0_29, %c0_30] : memref<16x512xbf16, #tpu.memory_space<vmem>>, vector<16x512xbf16>
    %c0_31 = arith.constant 0 : index
    %c0_32 = arith.constant 0 : index
    %c0_33 = arith.constant 0 : index
    %113 = vector.load %arg5[%c0_31, %c0_32, %c0_33] : memref<1x512x320xbf16, #tpu.memory_space<vmem>>, vector<1x512x320xbf16>
    %114 = vector.shape_cast %113 : vector<1x512x320xbf16> to vector<512x320xbf16>
    %cst_34 = arith.constant dense<0.000000e+00> : vector<16x320xf32>
    %115 = tpu.matmul %112, %114, %cst_34 {dimension_numbers = #tpu.dot_dimension_numbers<[1], [0], [0], [1], [0, 0, 1, 1], [], []>} : vector<16x512xbf16>, vector<512x320xbf16>, vector<16x320xf32> -> vector<16x320xf32>
    %c0_35 = arith.constant 0 : index
    %c0_36 = arith.constant 0 : index
    %c0_37 = arith.constant 0 : index
    %116 = vector.load %arg6[%c0_35, %c0_36, %c0_37] : memref<1x1x320xf32, #tpu.memory_space<vmem>>, vector<1x1x320xf32>
    %117 = vector.shape_cast %116 : vector<1x1x320xf32> to vector<1x320xf32>
    %118 = vector.broadcast %117 : vector<1x320xf32> to vector<16x320xf32>
    %119 = arith.addf %115, %118 : vector<16x320xf32>
    %120 = arith.addf %3, %119 : vector<16x320xf32>
    %cst_38 = arith.constant dense<0.000000e+00> : vector<16xf32>
    %121 = vector.multi_reduction <add>, %120, %cst_38 [1] : vector<16x320xf32> to vector<16xf32>
    %122 = vector.shape_cast %121 : vector<16xf32> to vector<16x1xf32>
    %cst_39 = arith.constant 3.200000e+02 : f32
    %123 = vector.broadcast %cst_39 : f32 to vector<16x1xf32>
    %124 = arith.divf %122, %123 : vector<16x1xf32>
    %125 = vector.broadcast %124 : vector<16x1xf32> to vector<16x320xf32>
    %126 = arith.subf %120, %125 : vector<16x320xf32>
    %127 = arith.mulf %126, %126 : vector<16x320xf32>
    %cst_40 = arith.constant dense<0.000000e+00> : vector<16xf32>
    %128 = vector.multi_reduction <add>, %127, %cst_40 [1] : vector<16x320xf32> to vector<16xf32>
    %129 = vector.shape_cast %128 : vector<16xf32> to vector<16x1xf32>
    %cst_41 = arith.constant 3.200000e+02 : f32
    %130 = vector.broadcast %cst_41 : f32 to vector<16x1xf32>
    %131 = arith.divf %129, %130 : vector<16x1xf32>
    %132 = vector.broadcast %124 : vector<16x1xf32> to vector<16x320xf32>
    %133 = arith.subf %120, %132 : vector<16x320xf32>
    %cst_42 = arith.constant 9.99999974E-6 : f32
    %134 = vector.broadcast %cst_42 : f32 to vector<16x1xf32>
    %135 = arith.addf %131, %134 : vector<16x1xf32>
    %136 = math.rsqrt %135 : vector<16x1xf32>
    %137 = vector.broadcast %136 : vector<16x1xf32> to vector<16x320xf32>
    %138 = arith.mulf %133, %137 : vector<16x320xf32>
    %c0_43 = arith.constant 0 : index
    %c0_44 = arith.constant 0 : index
    %c0_45 = arith.constant 0 : index
    %139 = vector.load %arg7[%c0_43, %c0_44, %c0_45] : memref<1x1x320xf32, #tpu.memory_space<vmem>>, vector<1x1x320xf32>
    %140 = vector.shape_cast %139 : vector<1x1x320xf32> to vector<1x320xf32>
    %141 = vector.broadcast %140 : vector<1x320xf32> to vector<16x320xf32>
    %142 = arith.mulf %138, %141 : vector<16x320xf32>
    %c0_46 = arith.constant 0 : index
    %c0_47 = arith.constant 0 : index
    %c0_48 = arith.constant 0 : index
    %143 = vector.load %arg8[%c0_46, %c0_47, %c0_48] : memref<1x1x320xf32, #tpu.memory_space<vmem>>, vector<1x1x320xf32>
    %144 = vector.shape_cast %143 : vector<1x1x320xf32> to vector<1x320xf32>
    %145 = vector.broadcast %144 : vector<1x320xf32> to vector<16x320xf32>
    %146 = arith.addf %142, %145 : vector<16x320xf32>
    %147 = arith.truncf %146 : vector<16x320xf32> to vector<16x320xbf16>
    %c0_49 = arith.constant 0 : index
    %c0_50 = arith.constant 0 : index
    %c0_51 = arith.constant 0 : index
    %148 = vector.load %arg11[%c0_49, %c0_50, %c0_51] : memref<1x320x2048xbf16, #tpu.memory_space<vmem>>, vector<1x320x2048xbf16>
    %149 = vector.shape_cast %148 : vector<1x320x2048xbf16> to vector<320x2048xbf16>
    %cst_52 = arith.constant dense<0.000000e+00> : vector<16x2048xf32>
    %150 = tpu.matmul %147, %149, %cst_52 {dimension_numbers = #tpu.dot_dimension_numbers<[1], [0], [0], [1], [0, 0, 1, 1], [], []>} : vector<16x320xbf16>, vector<320x2048xbf16>, vector<16x2048xf32> -> vector<16x2048xf32>
    %c0_53 = arith.constant 0 : index
    %c0_54 = arith.constant 0 : index
    %c0_55 = arith.constant 0 : index
    %151 = vector.load %arg12[%c0_53, %c0_54, %c0_55] : memref<1x1x2048xf32, #tpu.memory_space<vmem>>, vector<1x1x2048xf32>
    %152 = vector.shape_cast %151 : vector<1x1x2048xf32> to vector<1x2048xf32>
    %153 = vector.broadcast %152 : vector<1x2048xf32> to vector<16x2048xf32>
    %154 = arith.addf %150, %153 : vector<16x2048xf32>
    %cst_56 = arith.constant 0.000000e+00 : f32
    %155 = vector.broadcast %cst_56 : f32 to vector<16x2048xf32>
    %156 = arith.maximumf %154, %155 : vector<16x2048xf32>
    %157 = arith.truncf %156 : vector<16x2048xf32> to vector<16x2048xbf16>
    %c0_57 = arith.constant 0 : index
    %c0_58 = arith.constant 0 : index
    %c0_59 = arith.constant 0 : index
    %158 = vector.load %arg13[%c0_57, %c0_58, %c0_59] : memref<1x2048x320xbf16, #tpu.memory_space<vmem>>, vector<1x2048x320xbf16>
    %159 = vector.shape_cast %158 : vector<1x2048x320xbf16> to vector<2048x320xbf16>
    %cst_60 = arith.constant dense<0.000000e+00> : vector<16x320xf32>
    %160 = tpu.matmul %157, %159, %cst_60 {dimension_numbers = #tpu.dot_dimension_numbers<[1], [0], [0], [1], [0, 0, 1, 1], [], []>} : vector<16x2048xbf16>, vector<2048x320xbf16>, vector<16x320xf32> -> vector<16x320xf32>
    %c0_61 = arith.constant 0 : index
    %c0_62 = arith.constant 0 : index
    %c0_63 = arith.constant 0 : index
    %161 = vector.load %arg14[%c0_61, %c0_62, %c0_63] : memref<1x1x320xf32, #tpu.memory_space<vmem>>, vector<1x1x320xf32>
    %162 = vector.shape_cast %161 : vector<1x1x320xf32> to vector<1x320xf32>
    %163 = vector.broadcast %162 : vector<1x320xf32> to vector<16x320xf32>
    %164 = arith.addf %160, %163 : vector<16x320xf32>
    %165 = arith.addf %146, %164 : vector<16x320xf32>
    %cst_64 = arith.constant dense<0.000000e+00> : vector<16xf32>
    %166 = vector.multi_reduction <add>, %165, %cst_64 [1] : vector<16x320xf32> to vector<16xf32>
    %167 = vector.shape_cast %166 : vector<16xf32> to vector<16x1xf32>
    %cst_65 = arith.constant 3.200000e+02 : f32
    %168 = vector.broadcast %cst_65 : f32 to vector<16x1xf32>
    %169 = arith.divf %167, %168 : vector<16x1xf32>
    %170 = vector.broadcast %169 : vector<16x1xf32> to vector<16x320xf32>
    %171 = arith.subf %165, %170 : vector<16x320xf32>
    %172 = arith.mulf %171, %171 : vector<16x320xf32>
    %cst_66 = arith.constant dense<0.000000e+00> : vector<16xf32>
    %173 = vector.multi_reduction <add>, %172, %cst_66 [1] : vector<16x320xf32> to vector<16xf32>
    %174 = vector.shape_cast %173 : vector<16xf32> to vector<16x1xf32>
    %cst_67 = arith.constant 3.200000e+02 : f32
    %175 = vector.broadcast %cst_67 : f32 to vector<16x1xf32>
    %176 = arith.divf %174, %175 : vector<16x1xf32>
    %177 = vector.broadcast %169 : vector<16x1xf32> to vector<16x320xf32>
    %178 = arith.subf %165, %177 : vector<16x320xf32>
    %cst_68 = arith.constant 9.99999974E-6 : f32
    %179 = vector.broadcast %cst_68 : f32 to vector<16x1xf32>
    %180 = arith.addf %176, %179 : vector<16x1xf32>
    %181 = math.rsqrt %180 : vector<16x1xf32>
    %182 = vector.broadcast %181 : vector<16x1xf32> to vector<16x320xf32>
    %183 = arith.mulf %178, %182 : vector<16x320xf32>
    %c0_69 = arith.constant 0 : index
    %c0_70 = arith.constant 0 : index
    %c0_71 = arith.constant 0 : index
    %184 = vector.load %arg9[%c0_69, %c0_70, %c0_71] : memref<1x1x320xf32, #tpu.memory_space<vmem>>, vector<1x1x320xf32>
    %185 = vector.shape_cast %184 : vector<1x1x320xf32> to vector<1x320xf32>
    %186 = vector.broadcast %185 : vector<1x320xf32> to vector<16x320xf32>
    %187 = arith.mulf %183, %186 : vector<16x320xf32>
    %c0_72 = arith.constant 0 : index
    %c0_73 = arith.constant 0 : index
    %c0_74 = arith.constant 0 : index
    %188 = vector.load %arg10[%c0_72, %c0_73, %c0_74] : memref<1x1x320xf32, #tpu.memory_space<vmem>>, vector<1x1x320xf32>
    %189 = vector.shape_cast %188 : vector<1x1x320xf32> to vector<1x320xf32>
    %190 = vector.broadcast %189 : vector<1x320xf32> to vector<16x320xf32>
    %191 = arith.addf %187, %190 : vector<16x320xf32>
    %c0_75 = arith.constant 0 : index
    %c0_76 = arith.constant 0 : index
    %192 = vector.load %arg20[%c0_75, %c0_76] : memref<16x320xf32, #tpu.memory_space<vmem>>, vector<16x320xf32>
    tpu.vector_store %arg20[%c0_75, %c0_76], %191 {strides = array<i32>} : memref<16x320xf32, #tpu.memory_space<vmem>>, vector<16x320xf32>,
    %c1_i32 = arith.constant 1 : i32
    %193 = arith.cmpi eq, %arg1, %c1_i32 : i32
    %194 = arith.extui %193 : i1 to i32
    %c0_i32_77 = arith.constant 0 : i32
    %195 = arith.cmpi ne, %194, %c0_i32_77 : i32
    scf.if %195 {
      %196 = arith.truncf %191 : vector<16x320xf32> to vector<16x320xbf16>
      %c0_78 = arith.constant 0 : index
      %c0_79 = arith.constant 0 : index
      %197 = vector.load %arg15[%c0_78, %c0_79] : memref<320x128xbf16, #tpu.memory_space<vmem>>, vector<320x128xbf16>
      %cst_80 = arith.constant dense<0.000000e+00> : vector<16x128xf32>
      %198 = tpu.matmul %196, %197, %cst_80 {dimension_numbers = #tpu.dot_dimension_numbers<[1], [0], [0], [1], [0, 0, 1, 1], [], []>} : vector<16x320xbf16>, vector<320x128xbf16>, vector<16x128xf32> -> vector<16x128xf32>
      %c0_81 = arith.constant 0 : index
      %c0_82 = arith.constant 0 : index
      %199 = vector.load %arg16[%c0_81, %c0_82] : memref<1x128xf32, #tpu.memory_space<vmem>>, vector<1x128xf32>
      %200 = vector.broadcast %199 : vector<1x128xf32> to vector<16x128xf32>
      %201 = arith.addf %198, %200 : vector<16x128xf32>
      %cst_83 = arith.constant 0.000000e+00 : f32
      %202 = vector.broadcast %cst_83 : f32 to vector<16x128xf32>
      %203 = arith.maximumf %201, %202 : vector<16x128xf32>
      %204 = vector.shape_cast %203 : vector<16x128xf32> to vector<2x8x128xf32>
      %cst_84 = arith.constant dense<0.000000e+00> : vector<2x128xf32>
      %205 = vector.multi_reduction <add>, %204, %cst_84 [1] : vector<2x8x128xf32> to vector<2x128xf32>
      %cst_85 = arith.constant 8.000000e+00 : f32
      %206 = vector.broadcast %cst_85 : f32 to vector<2x128xf32>
      %207 = arith.divf %205, %206 : vector<2x128xf32>
      %c0_86 = arith.constant 0 : index
      %c0_87 = arith.constant 0 : index
      %208 = vector.load %arg17[%c0_86, %c0_87] : memref<1x128xf32, #tpu.memory_space<vmem>>, vector<1x128xf32>
      %209 = vector.broadcast %208 : vector<1x128xf32> to vector<2x128xf32>
      %210 = arith.mulf %207, %209 : vector<2x128xf32>
      %cst_88 = arith.constant dense<0.000000e+00> : vector<2xf32>
      %211 = vector.multi_reduction <add>, %210, %cst_88 [1] : vector<2x128xf32> to vector<2xf32>
      %212 = vector.shape_cast %211 : vector<2xf32> to vector<2x1xf32>
      %c0_89 = arith.constant 0 : index
      %c0_90 = arith.constant 0 : index
      %213 = vector.load %arg18[%c0_89, %c0_90] : memref<1x1xf32, #tpu.memory_space<vmem>>, vector<1x1xf32>
      %214 = vector.extract %213[0, 0] : f32 from vector<1x1xf32>
      %215 = vector.broadcast %214 : f32 to vector<2x1xf32>
      %216 = arith.addf %212, %215 : vector<2x1xf32>
      %c0_91 = arith.constant 0 : index
      %c0_92 = arith.constant 0 : index
      %217 = vector.load %arg19[%c0_91, %c0_92] : memref<2x1xf32, #tpu.memory_space<vmem>>, vector<2x1xf32>
      tpu.vector_store %arg19[%c0_91, %c0_92], %216 {strides = array<i32>} : memref<2x1xf32, #tpu.memory_space<vmem>>, vector<2x1xf32>,
    } else {
    }
    return
  }
  func.func @transform_0(%arg0: i32, %arg1: i32) -> (i32, i32, i32) {
    %c0_i32 = arith.constant 0 : i32
    %c0_i32_0 = arith.constant 0 : i32
    %c0_i32_1 = arith.constant 0 : i32
    return %arg0, %c0_i32, %c0_i32_0 : i32, i32, i32
  }
  func.func @transform_1(%arg0: i32, %arg1: i32) -> (i32, i32, i32) {
    %c0_i32 = arith.constant 0 : i32
    %c0_i32_0 = arith.constant 0 : i32
    %c0_i32_1 = arith.constant 0 : i32
    return %arg1, %c0_i32, %c0_i32_0 : i32, i32, i32
  }
  func.func @transform_2(%arg0: i32, %arg1: i32) -> (i32, i32, i32) {
    %c0_i32 = arith.constant 0 : i32
    %c0_i32_0 = arith.constant 0 : i32
    %c0_i32_1 = arith.constant 0 : i32
    return %arg1, %c0_i32, %c0_i32_0 : i32, i32, i32
  }
  func.func @transform_3(%arg0: i32, %arg1: i32) -> (i32, i32, i32) {
    %c0_i32 = arith.constant 0 : i32
    %c0_i32_0 = arith.constant 0 : i32
    %c0_i32_1 = arith.constant 0 : i32
    return %arg1, %c0_i32, %c0_i32_0 : i32, i32, i32
  }
  func.func @transform_4(%arg0: i32, %arg1: i32) -> (i32, i32, i32) {
    %c0_i32 = arith.constant 0 : i32
    %c0_i32_0 = arith.constant 0 : i32
    %c0_i32_1 = arith.constant 0 : i32
    return %arg1, %c0_i32, %c0_i32_0 : i32, i32, i32
  }
  func.func @transform_5(%arg0: i32, %arg1: i32) -> (i32, i32, i32) {
    %c0_i32 = arith.constant 0 : i32
    %c0_i32_0 = arith.constant 0 : i32
    %c0_i32_1 = arith.constant 0 : i32
    return %arg1, %c0_i32, %c0_i32_0 : i32, i32, i32
  }
  func.func @transform_6(%arg0: i32, %arg1: i32) -> (i32, i32, i32) {
    %c0_i32 = arith.constant 0 : i32
    %c0_i32_0 = arith.constant 0 : i32
    %c0_i32_1 = arith.constant 0 : i32
    return %arg1, %c0_i32, %c0_i32_0 : i32, i32, i32
  }
  func.func @transform_7(%arg0: i32, %arg1: i32) -> (i32, i32, i32) {
    %c0_i32 = arith.constant 0 : i32
    %c0_i32_0 = arith.constant 0 : i32
    %c0_i32_1 = arith.constant 0 : i32
    return %arg1, %c0_i32, %c0_i32_0 : i32, i32, i32
  }
  func.func @transform_8(%arg0: i32, %arg1: i32) -> (i32, i32, i32) {
    %c0_i32 = arith.constant 0 : i32
    %c0_i32_0 = arith.constant 0 : i32
    %c0_i32_1 = arith.constant 0 : i32
    return %arg1, %c0_i32, %c0_i32_0 : i32, i32, i32
  }
  func.func @transform_9(%arg0: i32, %arg1: i32) -> (i32, i32, i32) {
    %c0_i32 = arith.constant 0 : i32
    %c0_i32_0 = arith.constant 0 : i32
    %c0_i32_1 = arith.constant 0 : i32
    return %arg1, %c0_i32, %c0_i32_0 : i32, i32, i32
  }
  func.func @transform_10(%arg0: i32, %arg1: i32) -> (i32, i32, i32) {
    %c0_i32 = arith.constant 0 : i32
    %c0_i32_0 = arith.constant 0 : i32
    %c0_i32_1 = arith.constant 0 : i32
    return %arg1, %c0_i32, %c0_i32_0 : i32, i32, i32
  }
  func.func @transform_11(%arg0: i32, %arg1: i32) -> (i32, i32, i32) {
    %c0_i32 = arith.constant 0 : i32
    %c0_i32_0 = arith.constant 0 : i32
    %c0_i32_1 = arith.constant 0 : i32
    return %arg1, %c0_i32, %c0_i32_0 : i32, i32, i32
  }
  func.func @transform_12(%arg0: i32, %arg1: i32) -> (i32, i32, i32) {
    %c0_i32 = arith.constant 0 : i32
    %c0_i32_0 = arith.constant 0 : i32
    %c0_i32_1 = arith.constant 0 : i32
    return %arg1, %c0_i32, %c0_i32_0 : i32, i32, i32
  }
  func.func @transform_13(%arg0: i32, %arg1: i32) -> (i32, i32) {
    %c0_i32 = arith.constant 0 : i32
    %c0_i32_0 = arith.constant 0 : i32
    %c0_i32_1 = arith.constant 0 : i32
    return %c0_i32, %c0_i32_0 : i32, i32
  }
  func.func @transform_14(%arg0: i32, %arg1: i32) -> (i32, i32) {
    %c0_i32 = arith.constant 0 : i32
    %c0_i32_0 = arith.constant 0 : i32
    %c0_i32_1 = arith.constant 0 : i32
    return %c0_i32, %c0_i32_0 : i32, i32
  }
  func.func @transform_15(%arg0: i32, %arg1: i32) -> (i32, i32) {
    %c0_i32 = arith.constant 0 : i32
    %c0_i32_0 = arith.constant 0 : i32
    %c0_i32_1 = arith.constant 0 : i32
    return %c0_i32, %c0_i32_0 : i32, i32
  }
  func.func @transform_16(%arg0: i32, %arg1: i32) -> (i32, i32) {
    %c0_i32 = arith.constant 0 : i32
    %c0_i32_0 = arith.constant 0 : i32
    %c0_i32_1 = arith.constant 0 : i32
    return %c0_i32, %c0_i32_0 : i32, i32
  }
  func.func @transform_17(%arg0: i32, %arg1: i32) -> (i32, i32) {
    %c0_i32 = arith.constant 0 : i32
    %c0_i32_0 = arith.constant 0 : i32
    return %arg0, %c0_i32 : i32, i32
  }
}

</mosaic_0001>

<bundles_post_ra>
// kernel: tpu_custom_call.1
= control target key start
LH: loop header
LB: loop body
LE: loop exit
PB: predicated region body
PF: predicated region fallthrough
CT: control target
= control target key end

     0   :  { %s14161_s26 = smov 0   ;;  %s14163_s27 = smov 0   ;;  %s15928_s0 = inlined_call_operand.vmem [shape: f32[2,8,320], index: 0, kind: input, shape index: {}]   ;;  %s15929_s1 = inlined_call_operand.vmem [shape: bf16[2,320,1536], index: 1, kind: input, shape index: {}]   ;;  %s15930_s2 = inlined_call_operand.vmem [shape: f32[2,1,1536], index: 2, kind: input, shape index: {}]   ;;  %s15931_s3 = inlined_call_operand.vmem [shape: bf16[2,512,320], index: 3, kind: input, shape index: {}]   ;;  %s15932_s4 = inlined_call_operand.vmem [shape: f32[2,1,320], index: 4, kind: input, shape index: {}]   ;;  %s15933_s5 = inlined_call_operand.vmem [shape: f32[2,1,320], index: 5, kind: input, shape index: {}]   ;;  %s15934_s6 = inlined_call_operand.vmem [shape: f32[2,1,320], index: 6, kind: input, shape index: {}]   ;;  %s15935_s7 = inlined_call_operand.vmem [shape: f32[2,1,320], index: 7, kind: input, shape index: {}]   ;;  %s15936_s8 = inlined_call_operand.vmem [shape: f32[2,1,320], index: 8, kind: input, shape index: {}]   ;;  %s15937_s9 = inlined_call_operand.vmem [shape: bf16[2,320,2048], index: 9, kind: input, shape index: {}]   ;;  %s15938_s10 = inlined_call_operand.vmem [shape: f32[2,1,2048], index: 10, kind: input, shape index: {}]   ;;  %s15939_s11 = inlined_call_operand.vmem [shape: bf16[2,2048,320], index: 11, kind: input, shape index: {}]   ;;  %s15940_s12 = inlined_call_operand.vmem [shape: f32[2,1,320], index: 12, kind: input, shape index: {}]   ;;  %s15941_s13 = inlined_call_operand.vmem [shape: bf16[320,128], index: 13, kind: input, shape index: {}]   ;;  %s15942_s14 = inlined_call_operand.vmem [shape: f32[1,128], index: 14, kind: input, shape index: {}]   ;;  %s15943_s15 = inlined_call_operand.vmem [shape: f32[1,128], index: 15, kind: input, shape index: {}]   ;;  %s15944_s16 = inlined_call_operand.<no memory space> [shape: f32[1,1], index: 16, kind: input, shape index: {}]   ;;  %s15945_s17 = inlined_call_operand.vmem [shape: f32[2,1], index: 17, kind: output, shape index: {}]  }
   0x1   :  { %15952 = sst [smem:[#allocation10_spill]] %s15928_s0  ;;  %v22_v0 = vstv %s15944_s16  ;;  %s14165_s28 = smov 0  }
   0x2   :  { %15953 = sst [smem:[#allocation11_spill]] %s15929_s1  ;;  %23 = vst [vmem:[#allocation4] sm:$0x1] %v22_v0 }
   0x3   :  { %15954 = sst [smem:[#allocation12_spill]] %s15930_s2 }
   0x4   :  { %15955 = sst [smem:[#allocation13_spill]] %s15931_s3 }
   0x5   :  { %15956 = sst [smem:[#allocation14_spill]] %s15938_s10 }
   0x6   :  { %15957 = sst [smem:[#allocation15_spill]] %s15941_s13 }
   0x7   :  { %15958 = sst [smem:[#allocation16_spill]] %s15942_s14 }
   0x8   :  { %15959 = sst [smem:[#allocation17_spill]] %s15943_s15 }
   0x9   :  { %15960 = sst [smem:[#allocation18_spill]] %s15945_s17 }
   0xa LB: > { %15961 = sst [smem:[#allocation5_spill]] %s14057_s27  ;;  %s38_s16 = sadd.s32 1, %s14057_s27  ;;  %s14061_s28 = sphi %s14165_s28, %s29_s28   ;;  %s14057_s27 = sphi %s14163_s27, %s15981_s27   ;;  %s14053_s26 = sphi %s14161_s26, %s15980_s26  }
   0xb   : > { %15962 = sst [smem:[#allocation6_spill]] %s14061_s28  ;;  %p11253_p0 = scmp.ge.s32.totalorder %s14061_s28, 1 }
   0xc   : > { %p39_p1 = scmp.ge.s32.totalorder %s38_s16, 2  ;;  %p615_p2 = scmp.lt.s32.totalorder %s14061_s28, 3 }
   0xe   : > { %s15983_s16 = smov (%p39_p1, %s38_s16), 0  ;;  %p616_p3 = pnand %p11253_p0, %p615_p2 }
   0xf   : > { %15963 = sst [smem:[#allocation7_spill]] %s15983_s16 }
  0x10   : > { %619 = sbr.rel (%p616_p3) target bundleno = 5126 (0x1406), region = 88 }
  0x17   : > { %p726_p4 = scmp.lt.s32.totalorder %s14053_s26, 1  ;;  %s15964_s10 = sld [smem:[#allocation14_spill]] }
  0x18   : > { %s15966_s23 = sld [smem:[#allocation11_spill]]  ;;  %s15967_s2 = sld [smem:[#allocation12_spill]] }
  0x19   : > { %s727_s29 = scalar_select %p726_p4, %s14053_s26, 1 }
  0x1a   : > { %s15968_s3 = sld [smem:[#allocation13_spill]]  ;;  %p11259_p5 = scmp.ne.s32.totalorder %s14053_s26, 0 }
  0x1b   : > { %s12936_s0 = smul.u32 1920, %s727_s29  ;;  %s11257_s30 = sshll.u32 %s727_s29, 4  ;;  %vm795_vm0 = vcmask (!%p11259_p5), 523264  }
  0x1c   : > { %s12937_s18 = smul.u32 12, %s727_s29  ;;  %s15970_s15 = sld [smem:[#allocation10_spill]] (!%p11259_p5) }
  0x1d   : > { %s14186_s20 = scalar_lea.vmem %s15964_s10, %s11257_s30  ;;  %s12938_s25 = smul.u32 768, %s727_s29 }
  0x1e   : > { %15965 = sst [smem:[#allocation8_spill]] %s14186_s20  ;;  %s14191_s24 = scalar_lea.vmem %s15966_s23, %s12936_s0 }
  0x1f   : > { %s14196_s28 = scalar_lea.vmem %s15967_s2, %s12937_s18  ;;  %s14198_s17 = smul.u32 3, %s727_s29 }
  0x20   : > { %s14203_s30 = scalar_lea.vmem %s15968_s3, %s12938_s25  ;;  %s12940_s0 = smul.u32 2560, %s727_s29 }
  0x21   : > { %15969 = sst [smem:[#allocation9_spill]] %s14203_s30  ;;  %s743_s27 = scalar_lea.vmem %s15932_s4, %s14198_s17 }
  0x22   : > { %s755_s10 = scalar_lea.vmem %s15935_s7, %s14198_s17  ;;  %s759_s3 = scalar_lea.vmem %s15936_s8, %s14198_s17  ;;  %v787_v1 = vld [vmem:[%s15970_s15] sm:$0xff] (!%p11259_p5)  ;;  %v788_v2 = vld [vmem:[%s15970_s15 + $0x8] sm:$0xff] (!%p11259_p5)  ;;  %v789_v3 = vld [vmem:[%s15970_s15 + $0x10] sm:$0xff] (!%p11259_p5) }
  0x23   : > { %s14228_s19 = scalar_lea.vmem %s15937_s9, %s12940_s0  ;;  %s12941_s1 = smul.u32 3072, %s727_s29  ;;  %793 = vst [vmem:[#allocation2] sm:$0xff] (!%p11259_p5), %v787_v1  ;;  %794 = vst [vmem:[#allocation2 + $0x8] sm:$0xff] (!%p11259_p5), %v788_v2  ;;  %v790_v4 = vld [vmem:[%s15970_s15 + $0x18] sm:$0xff] (!%p11259_p5)  ;;  %v791_v5 = vld [vmem:[%s15970_s15 + $0x20] sm:$0xff] (!%p11259_p5) }
  0x24   : > { %s777_s21 = scalar_lea.vmem %s15940_s12, %s14198_s17  ;;  %786 = sbr.rel (%p11259_p5) target bundleno = 43 (0x2b), region = 92  ;;  %796 = vst.msk [vmem:[#allocation2 + $0x10] sm:$0xff] (!%p11259_p5), %vm795_vm0, %v789_v3  ;;  %v792_v6 = vld [vmem:[%s15970_s15 + $0x28] sm:$0xff] (!%p11259_p5)  ;;  %797 = vst [vmem:[#allocation2 + $0x18] sm:$0xff] (!%p11259_p5), %v790_v4 }
  0x25   : > { %s14237_s14 = scalar_lea.vmem %s15939_s11, %s12941_s1  ;;  %798 = vst [vmem:[#allocation2 + $0x20] sm:$0xff] (!%p11259_p5), %v791_v5  ;;  %799 = vst.msk [vmem:[#allocation2 + $0x28] sm:$0xff] (!%p11259_p5), %vm795_vm0, %v792_v6 }
  0x2b PF: > { %v12973_v7 = vld [vmem:[%s14191_s24 + $0x4] ss:$48 sps:$4 sm:$0xff]   ;;  %v12975_v8 = vld [vmem:[%s14191_s24] ss:$48 sps:$4 sm:$0xff]   ;;  %v14063_v9 = vmov 0   ;;  %v801_v21 = vld [vmem:[#allocation2 + $0x8] sm:$0xff]  ;;  %s15972_s20 = scalar_lea.vmem %s15933_s5, %s14198_s17  ;;  %s15973_s0 = scalar_lea.vmem %s15934_s6, %s14198_s17 }
  0x2c   : > { %2478 = vmatprep.mubr.bf16.mxu1 %v14063_v9  ;;  %2317 = vmatprep.subr.bf16.mxu0 %v12973_v7  ;;  %v12976_v10 = vld [vmem:[%s14191_s24 + $0x64] ss:$48 sps:$4 sm:$0xff]   ;;  %v12978_v11 = vld [vmem:[%s14191_s24 + $0x60] ss:$48 sps:$4 sm:$0xff]   ;;  %v13072_v37 = vld [vmem:[%s14191_s24 + $0x60c] ss:$48 sps:$4 sm:$0xff]  }
  0x2d   : > { %2318 = vmatpush1.bf16.msra.mxu0 %v12975_v8  ;;  %v12979_v12 = vld [vmem:[%s14191_s24 + $0xc4] ss:$48 sps:$4 sm:$0xff]   ;;  %v12981_v13 = vld [vmem:[%s14191_s24 + $0xc0] ss:$48 sps:$4 sm:$0xff]   ;;  %v13074_v38 = vld [vmem:[%s14191_s24 + $0x608] ss:$48 sps:$4 sm:$0xff]   ;;  %2446 = vmatprep.subr.bf16.mxu1 %v13072_v37 }
  0x2e   : > { %2319 = vmatprep.subr.bf16.mxu0 %v12976_v10  ;;  %v12982_v14 = vld [vmem:[%s14191_s24 + $0x124] ss:$48 sps:$4 sm:$0xff]   ;;  %v12984_v15 = vld [vmem:[%s14191_s24 + $0x120] ss:$48 sps:$4 sm:$0xff]   ;;  %2447 = vmatpush1.bf16.msra.mxu1 %v13074_v38  ;;  %v13078_v40 = vld [vmem:[%s14191_s24 + $0x66c] ss:$48 sps:$4 sm:$0xff]  }
  0x2f   : > { %v12985_v16 = vld [vmem:[%s14191_s24 + $0x184] ss:$48 sps:$4 sm:$0xff]   ;;  %v12987_v17 = vld [vmem:[%s14191_s24 + $0x180] ss:$48 sps:$4 sm:$0xff]   ;;  %v13080_v41 = vld [vmem:[%s14191_s24 + $0x668] ss:$48 sps:$4 sm:$0xff]   ;;  %2448 = vmatprep.subr.bf16.mxu1 %v13078_v40 }
  0x30   : > { %v12988_v18 = vld [vmem:[%s14191_s24 + $0x1e4] ss:$48 sps:$4 sm:$0xff]   ;;  %v12990_v19 = vld [vmem:[%s14191_s24 + $0x1e0] ss:$48 sps:$4 sm:$0xff]   ;;  %v13084_v44 = vld [vmem:[%s14191_s24 + $0x6cc] ss:$48 sps:$4 sm:$0xff]  }
  0x31   : > { %2320 = vmatpush1.bf16.msra.mxu0 %v12978_v11  ;;  %v12991_v20 = vld [vmem:[%s14191_s24 + $0x244] ss:$48 sps:$4 sm:$0xff]   ;;  %v12993_v24 = vld [vmem:[%s14191_s24 + $0x240] ss:$48 sps:$4 sm:$0xff]   ;;  %v13086_v45 = vld [vmem:[%s14191_s24 + $0x6c8] ss:$48 sps:$4 sm:$0xff]  }
  0x32   : > { %2321 = vmatprep.subr.bf16.mxu0 %v12979_v12  ;;  %v804_v22 = vld [vmem:[#allocation2 + $0x20] sm:$0xff]  ;;  %2449 = vmatpush1.bf16.msra.mxu1 %v13080_v41  ;;  %v13090_v46 = vld [vmem:[%s14191_s24 + $0x72c] ss:$48 sps:$4 sm:$0xff]   ;;  %v13092_v52 = vld [vmem:[%s14191_s24 + $0x728] ss:$48 sps:$4 sm:$0xff]   ;;  %vm2313_vm1 = vcmask 523264  }
  0x33   : > { %v14272_v23 = vpack.c.bf16 %v804_v22, %v801_v21  ;;  %v12994_v25 = vld [vmem:[%s14191_s24 + $0x2a4] ss:$48 sps:$4 sm:$0xff]   ;;  %v12996_v26 = vld [vmem:[%s14191_s24 + $0x2a0] ss:$48 sps:$4 sm:$0xff]   ;;  %2450 = vmatprep.subr.bf16.mxu1 %v13084_v44  ;;  %v803_v51 = vld [vmem:[#allocation2 + $0x18] sm:$0xff]  ;;  %vm14065_vm2 = vmmov 0  }
  0x34   : > { %v12997_v27 = vld [vmem:[%s14191_s24 + $0x304] ss:$48 sps:$4 sm:$0xff]   ;;  %v12999_v28 = vld [vmem:[%s14191_s24 + $0x300] ss:$48 sps:$4 sm:$0xff]   ;;  %v805_v54 = vld [vmem:[#allocation2 + $0x28] sm:$0xff]  ;;  %vm2963_vm3 = vcmask 1043456  }
  0x35   : > { %2322 = vmatpush1.bf16.msra.mxu0 %v12981_v13  ;;  %2349 = vmatprep.mubr.bf16.mxu0 %v14272_v23  ;;  %v13000_v29 = vld [vmem:[%s14191_s24 + $0x364] ss:$48 sps:$4 sm:$0xff]   ;;  %v13002_v30 = vld [vmem:[%s14191_s24 + $0x360] ss:$48 sps:$4 sm:$0xff]   ;;  %v13035_v1 = vld [vmem:[%s14191_s24 + $0xc] ss:$48 sps:$4 sm:$0xff]  }
  0x36   : > { %2323 = vmatprep.subr.bf16.mxu0 %v12982_v14  ;;  %v13003_v31 = vld [vmem:[%s14191_s24 + $0x3c4] ss:$48 sps:$4 sm:$0xff]   ;;  %v13005_v32 = vld [vmem:[%s14191_s24 + $0x3c0] ss:$48 sps:$4 sm:$0xff]   ;;  %2451 = vmatpush1.bf16.msra.mxu1 %v13086_v45  ;;  %v13033_v2 = vld [vmem:[%s14191_s24 + $0x8] ss:$48 sps:$4 sm:$0xff]  }
  0x37   : > { %v13006_v33 = vld [vmem:[%s14191_s24 + $0x424] ss:$48 sps:$4 sm:$0xff]   ;;  %v13008_v34 = vld [vmem:[%s14191_s24 + $0x420] ss:$48 sps:$4 sm:$0xff]   ;;  %2452 = vmatprep.subr.bf16.mxu1 %v13090_v46  ;;  %v13038_v3 = vld [vmem:[%s14191_s24 + $0x6c] ss:$48 sps:$4 sm:$0xff]  }
  0x38   : > { %v13009_v35 = vld [vmem:[%s14191_s24 + $0x484] ss:$48 sps:$4 sm:$0xff]   ;;  %v13011_v36 = vld [vmem:[%s14191_s24 + $0x480] ss:$48 sps:$4 sm:$0xff]   ;;  %v13036_v4 = vld [vmem:[%s14191_s24 + $0x68] ss:$48 sps:$4 sm:$0xff]  }
  0x39   : > { %2324 = vmatpush1.bf16.msra.mxu0 %v12984_v15  ;;  %v13012_v39 = vld [vmem:[%s14191_s24 + $0x4e4] ss:$48 sps:$4 sm:$0xff]   ;;  %v13014_v42 = vld [vmem:[%s14191_s24 + $0x4e0] ss:$48 sps:$4 sm:$0xff]   ;;  %v13041_v5 = vld [vmem:[%s14191_s24 + $0xcc] ss:$48 sps:$4 sm:$0xff]  }
  0x3a   : > { %2325 = vmatprep.subr.bf16.mxu0 %v12985_v16  ;;  %v13015_v43 = vld [vmem:[%s14191_s24 + $0x544] ss:$48 sps:$4 sm:$0xff]   ;;  %v13017_v47 = vld [vmem:[%s14191_s24 + $0x540] ss:$48 sps:$4 sm:$0xff]   ;;  %2453 = vmatpush1.bf16.msra.mxu1 %v13092_v52  ;;  %v13039_v6 = vld [vmem:[%s14191_s24 + $0xc8] ss:$48 sps:$4 sm:$0xff]  }
  0x3b   : > { %v13018_v48 = vld [vmem:[%s14191_s24 + $0x5a4] ss:$48 sps:$4 sm:$0xff]   ;;  %v13020_v49 = vld [vmem:[%s14191_s24 + $0x5a0] ss:$48 sps:$4 sm:$0xff]   ;;  %v13044_v7 = vld [vmem:[%s14191_s24 + $0x12c] ss:$48 sps:$4 sm:$0xff]  }
  0x3c   : > { %v800_v50 = vld [vmem:[#allocation2] sm:$0xff]  ;;  %v802_v53 = vld [vmem:[#allocation2 + $0x10] sm:$0xff]  ;;  %v13042_v8 = vld [vmem:[%s14191_s24 + $0x128] ss:$48 sps:$4 sm:$0xff]   ;;  %vm2935_vm4 = vcmask 64512   ;;  %s15974_s25 = sld [smem:[#allocation8_spill]] }
  0x3d   : > { %2326 = vmatpush1.bf16.msra.mxu0 %v12987_v17  ;;  %v13023_v55 = vld [vmem:[%s14191_s24 + $0x604] ss:$48 sps:$4 sm:$0xff]   ;;  %v14303_v56 = vpack.c.bf16 %v803_v51, %v800_v50  ;;  %v14305_v57 = vpack.c.bf16 %v805_v54, %v802_v53  ;;  %v13021_v58 = vld [vmem:[%s14191_s24 + $0x600] ss:$48 sps:$4 sm:$0xff]   ;;  %v13047_v10 = vld [vmem:[%s14191_s24 + $0x18c] ss:$48 sps:$4 sm:$0xff]  }
  0x3e   : > { %2327 = vmatprep.subr.bf16.mxu0 %v12988_v18  ;;  %v13026_v59 = vld [vmem:[%s14191_s24 + $0x664] ss:$48 sps:$4 sm:$0xff]   ;;  %v13024_v60 = vld [vmem:[%s14191_s24 + $0x660] ss:$48 sps:$4 sm:$0xff]   ;;  %v13045_v11 = vld [vmem:[%s14191_s24 + $0x188] ss:$48 sps:$4 sm:$0xff]  }
  0x3f   : > { %11501 = vmatmul.mubr.msk.bf16.vlgmr.msra.gmra.mrb[0].mxu1 %vm2313_vm1, %v14305_v57  ;;  %v13029_v61 = vld [vmem:[%s14191_s24 + $0x6c4] ss:$48 sps:$4 sm:$0xff]   ;;  %v13027_v62 = vld [vmem:[%s14191_s24 + $0x6c0] ss:$48 sps:$4 sm:$0xff]   ;;  %v13050_v12 = vld [vmem:[%s14191_s24 + $0x1ec] ss:$48 sps:$4 sm:$0xff]  }
  0x40   : > { %2607 = vmatprep.mubr.bf16.mxu1 %v14272_v23  ;;  %v13032_v63 = vld [vmem:[%s14191_s24 + $0x724] ss:$48 sps:$4 sm:$0xff]   ;;  %v13030_v0 = vld [vmem:[%s14191_s24 + $0x720] ss:$48 sps:$4 sm:$0xff]   ;;  %v13153_v13 = vld [vmem:[%s14191_s24 + $0x18] ss:$48 sps:$4 sm:$0xff]  }
  0x41   : > { %2328 = vmatpush1.bf16.msra.mxu0 %v12990_v19  ;;  %v13155_v14 = vld [vmem:[%s14191_s24 + $0x1c] ss:$48 sps:$4 sm:$0xff]   ;;  %v13048_v15 = vld [vmem:[%s14191_s24 + $0x1e8] ss:$48 sps:$4 sm:$0xff]   ;;  %v13095_v51 = vld [vmem:[%s14191_s24 + $0x14] ss:$48 sps:$4 sm:$0xff]  }
  0x42   : > { %2329 = vmatprep.subr.bf16.mxu0 %v12991_v20  ;;  %v13158_v16 = vld [vmem:[%s14191_s24 + $0x7c] ss:$48 sps:$4 sm:$0xff]   ;;  %2575 = vmatprep.subr.bf16.mxu1 %v13155_v14  ;;  %v13156_v18 = vld [vmem:[%s14191_s24 + $0x78] ss:$48 sps:$4 sm:$0xff]   ;;  %v13093_v52 = vld [vmem:[%s14191_s24 + $0x10] ss:$48 sps:$4 sm:$0xff]  }
  0x43   : > { %v13053_v17 = vld [vmem:[%s14191_s24 + $0x24c] ss:$48 sps:$4 sm:$0xff]   ;;  %2576 = vmatpush1.bf16.msra.mxu1 %v13153_v13  ;;  %v13051_v19 = vld [vmem:[%s14191_s24 + $0x248] ss:$48 sps:$4 sm:$0xff]   ;;  %v13098_v53 = vld [vmem:[%s14191_s24 + $0x74] ss:$48 sps:$4 sm:$0xff]  }
  0x44   : > { %2577 = vmatprep.subr.bf16.mxu1 %v13158_v16  ;;  %v13161_v20 = vld [vmem:[%s14191_s24 + $0xdc] ss:$48 sps:$4 sm:$0xff]   ;;  %v13159_v22 = vld [vmem:[%s14191_s24 + $0xd8] ss:$48 sps:$4 sm:$0xff]   ;;  %v13096_v54 = vld [vmem:[%s14191_s24 + $0x70] ss:$48 sps:$4 sm:$0xff]  }
  0x45   : > { %2330 = vmatpush1.bf16.msra.mxu0 %v12993_v24  ;;  %v13056_v21 = vld [vmem:[%s14191_s24 + $0x2ac] ss:$48 sps:$4 sm:$0xff]   ;;  %v13063_v37 = vld [vmem:[%s14191_s24 + $0x3c8] ss:$48 sps:$4 sm:$0xff]   ;;  %v13117_v14 = vld [vmem:[%s14191_s24 + $0x310] ss:$48 sps:$4 sm:$0xff]  }
  0x46   : > { %2331 = vmatprep.subr.bf16.mxu0 %v12994_v25  ;;  %v13164_v24 = vld [vmem:[%s14191_s24 + $0x13c] ss:$48 sps:$4 sm:$0xff]   ;;  %v13054_v25 = vld [vmem:[%s14191_s24 + $0x2a8] ss:$48 sps:$4 sm:$0xff]   ;;  %v13122_v16 = vld [vmem:[%s14191_s24 + $0x374] ss:$48 sps:$4 sm:$0xff]  }
  0x47   : > { %2578 = vmatpush1.bf16.msra.mxu1 %v13156_v18  ;;  %v13068_v38 = vld [vmem:[%s14191_s24 + $0x42c] ss:$48 sps:$4 sm:$0xff]   ;;  %v13066_v41 = vld [vmem:[%s14191_s24 + $0x428] ss:$48 sps:$4 sm:$0xff]   ;;  %v13120_v18 = vld [vmem:[%s14191_s24 + $0x370] ss:$48 sps:$4 sm:$0xff]  }
  0x48   : > { %2579 = vmatprep.subr.bf16.mxu1 %v13161_v20  ;;  %v13176_v40 = vld [vmem:[%s14191_s24 + $0x2bc] ss:$48 sps:$4 sm:$0xff]   ;;  %v13069_v44 = vld [vmem:[%s14191_s24 + $0x488] ss:$48 sps:$4 sm:$0xff]   ;;  %v13125_v20 = vld [vmem:[%s14191_s24 + $0x3d4] ss:$48 sps:$4 sm:$0xff]  }
  0x49   : > { %2332 = vmatpush1.bf16.msra.mxu0 %v12996_v26  ;;  %v13059_v26 = vld [vmem:[%s14191_s24 + $0x30c] ss:$48 sps:$4 sm:$0xff]   ;;  %v13075_v46 = vld [vmem:[%s14191_s24 + $0x4e8] ss:$48 sps:$4 sm:$0xff]   ;;  %p12346_p6 = scmp.ne.s32.totalorder %s14053_s26, 1 }
  0x4a   : > { %2333 = vmatprep.subr.bf16.mxu0 %v12997_v27  ;;  %v13162_v27 = vld [vmem:[%s14191_s24 + $0x138] ss:$48 sps:$4 sm:$0xff]   ;;  %v13077_v45 = vld [vmem:[%s14191_s24 + $0x4ec] ss:$48 sps:$4 sm:$0xff]   ;;  %s15975_s17 = sld [smem:[#allocation15_spill]] (!%p12346_p6)  ;;  %vm14067_vm5 = vmmov (!%p12346_p6), 0  }
  0x4b   : > { %2580 = vmatpush1.bf16.msra.mxu1 %v13159_v22  ;;  %v13087_v50 = vld [vmem:[%s14191_s24 + $0x5a8] ss:$48 sps:$4 sm:$0xff]   ;;  %v13188_v13 = vld [vmem:[%s14191_s24 + $0x43c] ss:$48 sps:$4 sm:$0xff]   ;;  %v13123_v22 = vld [vmem:[%s14191_s24 + $0x3d0] ss:$48 sps:$4 sm:$0xff]  }
  0x4c   : > { %2581 = vmatprep.subr.bf16.mxu1 %v13164_v24  ;;  %v13128_v24 = vld [vmem:[%s14191_s24 + $0x434] ss:$48 sps:$4 sm:$0xff]   ;;  %s15977_s23 = sld [smem:[#allocation17_spill]] (!%p12346_p6)  ;;  %vm11030_vm6 = vcmask (!%p12346_p6), 1041409   ;;  %vm11033_vm7 = vcmask (!%p12346_p6), 1041408   ;;  %vm11041_vm8 = vcmask (!%p12346_p6), 1024  }
  0x4d   : > { %2334 = vmatpush1.bf16.msra.mxu0 %v12999_v28  ;;  %v13167_v28 = vld [vmem:[%s14191_s24 + $0x19c] ss:$48 sps:$4 sm:$0xff]   ;;  %s15978_s2 = sld [smem:[#allocation18_spill]] (!%p12346_p6) }
  0x4e   : > { %2335 = vmatprep.subr.bf16.mxu0 %v13000_v29  ;;  %v13057_v29 = vld [vmem:[%s14191_s24 + $0x308] ss:$48 sps:$4 sm:$0xff]  }
  0x4f   : > { %2582 = vmatpush1.bf16.msra.mxu1 %v13162_v27  ;;  %v13126_v27 = vld [vmem:[%s14191_s24 + $0x430] ss:$48 sps:$4 sm:$0xff]  }
  0x50   : > { %2583 = vmatprep.subr.bf16.mxu1 %v13167_v28  ;;  %v13195_v28 = vld [vmem:[%s14191_s24 + $0x558] ss:$48 sps:$4 sm:$0xff]  }
  0x51   : > { %2336 = vmatpush1.bf16.msra.mxu0 %v13002_v30  ;;  %v13062_v30 = vld [vmem:[%s14191_s24 + $0x36c] ss:$48 sps:$4 sm:$0xff]  }
  0x52   : > { %2337 = vmatprep.subr.bf16.mxu0 %v13003_v31  ;;  %v13165_v31 = vld [vmem:[%s14191_s24 + $0x198] ss:$48 sps:$4 sm:$0xff]  }
  0x53   : > { %2584 = vmatpush1.bf16.msra.mxu1 %v13165_v31  ;;  %v13129_v31 = vld [vmem:[%s14191_s24 + $0x490] ss:$48 sps:$4 sm:$0xff]  }
  0x55   : > { %2338 = vmatpush1.bf16.msra.mxu0 %v13005_v32  ;;  %v13170_v32 = vld [vmem:[%s14191_s24 + $0x1fc] ss:$48 sps:$4 sm:$0xff]  }
  0x56   : > { %2339 = vmatprep.subr.bf16.mxu0 %v13006_v33  ;;  %v13060_v33 = vld [vmem:[%s14191_s24 + $0x368] ss:$48 sps:$4 sm:$0xff]   ;;  %2585 = vmatprep.subr.bf16.mxu1 %v13170_v32 }
  0x57   : > { %v13198_v32 = vld [vmem:[%s14191_s24 + $0x5b8] ss:$48 sps:$4 sm:$0xff]  }
  0x59   : > { %2340 = vmatpush1.bf16.msra.mxu0 %v13008_v34  ;;  %v13065_v34 = vld [vmem:[%s14191_s24 + $0x3cc] ss:$48 sps:$4 sm:$0xff]  }
  0x5a   : > { %2341 = vmatprep.subr.bf16.mxu0 %v13009_v35  ;;  %v13168_v35 = vld [vmem:[%s14191_s24 + $0x1f8] ss:$48 sps:$4 sm:$0xff]  }
  0x5b   : > { %2586 = vmatpush1.bf16.msra.mxu1 %v13168_v35  ;;  %v13132_v35 = vld [vmem:[%s14191_s24 + $0x4f0] ss:$48 sps:$4 sm:$0xff]  }
  0x5d   : > { %2342 = vmatpush1.bf16.msra.mxu0 %v13011_v36  ;;  %v13173_v36 = vld [vmem:[%s14191_s24 + $0x25c] ss:$48 sps:$4 sm:$0xff]  }
  0x5e   : > { %2343 = vmatprep.subr.bf16.mxu0 %v13012_v39  ;;  %v13171_v39 = vld [vmem:[%s14191_s24 + $0x258] ss:$48 sps:$4 sm:$0xff]   ;;  %2587 = vmatprep.subr.bf16.mxu1 %v13173_v36 }
  0x5f   : > { %2588 = vmatpush1.bf16.msra.mxu1 %v13171_v39  ;;  %v13201_v36 = vld [vmem:[%s14191_s24 + $0x618] ss:$48 sps:$4 sm:$0xff]   ;;  %v13135_v39 = vld [vmem:[%s14191_s24 + $0x550] ss:$48 sps:$4 sm:$0xff]  }
  0x60   : > { %2589 = vmatprep.subr.bf16.mxu1 %v13176_v40  ;;  %v13204_v40 = vld [vmem:[%s14191_s24 + $0x678] ss:$48 sps:$4 sm:$0xff]  }
  0x61   : > { %2344 = vmatpush1.bf16.msra.mxu0 %v13014_v42  ;;  %v13071_v42 = vld [vmem:[%s14191_s24 + $0x48c] ss:$48 sps:$4 sm:$0xff]  }
  0x62   : > { %2345 = vmatprep.subr.bf16.mxu0 %v13015_v43  ;;  %v13174_v43 = vld [vmem:[%s14191_s24 + $0x2b8] ss:$48 sps:$4 sm:$0xff]  }
  0x63   : > { %2590 = vmatpush1.bf16.msra.mxu1 %v13174_v43  ;;  %v13138_v43 = vld [vmem:[%s14191_s24 + $0x5b0] ss:$48 sps:$4 sm:$0xff]  }
  0x65   : > { %2346 = vmatpush1.bf16.msra.mxu0 %v13017_v47  ;;  %v13083_v47 = vld [vmem:[%s14191_s24 + $0x54c] ss:$48 sps:$4 sm:$0xff]  }
  0x66   : > { %2347 = vmatprep.subr.bf16.mxu0 %v13018_v48  ;;  %v13081_v48 = vld [vmem:[%s14191_s24 + $0x548] ss:$48 sps:$4 sm:$0xff]  }
  0x69   : > { %2348 = vmatpush1.bf16.msra.mxu0 %v13020_v49  ;;  %v13089_v49 = vld [vmem:[%s14191_s24 + $0x5ac] ss:$48 sps:$4 sm:$0xff]  }
  0x6a   : > { %2360 = vmatprep.subr.bf16.mxu0 %v13023_v55  ;;  %v13101_v55 = vld [vmem:[%s14191_s24 + $0xd4] ss:$48 sps:$4 sm:$0xff]  }
  0x6c   : > { %2350 = vmatmul.mubr.bf16.vlgmr.msra.gmra.mrb[0].mxu0 %v14303_v56 }
  0x6d   : > { %2361 = vmatpush1.bf16.msra.mxu0 %v13021_v58  ;;  %2392 = vmatprep.mubr.bf16.mxu0 %v14063_v9  ;;  %v13099_v58 = vld [vmem:[%s14191_s24 + $0xd0] ss:$48 sps:$4 sm:$0xff]  }
  0x6e   : > { %2362 = vmatprep.subr.bf16.mxu0 %v13026_v59  ;;  %v13104_v59 = vld [vmem:[%s14191_s24 + $0x134] ss:$48 sps:$4 sm:$0xff]  }
  0x71   : > { %2363 = vmatpush1.bf16.msra.mxu0 %v13024_v60  ;;  %v13102_v60 = vld [vmem:[%s14191_s24 + $0x130] ss:$48 sps:$4 sm:$0xff]  }
  0x72   : > { %2364 = vmatprep.subr.bf16.mxu0 %v13029_v61  ;;  %v13107_v61 = vld [vmem:[%s14191_s24 + $0x194] ss:$48 sps:$4 sm:$0xff]  }
  0x75   : > { %2365 = vmatpush1.bf16.msra.mxu0 %v13027_v62  ;;  %v13105_v62 = vld [vmem:[%s14191_s24 + $0x190] ss:$48 sps:$4 sm:$0xff]  }
  0x76   : > { %2366 = vmatprep.subr.bf16.mxu0 %v13032_v63  ;;  %v13110_v63 = vld [vmem:[%s14191_s24 + $0x1f4] ss:$48 sps:$4 sm:$0xff]  }
  0x79   : > { %2367 = vmatpush1.bf16.msra.mxu0 %v13030_v0  ;;  %v13108_v0 = vld [vmem:[%s14191_s24 + $0x1f0] ss:$48 sps:$4 sm:$0xff]  }
  0x7a   : > { %2403 = vmatprep.subr.bf16.mxu0 %v13035_v1  ;;  %v13113_v1 = vld [vmem:[%s14191_s24 + $0x254] ss:$48 sps:$4 sm:$0xff]  }
  0x7c   : > { %11500 = vmatmul.mubr.msk.bf16.vlgmr.msra.gmra.mrb[0].mxu0 %vm2313_vm1, %v14305_v57 }
  0x7d   : > { %2404 = vmatpush1.bf16.msra.mxu0 %v13033_v2  ;;  %2435 = vmatprep.mubr.bf16.mxu0 %v14272_v23  ;;  %v13179_v2 = vld [vmem:[%s14191_s24 + $0x31c] ss:$48 sps:$4 sm:$0xff]  }
  0x7e   : > { %2405 = vmatprep.subr.bf16.mxu0 %v13038_v3  ;;  %v13111_v3 = vld [vmem:[%s14191_s24 + $0x250] ss:$48 sps:$4 sm:$0xff]   ;;  %2591 = vmatprep.subr.bf16.mxu1 %v13179_v2  ;;  %v13218_v2 = vld [vmem:[%s14191_s24 + $0x84] ss:$48 sps:$4 sm:$0xff]  }
  0x81   : > { %2406 = vmatpush1.bf16.msra.mxu0 %v13036_v4  ;;  %v13177_v4 = vld [vmem:[%s14191_s24 + $0x318] ss:$48 sps:$4 sm:$0xff]  }
  0x82   : > { %2407 = vmatprep.subr.bf16.mxu0 %v13041_v5  ;;  %v13116_v5 = vld [vmem:[%s14191_s24 + $0x2b4] ss:$48 sps:$4 sm:$0xff]   ;;  %2592 = vmatpush1.bf16.msra.mxu1 %v13177_v4  ;;  %v13216_v4 = vld [vmem:[%s14191_s24 + $0x80] ss:$48 sps:$4 sm:$0xff]  }
  0x85   : > { %2408 = vmatpush1.bf16.msra.mxu0 %v13039_v6  ;;  %v13182_v6 = vld [vmem:[%s14191_s24 + $0x37c] ss:$48 sps:$4 sm:$0xff]  }
  0x86   : > { %2409 = vmatprep.subr.bf16.mxu0 %v13044_v7  ;;  %v13180_v7 = vld [vmem:[%s14191_s24 + $0x378] ss:$48 sps:$4 sm:$0xff]   ;;  %2593 = vmatprep.subr.bf16.mxu1 %v13182_v6  ;;  %v13245_v6 = vld [vmem:[%s14191_s24 + $0x1ac] ss:$48 sps:$4 sm:$0xff]  }
  0x87   : > { %2594 = vmatpush1.bf16.msra.mxu1 %v13180_v7  ;;  %v13222_v7 = vld [vmem:[%s14191_s24 + $0xe0] ss:$48 sps:$4 sm:$0xff]  }
  0x89   : > { %2410 = vmatpush1.bf16.msra.mxu0 %v13042_v8  ;;  %v13114_v8 = vld [vmem:[%s14191_s24 + $0x2b0] ss:$48 sps:$4 sm:$0xff]  }
  0x8a   : > { %2411 = vmatprep.subr.bf16.mxu0 %v13047_v10  ;;  %v13183_v10 = vld [vmem:[%s14191_s24 + $0x3d8] ss:$48 sps:$4 sm:$0xff]  }
  0x8d   : > { %2412 = vmatpush1.bf16.msra.mxu0 %v13045_v11  ;;  %v13185_v11 = vld [vmem:[%s14191_s24 + $0x3dc] ss:$48 sps:$4 sm:$0xff]  }
  0x8e   : > { %2413 = vmatprep.subr.bf16.mxu0 %v13050_v12  ;;  %v13119_v12 = vld [vmem:[%s14191_s24 + $0x314] ss:$48 sps:$4 sm:$0xff]   ;;  %2595 = vmatprep.subr.bf16.mxu1 %v13185_v11  ;;  %v13251_v11 = vld [vmem:[%s14191_s24 + $0x20c] ss:$48 sps:$4 sm:$0xff]  }
  0x8f   : > { %2596 = vmatpush1.bf16.msra.mxu1 %v13183_v10  ;;  %v13230_v10 = vld [vmem:[%s14191_s24 + $0x144] ss:$48 sps:$4 sm:$0xff]  }
  0x90   : > { %2597 = vmatprep.subr.bf16.mxu1 %v13188_v13  ;;  %v13236_v13 = vld [vmem:[%s14191_s24 + $0x1a4] ss:$48 sps:$4 sm:$0xff]  }
  0x91   : > { %2414 = vmatpush1.bf16.msra.mxu0 %v13048_v15  ;;  %v13186_v15 = vld [vmem:[%s14191_s24 + $0x438] ss:$48 sps:$4 sm:$0xff]  }
  0x92   : > { %2415 = vmatprep.subr.bf16.mxu0 %v13053_v17  ;;  %v13191_v17 = vld [vmem:[%s14191_s24 + $0x49c] ss:$48 sps:$4 sm:$0xff]  }
  0x93   : > { %2598 = vmatpush1.bf16.msra.mxu1 %v13186_v15  ;;  %v13255_v15 = vld [vmem:[%s14191_s24 + $0x268] ss:$48 sps:$4 sm:$0xff]  }
  0x94   : > { %2599 = vmatprep.subr.bf16.mxu1 %v13191_v17  ;;  %v13234_v17 = vld [vmem:[%s14191_s24 + $0x1a0] ss:$48 sps:$4 sm:$0xff]  }
  0x95   : > { %2416 = vmatpush1.bf16.msra.mxu0 %v13051_v19  ;;  %v13189_v19 = vld [vmem:[%s14191_s24 + $0x498] ss:$48 sps:$4 sm:$0xff]  }
  0x96   : > { %2417 = vmatprep.subr.bf16.mxu0 %v13056_v21  ;;  %v13194_v21 = vld [vmem:[%s14191_s24 + $0x4fc] ss:$48 sps:$4 sm:$0xff]  }
  0x97   : > { %2600 = vmatpush1.bf16.msra.mxu1 %v13189_v19  ;;  %v13261_v19 = vld [vmem:[%s14191_s24 + $0x2c8] ss:$48 sps:$4 sm:$0xff]  }
  0x98   : > { %2601 = vmatprep.subr.bf16.mxu1 %v13194_v21  ;;  %v13240_v21 = vld [vmem:[%s14191_s24 + $0x200] ss:$48 sps:$4 sm:$0xff]  }
  0x99   : > { %2418 = vmatpush1.bf16.msra.mxu0 %v13054_v25  ;;  %v13192_v25 = vld [vmem:[%s14191_s24 + $0x4f8] ss:$48 sps:$4 sm:$0xff]  }
  0x9a   : > { %2419 = vmatprep.subr.bf16.mxu0 %v13059_v26  ;;  %v13197_v26 = vld [vmem:[%s14191_s24 + $0x55c] ss:$48 sps:$4 sm:$0xff]  }
  0x9b   : > { %2602 = vmatpush1.bf16.msra.mxu1 %v13192_v25  ;;  %v13275_v25 = vld [vmem:[%s14191_s24 + $0x38c] ss:$48 sps:$4 sm:$0xff]  }
  0x9c   : > { %2603 = vmatprep.subr.bf16.mxu1 %v13197_v26  ;;  %v13246_v26 = vld [vmem:[%s14191_s24 + $0x260] ss:$48 sps:$4 sm:$0xff]  }
  0x9d   : > { %2420 = vmatpush1.bf16.msra.mxu0 %v13057_v29  ;;  %v13131_v29 = vld [vmem:[%s14191_s24 + $0x494] ss:$48 sps:$4 sm:$0xff]  }
  0x9e   : > { %2421 = vmatprep.subr.bf16.mxu0 %v13062_v30  ;;  %v13200_v30 = vld [vmem:[%s14191_s24 + $0x5bc] ss:$48 sps:$4 sm:$0xff]  }
  0x9f   : > { %2604 = vmatpush1.bf16.msra.mxu1 %v13195_v28  ;;  %v13273_v28 = vld [vmem:[%s14191_s24 + $0x388] ss:$48 sps:$4 sm:$0xff]  }
  0xa0   : > { %2605 = vmatprep.subr.bf16.mxu1 %v13200_v30  ;;  %v13252_v30 = vld [vmem:[%s14191_s24 + $0x2c0] ss:$48 sps:$4 sm:$0xff]  }
  0xa1   : > { %2422 = vmatpush1.bf16.msra.mxu0 %v13060_v33  ;;  %v13134_v33 = vld [vmem:[%s14191_s24 + $0x4f4] ss:$48 sps:$4 sm:$0xff]  }
  0xa2   : > { %2423 = vmatprep.subr.bf16.mxu0 %v13065_v34  ;;  %v13203_v34 = vld [vmem:[%s14191_s24 + $0x61c] ss:$48 sps:$4 sm:$0xff]  }
  0xa3   : > { %2606 = vmatpush1.bf16.msra.mxu1 %v13198_v32  ;;  %v13279_v32 = vld [vmem:[%s14191_s24 + $0x3e8] ss:$48 sps:$4 sm:$0xff]  }
  0xa4   : > { %2618 = vmatprep.subr.bf16.mxu1 %v13203_v34  ;;  %v13287_v34 = vld [vmem:[%s14191_s24 + $0x44c] ss:$48 sps:$4 sm:$0xff]  }
  0xa5   : > { %2424 = vmatpush1.bf16.msra.mxu0 %v13063_v37  ;;  %v13137_v37 = vld [vmem:[%s14191_s24 + $0x554] ss:$48 sps:$4 sm:$0xff]  }
  0xa6   : > { %2425 = vmatprep.subr.bf16.mxu0 %v13068_v38  ;;  %v13206_v38 = vld [vmem:[%s14191_s24 + $0x67c] ss:$48 sps:$4 sm:$0xff]   ;;  %2608 = vmatmul.mubr.bf16.vlgmr.msra.gmra.mrb[4].mxu1 %v14303_v56 }
  0xa7   : > { %2619 = vmatpush1.bf16.msra.mxu1 %v13201_v36  ;;  %2650 = vmatprep.mubr.bf16.mxu1 %v14063_v9  ;;  %v13285_v36 = vld [vmem:[%s14191_s24 + $0x448] ss:$48 sps:$4 sm:$0xff]  }
  0xa8   : > { %2620 = vmatprep.subr.bf16.mxu1 %v13206_v38  ;;  %v13264_v38 = vld [vmem:[%s14191_s24 + $0x380] ss:$48 sps:$4 sm:$0xff]  }
  0xa9   : > { %2426 = vmatpush1.bf16.msra.mxu0 %v13066_v41  ;;  %v13140_v41 = vld [vmem:[%s14191_s24 + $0x5b4] ss:$48 sps:$4 sm:$0xff]  }
  0xaa   : > { %2427 = vmatprep.subr.bf16.mxu0 %v13071_v42  ;;  %v13209_v42 = vld [vmem:[%s14191_s24 + $0x6dc] ss:$48 sps:$4 sm:$0xff]  }
  0xab   : > { %2621 = vmatpush1.bf16.msra.mxu1 %v13204_v40  ;;  %v13291_v40 = vld [vmem:[%s14191_s24 + $0x4a8] ss:$48 sps:$4 sm:$0xff]  }
  0xac   : > { %2622 = vmatprep.subr.bf16.mxu1 %v13209_v42  ;;  %v13270_v42 = vld [vmem:[%s14191_s24 + $0x3e0] ss:$48 sps:$4 sm:$0xff]  }
  0xad   : > { %2428 = vmatpush1.bf16.msra.mxu0 %v13069_v44  ;;  %v13207_v44 = vld [vmem:[%s14191_s24 + $0x6d8] ss:$48 sps:$4 sm:$0xff]  }
  0xae   : > { %2429 = vmatprep.subr.bf16.mxu0 %v13077_v45  ;;  %v13143_v45 = vld [vmem:[%s14191_s24 + $0x614] ss:$48 sps:$4 sm:$0xff]  }
  0xaf   : > { %2623 = vmatpush1.bf16.msra.mxu1 %v13207_v44  ;;  %v13297_v44 = vld [vmem:[%s14191_s24 + $0x508] ss:$48 sps:$4 sm:$0xff]  }
  0xb1   : > { %2430 = vmatpush1.bf16.msra.mxu0 %v13075_v46  ;;  %v13212_v46 = vld [vmem:[%s14191_s24 + $0x73c] ss:$48 sps:$4 sm:$0xff]  }
  0xb2   : > { %2431 = vmatprep.subr.bf16.mxu0 %v13083_v47  ;;  %v13141_v47 = vld [vmem:[%s14191_s24 + $0x610] ss:$48 sps:$4 sm:$0xff]   ;;  %2624 = vmatprep.subr.bf16.mxu1 %v13212_v46 }
  0xb3   : > { %v13276_v46 = vld [vmem:[%s14191_s24 + $0x440] ss:$48 sps:$4 sm:$0xff]  }
  0xb5   : > { %2432 = vmatpush1.bf16.msra.mxu0 %v13081_v48  ;;  %v13146_v48 = vld [vmem:[%s14191_s24 + $0x674] ss:$48 sps:$4 sm:$0xff]  }
  0xb6   : > { %2433 = vmatprep.subr.bf16.mxu0 %v13089_v49  ;;  %v13210_v49 = vld [vmem:[%s14191_s24 + $0x738] ss:$48 sps:$4 sm:$0xff]  }
  0xb7   : > { %2625 = vmatpush1.bf16.msra.mxu1 %v13210_v49  ;;  %v13311_v49 = vld [vmem:[%s14191_s24 + $0x5cc] ss:$48 sps:$4 sm:$0xff]  }
  0xb9   : > { %2434 = vmatpush1.bf16.msra.mxu0 %v13087_v50  ;;  %v13221_v50 = vld [vmem:[%s14191_s24 + $0x2c] ss:$48 sps:$4 sm:$0xff]  }
  0xba   : > { %2489 = vmatprep.subr.bf16.mxu0 %v13095_v51  ;;  %v13144_v51 = vld [vmem:[%s14191_s24 + $0x670] ss:$48 sps:$4 sm:$0xff]   ;;  %2747 = vmatprep.subr.bf16.mxu1 %v13221_v50 }
  0xbb   : > { %11503 = vmatmul.mubr.msk.bf16.vlgmr.msra.gmra.mrb[4].mxu1 %vm2313_vm1, %v14305_v57  ;;  %v13282_v50 = vld [vmem:[%s14191_s24 + $0x4a0] ss:$48 sps:$4 sm:$0xff]  }
  0xbc   : > { %2436 = vmatmul.mubr.bf16.vlgmr.msra.gmra.mrb[4].mxu0 %v14303_v56  ;;  %2779 = vmatprep.mubr.bf16.mxu1 %v14272_v23 }
  0xbd   : > { %2490 = vmatpush1.bf16.msra.mxu0 %v13093_v52  ;;  %2521 = vmatprep.mubr.bf16.mxu0 %v14272_v23  ;;  %v13149_v52 = vld [vmem:[%s14191_s24 + $0x6d4] ss:$48 sps:$4 sm:$0xff]  }
  0xbe   : > { %2491 = vmatprep.subr.bf16.mxu0 %v13098_v53  ;;  %v13219_v53 = vld [vmem:[%s14191_s24 + $0x28] ss:$48 sps:$4 sm:$0xff]  }
  0xbf   : > { %2748 = vmatpush1.bf16.msra.mxu1 %v13219_v53  ;;  %v13317_v53 = vld [vmem:[%s14191_s24 + $0x62c] ss:$48 sps:$4 sm:$0xff]  }
  0xc1   : > { %2492 = vmatpush1.bf16.msra.mxu0 %v13096_v54  ;;  %v13227_v54 = vld [vmem:[%s14191_s24 + $0x8c] ss:$48 sps:$4 sm:$0xff]  }
  0xc2   : > { %2493 = vmatprep.subr.bf16.mxu0 %v13101_v55  ;;  %v13147_v55 = vld [vmem:[%s14191_s24 + $0x6d0] ss:$48 sps:$4 sm:$0xff]   ;;  %2749 = vmatprep.subr.bf16.mxu1 %v13227_v54 }
  0xc3   : > { %v13288_v54 = vld [vmem:[%s14191_s24 + $0x500] ss:$48 sps:$4 sm:$0xff]  }
  0xc5   : > { %2494 = vmatpush1.bf16.msra.mxu0 %v13099_v58  ;;  %v13152_v58 = vld [vmem:[%s14191_s24 + $0x734] ss:$48 sps:$4 sm:$0xff]  }
  0xc6   : > { %2495 = vmatprep.subr.bf16.mxu0 %v13104_v59  ;;  %v13225_v59 = vld [vmem:[%s14191_s24 + $0x88] ss:$48 sps:$4 sm:$0xff]  }
  0xc7   : > { %2750 = vmatpush1.bf16.msra.mxu1 %v13225_v59 }
  0xc9   : > { %2496 = vmatpush1.bf16.msra.mxu0 %v13102_v60  ;;  %v13233_v60 = vld [vmem:[%s14191_s24 + $0xec] ss:$48 sps:$4 sm:$0xff]  }
  0xca   : > { %2497 = vmatprep.subr.bf16.mxu0 %v13107_v61  ;;  %v13150_v61 = vld [vmem:[%s14191_s24 + $0x730] ss:$48 sps:$4 sm:$0xff]   ;;  %2751 = vmatprep.subr.bf16.mxu1 %v13233_v60  ;;  %v13323_v60 = vld [vmem:[%s14191_s24 + $0x68c] ss:$48 sps:$4 sm:$0xff]  }
  0xcd   : > { %2498 = vmatpush1.bf16.msra.mxu0 %v13105_v62  ;;  %v13215_v62 = vld [vmem:[%s14191_s24 + $0x24] ss:$48 sps:$4 sm:$0xff]  }
  0xce   : > { %2499 = vmatprep.subr.bf16.mxu0 %v13110_v63  ;;  %v13231_v63 = vld [vmem:[%s14191_s24 + $0xe8] ss:$48 sps:$4 sm:$0xff]  }
  0xcf   : > { %2752 = vmatpush1.bf16.msra.mxu1 %v13231_v63  ;;  %v13294_v63 = vld [vmem:[%s14191_s24 + $0x560] ss:$48 sps:$4 sm:$0xff]  }
  0xd1   : > { %2500 = vmatpush1.bf16.msra.mxu0 %v13108_v0  ;;  %v13239_v0 = vld [vmem:[%s14191_s24 + $0x14c] ss:$48 sps:$4 sm:$0xff]  }
  0xd2   : > { %2501 = vmatprep.subr.bf16.mxu0 %v13113_v1  ;;  %v13213_v1 = vld [vmem:[%s14191_s24 + $0x20] ss:$48 sps:$4 sm:$0xff]   ;;  %2753 = vmatprep.subr.bf16.mxu1 %v13239_v0 }
  0xd5   : > { %2502 = vmatpush1.bf16.msra.mxu0 %v13111_v3  ;;  %v13237_v3 = vld [vmem:[%s14191_s24 + $0x148] ss:$48 sps:$4 sm:$0xff]  }
  0xd6   : > { %2503 = vmatprep.subr.bf16.mxu0 %v13116_v5  ;;  %v13224_v5 = vld [vmem:[%s14191_s24 + $0xe4] ss:$48 sps:$4 sm:$0xff]   ;;  %2754 = vmatpush1.bf16.msra.mxu1 %v13237_v3  ;;  %v13329_v3 = vld [vmem:[%s14191_s24 + $0x6ec] ss:$48 sps:$4 sm:$0xff]  }
  0xd7   : > { %2755 = vmatprep.subr.bf16.mxu1 %v13245_v6  ;;  %v13327_v6 = vld [vmem:[%s14191_s24 + $0x6e8] ss:$48 sps:$4 sm:$0xff]  }
  0xd9   : > { %2504 = vmatpush1.bf16.msra.mxu0 %v13114_v8  ;;  %v13243_v8 = vld [vmem:[%s14191_s24 + $0x1a8] ss:$48 sps:$4 sm:$0xff]  }
  0xda   : > { %2505 = vmatprep.subr.bf16.mxu0 %v13119_v12  ;;  %2756 = vmatpush1.bf16.msra.mxu1 %v13243_v8  ;;  %v13228_v12 = vld [vmem:[%s14191_s24 + $0x140] ss:$48 sps:$4 sm:$0xff]  }
  0xdb   : > { %2757 = vmatprep.subr.bf16.mxu1 %v13251_v11  ;;  %v13306_v8 = vld [vmem:[%s14191_s24 + $0x620] ss:$48 sps:$4 sm:$0xff]   ;;  %v13330_v11 = vld [vmem:[%s14191_s24 + $0x748] ss:$48 sps:$4 sm:$0xff]  }
  0xdd   : > { %2506 = vmatpush1.bf16.msra.mxu0 %v13117_v14  ;;  %v13257_v14 = vld [vmem:[%s14191_s24 + $0x26c] ss:$48 sps:$4 sm:$0xff]  }
  0xde   : > { %2507 = vmatprep.subr.bf16.mxu0 %v13122_v16  ;;  %v13263_v16 = vld [vmem:[%s14191_s24 + $0x2cc] ss:$48 sps:$4 sm:$0xff]  }
  0xe1   : > { %2508 = vmatpush1.bf16.msra.mxu0 %v13120_v18  ;;  %v13242_v18 = vld [vmem:[%s14191_s24 + $0x204] ss:$48 sps:$4 sm:$0xff]  }
  0xe2   : > { %2509 = vmatprep.subr.bf16.mxu0 %v13125_v20  ;;  %v13269_v20 = vld [vmem:[%s14191_s24 + $0x32c] ss:$48 sps:$4 sm:$0xff]  }
  0xe5   : > { %2510 = vmatpush1.bf16.msra.mxu0 %v13123_v22  ;;  %v13248_v22 = vld [vmem:[%s14191_s24 + $0x264] ss:$48 sps:$4 sm:$0xff]  }
  0xe6   : > { %2511 = vmatprep.subr.bf16.mxu0 %v13128_v24  ;;  %v13267_v24 = vld [vmem:[%s14191_s24 + $0x328] ss:$48 sps:$4 sm:$0xff]  }
  0xe9   : > { %2512 = vmatpush1.bf16.msra.mxu0 %v13126_v27  ;;  %v13254_v27 = vld [vmem:[%s14191_s24 + $0x2c4] ss:$48 sps:$4 sm:$0xff]  }
  0xea   : > { %2513 = vmatprep.subr.bf16.mxu0 %v13131_v29  ;;  %v13281_v29 = vld [vmem:[%s14191_s24 + $0x3ec] ss:$48 sps:$4 sm:$0xff]  }
  0xed   : > { %2514 = vmatpush1.bf16.msra.mxu0 %v13129_v31  ;;  %v13260_v31 = vld [vmem:[%s14191_s24 + $0x324] ss:$48 sps:$4 sm:$0xff]  }
  0xee   : > { %2515 = vmatprep.subr.bf16.mxu0 %v13134_v33  ;;  %v13258_v33 = vld [vmem:[%s14191_s24 + $0x320] ss:$48 sps:$4 sm:$0xff]  }
  0xf1   : > { %2516 = vmatpush1.bf16.msra.mxu0 %v13132_v35  ;;  %v13266_v35 = vld [vmem:[%s14191_s24 + $0x384] ss:$48 sps:$4 sm:$0xff]  }
  0xf2   : > { %2517 = vmatprep.subr.bf16.mxu0 %v13137_v37  ;;  %v13293_v37 = vld [vmem:[%s14191_s24 + $0x4ac] ss:$48 sps:$4 sm:$0xff]  }
  0xf5   : > { %2518 = vmatpush1.bf16.msra.mxu0 %v13135_v39  ;;  %v13272_v39 = vld [vmem:[%s14191_s24 + $0x3e4] ss:$48 sps:$4 sm:$0xff]  }
  0xf6   : > { %2519 = vmatprep.subr.bf16.mxu0 %v13140_v41  ;;  %v13299_v41 = vld [vmem:[%s14191_s24 + $0x50c] ss:$48 sps:$4 sm:$0xff]  }
  0xf9   : > { %2520 = vmatpush1.bf16.msra.mxu0 %v13138_v43  ;;  %v13278_v43 = vld [vmem:[%s14191_s24 + $0x444] ss:$48 sps:$4 sm:$0xff]  }
  0xfa   : > { %2532 = vmatprep.subr.bf16.mxu0 %v13143_v45  ;;  %v13305_v45 = vld [vmem:[%s14191_s24 + $0x56c] ss:$48 sps:$4 sm:$0xff]  }
  0xfc   : > { %2522 = vmatmul.mubr.bf16.vlgmr.msra.gmra.mrb[8].mxu0 %v14303_v56 }
  0xfd   : > { %2533 = vmatpush1.bf16.msra.mxu0 %v13141_v47  ;;  %2564 = vmatprep.mubr.bf16.mxu0 %v14063_v9  ;;  %v13284_v47 = vld [vmem:[%s14191_s24 + $0x4a4] ss:$48 sps:$4 sm:$0xff]  }
  0xfe   : > { %2534 = vmatprep.subr.bf16.mxu0 %v13146_v48  ;;  %v13303_v48 = vld [vmem:[%s14191_s24 + $0x568] ss:$48 sps:$4 sm:$0xff]  }
 0x101   : > { %2535 = vmatpush1.bf16.msra.mxu0 %v13144_v51  ;;  %v13290_v51 = vld [vmem:[%s14191_s24 + $0x504] ss:$48 sps:$4 sm:$0xff]  }
 0x102   : > { %2536 = vmatprep.subr.bf16.mxu0 %v13149_v52  ;;  %v13309_v52 = vld [vmem:[%s14191_s24 + $0x5c8] ss:$48 sps:$4 sm:$0xff]  }
 0x105   : > { %2537 = vmatpush1.bf16.msra.mxu0 %v13147_v55  ;;  %v13296_v55 = vld [vmem:[%s14191_s24 + $0x564] ss:$48 sps:$4 sm:$0xff]  }
 0x106   : > { %2538 = vmatprep.subr.bf16.mxu0 %v13152_v58  ;;  %v13315_v58 = vld [vmem:[%s14191_s24 + $0x628] ss:$48 sps:$4 sm:$0xff]  }
 0x109   : > { %2539 = vmatpush1.bf16.msra.mxu0 %v13150_v61 }
 0x10a   : > { %2661 = vmatprep.subr.bf16.mxu0 %v13215_v62 }
 0x10c   : > { %11502 = vmatmul.mubr.msk.bf16.vlgmr.msra.gmra.mrb[8].mxu0 %vm2313_vm1, %v14305_v57 }
 0x10d   : > { %2662 = vmatpush1.bf16.msra.mxu0 %v13213_v1  ;;  %2693 = vmatprep.mubr.bf16.mxu0 %v14272_v23  ;;  %v13249_v23 = vld [vmem:[%s14191_s24 + $0x208] ss:$48 sps:$4 sm:$0xff]   ;;  %v13302_v1 = vld [vmem:[%s14191_s24 + $0x5c4] ss:$48 sps:$4 sm:$0xff]  }
 0x10e   : > { %2663 = vmatprep.subr.bf16.mxu0 %v13218_v2  ;;  %2758 = vmatpush1.bf16.msra.mxu1 %v13249_v23  ;;  %v13321_v2 = vld [vmem:[%s14191_s24 + $0x688] ss:$48 sps:$4 sm:$0xff]   ;;  %v13320_v23 = vld [vmem:[%s14191_s24 + $0x6e4] ss:$48 sps:$4 sm:$0xff]  }
 0x10f   : > { %2759 = vmatprep.subr.bf16.mxu1 %v13257_v14  ;;  %v13318_v14 = vld [vmem:[%s14191_s24 + $0x6e0] ss:$48 sps:$4 sm:$0xff]  }
 0x111   : > { %2664 = vmatpush1.bf16.msra.mxu0 %v13216_v4  ;;  %v13300_v4 = vld [vmem:[%s14191_s24 + $0x5c0] ss:$48 sps:$4 sm:$0xff]  }
 0x112   : > { %2665 = vmatprep.subr.bf16.mxu0 %v13224_v5  ;;  %2760 = vmatpush1.bf16.msra.mxu1 %v13255_v15  ;;  %v14509_v59 = vpop.f32.mrb[0].mxu1  ;;  %v13308_v5 = vld [vmem:[%s14191_s24 + $0x624] ss:$48 sps:$4 sm:$0xff]  }
 0x113   : > { %2761 = vmatprep.subr.bf16.mxu1 %v13263_v16  ;;  %v14512_v61 = vpop.f32.mrb[1].mxu1  ;;  %v13326_v16 = vld [vmem:[%s14191_s24 + $0x744] ss:$48 sps:$4 sm:$0xff]  }
 0x114   : > { %v14514_v62 = vpop.f32.mrb[2].mxu1 }
 0x115   : > { %2666 = vmatpush1.bf16.msra.mxu0 %v13222_v7  ;;  %v14517_v0 = vpop.f32.mrb[3].mxu1  ;;  %v13332_v7 = vld [vmem:[%s14191_s24 + $0x74c] ss:$48 sps:$4 sm:$0xff]  }
 0x116   : > { %2667 = vmatprep.subr.bf16.mxu0 %v13230_v10  ;;  %2762 = vmatpush1.bf16.msra.mxu1 %v13261_v19  ;;  %v13314_v10 = vld [vmem:[%s14191_s24 + $0x684] ss:$48 sps:$4 sm:$0xff]   ;;  %v14064_v19 = vmov 0.0  }
 0x117   : > { %2763 = vmatprep.subr.bf16.mxu1 %v13269_v20  ;;  %v1053_v20 = vlaneseq }
 0x119   : > { %2668 = vmatpush1.bf16.msra.mxu0 %v13228_v12  ;;  %v13312_v12 = vld [vmem:[%s14191_s24 + $0x680] ss:$48 sps:$4 sm:$0xff]  }
 0x11a   : > { %2669 = vmatprep.subr.bf16.mxu0 %v13236_v13  ;;  %2764 = vmatpush1.bf16.msra.mxu1 %v13267_v24  ;;  %v14558_v24 = vld [vmem:[%s14196_s28] sm:$0xff] }
 0x11b   : > { %2765 = vmatprep.subr.bf16.mxu1 %v13275_v25 }
 0x11d   : > { %2670 = vmatpush1.bf16.msra.mxu0 %v13234_v17 }
 0x11e   : > { %2671 = vmatprep.subr.bf16.mxu0 %v13242_v18  ;;  %2766 = vmatpush1.bf16.msra.mxu1 %v13273_v28 }
 0x11f   : > { %2767 = vmatprep.subr.bf16.mxu1 %v13281_v29 }
 0x121   : > { %2672 = vmatpush1.bf16.msra.mxu0 %v13240_v21  ;;  %v14552_v21 = vshrl.u32 %v1053_v20, 7 }
 0x122   : > { %2673 = vmatprep.subr.bf16.mxu0 %v13248_v22  ;;  %2768 = vmatpush1.bf16.msra.mxu1 %v13279_v32 }
 0x123   : > { %2769 = vmatprep.subr.bf16.mxu1 %v13287_v34  ;;  %v14555_v22 = vsub.s32 2, %v14552_v21 }
 0x125   : > { %2674 = vmatpush1.bf16.msra.mxu0 %v13246_v26  ;;  %v1064_v25 = vrot.slane %v14558_v24, %v14555_v22 }
 0x126   : > { %2675 = vmatprep.subr.bf16.mxu0 %v13254_v27  ;;  %2770 = vmatpush1.bf16.msra.mxu1 %v13285_v36 }
 0x127   : > { %2771 = vmatprep.subr.bf16.mxu1 %v13293_v37 }
 0x129   : > { %2676 = vmatpush1.bf16.msra.mxu0 %v13252_v30 }
 0x12a   : > { %2677 = vmatprep.subr.bf16.mxu0 %v13260_v31  ;;  %2772 = vmatpush1.bf16.msra.mxu1 %v13291_v40 }
 0x12b   : > { %2773 = vmatprep.subr.bf16.mxu1 %v13299_v41 }
 0x12d   : > { %2678 = vmatpush1.bf16.msra.mxu0 %v13258_v33 }
 0x12e   : > { %2679 = vmatprep.subr.bf16.mxu0 %v13266_v35  ;;  %2774 = vmatpush1.bf16.msra.mxu1 %v13297_v44 }
 0x12f   : > { %2775 = vmatprep.subr.bf16.mxu1 %v13305_v45  ;;  %v14593_v45 = vsub.s32 0, %v14552_v21 }
 0x131   : > { %2680 = vmatpush1.bf16.msra.mxu0 %v13264_v38 }
 0x132   : > { %2681 = vmatprep.subr.bf16.mxu0 %v13272_v39  ;;  %2776 = vmatpush1.bf16.msra.mxu1 %v13303_v48 }
 0x133   : > { %2777 = vmatprep.subr.bf16.mxu1 %v13311_v49  ;;  %v1056_v49 = vrot.slane %v14558_v24, %v14593_v45 }
 0x135   : > { %2682 = vmatpush1.bf16.msra.mxu0 %v13270_v42 }
 0x136   : > { %2683 = vmatprep.subr.bf16.mxu0 %v13278_v43  ;;  %2778 = vmatpush1.bf16.msra.mxu1 %v13309_v52  ;;  %v14588_v43 = vsub.s32 4, %v14552_v21 }
 0x137   : > { %2790 = vmatprep.subr.bf16.mxu1 %v13317_v53 }
 0x138   : > { %v1072_v44 = vrot.slane %v14558_v24, %v14588_v43 }
 0x139   : > { %2684 = vmatpush1.bf16.msra.mxu0 %v13276_v46  ;;  %2780 = vmatmul.mubr.bf16.vlgmr.msra.gmra.mrb[8].mxu1 %v14303_v56 }
 0x13a   : > { %2685 = vmatprep.subr.bf16.mxu0 %v13284_v47  ;;  %2791 = vmatpush1.bf16.msra.mxu1 %v13315_v58 }
 0x13b   : > { %2792 = vmatprep.subr.bf16.mxu1 %v13323_v60  ;;  %2822 = vmatprep.mubr.bf16.mxu1 %v14063_v9 }
 0x13d   : > { %2686 = vmatpush1.bf16.msra.mxu0 %v13282_v50 }
 0x13e   : > { %2687 = vmatprep.subr.bf16.mxu0 %v13290_v51  ;;  %2793 = vmatpush1.bf16.msra.mxu1 %v13321_v2 }
 0x13f   : > { %2794 = vmatprep.subr.bf16.mxu1 %v13329_v3 }
 0x141   : > { %2688 = vmatpush1.bf16.msra.mxu0 %v13288_v54 }
 0x142   : > { %2689 = vmatprep.subr.bf16.mxu0 %v13296_v55  ;;  %2795 = vmatpush1.bf16.msra.mxu1 %v13327_v6 }
 0x143   : > { %2796 = vmatprep.subr.bf16.mxu1 %v13332_v7 }
 0x145   : > { %2690 = vmatpush1.bf16.msra.mxu0 %v13294_v63 }
 0x146   : > { %2691 = vmatprep.subr.bf16.mxu0 %v13302_v1  ;;  %2797 = vmatpush1.bf16.msra.mxu1 %v13330_v11 }
 0x147   : > { %12682 = vmatprep.subr.bf16.mxu1 %v14064_v19 }
 0x149   : > { %2692 = vmatpush1.bf16.msra.mxu0 %v13300_v4  ;;  %11505 = vmatmul.mubr.msk.bf16.vlgmr.msra.gmra.mrb[8].mxu1 %vm2313_vm1, %v14305_v57 }
 0x14a   : > { %2704 = vmatprep.subr.bf16.mxu0 %v13308_v5  ;;  %12684 = vmatprep.mubr.msk.bf16.mxu1 %vm14065_vm2, %v14064_v19 }
 0x14c   : > { %2694 = vmatmul.mubr.bf16.vlgmr.msra.gmra.mrb[12].mxu0 %v14303_v56  ;;  %v13324_v56 = vld [vmem:[%s14191_s24 + $0x740] ss:$48 sps:$4 sm:$0xff]  }
 0x14d   : > { %2705 = vmatpush1.bf16.msra.mxu0 %v13306_v8  ;;  %2736 = vmatprep.mubr.bf16.mxu0 %v14063_v9 }
 0x14e   : > { %2706 = vmatprep.subr.bf16.mxu0 %v13314_v10 }
 0x14f   : > { %v2394_v13 = vpop.f32.mrb[0].mxu0 }
 0x150   : > { %v14536_v15 = vpop.f32.mrb[1].mxu0  ;;  %v12784_v55 = vadd.f32 %v2394_v13, %v1056_v49 }
 0x151   : > { %v2398_v17 = vpop.f32.mrb[2].mxu0  ;;  %2707 = vmatpush1.bf16.msra.mxu0 %v13312_v12 }
 0x152   : > { %v14541_v18 = vpop.f32.mrb[3].mxu0  ;;  %2708 = vmatprep.subr.bf16.mxu0 %v13320_v23  ;;  %v12786_v58 = vadd.f32 %v2398_v17, %v1056_v49 }
 0x154   : > { %v12374_v60 = vpack.c.bf16 %v12786_v58, %v12786_v58 }
 0x155   : > { %2709 = vmatpush1.bf16.msra.mxu0 %v13318_v14  ;;  %v14617_v14 = vsub.s32 1, %v14552_v21 }
 0x156   : > { %2710 = vmatprep.subr.bf16.mxu0 %v13326_v16 }
 0x159   : > { %2711 = vmatpush1.bf16.msra.mxu0 %v13324_v56 }
 0x15a   : > { %12676 = vmatprep.subr.bf16.mxu0 %v14064_v19 }
 0x15c   : > { %11504 = vmatmul.mubr.msk.bf16.vlgmr.msra.gmra.mrb[12].mxu0 %vm2313_vm1, %v14305_v57  ;;  %v14561_v57 = vsub.s32 3, %v14552_v21 }
 0x15d   : > { %12678 = vmatprep.mubr.msk.bf16.mxu0 %vm14065_vm2, %v14064_v19 }
 0x15e   : > { %v1068_v26 = vrot.slane %v14558_v24, %v14561_v57 }
 0x18e   : > { %v14579_v39 = vpop.f32.mrb[4].mxu1 }
 0x18f   : > { %v2437_v27 = vpop.f32.mrb[4].mxu0  ;;  %v14581_v40 = vpop.f32.mrb[5].mxu1 }
 0x190   : > { %v2438_v28 = vadd.f32 %v2437_v27, %v1064_v25  ;;  %v2439_v29 = vpop.f32.mrb[5].mxu0  ;;  %v14583_v41 = vpop.f32.mrb[6].mxu1 }
 0x191   : > { %v2440_v30 = vadd.f32 %v2439_v29, %v1068_v26  ;;  %v2441_v31 = vpop.f32.mrb[6].mxu0  ;;  %v14585_v42 = vpop.f32.mrb[7].mxu1 }
 0x192   : > { %v2442_v32 = vadd.f32 %v2441_v31, %v1064_v25  ;;  %v14568_v33 = vadd.f32 %v14509_v59, %v2438_v28  ;;  %v2443_v34 = vpop.f32.mrb[7].mxu0  ;;  %v12373_v59 = vpack.c.bf16 %v12784_v55, %v12784_v55 }
 0x193   : > { %v2444_v35 = vadd.f32 %v2443_v34, %v1068_v26  ;;  %v14571_v36 = vadd.f32 %v14512_v61, %v2440_v30  ;;  %v1050_v61 = vld [vmem:[%s14196_s28 + $0x8] sm:$0xf]  ;;  %s15971_s28 = sld [smem:[#allocation9_spill]] }
 0x194   : > { %v14574_v37 = vadd.f32 %v14514_v62, %v2442_v32  ;;  %v1096_v62 = vrot.slane %v1050_v61, %v14555_v22  ;;  %v1100_v63 = vrot.slane %v1050_v61, %v14561_v57  ;;  %v1088_v17 = vrot.slane %v1050_v61, %v14593_v45 }
 0x195   : > { %v14577_v38 = vadd.f32 %v14517_v0, %v2444_v35  ;;  %v1092_v20 = vrot.slane %v1050_v61, %v14617_v14 }
 0x1df   : > { %v2566_v46 = vpop.f32.mrb[8].mxu0 }
 0x1e0   : > { %v12796_v47 = vadd.f32 %v2566_v46, %v1072_v44  ;;  %v14595_v48 = vpop.f32.mrb[9].mxu0 }
 0x1e1   : > { %v2570_v50 = vpop.f32.mrb[10].mxu0 }
 0x1e2   : > { %v12375_v51 = vpack.c.bf16 %v12796_v47, %v12796_v47  ;;  %v12798_v52 = vadd.f32 %v2570_v50, %v1072_v44  ;;  %v14599_v53 = vpop.f32.mrb[11].mxu0 }
 0x1e4   : > { %v12376_v54 = vpack.c.bf16 %v12798_v52, %v12798_v52  ;;  %12677 = vmatpush3.bf16.xpose.msra.mxu0 %v12375_v51 }
 0x1e5   : > { %12688 = vmatprep.subr.bf16.mxu0 %v14064_v19 }
 0x1e6   : > { %12683 = vmatpush3.bf16.xpose.msra.mxu1 %v12376_v54 }
 0x1e7   : > { %12694 = vmatprep.subr.bf16.mxu1 %v14064_v19 }
 0x1eb   : > { %12679 = vmatmul.mubr.bf16.vlgmr.msra.gmra.mrb[16].mxu0 %v12373_v59 }
 0x1ec   : > { %12690 = vmatprep.mubr.msk.bf16.mxu0 %vm14065_vm2, %v14064_v19 }
 0x1ed   : > { %12685 = vmatmul.mubr.bf16.vlgmr.msra.gmra.mrb[12].mxu1 %v12374_v60 }
 0x1ee   : > { %12696 = vmatprep.mubr.msk.bf16.mxu1 %vm14065_vm2, %v14064_v19 }
 0x21c   : > { %v2824_v0 = vpop.f32.mrb[8].mxu1 }
 0x21d   : > { %v12808_v1 = vadd.f32 %v2824_v0, %v1096_v62  ;;  %v2826_v2 = vpop.f32.mrb[9].mxu1 }
 0x21e   : > { %v12809_v3 = vadd.f32 %v2826_v2, %v1100_v63  ;;  %v2828_v4 = vpop.f32.mrb[10].mxu1 }
 0x21f   : > { %v12389_v5 = vpack.c.bf16 %v12808_v1, %v12808_v1  ;;  %v12810_v6 = vadd.f32 %v2828_v4, %v1096_v62  ;;  %v2830_v7 = vpop.f32.mrb[11].mxu1 }
 0x220   : > { %v12395_v8 = vpack.c.bf16 %v12809_v3, %v12809_v3  ;;  %v12811_v10 = vadd.f32 %v2830_v7, %v1100_v63 }
 0x221   : > { %v14611_v11 = vsel %vm2963_vm3, %v12389_v5, 0  ;;  %v12390_v12 = vpack.c.bf16 %v12810_v6, %v12810_v6 }
 0x222   : > { %v14614_v23 = vsel %vm2963_vm3, %v12395_v8, 0  ;;  %v12396_v13 = vpack.c.bf16 %v12811_v10, %v12811_v10 }
 0x223   : > { %v14620_v16 = vsel %vm2963_vm3, %v12390_v12, 0 }
 0x224   : > { %v14624_v56 = vsel %vm2963_vm3, %v12396_v13, 0 }
 0x22f   : > { %v2738_v25 = vpop.f32.mrb[12].mxu0 }
 0x230   : > { %v12804_v26 = vadd.f32 %v2738_v25, %v1088_v17  ;;  %v2740_v27 = vpop.f32.mrb[13].mxu0 }
 0x231   : > { %v12805_v28 = vadd.f32 %v2740_v27, %v1092_v20  ;;  %v2742_v29 = vpop.f32.mrb[14].mxu0 }
 0x232   : > { %v12377_v30 = vpack.c.bf16 %v12804_v26, %v12804_v26  ;;  %v12806_v31 = vadd.f32 %v2742_v29, %v1088_v17  ;;  %v2744_v32 = vpop.f32.mrb[15].mxu0  ;;  %v14642_v17 = vsub.s32 5, %v14552_v21  ;;  %v1060_v29 = vrot.slane %v14558_v24, %v14617_v14 }
 0x233   : > { %v12383_v34 = vpack.c.bf16 %v12805_v28, %v12805_v28  ;;  %v12807_v35 = vadd.f32 %v2744_v32, %v1092_v20 }
 0x234   : > { %v2965_v44 = vsel %vm2963_vm3, %v12377_v30, 0  ;;  %v12378_v46 = vpack.c.bf16 %v12806_v31, %v12806_v31  ;;  %v1076_v25 = vrot.slane %v14558_v24, %v14642_v17 }
 0x235   : > { %v14629_v47 = vsel %vm2963_vm3, %v12383_v34, 0  ;;  %v12384_v49 = vpack.c.bf16 %v12807_v35, %v12807_v35  ;;  %12689 = vmatpush3.bf16.msra.mxu0 %v2965_v44  ;;  %v12785_v44 = vadd.f32 %v14536_v15, %v1060_v29 }
 0x236   : > { %v3011_v50 = vsel %vm2963_vm3, %v12378_v46, 0  ;;  %12700 = vmatprep.subr.bf16.mxu0 %v14064_v19  ;;  %v12797_v27 = vadd.f32 %v14595_v48, %v1076_v25  ;;  %v12799_v34 = vadd.f32 %v14599_v53, %v1076_v25 }
 0x237   : > { %v14634_v51 = vsel %vm2963_vm3, %v12384_v49, 0  ;;  %12695 = vmatpush3.bf16.msra.mxu1 %v3011_v50  ;;  %v12379_v53 = vpack.c.bf16 %v12785_v44, %v12785_v44  ;;  %v12787_v49 = vadd.f32 %v14541_v18, %v1060_v29  ;;  %v14675_v29 = vsub.s32 6, %v14552_v21 }
 0x238   : > { %12706 = vmatprep.subr.bf16.mxu1 %v14064_v19  ;;  %v12381_v32 = vpack.c.bf16 %v12797_v27, %v12797_v27  ;;  %v12382_v48 = vpack.c.bf16 %v12799_v34, %v12799_v34 }
 0x239   : > { %v12380_v15 = vpack.c.bf16 %v12787_v49, %v12787_v49 }
 0x2be   : > { %v2889_v52 = vpop.f32.mrb[16].mxu0 }
 0x2bf   : > { %v12680_v54 = vpop.f32.mrb[17].mxu0  ;;  %v2936_v55 = vsel %vm2935_vm4, %v2889_v52, -inf }
 0x2c0   : > { %v2929_v58 = vpop.f32.mrb[12].mxu1  ;;  %2937 = vmax.xlane.f32.xlu0 %v2936_v55  ;;  %v2892_v59 = vpop.f32.mrb[18].mxu0 }
 0x2c1   : > { %v12681_v60 = vpop.f32.mrb[19].mxu0  ;;  %v12686_v61 = vpop.f32.mrb[13].mxu1  ;;  %v2939_v0 = vsel %vm2935_vm4, %v2929_v58, -inf }
 0x2c2   : > { %v2932_v62 = vpop.f32.mrb[14].mxu1 }
 0x2c3   : > { %v12687_v63 = vpop.f32.mrb[15].mxu1 }
 0x2c4   : > { %2940 = vmax.xlane.f32.xlu0 %v2939_v0 }
 0x34d   : > { %v2938_v1 = vpop.xlane.xlu0 %2937 }
 0x34e   : > { %v2942_v2 = vsub.f32 %v2889_v52, %v2938_v1 }
 0x350   : > { %v2944_v3 = vmul.f32 1.442695, %v2942_v2 }
 0x351   : > { %v2941_v4 = vpop.xlane.xlu0 %2940 }
 0x352   : > { %13973 = vpow2.f32 %v2944_v3  ;;  %v2943_v5 = vsub.f32 %v2929_v58, %v2941_v4 }
 0x354   : > { %v2946_v6 = vmul.f32 1.442695, %v2943_v5 }
 0x356   : > { %13975 = vpow2.f32 %v2946_v6 }
 0x35c   : > { %v13974_v7 = vpop.eup %13973 }
 0x35d   : > { %v2948_v8 = vsel %vm2935_vm4, %v13974_v7, 0.0 }
 0x35e   : > { %2949 = vadd.xlane.f32.xlu1 %v2948_v8 }
 0x360   : > { %v13976_v10 = vpop.eup %13975 }
 0x361   : > { %v2951_v12 = vsel %vm2935_vm4, %v13976_v10, 0.0 }
 0x362   : > { %2952 = vadd.xlane.f32.xlu1 %v2951_v12 }
 0x3eb   : > { %v2950_v13 = vpop.xlane.xlu1 %2949 }
 0x3ec   : > { %13977 = vrcp.f32 %v2950_v13 }
 0x3ef   : > { %v2953_v20 = vpop.xlane.xlu1 %2952 }
 0x3f0   : > { %13979 = vrcp.f32 %v2953_v20 }
 0x3f6   : > { %v13978_v26 = vpop.eup %13977 }
 0x3f7   : > { %v2956_v28 = vmul.f32 %v13978_v26, %v13974_v7 }
 0x3f9   : > { %v2958_v30 = vpack.c.bf16 %v2956_v28, %v2956_v28 }
 0x3fa   : > { %v13980_v31 = vpop.eup %13979 }
 0x3fb   : > { %v2957_v35 = vmul.f32 %v13980_v31, %v13976_v10  ;;  %12691 = vmatmul.mubr.msk.bf16.vlgmr.msra.gmra.mrb[20].mxu0 %vm2935_vm4, %v2958_v30  ;;  %v1080_v31 = vrot.slane %v14558_v24, %v14675_v29 }
 0x3fc   : > { %12701 = vmatpush3.bf16.xpose.msra.mxu0 %v12381_v32  ;;  %12702 = vmatprep.mubr.msk.bf16.mxu0 %vm14065_vm2, %v14064_v19 }
 0x3fd   : > { %v2959_v46 = vpack.c.bf16 %v2957_v35, %v2957_v35  ;;  %12712 = vmatprep.subr.bf16.mxu0 %v14064_v19  ;;  %v12800_v34 = vadd.f32 %v14579_v39, %v1080_v31  ;;  %v12385_v39 = vpack.c.bf16 %v14568_v33, %v14568_v33 }
 0x3ff   : > { %12697 = vmatmul.mubr.msk.bf16.vlgmr.msra.gmra.mrb[16].mxu1 %vm2935_vm4, %v2959_v46 }
 0x400   : > { %12707 = vmatpush3.bf16.xpose.msra.mxu1 %v12382_v48  ;;  %12708 = vmatprep.mubr.msk.bf16.mxu1 %vm14065_vm2, %v14064_v19  ;;  %v12387_v48 = vpack.c.bf16 %v12800_v34, %v12800_v34 }
 0x401   : > { %12718 = vmatprep.subr.bf16.mxu1 %v14064_v19 }
 0x403   : > { %12703 = vmatmul.mubr.bf16.vlgmr.msra.gmra.mrb[24].mxu0 %v12379_v53  ;;  %v12802_v53 = vadd.f32 %v14583_v41, %v1080_v31  ;;  %v12386_v41 = vpack.c.bf16 %v14574_v37, %v14574_v37 }
 0x404   : > { %12713 = vmatpush3.bf16.msra.mxu0 %v14629_v47  ;;  %12714 = vmatprep.mubr.msk.bf16.mxu0 %vm14065_vm2, %v14064_v19 }
 0x405   : > { %12724 = vmatprep.subr.bf16.mxu0 %v14064_v19 }
 0x407   : > { %12709 = vmatmul.mubr.bf16.vlgmr.msra.gmra.mrb[20].mxu1 %v12380_v15 }
 0x408   : > { %12719 = vmatpush3.bf16.msra.mxu1 %v14634_v51  ;;  %12720 = vmatprep.mubr.msk.bf16.mxu1 %vm14065_vm2, %v14064_v19 }
 0x409   : > { %12730 = vmatprep.subr.bf16.mxu1 %v14064_v19 }
 0x4ce   : > { %v3001_v18 = vpop.f32.mrb[20].mxu0 }
 0x4cf   : > { %v12692_v50 = vpop.f32.mrb[21].mxu0 }
 0x4d0   : > { %v3004_v52 = vpop.f32.mrb[22].mxu0 }
 0x4d1   : > { %v12693_v54 = vpop.f32.mrb[23].mxu0 }
 0x4d2   : > { %v3047_v55 = vpop.f32.mrb[16].mxu1 }
 0x4d3   : > { %v14668_v47 = vpack.c.bf16 %v3047_v55, %v3001_v18  ;;  %v12698_v58 = vpop.f32.mrb[17].mxu1  ;;  %v12388_v18 = vpack.c.bf16 %v12802_v53, %v12802_v53 }
 0x4d4   : > { %v3050_v59 = vpop.f32.mrb[18].mxu1 }
 0x4d5   : > { %v12699_v60 = vpop.f32.mrb[19].mxu1 }
 0x4d6   : > { %v3111_v61 = vpop.f32.mrb[24].mxu0 }
 0x4d7   : > { %v12704_v62 = vpop.f32.mrb[25].mxu0  ;;  %v3157_v63 = vsel %vm2935_vm4, %v3111_v61, -inf }
 0x4d8   : > { %3158 = vmax.xlane.f32.xlu0 %v3157_v63  ;;  %v3114_v51 = vpop.f32.mrb[26].mxu0 }
 0x4d9   : > { %v12705_v0 = vpop.f32.mrb[27].mxu0 }
 0x4da   : > { %v3151_v1 = vpop.f32.mrb[20].mxu1 }
 0x4db   : > { %v12710_v2 = vpop.f32.mrb[21].mxu1  ;;  %v3160_v3 = vsel %vm2935_vm4, %v3151_v1, -inf }
 0x4dc   : > { %3161 = vmax.xlane.f32.xlu1 %v3160_v3  ;;  %v3154_v4 = vpop.f32.mrb[22].mxu1 }
 0x4dd   : > { %v12711_v5 = vpop.f32.mrb[23].mxu1 }
 0x565   : > { %v3159_v6 = vpop.xlane.xlu0 %3158 }
 0x566   : > { %v3163_v7 = vsub.f32 %v3111_v61, %v3159_v6 }
 0x568   : > { %v3165_v8 = vmul.f32 1.442695, %v3163_v7 }
 0x569   : > { %v3162_v10 = vpop.xlane.xlu1 %3161 }
 0x56a   : > { %13981 = vpow2.f32 %v3165_v8  ;;  %v3164_v12 = vsub.f32 %v3151_v1, %v3162_v10 }
 0x56c   : > { %v3167_v13 = vmul.f32 1.442695, %v3164_v12 }
 0x56e   : > { %13983 = vpow2.f32 %v3167_v13 }
 0x574   : > { %v13982_v20 = vpop.eup %13981 }
 0x575   : > { %v3169_v25 = vsel %vm2935_vm4, %v13982_v20, 0.0 }
 0x576   : > { %3170 = vadd.xlane.f32.xlu0 %v3169_v25 }
 0x578   : > { %v13984_v26 = vpop.eup %13983 }
 0x579   : > { %v3172_v27 = vsel %vm2935_vm4, %v13984_v26, 0.0 }
 0x57a   : > { %3173 = vadd.xlane.f32.xlu1 %v3172_v27  ;;  %v14708_v27 = vsub.s32 7, %v14552_v21 }
 0x603   : > { %v3171_v28 = vpop.xlane.xlu0 %3170 }
 0x604   : > { %13985 = vrcp.f32 %v3171_v28 }
 0x607   : > { %v3174_v30 = vpop.xlane.xlu1 %3173 }
 0x608   : > { %13987 = vrcp.f32 %v3174_v30  ;;  %v1084_v30 = vrot.slane %v14558_v24, %v14708_v27 }
 0x60e   : > { %v13986_v32 = vpop.eup %13985 }
 0x60f   : > { %v3177_v35 = vmul.f32 %v13986_v32, %v13982_v20  ;;  %v12801_v32 = vadd.f32 %v14581_v40, %v1084_v30  ;;  %v12391_v40 = vpack.c.bf16 %v14571_v36, %v14571_v36 }
 0x611   : > { %v3179_v44 = vpack.c.bf16 %v3177_v35, %v3177_v35 }
 0x612   : > { %v13988_v46 = vpop.eup %13987 }
 0x613   : > { %v3178_v49 = vmul.f32 %v13988_v46, %v13984_v26  ;;  %12715 = vmatmul.mubr.msk.bf16.vlgmr.msra.gmra.mrb[28].mxu0 %vm2935_vm4, %v3179_v44  ;;  %v12393_v46 = vpack.c.bf16 %v12801_v32, %v12801_v32 }
 0x614   : > { %12725 = vmatpush3.bf16.xpose.msra.mxu0 %v12387_v48  ;;  %12726 = vmatprep.mubr.msk.bf16.mxu0 %vm14065_vm2, %v14064_v19  ;;  %v12803_v48 = vadd.f32 %v14585_v42, %v1084_v30  ;;  %v12392_v42 = vpack.c.bf16 %v14577_v38, %v14577_v38  ;;  %v13336_v30 = vld [vmem:[%s15971_s28 + $0x18] ss:$12 sps:$4 sm:$0xff]  }
 0x615   : > { %v3180_v15 = vpack.c.bf16 %v3178_v49, %v3178_v49  ;;  %12736 = vmatprep.subr.bf16.mxu0 %v14064_v19 }
 0x616   : > { %v12394_v24 = vpack.c.bf16 %v12803_v48, %v12803_v48  ;;  %v13344_v48 = vld [vmem:[%s15971_s28 + $0x4c] ss:$12 sps:$4 sm:$0xff]  }
 0x617   : > { %12721 = vmatmul.mubr.msk.bf16.vlgmr.msra.gmra.mrb[24].mxu1 %vm2935_vm4, %v3180_v15 }
 0x618   : > { %12731 = vmatpush3.bf16.xpose.msra.mxu1 %v12388_v18  ;;  %12732 = vmatprep.mubr.msk.bf16.mxu1 %vm14065_vm2, %v14064_v19 }
 0x619   : > { %12742 = vmatprep.subr.bf16.mxu1 %v14064_v19 }
 0x61b   : > { %12727 = vmatmul.mubr.bf16.vlgmr.msra.gmra.mrb[32].mxu0 %v12385_v39 }
 0x61c   : > { %12737 = vmatpush3.bf16.msra.mxu0 %v14611_v11  ;;  %12738 = vmatprep.mubr.msk.bf16.mxu0 %vm14065_vm2, %v14064_v19 }
 0x61d   : > { %12748 = vmatprep.subr.bf16.mxu0 %v14064_v19 }
 0x61f   : > { %12733 = vmatmul.mubr.bf16.vlgmr.msra.gmra.mrb[28].mxu1 %v12386_v41 }
 0x620   : > { %12743 = vmatpush3.bf16.msra.mxu1 %v14620_v16  ;;  %12744 = vmatprep.mubr.msk.bf16.mxu1 %vm14065_vm2, %v14064_v19 }
 0x621   : > { %12754 = vmatprep.subr.bf16.mxu1 %v14064_v19 }
 0x6e6   : > { %v3221_v33 = vpop.f32.mrb[28].mxu0 }
 0x6e7   : > { %v12716_v50 = vpop.f32.mrb[29].mxu0 }
 0x6e8   : > { %v3224_v52 = vpop.f32.mrb[30].mxu0 }
 0x6e9   : > { %v12717_v11 = vpop.f32.mrb[31].mxu0 }
 0x6ea   : > { %v3267_v54 = vpop.f32.mrb[24].mxu1 }
 0x6eb   : > { %v14701_v55 = vpack.c.bf16 %v3267_v54, %v3221_v33  ;;  %v12722_v58 = vpop.f32.mrb[25].mxu1 }
 0x6ec   : > { %v3270_v59 = vpop.f32.mrb[26].mxu1 }
 0x6ed   : > { %v12723_v37 = vpop.f32.mrb[27].mxu1 }
 0x6ee   : > { %v3331_v60 = vpop.f32.mrb[32].mxu0 }
 0x6ef   : > { %v12728_v61 = vpop.f32.mrb[33].mxu0  ;;  %v3377_v62 = vsel %vm2935_vm4, %v3331_v60, -inf }
 0x6f0   : > { %3378 = vmax.xlane.f32.xlu0 %v3377_v62  ;;  %v3334_v16 = vpop.f32.mrb[34].mxu0 }
 0x6f1   : > { %v12729_v63 = vpop.f32.mrb[35].mxu0 }
 0x6f2   : > { %v3371_v51 = vpop.f32.mrb[28].mxu1 }
 0x6f3   : > { %v12734_v0 = vpop.f32.mrb[29].mxu1  ;;  %v3380_v1 = vsel %vm2935_vm4, %v3371_v51, -inf }
 0x6f4   : > { %3381 = vmax.xlane.f32.xlu1 %v3380_v1  ;;  %v3374_v2 = vpop.f32.mrb[30].mxu1 }
 0x6f5   : > { %v12735_v3 = vpop.f32.mrb[31].mxu1 }
 0x77d   : > { %v3379_v4 = vpop.xlane.xlu0 %3378 }
 0x77e   : > { %v3383_v5 = vsub.f32 %v3331_v60, %v3379_v4 }
 0x780   : > { %v3385_v6 = vmul.f32 1.442695, %v3383_v5  ;;  %v13335_v5 = vld [vmem:[%s15971_s28 + $0x4] ss:$12 sps:$4 sm:$0xff]  }
 0x781   : > { %v3382_v7 = vpop.xlane.xlu1 %3381 }
 0x782   : > { %13989 = vpow2.f32 %v3385_v6  ;;  %v3384_v8 = vsub.f32 %v3371_v51, %v3382_v7  ;;  %v13408_v6 = vld [vmem:[%s15971_s28 + $0x248] ss:$12 sps:$4 sm:$0xff]  }
 0x784   : > { %v3387_v10 = vmul.f32 1.442695, %v3384_v8 }
 0x786   : > { %13991 = vpow2.f32 %v3387_v10 }
 0x78c   : > { %v13990_v12 = vpop.eup %13989 }
 0x78d   : > { %v3389_v13 = vsel %vm2935_vm4, %v13990_v12, 0.0 }
 0x78e   : > { %3390 = vadd.xlane.f32.xlu0 %v3389_v13  ;;  %v13333_v13 = vld [vmem:[%s15971_s28] ss:$12 sps:$4 sm:$0xff]  }
 0x790   : > { %v13992_v20 = vpop.eup %13991 }
 0x791   : > { %v3392_v25 = vsel %vm2935_vm4, %v13992_v20, 0.0 }
 0x792   : > { %3393 = vadd.xlane.f32.xlu1 %v3392_v25  ;;  %v13338_v25 = vld [vmem:[%s15971_s28 + $0x1c] ss:$12 sps:$4 sm:$0xff]  }
 0x81b   : > { %v3391_v26 = vpop.xlane.xlu0 %3390 }
 0x81c   : > { %13993 = vrcp.f32 %v3391_v26 }
 0x81f   : > { %v3394_v28 = vpop.xlane.xlu1 %3393 }
 0x820   : > { %13995 = vrcp.f32 %v3394_v28 }
 0x826   : > { %v13994_v31 = vpop.eup %13993 }
 0x827   : > { %v3397_v34 = vmul.f32 %v13994_v31, %v13990_v12  ;;  %v13409_v31 = vld [vmem:[%s15971_s28 + $0x188] ss:$12 sps:$4 sm:$0xff]  }
 0x829   : > { %v3399_v35 = vpack.c.bf16 %v3397_v34, %v3397_v34  ;;  %v13341_v34 = vld [vmem:[%s15971_s28 + $0x34] ss:$12 sps:$4 sm:$0xff]  }
 0x82a   : > { %v13996_v44 = vpop.eup %13995 }
 0x82b   : > { %v3398_v53 = vmul.f32 %v13996_v44, %v13992_v20  ;;  %12739 = vmatmul.mubr.msk.bf16.vlgmr.msra.gmra.mrb[36].mxu0 %vm2935_vm4, %v3399_v35  ;;  %v13413_v35 = vld [vmem:[%s15971_s28 + $0x260] ss:$12 sps:$4 sm:$0xff]   ;;  %v13339_v44 = vld [vmem:[%s15971_s28 + $0x30] ss:$12 sps:$4 sm:$0xff]  }
 0x82c   : > { %12749 = vmatpush3.bf16.xpose.msra.mxu0 %v12393_v46  ;;  %12750 = vmatprep.mubr.msk.bf16.mxu0 %vm14065_vm2, %v14064_v19  ;;  %v13414_v46 = vld [vmem:[%s15971_s28 + $0x1a0] ss:$12 sps:$4 sm:$0xff]  }
 0x82d   : > { %v3400_v21 = vpack.c.bf16 %v3398_v53, %v3398_v53  ;;  %12760 = vmatprep.subr.bf16.mxu0 %v14064_v19  ;;  %v13418_v53 = vld [vmem:[%s15971_s28 + $0x278] ss:$12 sps:$4 sm:$0xff]  }
 0x82f   : > { %12745 = vmatmul.mubr.msk.bf16.vlgmr.msra.gmra.mrb[32].mxu1 %vm2935_vm4, %v3400_v21  ;;  %v13342_v21 = vld [vmem:[%s15971_s28 + $0x48] ss:$12 sps:$4 sm:$0xff]  }
 0x830   : > { %12755 = vmatpush3.bf16.xpose.msra.mxu1 %v12394_v24  ;;  %12756 = vmatprep.mubr.msk.bf16.mxu1 %vm14065_vm2, %v14064_v19  ;;  %v13419_v24 = vld [vmem:[%s15971_s28 + $0x1b8] ss:$12 sps:$4 sm:$0xff]  }
 0x831   : > { %12766 = vmatprep.subr.bf16.mxu1 %v14064_v19 }
 0x833   : > { %12751 = vmatmul.mubr.bf16.vlgmr.msra.gmra.mrb[40].mxu0 %v12391_v40  ;;  %v13347_v40 = vld [vmem:[%s15971_s28 + $0x64] ss:$12 sps:$4 sm:$0xff]  }
 0x834   : > { %12761 = vmatpush3.bf16.msra.mxu0 %v14614_v23  ;;  %12762 = vmatprep.mubr.msk.bf16.mxu0 %vm14065_vm2, %v14064_v19 }
 0x835   : > { %4376 = vmatprep.subr.bf16.mxu0 %v13335_v5  ;;  %v13383_v5 = vld [vmem:[%s15971_s28 + $0x184] ss:$12 sps:$4 sm:$0xff]  }
 0x837   : > { %12757 = vmatmul.mubr.bf16.vlgmr.msra.gmra.mrb[36].mxu1 %v12392_v42  ;;  %v13423_v42 = vld [vmem:[%s15971_s28 + $0x290] ss:$12 sps:$4 sm:$0xff]  }
 0x838   : > { %12767 = vmatpush3.bf16.msra.mxu1 %v14624_v56  ;;  %12768 = vmatprep.mubr.msk.bf16.mxu1 %vm14065_vm2, %v14064_v19 }
 0x839   : > { %12451 = vmatprep.subr.bf16.mxu1 %v13408_v6  ;;  %v13381_v6 = vld [vmem:[%s15971_s28 + $0x180] ss:$12 sps:$4 sm:$0xff]  }
 0x8fe   : > { %v3441_v49 = vpop.f32.mrb[36].mxu0 }
 0x8ff   : > { %v12740_v15 = vpop.f32.mrb[37].mxu0 }
 0x900   : > { %v3444_v36 = vpop.f32.mrb[38].mxu0  ;;  %v13424_v15 = vld [vmem:[%s15971_s28 + $0x1d0] ss:$12 sps:$4 sm:$0xff]  }
 0x901   : > { %v12741_v18 = vpop.f32.mrb[39].mxu0  ;;  %v13350_v36 = vld [vmem:[%s15971_s28 + $0x7c] ss:$12 sps:$4 sm:$0xff]  }
 0x902   : > { %v3487_v39 = vpop.f32.mrb[32].mxu1  ;;  %v13428_v18 = vld [vmem:[%s15971_s28 + $0x2a8] ss:$12 sps:$4 sm:$0xff]  }
 0x903   : > { %v14732_v41 = vpack.c.bf16 %v3487_v39, %v3441_v49  ;;  %v12746_v23 = vpop.f32.mrb[33].mxu1  ;;  %v13345_v49 = vld [vmem:[%s15971_s28 + $0x60] ss:$12 sps:$4 sm:$0xff]   ;;  %v13348_v39 = vld [vmem:[%s15971_s28 + $0x78] ss:$12 sps:$4 sm:$0xff]  }
 0x904   : > { %v3490_v33 = vpop.f32.mrb[34].mxu1  ;;  %v13429_v23 = vld [vmem:[%s15971_s28 + $0x1e8] ss:$12 sps:$4 sm:$0xff]  }
 0x905   : > { %v12747_v50 = vpop.f32.mrb[35].mxu1  ;;  %v13353_v33 = vld [vmem:[%s15971_s28 + $0x94] ss:$12 sps:$4 sm:$0xff]  }
 0x906   : > { %v3551_v52 = vpop.f32.mrb[40].mxu0  ;;  %v13433_v50 = vld [vmem:[%s15971_s28 + $0x2c0] ss:$12 sps:$4 sm:$0xff]  }
 0x907   : > { %v12752_v11 = vpop.f32.mrb[41].mxu0  ;;  %v3597_v38 = vsel %vm2935_vm4, %v3551_v52, -inf }
 0x908   : > { %3598 = vmax.xlane.f32.xlu0 %v3597_v38  ;;  %v3554_v54 = vpop.f32.mrb[42].mxu0  ;;  %v13434_v11 = vld [vmem:[%s15971_s28 + $0x200] ss:$12 sps:$4 sm:$0xff]  }
 0x909   : > { %v12753_v56 = vpop.f32.mrb[43].mxu0  ;;  %v13356_v38 = vld [vmem:[%s15971_s28 + $0xac] ss:$12 sps:$4 sm:$0xff]   ;;  %v13354_v54 = vld [vmem:[%s15971_s28 + $0xa8] ss:$12 sps:$4 sm:$0xff]  }
 0x90a   : > { %v3591_v58 = vpop.f32.mrb[36].mxu1  ;;  %v13359_v56 = vld [vmem:[%s15971_s28 + $0xc4] ss:$12 sps:$4 sm:$0xff]  }
 0x90b   : > { %v12758_v59 = vpop.f32.mrb[37].mxu1  ;;  %v3600_v19 = vsel %vm2935_vm4, %v3591_v58, -inf }
 0x90c   : > { %3601 = vmax.xlane.f32.xlu1 %v3600_v19  ;;  %v3594_v37 = vpop.f32.mrb[38].mxu1  ;;  %v13362_v59 = vld [vmem:[%s15971_s28 + $0xdc] ss:$12 sps:$4 sm:$0xff]   ;;  %v13360_v19 = vld [vmem:[%s15971_s28 + $0xd8] ss:$12 sps:$4 sm:$0xff]  }
 0x90d   : > { %v12759_v60 = vpop.f32.mrb[39].mxu1  ;;  %v13365_v37 = vld [vmem:[%s15971_s28 + $0xf4] ss:$12 sps:$4 sm:$0xff]  }
 0x90e   : > { %v13363_v60 = vld [vmem:[%s15971_s28 + $0xf0] ss:$12 sps:$4 sm:$0xff]  }
 0x995   : > { %v3599_v61 = vpop.xlane.xlu0 %3598 }
 0x996   : > { %v3603_v62 = vsub.f32 %v3551_v52, %v3599_v61  ;;  %v13351_v52 = vld [vmem:[%s15971_s28 + $0x90] ss:$12 sps:$4 sm:$0xff]   ;;  %v13368_v61 = vld [vmem:[%s15971_s28 + $0x10c] ss:$12 sps:$4 sm:$0xff]  }
 0x998   : > { %v3605_v16 = vmul.f32 1.442695, %v3603_v62  ;;  %v13366_v62 = vld [vmem:[%s15971_s28 + $0x108] ss:$12 sps:$4 sm:$0xff]  }
 0x999   : > { %v3602_v63 = vpop.xlane.xlu1 %3601 }
 0x99a   : > { %13997 = vpow2.f32 %v3605_v16  ;;  %v3604_v51 = vsub.f32 %v3591_v58, %v3602_v63  ;;  %v13357_v58 = vld [vmem:[%s15971_s28 + $0xc0] ss:$12 sps:$4 sm:$0xff]   ;;  %v13371_v16 = vld [vmem:[%s15971_s28 + $0x124] ss:$12 sps:$4 sm:$0xff]  }
 0x99b   : > { %v13369_v63 = vld [vmem:[%s15971_s28 + $0x120] ss:$12 sps:$4 sm:$0xff]  }
 0x99c   : > { %v3607_v0 = vmul.f32 1.442695, %v3604_v51  ;;  %v13374_v51 = vld [vmem:[%s15971_s28 + $0x13c] ss:$12 sps:$4 sm:$0xff]  }
 0x99e   : > { %13999 = vpow2.f32 %v3607_v0  ;;  %v13372_v0 = vld [vmem:[%s15971_s28 + $0x138] ss:$12 sps:$4 sm:$0xff]  }
 0x9a4   : > { %v13998_v1 = vpop.eup %13997 }
 0x9a5   : > { %v3609_v2 = vsel %vm2935_vm4, %v13998_v1, 0.0 }
 0x9a6   : > { %3610 = vadd.xlane.f32.xlu0 %v3609_v2  ;;  %v13375_v2 = vld [vmem:[%s15971_s28 + $0x150] ss:$12 sps:$4 sm:$0xff]  }
 0x9a8   : > { %v14000_v3 = vpop.eup %13999 }
 0x9a9   : > { %v3612_v4 = vsel %vm2935_vm4, %v14000_v3, 0.0 }
 0x9aa   : > { %3613 = vadd.xlane.f32.xlu1 %v3612_v4  ;;  %v13378_v4 = vld [vmem:[%s15971_s28 + $0x168] ss:$12 sps:$4 sm:$0xff]  }
 0xa33   : > { %v3611_v7 = vpop.xlane.xlu0 %3610 }
 0xa34   : > { %14001 = vrcp.f32 %v3611_v7  ;;  %v13386_v7 = vld [vmem:[%s15971_s28 + $0x19c] ss:$12 sps:$4 sm:$0xff]  }
 0xa37   : > { %v3614_v8 = vpop.xlane.xlu1 %3613 }
 0xa38   : > { %14003 = vrcp.f32 %v3614_v8  ;;  %v13384_v8 = vld [vmem:[%s15971_s28 + $0x198] ss:$12 sps:$4 sm:$0xff]  }
 0xa3e   : > { %v14002_v10 = vpop.eup %14001 }
 0xa3f   : > { %v3617_v12 = vmul.f32 %v14002_v10, %v13998_v1  ;;  %v13377_v1 = vld [vmem:[%s15971_s28 + $0x154] ss:$12 sps:$4 sm:$0xff]  }
 0xa40   : > { %v13389_v10 = vld [vmem:[%s15971_s28 + $0x1b4] ss:$12 sps:$4 sm:$0xff]  }
 0xa41   : > { %v3619_v20 = vpack.c.bf16 %v3617_v12, %v3617_v12  ;;  %v13387_v12 = vld [vmem:[%s15971_s28 + $0x1b0] ss:$12 sps:$4 sm:$0xff]  }
 0xa42   : > { %v14004_v26 = vpop.eup %14003 }
 0xa43   : > { %v3618_v28 = vmul.f32 %v14004_v26, %v14000_v3  ;;  %12763 = vmatmul.mubr.msk.bf16.vlgmr.msra.gmra.mrb[44].mxu0 %vm2935_vm4, %v3619_v20  ;;  %v13380_v3 = vld [vmem:[%s15971_s28 + $0x16c] ss:$12 sps:$4 sm:$0xff]   ;;  %v13390_v20 = vld [vmem:[%s15971_s28 + $0x1c8] ss:$12 sps:$4 sm:$0xff]  }
 0xa44   : > { %4377 = vmatpush1.bf16.msra.mxu0 %v13333_v13  ;;  %4408 = vmatprep.mubr.bf16.mxu0 %v14701_v55  ;;  %v13392_v13 = vld [vmem:[%s15971_s28 + $0x1cc] ss:$12 sps:$4 sm:$0xff]  }
 0xa45   : > { %4378 = vmatprep.subr.bf16.mxu0 %v13338_v25  ;;  %v3620_v32 = vpack.c.bf16 %v3618_v28, %v3618_v28  ;;  %v13395_v25 = vld [vmem:[%s15971_s28 + $0x1e4] ss:$12 sps:$4 sm:$0xff]   ;;  %v13393_v26 = vld [vmem:[%s15971_s28 + $0x1e0] ss:$12 sps:$4 sm:$0xff]   ;;  %v13398_v28 = vld [vmem:[%s15971_s28 + $0x1fc] ss:$12 sps:$4 sm:$0xff]  }
 0xa47   : > { %12769 = vmatmul.mubr.msk.bf16.vlgmr.msra.gmra.mrb[40].mxu1 %vm2935_vm4, %v3620_v32  ;;  %v13438_v32 = vld [vmem:[%s15971_s28 + $0x2d8] ss:$12 sps:$4 sm:$0xff]  }
 0xa48   : > { %4379 = vmatpush1.bf16.msra.mxu0 %v13336_v30  ;;  %12452 = vmatpush3.bf16.msra.mxu1 %v13409_v31  ;;  %v13396_v30 = vld [vmem:[%s15971_s28 + $0x1f8] ss:$12 sps:$4 sm:$0xff]   ;;  %v13401_v31 = vld [vmem:[%s15971_s28 + $0x214] ss:$12 sps:$4 sm:$0xff]  }
 0xa49   : > { %4380 = vmatprep.subr.bf16.mxu0 %v13341_v34  ;;  %12453 = vmatprep.subr.bf16.mxu1 %v13413_v35  ;;  %v13439_v34 = vld [vmem:[%s15971_s28 + $0x218] ss:$12 sps:$4 sm:$0xff]   ;;  %v13399_v35 = vld [vmem:[%s15971_s28 + $0x210] ss:$12 sps:$4 sm:$0xff]  }
 0xa4c   : > { %4381 = vmatpush1.bf16.msra.mxu0 %v13339_v44  ;;  %12454 = vmatpush3.bf16.msra.mxu1 %v13414_v46  ;;  %v13404_v44 = vld [vmem:[%s15971_s28 + $0x22c] ss:$12 sps:$4 sm:$0xff]   ;;  %v13443_v46 = vld [vmem:[%s15971_s28 + $0x2f0] ss:$12 sps:$4 sm:$0xff]  }
 0xa4d   : > { %4382 = vmatprep.subr.bf16.mxu0 %v13344_v48  ;;  %12455 = vmatprep.subr.bf16.mxu1 %v13418_v53  ;;  %v13444_v48 = vld [vmem:[%s15971_s28 + $0x230] ss:$12 sps:$4 sm:$0xff]   ;;  %v13402_v53 = vld [vmem:[%s15971_s28 + $0x228] ss:$12 sps:$4 sm:$0xff]  }
 0xa50   : > { %4383 = vmatpush1.bf16.msra.mxu0 %v13342_v21  ;;  %12456 = vmatpush3.bf16.msra.mxu1 %v13419_v24  ;;  %v13407_v21 = vld [vmem:[%s15971_s28 + $0x244] ss:$12 sps:$4 sm:$0xff]   ;;  %v13405_v24 = vld [vmem:[%s15971_s28 + $0x240] ss:$12 sps:$4 sm:$0xff]  }
 0xa51   : > { %4384 = vmatprep.subr.bf16.mxu0 %v13347_v40  ;;  %12457 = vmatprep.subr.bf16.mxu1 %v13423_v42  ;;  %v13412_v40 = vld [vmem:[%s15971_s28 + $0x25c] ss:$12 sps:$4 sm:$0xff]   ;;  %v13410_v42 = vld [vmem:[%s15971_s28 + $0x258] ss:$12 sps:$4 sm:$0xff]  }
 0xa54   : > { %4385 = vmatpush1.bf16.msra.mxu0 %v13345_v49  ;;  %12458 = vmatpush3.bf16.msra.mxu1 %v13424_v15  ;;  %v13417_v49 = vld [vmem:[%s15971_s28 + $0x274] ss:$12 sps:$4 sm:$0xff]   ;;  %v13415_v15 = vld [vmem:[%s15971_s28 + $0x270] ss:$12 sps:$4 sm:$0xff]  }
 0xa55   : > { %4386 = vmatprep.subr.bf16.mxu0 %v13350_v36  ;;  %12459 = vmatprep.subr.bf16.mxu1 %v13428_v18  ;;  %v13422_v36 = vld [vmem:[%s15971_s28 + $0x28c] ss:$12 sps:$4 sm:$0xff]   ;;  %v13420_v18 = vld [vmem:[%s15971_s28 + $0x288] ss:$12 sps:$4 sm:$0xff]  }
 0xa58   : > { %4387 = vmatpush1.bf16.msra.mxu0 %v13348_v39  ;;  %12460 = vmatpush3.bf16.msra.mxu1 %v13429_v23  ;;  %v13427_v39 = vld [vmem:[%s15971_s28 + $0x2a4] ss:$12 sps:$4 sm:$0xff]   ;;  %v13425_v23 = vld [vmem:[%s15971_s28 + $0x2a0] ss:$12 sps:$4 sm:$0xff]  }
 0xa59   : > { %4388 = vmatprep.subr.bf16.mxu0 %v13353_v33  ;;  %12461 = vmatprep.subr.bf16.mxu1 %v13433_v50  ;;  %v13432_v33 = vld [vmem:[%s15971_s28 + $0x2bc] ss:$12 sps:$4 sm:$0xff]   ;;  %v13430_v50 = vld [vmem:[%s15971_s28 + $0x2b8] ss:$12 sps:$4 sm:$0xff]  }
 0xa5c   : > { %4389 = vmatpush1.bf16.msra.mxu0 %v13351_v52  ;;  %12462 = vmatpush3.bf16.msra.mxu1 %v13434_v11  ;;  %v13437_v52 = vld [vmem:[%s15971_s28 + $0x2d4] ss:$12 sps:$4 sm:$0xff]   ;;  %v13435_v11 = vld [vmem:[%s15971_s28 + $0x2d0] ss:$12 sps:$4 sm:$0xff]  }
 0xa5d   : > { %4390 = vmatprep.subr.bf16.mxu0 %v13356_v38  ;;  %12463 = vmatprep.subr.bf16.mxu1 %v13438_v32  ;;  %v13442_v38 = vld [vmem:[%s15971_s28 + $0x2ec] ss:$12 sps:$4 sm:$0xff]  }
 0xa60   : > { %4391 = vmatpush1.bf16.msra.mxu0 %v13354_v54  ;;  %12464 = vmatpush3.bf16.msra.mxu1 %v13439_v34  ;;  %v13440_v54 = vld [vmem:[%s15971_s28 + $0x2e8] ss:$12 sps:$4 sm:$0xff]  }
 0xa61   : > { %4392 = vmatprep.subr.bf16.mxu0 %v13359_v56  ;;  %12465 = vmatprep.subr.bf16.mxu1 %v13443_v46  ;;  %v13445_v56 = vld [vmem:[%s15971_s28 + $0xc8] ss:$12 sps:$4 sm:$0xff]   ;;  %v3847_v46 = vld [vmem:[%s743_s27] sm:$0x7] }
 0xa64   : > { %4393 = vmatpush1.bf16.msra.mxu0 %v13357_v58  ;;  %12466 = vmatpush3.bf16.msra.mxu1 %v13444_v48  ;;  %v3852_v48 = vrot.slane %v3847_v46, %v14593_v45 }
 0xa65   : > { %4394 = vmatprep.subr.bf16.mxu0 %v13362_v59 }
 0xa68   : > { %4395 = vmatpush1.bf16.msra.mxu0 %v13360_v19 }
 0xa69   : > { %4396 = vmatprep.subr.bf16.mxu0 %v13365_v37 }
 0xa6c   : > { %4397 = vmatpush1.bf16.msra.mxu0 %v13363_v60 }
 0xa6d   : > { %4398 = vmatprep.subr.bf16.mxu0 %v13368_v61 }
 0xa70   : > { %4399 = vmatpush1.bf16.msra.mxu0 %v13366_v62 }
 0xa71   : > { %4400 = vmatprep.subr.bf16.mxu0 %v13371_v16  ;;  %v13446_v16 = vld [vmem:[%s15971_s28 + $0x8] ss:$12 sps:$4 sm:$0xff]  }
 0xa74   : > { %4401 = vmatpush1.bf16.msra.mxu0 %v13369_v63 }
 0xa75   : > { %4402 = vmatprep.subr.bf16.mxu0 %v13374_v51  ;;  %v13447_v51 = vld [vmem:[%s15971_s28 + $0xe0] ss:$12 sps:$4 sm:$0xff]  }
 0xa78   : > { %4403 = vmatpush1.bf16.msra.mxu0 %v13372_v0 }
 0xa79   : > { %4404 = vmatprep.subr.bf16.mxu0 %v13377_v1  ;;  %v13448_v1 = vld [vmem:[%s15971_s28 + $0x20] ss:$12 sps:$4 sm:$0xff]  }
 0xa7c   : > { %4405 = vmatpush1.bf16.msra.mxu0 %v13375_v2  ;;  %v13449_v2 = vld [vmem:[%s15971_s28 + $0xf8] ss:$12 sps:$4 sm:$0xff]  }
 0xa7d   : > { %4406 = vmatprep.subr.bf16.mxu0 %v13380_v3  ;;  %v13450_v3 = vld [vmem:[%s15971_s28 + $0x38] ss:$12 sps:$4 sm:$0xff]  }
 0xa80   : > { %4407 = vmatpush1.bf16.msra.mxu0 %v13378_v4  ;;  %v13451_v4 = vld [vmem:[%s15971_s28 + $0x110] ss:$12 sps:$4 sm:$0xff]  }
 0xa81   : > { %4419 = vmatprep.subr.bf16.mxu0 %v13383_v5  ;;  %v13452_v5 = vld [vmem:[%s15971_s28 + $0x50] ss:$12 sps:$4 sm:$0xff]  }
 0xa83   : > { %4409 = vmatmul.mubr.bf16.vlgmr.msra.gmra.mrb[48].mxu0 %v14668_v47 }
 0xa84   : > { %4420 = vmatpush1.bf16.msra.mxu0 %v13381_v6  ;;  %v13454_v6 = vld [vmem:[%s15971_s28 + $0x68] ss:$12 sps:$4 sm:$0xff]  }
 0xa85   : > { %4421 = vmatprep.subr.bf16.mxu0 %v13386_v7  ;;  %v13456_v7 = vld [vmem:[%s15971_s28 + $0x80] ss:$12 sps:$4 sm:$0xff]  }
 0xa88   : > { %4422 = vmatpush1.bf16.msra.mxu0 %v13384_v8  ;;  %v13457_v8 = vld [vmem:[%s15971_s28 + $0x158] ss:$12 sps:$4 sm:$0xff]  }
 0xa89   : > { %4423 = vmatprep.subr.bf16.mxu0 %v13389_v10  ;;  %v13458_v10 = vld [vmem:[%s15971_s28 + $0x98] ss:$12 sps:$4 sm:$0xff]  }
 0xa8c   : > { %4424 = vmatpush1.bf16.msra.mxu0 %v13387_v12  ;;  %v13459_v12 = vld [vmem:[%s15971_s28 + $0x170] ss:$12 sps:$4 sm:$0xff]  }
 0xa8d   : > { %4425 = vmatprep.subr.bf16.mxu0 %v13392_v13  ;;  %v13460_v13 = vld [vmem:[%s15971_s28 + $0xb0] ss:$12 sps:$4 sm:$0xff]  }
 0xa90   : > { %4426 = vmatpush1.bf16.msra.mxu0 %v13390_v20 }
 0xa91   : > { %4427 = vmatprep.subr.bf16.mxu0 %v13395_v25 }
 0xa94   : > { %4428 = vmatpush1.bf16.msra.mxu0 %v13393_v26 }
 0xa95   : > { %4429 = vmatprep.subr.bf16.mxu0 %v13398_v28 }
 0xa98   : > { %4430 = vmatpush1.bf16.msra.mxu0 %v13396_v30 }
 0xa99   : > { %4431 = vmatprep.subr.bf16.mxu0 %v13401_v31 }
 0xa9c   : > { %4432 = vmatpush1.bf16.msra.mxu0 %v13399_v35 }
 0xa9d   : > { %4433 = vmatprep.subr.bf16.mxu0 %v13404_v44 }
 0xaa0   : > { %4434 = vmatpush1.bf16.msra.mxu0 %v13402_v53  ;;  %v3856_v53 = vrot.slane %v3847_v46, %v14617_v14 }
 0xaa1   : > { %4435 = vmatprep.subr.bf16.mxu0 %v13407_v21  ;;  %v3860_v21 = vrot.slane %v3847_v46, %v14555_v22 }
 0xaa4   : > { %4436 = vmatpush1.bf16.msra.mxu0 %v13405_v24 }
 0xaa5   : > { %4437 = vmatprep.subr.bf16.mxu0 %v13412_v40 }
 0xaa8   : > { %4438 = vmatpush1.bf16.msra.mxu0 %v13410_v42 }
 0xaa9   : > { %4439 = vmatprep.subr.bf16.mxu0 %v13417_v49 }
 0xaac   : > { %4440 = vmatpush1.bf16.msra.mxu0 %v13415_v15 }
 0xaad   : > { %4441 = vmatprep.subr.bf16.mxu0 %v13422_v36 }
 0xab0   : > { %4442 = vmatpush1.bf16.msra.mxu0 %v13420_v18 }
 0xab1   : > { %4443 = vmatprep.subr.bf16.mxu0 %v13427_v39 }
 0xab4   : > { %4444 = vmatpush1.bf16.msra.mxu0 %v13425_v23 }
 0xab5   : > { %4445 = vmatprep.subr.bf16.mxu0 %v13432_v33 }
 0xab8   : > { %4446 = vmatpush1.bf16.msra.mxu0 %v13430_v50  ;;  %v14013_v50 = vld [vmem:[#allocation2] sm:$0xff] }
 0xab9   : > { %4447 = vmatprep.subr.bf16.mxu0 %v13437_v52 }
 0xabc   : > { %4448 = vmatpush1.bf16.msra.mxu0 %v13435_v11  ;;  %v14014_v11 = vld [vmem:[#allocation2 + $0x8] sm:$0xff] }
 0xabd   : > { %4449 = vmatprep.subr.bf16.mxu0 %v13442_v38 }
 0xac0   : > { %4450 = vmatpush1.bf16.msra.mxu0 %v13440_v54 }
 0xac1   : > { %12429 = vmatprep.subr.bf16.mxu0 %v13445_v56 }
 0xb16   : > { %v3661_v58 = vpop.f32.mrb[44].mxu0 }
 0xb17   : > { %v12764_v59 = vpop.f32.mrb[45].mxu0 }
 0xb18   : > { %v3664_v19 = vpop.f32.mrb[46].mxu0 }
 0xb19   : > { %v12765_v37 = vpop.f32.mrb[47].mxu0  ;;  %v14016_v19 = vld [vmem:[#allocation2 + $0x20] sm:$0xff] }
 0xb1a   : > { %v3707_v60 = vpop.f32.mrb[40].mxu1 }
 0xb1b   : > { %v3713_v61 = vpack.c.bf16 %v3707_v60, %v3661_v58  ;;  %v12770_v62 = vpop.f32.mrb[41].mxu1  ;;  %v14015_v58 = vld [vmem:[#allocation2 + $0x18] sm:$0xff] }
 0xb1c   : > { %v3710_v63 = vpop.f32.mrb[42].mxu1 }
 0xb1d   : > { %v12771_v0 = vpop.f32.mrb[43].mxu1  ;;  %4451 = vmatprep.mubr.bf16.mxu0 %v3713_v61  ;;  %4535 = vmatprep.mubr.bf16.mxu1 %v3713_v61  ;;  %v14017_v61 = vld [vmem:[#allocation2 + $0x10] sm:$0xff] }
 0xb1e   : > { %4452 = vmatmul.mubr.bf16.vlgmr.msra.gmra.mrb[48].mxu0 %v14732_v41  ;;  %4536 = vmatmul.mubr.bf16.vlgmr.msra.gmra.mrb[44].mxu1 %v14732_v41  ;;  %v13453_v41 = vld [vmem:[%s15971_s28 + $0x128] ss:$12 sps:$4 sm:$0xff]  }
 0xb1f   : > { %12430 = vmatpush3.bf16.msra.mxu0 %v13446_v16  ;;  %4494 = vmatprep.mubr.bf16.mxu0 %v14701_v55  ;;  %v13455_v55 = vld [vmem:[%s15971_s28 + $0x140] ss:$12 sps:$4 sm:$0xff]  }
 0xb20   : > { %12431 = vmatprep.subr.bf16.mxu0 %v13447_v51  ;;  %v14018_v51 = vld [vmem:[#allocation2 + $0x28] sm:$0xff] }
 0xb23   : > { %12432 = vmatpush3.bf16.msra.mxu0 %v13448_v1 }
 0xb24   : > { %12433 = vmatprep.subr.bf16.mxu0 %v13449_v2 }
 0xb27   : > { %12434 = vmatpush3.bf16.msra.mxu0 %v13450_v3 }
 0xb28   : > { %12435 = vmatprep.subr.bf16.mxu0 %v13451_v4 }
 0xb2b   : > { %12436 = vmatpush3.bf16.msra.mxu0 %v13452_v5  ;;  %v4646_v5 = vld [vmem:[%s14228_s19] sm:$0xff] }
 0xb2c   : > { %12437 = vmatprep.subr.bf16.mxu0 %v13453_v41  ;;  %v4654_v41 = vld [vmem:[%s14228_s19 + $0x40] sm:$0xff] }
 0xb2f   : > { %12438 = vmatpush3.bf16.msra.mxu0 %v13454_v6  ;;  %v4647_v6 = vld [vmem:[%s14228_s19 + $0x8] sm:$0xff] }
 0xb30   : > { %12439 = vmatprep.subr.bf16.mxu0 %v13455_v55  ;;  %v11634_v55 = vcombine.low %v4646_v5, %v4654_v41 }
 0xb33   : > { %12440 = vmatpush3.bf16.msra.mxu0 %v13456_v7  ;;  %v11635_v7 = vcombine.high %v4646_v5, %v4654_v41  ;;  %v4751_v5 = vld [vmem:[%s14228_s19 + $0x348] sm:$0xff] }
 0xb34   : > { %12441 = vmatprep.subr.bf16.mxu0 %v13457_v8  ;;  %v4655_v8 = vld [vmem:[%s14228_s19 + $0x48] sm:$0xff] }
 0xb35   : > { %6653 = vmatprep.subr.bf16.mxu1 %v11635_v7 }
 0xb36   : > { %6654 = vmatpush1.bf16.msra.mxu1 %v11634_v55 }
 0xb37   : > { %12442 = vmatpush3.bf16.msra.mxu0 %v13458_v10  ;;  %v4662_v10 = vld [vmem:[%s14228_s19 + $0x80] sm:$0xff] }
 0xb38   : > { %12443 = vmatprep.subr.bf16.mxu0 %v13459_v12  ;;  %v4670_v12 = vld [vmem:[%s14228_s19 + $0xc0] sm:$0xff] }
 0xb3b   : > { %12444 = vmatpush3.bf16.msra.mxu0 %v13460_v13  ;;  %v11636_v13 = vcombine.low %v4647_v6, %v4655_v8 }
 0xb3e   : > { %4495 = vmatmul.mubr.bf16.vlgmr.msra.gmra.mrb[52].mxu0 %v14668_v47 }
 0xbf1   : > { %v4453_v20 = vpop.f32.mrb[48].mxu0  ;;  %v12467_v25 = vpop.f32.mrb[44].mxu1 }
 0xbf2   : > { %v4455_v26 = vpop.f32.mrb[49].mxu0  ;;  %v12468_v28 = vpop.f32.mrb[45].mxu1  ;;  %v12812_v24 = vadd.f32 %v4453_v20, %v3852_v48  ;;  %v11637_v20 = vcombine.high %v4647_v6, %v4655_v8  ;;  %v4758_v8 = vld [vmem:[%s14228_s19 + $0x380] sm:$0xff] }
 0xbf3   : > { %v12469_v30 = vadd.f32 %v12468_v28, %v12467_v25  ;;  %v4457_v31 = vpop.f32.mrb[50].mxu0  ;;  %v12470_v32 = vpop.f32.mrb[46].mxu1  ;;  %v12813_v40 = vadd.f32 %v4455_v26, %v3856_v53  ;;  %v11651_v25 = vcombine.high %v4662_v10, %v4670_v12  ;;  %v4663_v26 = vld [vmem:[%s14228_s19 + $0x88] sm:$0xff] }
 0xbf4   : > { %v4459_v34 = vpop.f32.mrb[51].mxu0  ;;  %v12471_v35 = vpop.f32.mrb[47].mxu1  ;;  %v12814_v36 = vadd.f32 %v4457_v31, %v3852_v48  ;;  %v14850_v52 = vadd.f32 %v14013_v50, %v12812_v24  ;;  %v4671_v28 = vld [vmem:[%s14228_s19 + $0xc8] sm:$0xff]  ;;  %6739 = vmatprep.subr.bf16.mxu0 %v11637_v20 }
 0xbf5   : > { %v12472_v44 = vadd.f32 %v12471_v35, %v12470_v32  ;;  %v12815_v18 = vadd.f32 %v4459_v34, %v3856_v53  ;;  %v14852_v38 = vadd.f32 %v14014_v11, %v12813_v40  ;;  %v11653_v31 = vcombine.high %v4663_v26, %v4671_v28  ;;  %v4686_v32 = vld [vmem:[%s14228_s19 + $0x140] sm:$0xff]  ;;  %v4679_v34 = vld [vmem:[%s14228_s19 + $0x108] sm:$0xff]  ;;  %6740 = vmatpush1.bf16.msra.mxu0 %v11636_v13 }
 0xbf6   : > { %v14854_v59 = vadd.f32 %v14015_v58, %v12814_v36  ;;  %v4687_v35 = vld [vmem:[%s14228_s19 + $0x148] sm:$0xff]  ;;  %6655 = vmatprep.subr.bf16.mxu1 %v11651_v25  ;;  %v11652_v46 = vcombine.low %v4663_v26, %v4671_v28  ;;  %v4726_v58 = vld [vmem:[%s14228_s19 + $0x280] sm:$0xff] }
 0xbf7   : > { %v14856_v37 = vadd.f32 %v14016_v19, %v12815_v18  ;;  %v4550_v16 = vadd.f32 %v14852_v38, %v14850_v52  ;;  %6741 = vmatprep.subr.bf16.mxu0 %v11653_v31  ;;  %v11669_v53 = vcombine.high %v4679_v34, %v4687_v35  ;;  %v4695_v24 = vld [vmem:[%s14228_s19 + $0x188] sm:$0xff]  ;;  %v4710_v18 = vld [vmem:[%s14228_s19 + $0x200] sm:$0xff] }
 0xbf8   : > { %v4703_v40 = vld [vmem:[%s14228_s19 + $0x1c8] sm:$0xff]  ;;  %v4734_v19 = vld [vmem:[%s14228_s19 + $0x2c0] sm:$0xff] }
 0xbf9   : > { %v4555_v2 = vadd.f32 %v14856_v37, %v14854_v59  ;;  %6742 = vmatpush1.bf16.msra.mxu0 %v11652_v46  ;;  %v11685_v36 = vcombine.high %v4695_v24, %v4703_v40  ;;  %v11684_v11 = vcombine.low %v4695_v24, %v4703_v40  ;;  %v11714_v41 = vcombine.low %v4726_v58, %v4734_v19  ;;  %v4767_v13 = vld [vmem:[%s14228_s19 + $0x3c8] sm:$0xff]  ;;  %v4782_v31 = vld [vmem:[%s14228_s19 + $0x440] sm:$0xff] }
 0xbfa   : > { %6743 = vmatprep.subr.bf16.mxu0 %v11669_v53  ;;  %v4790_v53 = vld [vmem:[%s14228_s19 + $0x480] sm:$0xff]  ;;  %v4799_v24 = vld [vmem:[%s14228_s19 + $0x4c8] sm:$0xff] }
 0xc11   : > { %v12445_v47 = vpop.f32.mrb[52].mxu0 }
 0xc12   : > { %v12446_v42 = vpop.f32.mrb[53].mxu0 }
 0xc13   : > { %v12447_v49 = vadd.f32 %v12446_v42, %v12445_v47  ;;  %v12448_v15 = vpop.f32.mrb[54].mxu0  ;;  %v4694_v47 = vld [vmem:[%s14228_s19 + $0x180] sm:$0xff] }
 0xc14   : > { %v12449_v39 = vpop.f32.mrb[55].mxu0 }
 0xc15   : > { %v4497_v23 = vadd.f32 %v12447_v49, %v3860_v21  ;;  %v12450_v33 = vadd.f32 %v12449_v39, %v12448_v15  ;;  %v11668_v49 = vcombine.low %v4679_v34, %v4687_v35  ;;  %v4718_v39 = vld [vmem:[%s14228_s19 + $0x240] sm:$0xff]  ;;  %v4783_v34 = vld [vmem:[%s14228_s19 + $0x448] sm:$0xff] }
 0xc17   : > { %v4538_v54 = vadd.f32 %v12469_v30, %v4497_v23  ;;  %v4500_v56 = vadd.f32 %v12450_v33, %v3860_v21  ;;  %v4678_v30 = vld [vmem:[%s14228_s19 + $0x100] sm:$0xff]  ;;  %v4711_v23 = vld [vmem:[%s14228_s19 + $0x208] sm:$0xff]  ;;  %6744 = vmatpush1.bf16.msra.mxu0 %v11668_v49 }
 0xc18   : > { %v11667_v48 = vcombine.high %v4678_v30, %v4686_v32  ;;  %v4702_v21 = vld [vmem:[%s14228_s19 + $0x1c0] sm:$0xff]  ;;  %v11666_v42 = vcombine.low %v4678_v30, %v4686_v32  ;;  %v4719_v33 = vld [vmem:[%s14228_s19 + $0x248] sm:$0xff]  ;;  %6745 = vmatprep.subr.bf16.mxu0 %v11685_v36 }
 0xc19   : > { %v4541_v60 = vadd.f32 %v12472_v44, %v4500_v56  ;;  %v14858_v62 = vadd.f32 %v14017_v61, %v4538_v54  ;;  %v11650_v44 = vcombine.low %v4662_v10, %v4670_v12  ;;  %v11683_v15 = vcombine.high %v4694_v47, %v4702_v21  ;;  %v4735_v61 = vld [vmem:[%s14228_s19 + $0x2c8] sm:$0xff]  ;;  %v4766_v10 = vld [vmem:[%s14228_s19 + $0x3c0] sm:$0xff] }
 0xc1a   : > { %v11682_v50 = vcombine.low %v4694_v47, %v4702_v21  ;;  %v11699_v54 = vcombine.high %v4710_v18, %v4718_v39  ;;  %v11701_v56 = vcombine.high %v4711_v23, %v4719_v33  ;;  %v4759_v12 = vld [vmem:[%s14228_s19 + $0x388] sm:$0xff]  ;;  %v11747_v26 = vcombine.high %v4758_v8, %v4766_v10  ;;  %v4774_v30 = vld [vmem:[%s14228_s19 + $0x400] sm:$0xff] }
 0xc1b   : > { %v4551_v63 = vsel %vm2313_vm1, %v14858_v62, 0.0  ;;  %v14864_v0 = vadd.f32 %v14018_v51, %v4541_v60  ;;  %6656 = vmatpush1.bf16.msra.mxu1 %v11650_v44  ;;  %v4727_v60 = vld [vmem:[%s14228_s19 + $0x288] sm:$0xff]  ;;  %6746 = vmatpush1.bf16.msra.mxu0 %v11684_v11  ;;  %v11715_v51 = vcombine.high %v4726_v58, %v4734_v19  ;;  %v11749_v28 = vcombine.high %v4759_v12, %v4767_v13  ;;  %v4798_v47 = vld [vmem:[%s14228_s19 + $0x4c0] sm:$0xff] }
 0xc1c   : > { %v4552_v1 = vadd.f32 %v4551_v63, %v4550_v16  ;;  %6657 = vmatprep.subr.bf16.mxu1 %v11667_v48  ;;  %v11698_v16 = vcombine.low %v4710_v18, %v4718_v39  ;;  %v11700_v63 = vcombine.low %v4711_v23, %v4719_v33  ;;  %6747 = vmatprep.subr.bf16.mxu0 %v11701_v56  ;;  %v4775_v32 = vld [vmem:[%s14228_s19 + $0x408] sm:$0xff] }
 0xc1d   : > { %v4556_v3 = vsel %vm2313_vm1, %v14864_v0, 0.0  ;;  %v11716_v6 = vcombine.low %v4727_v60, %v4735_v61  ;;  %v11746_v35 = vcombine.low %v4758_v8, %v4766_v10  ;;  %v11748_v44 = vcombine.low %v4759_v12, %v4767_v13  ;;  %v4791_v21 = vld [vmem:[%s14228_s19 + $0x488] sm:$0xff]  ;;  %v4822_v10 = vld [vmem:[%s14228_s19 + $0x580] sm:$0xff] }
 0xc1e   : > { %4553 = vadd.xlane.f32.xlu0 %v4552_v1  ;;  %v4557_v4 = vadd.f32 %v4556_v3, %v4555_v2  ;;  %v11717_v1 = vcombine.high %v4727_v60, %v4735_v61  ;;  %v4742_v2 = vld [vmem:[%s14228_s19 + $0x300] sm:$0xff]  ;;  %v11763_v46 = vcombine.high %v4774_v30, %v4782_v31  ;;  %v11765_v48 = vcombine.high %v4775_v32, %v4783_v34  ;;  %v4823_v13 = vld [vmem:[%s14228_s19 + $0x588] sm:$0xff] }
 0xc1f   : > { %6658 = vmatpush1.bf16.msra.mxu1 %v11666_v42  ;;  %v4750_v3 = vld [vmem:[%s14228_s19 + $0x340] sm:$0xff]  ;;  %6748 = vmatpush1.bf16.msra.mxu0 %v11700_v63  ;;  %v11762_v40 = vcombine.low %v4774_v30, %v4782_v31  ;;  %v11764_v42 = vcombine.low %v4775_v32, %v4783_v34  ;;  %v11779_v49 = vcombine.high %v4790_v53, %v4798_v47  ;;  %v4839_v34 = vld [vmem:[%s14228_s19 + $0x608] sm:$0xff] }
 0xc20   : > { %4558 = vadd.xlane.f32.xlu1 %v4557_v4  ;;  %6659 = vmatprep.subr.bf16.mxu1 %v11683_v15  ;;  %v4743_v4 = vld [vmem:[%s14228_s19 + $0x308] sm:$0xff]  ;;  %v11731_v55 = vcombine.high %v4742_v2, %v4750_v3  ;;  %v11730_v20 = vcombine.low %v4742_v2, %v4750_v3  ;;  %v11781_v15 = vcombine.high %v4791_v21, %v4799_v24  ;;  %v4806_v3 = vld [vmem:[%s14228_s19 + $0x500] sm:$0xff] }
 0xc21   : > { %6749 = vmatprep.subr.bf16.mxu0 %v11717_v1  ;;  %v11733_v7 = vcombine.high %v4743_v4, %v4751_v5  ;;  %v11732_v25 = vcombine.low %v4743_v4, %v4751_v5  ;;  %v11778_v36 = vcombine.low %v4790_v53, %v4798_v47  ;;  %v11780_v18 = vcombine.low %v4791_v21, %v4799_v24  ;;  %v4814_v4 = vld [vmem:[%s14228_s19 + $0x540] sm:$0xff]  ;;  %v4807_v5 = vld [vmem:[%s14228_s19 + $0x508] sm:$0xff] }
 0xc22   : > { %v4830_v12 = vld [vmem:[%s14228_s19 + $0x5c0] sm:$0xff]  ;;  %v4855_v24 = vld [vmem:[%s14228_s19 + $0x688] sm:$0xff] }
 0xc23   : > { %6660 = vmatpush1.bf16.msra.mxu1 %v11682_v50  ;;  %6750 = vmatpush1.bf16.msra.mxu0 %v11716_v6  ;;  %v4815_v6 = vld [vmem:[%s14228_s19 + $0x548] sm:$0xff]  ;;  %v4838_v31 = vld [vmem:[%s14228_s19 + $0x600] sm:$0xff] }
 0xc24   : > { %6661 = vmatprep.subr.bf16.mxu1 %v11699_v54  ;;  %6751 = vmatprep.subr.bf16.mxu0 %v11733_v7  ;;  %v11796_v7 = vcombine.low %v4807_v5, %v4815_v6  ;;  %v11797_v8 = vcombine.high %v4807_v5, %v4815_v6  ;;  %v4846_v32 = vld [vmem:[%s14228_s19 + $0x640] sm:$0xff] }
 0xc25   : > { %v4854_v47 = vld [vmem:[%s14228_s19 + $0x680] sm:$0xff] }
 0xc26   : > { %v4862_v21 = vld [vmem:[%s14228_s19 + $0x6c0] sm:$0xff] }
 0xc27   : > { %6662 = vmatpush1.bf16.msra.mxu1 %v11698_v16  ;;  %6752 = vmatpush1.bf16.msra.mxu0 %v11732_v25  ;;  %v4831_v25 = vld [vmem:[%s14228_s19 + $0x5c8] sm:$0xff] }
 0xc28   : > { %6663 = vmatprep.subr.bf16.mxu1 %v11715_v51  ;;  %6753 = vmatprep.subr.bf16.mxu0 %v11749_v28  ;;  %v11812_v28 = vcombine.low %v4823_v13, %v4831_v25  ;;  %v11813_v30 = vcombine.high %v4823_v13, %v4831_v25 }
 0xc2b   : > { %6664 = vmatpush1.bf16.msra.mxu1 %v11714_v41  ;;  %6754 = vmatpush1.bf16.msra.mxu0 %v11748_v44  ;;  %v11795_v41 = vcombine.high %v4806_v3, %v4814_v4  ;;  %v4847_v44 = vld [vmem:[%s14228_s19 + $0x648] sm:$0xff] }
 0xc2c   : > { %6665 = vmatprep.subr.bf16.mxu1 %v11731_v55  ;;  %6755 = vmatprep.subr.bf16.mxu0 %v11765_v48  ;;  %v11794_v55 = vcombine.low %v4806_v3, %v4814_v4  ;;  %v11828_v48 = vcombine.low %v4839_v34, %v4847_v44  ;;  %v11829_v53 = vcombine.high %v4839_v34, %v4847_v44  ;;  %v4910_v3 = vld [vmem:[%s14228_s19 + $0x840] sm:$0xff]  ;;  %v4903_v4 = vld [vmem:[%s14228_s19 + $0x808] sm:$0xff] }
 0xc2f   : > { %6666 = vmatpush1.bf16.msra.mxu1 %v11730_v20  ;;  %6756 = vmatpush1.bf16.msra.mxu0 %v11764_v42  ;;  %v11811_v20 = vcombine.high %v4822_v10, %v4830_v12  ;;  %v4863_v42 = vld [vmem:[%s14228_s19 + $0x6c8] sm:$0xff] }
 0xc30   : > { %6667 = vmatprep.subr.bf16.mxu1 %v11747_v26  ;;  %6757 = vmatprep.subr.bf16.mxu0 %v11781_v15  ;;  %v11810_v26 = vcombine.low %v4822_v10, %v4830_v12  ;;  %v11844_v15 = vcombine.low %v4855_v24, %v4863_v42 }
 0xc33   : > { %6668 = vmatpush1.bf16.msra.mxu1 %v11746_v35  ;;  %6758 = vmatpush1.bf16.msra.mxu0 %v11780_v18  ;;  %v11827_v35 = vcombine.high %v4838_v31, %v4846_v32  ;;  %v4870_v18 = vld [vmem:[%s14228_s19 + $0x700] sm:$0xff] }
 0xc34   : > { %6669 = vmatprep.subr.bf16.mxu1 %v11763_v46  ;;  %6759 = vmatprep.subr.bf16.mxu0 %v11797_v8  ;;  %v11826_v46 = vcombine.low %v4838_v31, %v4846_v32  ;;  %v14982_v31 = vld [vmem:[%s15973_s0] sm:$0x7] }
 0xc37   : > { %6670 = vmatpush1.bf16.msra.mxu1 %v11762_v40  ;;  %6760 = vmatpush1.bf16.msra.mxu0 %v11796_v7  ;;  %v11843_v40 = vcombine.high %v4854_v47, %v4862_v21 }
 0xc38   : > { %6671 = vmatprep.subr.bf16.mxu1 %v11779_v49  ;;  %6761 = vmatprep.subr.bf16.mxu0 %v11813_v30  ;;  %v11842_v49 = vcombine.low %v4854_v47, %v4862_v21 }
 0xc3b   : > { %6672 = vmatpush1.bf16.msra.mxu1 %v11778_v36  ;;  %6762 = vmatpush1.bf16.msra.mxu0 %v11812_v28  ;;  %v11845_v36 = vcombine.high %v4855_v24, %v4863_v42 }
 0xc3c   : > { %6673 = vmatprep.subr.bf16.mxu1 %v11795_v41  ;;  %6763 = vmatprep.subr.bf16.mxu0 %v11829_v53  ;;  %v4911_v41 = vld [vmem:[%s14228_s19 + $0x848] sm:$0xff] }
 0xc3d   : > { %v11893_v7 = vcombine.high %v4903_v4, %v4911_v41 }
 0xc3f   : > { %6674 = vmatpush1.bf16.msra.mxu1 %v11794_v55  ;;  %6764 = vmatpush1.bf16.msra.mxu0 %v11828_v48  ;;  %v11892_v55 = vcombine.low %v4903_v4, %v4911_v41  ;;  %v4629_v48 = vrot.slane %v14982_v31, %v14617_v14 }
 0xc40   : > { %6675 = vmatprep.subr.bf16.mxu1 %v11811_v20  ;;  %6765 = vmatprep.subr.bf16.mxu0 %v11845_v36 }
 0xc43   : > { %6676 = vmatpush1.bf16.msra.mxu1 %v11810_v26  ;;  %6766 = vmatpush1.bf16.msra.mxu0 %v11844_v15  ;;  %v4597_v26 = vld [vmem:[%s15972_s20] sm:$0x7] }
 0xc44   : > { %6677 = vmatprep.subr.bf16.mxu1 %v11827_v35  ;;  %v4602_v28 = vrot.slane %v4597_v26, %v14593_v45  ;;  %v4606_v30 = vrot.slane %v4597_v26, %v14617_v14  ;;  %v4610_v4 = vrot.slane %v4597_v26, %v14555_v22 }
 0xc47   : > { %6678 = vmatpush1.bf16.msra.mxu1 %v11826_v46  ;;  %v4625_v46 = vrot.slane %v14982_v31, %v14593_v45 }
 0xc48   : > { %6679 = vmatprep.subr.bf16.mxu1 %v11843_v40 }
 0xc4b   : > { %6680 = vmatpush1.bf16.msra.mxu1 %v11842_v49 }
 0xcab   : > { %v4554_v39 = vpop.xlane.xlu0 %4553 }
 0xcac   : > { %v4561_v23 = vmul.f32 0.003125, %v4554_v39  ;;  %v4878_v39 = vld [vmem:[%s14228_s19 + $0x740] sm:$0xff] }
 0xcad   : > { %v4559_v33 = vpop.xlane.xlu1 %4558 }
 0xcae   : > { %v14911_v50 = vsub.f32 %v14850_v52, %v4561_v23  ;;  %v14914_v11 = vsub.f32 %v14852_v38, %v4561_v23  ;;  %v14917_v54 = vsub.f32 %v14858_v62, %v4561_v23  ;;  %v4562_v56 = vmul.f32 0.003125, %v4559_v33  ;;  %v4871_v23 = vld [vmem:[%s14228_s19 + $0x708] sm:$0xff] }
 0xcaf   : > { %v11859_v33 = vcombine.high %v4870_v18, %v4878_v39 }
 0xcb0   : > { %v14920_v58 = vsub.f32 %v14854_v59, %v4562_v56  ;;  %v14923_v19 = vsub.f32 %v14856_v37, %v4562_v56  ;;  %v14926_v60 = vsub.f32 %v14864_v0, %v4562_v56  ;;  %v4569_v52 = vmul.f32 %v14911_v50, %v14911_v50  ;;  %v4879_v56 = vld [vmem:[%s14228_s19 + $0x748] sm:$0xff] }
 0xcb1   : > { %v4570_v38 = vmul.f32 %v14914_v11, %v14914_v11  ;;  %v4571_v62 = vmul.f32 %v14917_v54, %v14917_v54  ;;  %6681 = vmatprep.subr.bf16.mxu1 %v11859_v33 }
 0xcb2   : > { %v4572_v59 = vmul.f32 %v14920_v58, %v14920_v58  ;;  %v4573_v37 = vmul.f32 %v14923_v19, %v14923_v19  ;;  %v4574_v0 = vmul.f32 %v14926_v60, %v14926_v60 }
 0xcb3   : > { %v4575_v61 = vadd.f32 %v4570_v38, %v4569_v52  ;;  %v4576_v16 = vsel %vm2313_vm1, %v4571_v62, 0.0  ;;  %v11858_v52 = vcombine.low %v4870_v18, %v4878_v39  ;;  %v11860_v38 = vcombine.low %v4871_v23, %v4879_v56  ;;  %v4919_v18 = vld [vmem:[%s14228_s19 + $0x888] sm:$0xff] }
 0xcb4   : > { %v4580_v63 = vadd.f32 %v4573_v37, %v4572_v59  ;;  %v4581_v51 = vsel %vm2313_vm1, %v4574_v0, 0.0  ;;  %v11861_v62 = vcombine.high %v4871_v23, %v4879_v56  ;;  %v4886_v59 = vld [vmem:[%s14228_s19 + $0x780] sm:$0xff]  ;;  %v4887_v0 = vld [vmem:[%s14228_s19 + $0x788] sm:$0xff] }
 0xcb5   : > { %v4577_v1 = vadd.f32 %v4576_v16, %v4575_v61  ;;  %6682 = vmatpush1.bf16.msra.mxu1 %v11858_v52  ;;  %v4894_v37 = vld [vmem:[%s14228_s19 + $0x7c0] sm:$0xff]  ;;  %v4895_v16 = vld [vmem:[%s14228_s19 + $0x7c8] sm:$0xff] }
 0xcb6   : > { %v4582_v2 = vadd.f32 %v4581_v51, %v4580_v63  ;;  %6767 = vmatprep.subr.bf16.mxu0 %v11861_v62  ;;  %v11875_v61 = vcombine.high %v4886_v59, %v4894_v37  ;;  %v11874_v63 = vcombine.low %v4886_v59, %v4894_v37  ;;  %v11876_v51 = vcombine.low %v4887_v0, %v4895_v16  ;;  %v4934_v52 = vld [vmem:[%s14228_s19 + $0x900] sm:$0xff]  ;;  %v4935_v62 = vld [vmem:[%s14228_s19 + $0x908] sm:$0xff] }
 0xcb7   : > { %4578 = vadd.xlane.f32.xlu0 %v4577_v1  ;;  %6768 = vmatpush1.bf16.msra.mxu0 %v11860_v38  ;;  %v11877_v1 = vcombine.high %v4887_v0, %v4895_v16  ;;  %v4942_v38 = vld [vmem:[%s14228_s19 + $0x940] sm:$0xff]  ;;  %v4943_v59 = vld [vmem:[%s14228_s19 + $0x948] sm:$0xff] }
 0xcb8   : > { %4583 = vadd.xlane.f32.xlu1 %v4582_v2  ;;  %6683 = vmatprep.subr.bf16.mxu1 %v11875_v61  ;;  %v4902_v2 = vld [vmem:[%s14228_s19 + $0x800] sm:$0xff]  ;;  %v11923_v16 = vcombine.high %v4934_v52, %v4942_v38  ;;  %v11924_v41 = vcombine.low %v4935_v62, %v4943_v59 }
 0xcb9   : > { %6769 = vmatprep.subr.bf16.mxu0 %v11877_v1  ;;  %6684 = vmatpush1.bf16.msra.mxu1 %v11874_v63  ;;  %v11891_v5 = vcombine.high %v4902_v2, %v4910_v3  ;;  %v11890_v6 = vcombine.low %v4902_v2, %v4910_v3  ;;  %v11925_v63 = vcombine.high %v4935_v62, %v4943_v59  ;;  %v4958_v1 = vld [vmem:[%s14228_s19 + $0x9c0] sm:$0xff]  ;;  %v4951_v2 = vld [vmem:[%s14228_s19 + $0x988] sm:$0xff]  ;;  %v4697_v62 = vld [vmem:[%s14228_s19 + $0x198] sm:$0xff] }
 0xcba   : > { %v4959_v3 = vld [vmem:[%s14228_s19 + $0x9c8] sm:$0xff]  ;;  %v4705_v59 = vld [vmem:[%s14228_s19 + $0x1d8] sm:$0xff] }
 0xcbb   : > { %6770 = vmatpush1.bf16.msra.mxu0 %v11876_v51  ;;  %6696 = vmatprep.subr.bf16.mxu1 %v11891_v5  ;;  %v4950_v51 = vld [vmem:[%s14228_s19 + $0x980] sm:$0xff]  ;;  %v11922_v5 = vcombine.low %v4934_v52, %v4942_v38  ;;  %v11940_v26 = vcombine.low %v4951_v2, %v4959_v3  ;;  %v4696_v52 = vld [vmem:[%s14228_s19 + $0x190] sm:$0xff] }
 0xcbc   : > { %6782 = vmatprep.subr.bf16.mxu0 %v11893_v7  ;;  %v11941_v7 = vcombine.high %v4951_v2, %v4959_v3  ;;  %v4704_v38 = vld [vmem:[%s14228_s19 + $0x1d0] sm:$0xff]  ;;  %v4721_v2 = vld [vmem:[%s14228_s19 + $0x258] sm:$0xff] }
 0xcbd   : > { %v11686_v3 = vcombine.low %v4696_v52, %v4704_v38 }
 0xd44   : > { %v4579_v8 = vpop.xlane.xlu0 %4578 }
 0xd45   : > { %v4585_v10 = vmul.f32 0.003125, %v4579_v8  ;;  %v4584_v12 = vpop.xlane.xlu1 %4583  ;;  %v4648_v8 = vld [vmem:[%s14228_s19 + $0x10] sm:$0xff] }
 0xd46   : > { %v4586_v13 = vmul.f32 0.003125, %v4584_v12  ;;  %v4649_v12 = vld [vmem:[%s14228_s19 + $0x18] sm:$0xff] }
 0xd47   : > { %v4587_v20 = vadd.f32 1e-05, %v4585_v10  ;;  %v4656_v10 = vld [vmem:[%s14228_s19 + $0x50] sm:$0xff] }
 0xd48   : > { %v4588_v25 = vadd.f32 1e-05, %v4586_v13  ;;  %v4657_v13 = vld [vmem:[%s14228_s19 + $0x58] sm:$0xff] }
 0xd49   : > { %14005 = vrsqrt.f32 %v4587_v20 }
 0xd4a   : > { %14007 = vrsqrt.f32 %v4588_v25  ;;  %v11938_v25 = vcombine.low %v4950_v51, %v4958_v1 }
 0xd53   : > { %v14006_v32 = vpop.eup %14005 }
 0xd54   : > { %v14008_v34 = vpop.eup %14007  ;;  %v4591_v35 = vmul.f32 %v14006_v32, %v14911_v50  ;;  %v4592_v44 = vmul.f32 %v14006_v32, %v14914_v11  ;;  %v4918_v50 = vld [vmem:[%s14228_s19 + $0x880] sm:$0xff] }
 0xd55   : > { %v4594_v53 = vmul.f32 %v14008_v34, %v14920_v58  ;;  %v4595_v47 = vmul.f32 %v14008_v34, %v14923_v19  ;;  %v4926_v58 = vld [vmem:[%s14228_s19 + $0x8c0] sm:$0xff]  ;;  %v4927_v19 = vld [vmem:[%s14228_s19 + $0x8c8] sm:$0xff]  ;;  %v4596_v61 = vmul.f32 %v14008_v34, %v14926_v60  ;;  %v4593_v60 = vmul.f32 %v14006_v32, %v14917_v54  ;;  %v4664_v34 = vld [vmem:[%s14228_s19 + $0x90] sm:$0xff] }
 0xd56   : > { %v4614_v21 = vmul.f32 %v4602_v28, %v4591_v35  ;;  %v4615_v24 = vmul.f32 %v4606_v30, %v4592_v44  ;;  %v11907_v33 = vcombine.high %v4918_v50, %v4926_v58  ;;  %v11909_v56 = vcombine.high %v4919_v18, %v4927_v19  ;;  %v4672_v44 = vld [vmem:[%s14228_s19 + $0xd0] sm:$0xff] }
 0xd57   : > { %v4617_v40 = vmul.f32 %v4602_v28, %v4594_v53  ;;  %v4618_v42 = vmul.f32 %v4606_v30, %v4595_v47  ;;  %v11906_v37 = vcombine.low %v4918_v50, %v4926_v58  ;;  %v11908_v0 = vcombine.low %v4919_v18, %v4927_v19  ;;  %v4681_v50 = vld [vmem:[%s14228_s19 + $0x118] sm:$0xff] }
 0xd58   : > { %v14993_v11 = vadd.f32 %v4625_v46, %v4614_v21  ;;  %v14995_v49 = vadd.f32 %v4629_v48, %v4615_v24  ;;  %v4633_v54 = vrot.slane %v14982_v31, %v14555_v22  ;;  %v4616_v20 = vmul.f32 %v4610_v4, %v4593_v60  ;;  %v4673_v31 = vld [vmem:[%s14228_s19 + $0xd8] sm:$0xff] }
 0xd59   : > { %v14997_v15 = vadd.f32 %v4625_v46, %v4617_v40  ;;  %v14999_v36 = vadd.f32 %v4629_v48, %v4618_v42  ;;  %v11639_v30 = vcombine.high %v4648_v8, %v4656_v10  ;;  %v11641_v32 = vcombine.high %v4649_v12, %v4657_v13  ;;  %v4665_v46 = vld [vmem:[%s14228_s19 + $0x98] sm:$0xff]  ;;  %v4680_v40 = vld [vmem:[%s14228_s19 + $0x110] sm:$0xff] }
 0xd5a   : > { %v15038_v35 = vadd.f32 %v4633_v54, %v4616_v20  ;;  %v11638_v48 = vcombine.low %v4648_v8, %v4656_v10  ;;  %v11640_v47 = vcombine.low %v4649_v12, %v4657_v13  ;;  %v11655_v21 = vcombine.high %v4664_v34, %v4672_v44  ;;  %v4688_v42 = vld [vmem:[%s14228_s19 + $0x150] sm:$0xff]  ;;  %v4689_v58 = vld [vmem:[%s14228_s19 + $0x158] sm:$0xff] }
 0xd5b   : > { %v15006_v39 = vpack.c.bf16 %v14999_v36, %v14995_v49  ;;  %v15010_v23 = vpack.c.bf16 %v14997_v15, %v14993_v11  ;;  %v11657_v24 = vcombine.high %v4665_v46, %v4673_v31  ;;  %v11654_v18 = vcombine.low %v4664_v34, %v4672_v44  ;;  %v4752_v20 = vld [vmem:[%s14228_s19 + $0x350] sm:$0xff] }
 0xd5c   : > { %v11656_v19 = vcombine.low %v4665_v46, %v4673_v31  ;;  %v4760_v46 = vld [vmem:[%s14228_s19 + $0x390] sm:$0xff] }
 0xd5d   : > { %6685 = vmatprep.mubr.bf16.mxu1 %v15006_v39  ;;  %6771 = vmatprep.mubr.bf16.mxu0 %v15006_v39  ;;  %v4768_v31 = vld [vmem:[%s14228_s19 + $0x3d0] sm:$0xff] }
 0xd5e   : > { %6686 = vmatmul.mubr.bf16.vlgmr.msra.gmra.mrb[48].mxu1 %v15010_v23  ;;  %6772 = vmatmul.mubr.bf16.vlgmr.msra.gmra.mrb[56].mxu0 %v15010_v23 }
 0xd5f   : > { %6697 = vmatpush1.bf16.msra.mxu1 %v11890_v6  ;;  %6783 = vmatpush1.bf16.msra.mxu0 %v11892_v55  ;;  %v4619_v6 = vmul.f32 %v4610_v4, %v4596_v61  ;;  %v11939_v55 = vcombine.high %v4950_v51, %v4958_v1  ;;  %v11687_v61 = vcombine.high %v4696_v52, %v4704_v38  ;;  %v4720_v51 = vld [vmem:[%s14228_s19 + $0x250] sm:$0xff]  ;;  %v4713_v1 = vld [vmem:[%s14228_s19 + $0x218] sm:$0xff] }
 0xd60   : > { %6698 = vmatprep.subr.bf16.mxu1 %v11907_v33  ;;  %6784 = vmatprep.subr.bf16.mxu0 %v11909_v56  ;;  %v11671_v33 = vcombine.high %v4680_v40, %v4688_v42  ;;  %v11673_v56 = vcombine.high %v4681_v50, %v4689_v58  ;;  %v11688_v4 = vcombine.low %v4697_v62, %v4705_v59 }
 0xd61   : > { %6728 = vmatprep.mubr.bf16.mxu1 %v14063_v9  ;;  %6814 = vmatprep.mubr.bf16.mxu0 %v14063_v9  ;;  %v15035_v28 = vadd.f32 %v4633_v54, %v4619_v6  ;;  %v4736_v6 = vld [vmem:[%s14228_s19 + $0x2d0] sm:$0xff]  ;;  %v11704_v10 = vcombine.low %v4713_v1, %v4721_v2 }
 0xd62   : > { %v4744_v54 = vld [vmem:[%s14228_s19 + $0x310] sm:$0xff] }
 0xd63   : > { %6699 = vmatpush1.bf16.msra.mxu1 %v11906_v37  ;;  %6785 = vmatpush1.bf16.msra.mxu0 %v11908_v0  ;;  %v15045_v53 = vpack.c.bf16 %v15035_v28, %v15038_v35  ;;  %v11670_v37 = vcombine.low %v4680_v40, %v4688_v42  ;;  %v11672_v0 = vcombine.low %v4681_v50, %v4689_v58  ;;  %v4776_v50 = vld [vmem:[%s14228_s19 + $0x410] sm:$0xff] }
 0xd64   : > { %6700 = vmatprep.subr.bf16.mxu1 %v11923_v16  ;;  %6786 = vmatprep.subr.bf16.mxu0 %v11925_v63  ;;  %v11689_v16 = vcombine.high %v4697_v62, %v4705_v59  ;;  %v4712_v63 = vld [vmem:[%s14228_s19 + $0x210] sm:$0xff]  ;;  %v11735_v34 = vcombine.high %v4744_v54, %v4752_v20  ;;  %v11751_v40 = vcombine.high %v4760_v46, %v4768_v31 }
 0xd65   : > { %v11703_v60 = vcombine.high %v4712_v63, %v4720_v51  ;;  %v11702_v8 = vcombine.low %v4712_v63, %v4720_v51  ;;  %v4784_v58 = vld [vmem:[%s14228_s19 + $0x450] sm:$0xff] }
 0xd66   : > { %v11767_v52 = vcombine.high %v4776_v50, %v4784_v58  ;;  %v4792_v62 = vld [vmem:[%s14228_s19 + $0x490] sm:$0xff] }
 0xd67   : > { %6701 = vmatpush1.bf16.msra.mxu1 %v11922_v5  ;;  %6787 = vmatpush1.bf16.msra.mxu0 %v11924_v41  ;;  %v11705_v5 = vcombine.high %v4713_v1, %v4721_v2  ;;  %v4728_v41 = vld [vmem:[%s14228_s19 + $0x290] sm:$0xff] }
 0xd68   : > { %6702 = vmatprep.subr.bf16.mxu1 %v11939_v55  ;;  %6788 = vmatprep.subr.bf16.mxu0 %v11941_v7  ;;  %v4729_v55 = vld [vmem:[%s14228_s19 + $0x298] sm:$0xff]  ;;  %v11719_v12 = vcombine.high %v4728_v41, %v4736_v6  ;;  %v4800_v59 = vld [vmem:[%s14228_s19 + $0x4d0] sm:$0xff] }
 0xd69   : > { %v4737_v7 = vld [vmem:[%s14228_s19 + $0x2d8] sm:$0xff]  ;;  %v11783_v63 = vcombine.high %v4792_v62, %v4800_v59  ;;  %v4808_v1 = vld [vmem:[%s14228_s19 + $0x510] sm:$0xff] }
 0xd6a   : > { %v11721_v13 = vcombine.high %v4729_v55, %v4737_v7  ;;  %v4816_v2 = vld [vmem:[%s14228_s19 + $0x550] sm:$0xff] }
 0xd6b   : > { %6703 = vmatpush1.bf16.msra.mxu1 %v11938_v25  ;;  %6789 = vmatpush1.bf16.msra.mxu0 %v11940_v26  ;;  %v4745_v25 = vld [vmem:[%s14228_s19 + $0x318] sm:$0xff] }
 0xd6c   : > { %6825 = vmatprep.subr.bf16.mxu1 %v11639_v30  ;;  %6911 = vmatprep.subr.bf16.mxu0 %v11641_v32  ;;  %v4753_v26 = vld [vmem:[%s14228_s19 + $0x358] sm:$0xff]  ;;  %v11718_v30 = vcombine.low %v4728_v41, %v4736_v6  ;;  %v11720_v32 = vcombine.low %v4729_v55, %v4737_v7  ;;  %v11799_v41 = vcombine.high %v4808_v1, %v4816_v2  ;;  %v4824_v55 = vld [vmem:[%s14228_s19 + $0x590] sm:$0xff] }
 0xd6d   : > { %v11737_v44 = vcombine.high %v4745_v25, %v4753_v26  ;;  %v4832_v7 = vld [vmem:[%s14228_s19 + $0x5d0] sm:$0xff] }
 0xd6e   : > { %11954 = vmatmul.mubr.msk.bf16.vlgmr.msra.gmra.mrb[48].mxu1 %vm2313_vm1, %v15045_v53  ;;  %11955 = vmatmul.mubr.msk.bf16.vlgmr.msra.gmra.mrb[56].mxu0 %vm2313_vm1, %v15045_v53 }
 0xd6f   : > { %6826 = vmatpush1.bf16.msra.mxu1 %v11638_v48  ;;  %6857 = vmatprep.mubr.bf16.mxu1 %v15006_v39  ;;  %v4761_v48 = vld [vmem:[%s14228_s19 + $0x398] sm:$0xff] }
 0xd70   : > { %6912 = vmatpush1.bf16.msra.mxu0 %v11640_v47  ;;  %6943 = vmatprep.mubr.bf16.mxu0 %v15006_v39  ;;  %v4769_v47 = vld [vmem:[%s14228_s19 + $0x3d8] sm:$0xff] }
 0xd71   : > { %6827 = vmatprep.subr.bf16.mxu1 %v11655_v21  ;;  %6913 = vmatprep.subr.bf16.mxu0 %v11657_v24  ;;  %v11734_v21 = vcombine.low %v4744_v54, %v4752_v20  ;;  %v11736_v24 = vcombine.low %v4745_v25, %v4753_v26  ;;  %v11753_v42 = vcombine.high %v4761_v48, %v4769_v47  ;;  %v4840_v25 = vld [vmem:[%s14228_s19 + $0x610] sm:$0xff] }
 0xd72   : > { %v11815_v54 = vcombine.high %v4824_v55, %v4832_v7  ;;  %v4848_v26 = vld [vmem:[%s14228_s19 + $0x650] sm:$0xff] }
 0xd73   : > { %6828 = vmatpush1.bf16.msra.mxu1 %v11654_v18  ;;  %v4777_v18 = vld [vmem:[%s14228_s19 + $0x418] sm:$0xff] }
 0xd74   : > { %6914 = vmatpush1.bf16.msra.mxu0 %v11656_v19  ;;  %6829 = vmatprep.subr.bf16.mxu1 %v11671_v33  ;;  %v4785_v19 = vld [vmem:[%s14228_s19 + $0x458] sm:$0xff]  ;;  %v11750_v33 = vcombine.low %v4760_v46, %v4768_v31  ;;  %v11831_v46 = vcombine.high %v4840_v25, %v4848_v26 }
 0xd75   : > { %6915 = vmatprep.subr.bf16.mxu0 %v11673_v56  ;;  %v11752_v56 = vcombine.low %v4761_v48, %v4769_v47  ;;  %v11769_v38 = vcombine.high %v4777_v18, %v4785_v19  ;;  %v4856_v48 = vld [vmem:[%s14228_s19 + $0x690] sm:$0xff] }
 0xd76   : > { %v4864_v47 = vld [vmem:[%s14228_s19 + $0x6d0] sm:$0xff] }
 0xd77   : > { %6830 = vmatpush1.bf16.msra.mxu1 %v11670_v37  ;;  %v4793_v37 = vld [vmem:[%s14228_s19 + $0x498] sm:$0xff] }
 0xd78   : > { %6916 = vmatpush1.bf16.msra.mxu0 %v11672_v0  ;;  %6831 = vmatprep.subr.bf16.mxu1 %v11687_v61  ;;  %v4801_v0 = vld [vmem:[%s14228_s19 + $0x4d8] sm:$0xff]  ;;  %v11766_v61 = vcombine.low %v4776_v50, %v4784_v58  ;;  %v11847_v50 = vcombine.high %v4856_v48, %v4864_v47 }
 0xd79   : > { %6917 = vmatprep.subr.bf16.mxu0 %v11689_v16  ;;  %v11768_v16 = vcombine.low %v4777_v18, %v4785_v19  ;;  %v11785_v51 = vcombine.high %v4793_v37, %v4801_v0  ;;  %v4872_v18 = vld [vmem:[%s14228_s19 + $0x710] sm:$0xff] }
 0xd7a   : > { %v4880_v19 = vld [vmem:[%s14228_s19 + $0x750] sm:$0xff] }
 0xd7b   : > { %6832 = vmatpush1.bf16.msra.mxu1 %v11686_v3  ;;  %v4809_v3 = vld [vmem:[%s14228_s19 + $0x518] sm:$0xff] }
 0xd7c   : > { %6918 = vmatpush1.bf16.msra.mxu0 %v11688_v4  ;;  %6833 = vmatprep.subr.bf16.mxu1 %v11703_v60  ;;  %v4817_v4 = vld [vmem:[%s14228_s19 + $0x558] sm:$0xff]  ;;  %v11782_v60 = vcombine.low %v4792_v62, %v4800_v59  ;;  %v11863_v62 = vcombine.high %v4872_v18, %v4880_v19 }
 0xd7d   : > { %6919 = vmatprep.subr.bf16.mxu0 %v11705_v5  ;;  %v11784_v5 = vcombine.low %v4793_v37, %v4801_v0  ;;  %v11801_v6 = vcombine.high %v4809_v3, %v4817_v4  ;;  %v4888_v37 = vld [vmem:[%s14228_s19 + $0x790] sm:$0xff] }
 0xd7e   : > { %v4896_v0 = vld [vmem:[%s14228_s19 + $0x7d0] sm:$0xff] }
 0xd7f   : > { %6834 = vmatpush1.bf16.msra.mxu1 %v11702_v8  ;;  %v4825_v8 = vld [vmem:[%s14228_s19 + $0x598] sm:$0xff] }
 0xd80   : > { %6920 = vmatpush1.bf16.msra.mxu0 %v11704_v10  ;;  %6835 = vmatprep.subr.bf16.mxu1 %v11719_v12  ;;  %v4833_v10 = vld [vmem:[%s14228_s19 + $0x5d8] sm:$0xff]  ;;  %v11798_v12 = vcombine.low %v4808_v1, %v4816_v2  ;;  %v11879_v1 = vcombine.high %v4888_v37, %v4896_v0 }
 0xd81   : > { %6921 = vmatprep.subr.bf16.mxu0 %v11721_v13  ;;  %v11800_v13 = vcombine.low %v4809_v3, %v4817_v4  ;;  %v11817_v20 = vcombine.high %v4825_v8, %v4833_v10  ;;  %v4904_v3 = vld [vmem:[%s14228_s19 + $0x810] sm:$0xff] }
 0xd82   : > { %v4912_v4 = vld [vmem:[%s14228_s19 + $0x850] sm:$0xff] }
 0xd83   : > { %6836 = vmatpush1.bf16.msra.mxu1 %v11718_v30  ;;  %v4841_v30 = vld [vmem:[%s14228_s19 + $0x618] sm:$0xff] }
 0xd84   : > { %6922 = vmatpush1.bf16.msra.mxu0 %v11720_v32  ;;  %6837 = vmatprep.subr.bf16.mxu1 %v11735_v34  ;;  %v4849_v32 = vld [vmem:[%s14228_s19 + $0x658] sm:$0xff]  ;;  %v11814_v34 = vcombine.low %v4824_v55, %v4832_v7  ;;  %v11895_v55 = vcombine.high %v4904_v3, %v4912_v4 }
 0xd85   : > { %6923 = vmatprep.subr.bf16.mxu0 %v11737_v44  ;;  %v11816_v44 = vcombine.low %v4825_v8, %v4833_v10  ;;  %v11833_v31 = vcombine.high %v4841_v30, %v4849_v32  ;;  %v4920_v8 = vld [vmem:[%s14228_s19 + $0x890] sm:$0xff] }
 0xd86   : > { %v4928_v10 = vld [vmem:[%s14228_s19 + $0x8d0] sm:$0xff] }
 0xd87   : > { %6838 = vmatpush1.bf16.msra.mxu1 %v11734_v21  ;;  %v4857_v21 = vld [vmem:[%s14228_s19 + $0x698] sm:$0xff] }
 0xd88   : > { %6924 = vmatpush1.bf16.msra.mxu0 %v11736_v24  ;;  %6839 = vmatprep.subr.bf16.mxu1 %v11751_v40  ;;  %v4865_v24 = vld [vmem:[%s14228_s19 + $0x6d8] sm:$0xff]  ;;  %v11830_v40 = vcombine.low %v4840_v25, %v4848_v26  ;;  %v11911_v25 = vcombine.high %v4920_v8, %v4928_v10 }
 0xd89   : > { %6925 = vmatprep.subr.bf16.mxu0 %v11753_v42  ;;  %v11832_v42 = vcombine.low %v4841_v30, %v4849_v32  ;;  %v11849_v58 = vcombine.high %v4857_v21, %v4865_v24  ;;  %v4936_v30 = vld [vmem:[%s14228_s19 + $0x910] sm:$0xff] }
 0xd8a   : > { %v4944_v32 = vld [vmem:[%s14228_s19 + $0x950] sm:$0xff] }
 0xd8b   : > { %6840 = vmatpush1.bf16.msra.mxu1 %v11750_v33  ;;  %v4873_v33 = vld [vmem:[%s14228_s19 + $0x718] sm:$0xff] }
 0xd8c   : > { %6926 = vmatpush1.bf16.msra.mxu0 %v11752_v56  ;;  %6841 = vmatprep.subr.bf16.mxu1 %v11767_v52  ;;  %v4881_v56 = vld [vmem:[%s14228_s19 + $0x758] sm:$0xff]  ;;  %v11846_v52 = vcombine.low %v4856_v48, %v4864_v47  ;;  %v11927_v48 = vcombine.high %v4936_v30, %v4944_v32 }
 0xd8d   : > { %6927 = vmatprep.subr.bf16.mxu0 %v11769_v38  ;;  %v11848_v38 = vcombine.low %v4857_v21, %v4865_v24  ;;  %v11865_v59 = vcombine.high %v4873_v33, %v4881_v56  ;;  %v4952_v21 = vld [vmem:[%s14228_s19 + $0x990] sm:$0xff] }
 0xd8e   : > { %v4960_v24 = vld [vmem:[%s14228_s19 + $0x9d0] sm:$0xff] }
 0xd8f   : > { %6842 = vmatpush1.bf16.msra.mxu1 %v11766_v61  ;;  %v4889_v61 = vld [vmem:[%s14228_s19 + $0x798] sm:$0xff] }
 0xd90   : > { %6928 = vmatpush1.bf16.msra.mxu0 %v11768_v16  ;;  %6843 = vmatprep.subr.bf16.mxu1 %v11783_v63  ;;  %v4897_v16 = vld [vmem:[%s14228_s19 + $0x7d8] sm:$0xff]  ;;  %v11862_v63 = vcombine.low %v4872_v18, %v4880_v19  ;;  %v11943_v18 = vcombine.high %v4952_v21, %v4960_v24 }
 0xd91   : > { %6929 = vmatprep.subr.bf16.mxu0 %v11785_v51  ;;  %v11864_v51 = vcombine.low %v4873_v33, %v4881_v56  ;;  %v11881_v2 = vcombine.high %v4889_v61, %v4897_v16  ;;  %v4650_v33 = vld [vmem:[%s14228_s19 + $0x20] sm:$0xff] }
 0xd92   : > { %v4658_v56 = vld [vmem:[%s14228_s19 + $0x60] sm:$0xff] }
 0xd93   : > { %6844 = vmatpush1.bf16.msra.mxu1 %v11782_v60  ;;  %v4905_v60 = vld [vmem:[%s14228_s19 + $0x818] sm:$0xff] }
 0xd94   : > { %6930 = vmatpush1.bf16.msra.mxu0 %v11784_v5  ;;  %6845 = vmatprep.subr.bf16.mxu1 %v11799_v41  ;;  %v4913_v5 = vld [vmem:[%s14228_s19 + $0x858] sm:$0xff]  ;;  %v11878_v41 = vcombine.low %v4888_v37, %v4896_v0  ;;  %v11643_v37 = vcombine.high %v4650_v33, %v4658_v56 }
 0xd95   : > { %6931 = vmatprep.subr.bf16.mxu0 %v11801_v6  ;;  %v11880_v6 = vcombine.low %v4889_v61, %v4897_v16  ;;  %v11897_v7 = vcombine.high %v4905_v60, %v4913_v5  ;;  %v4666_v61 = vld [vmem:[%s14228_s19 + $0xa0] sm:$0xff] }
 0xd96   : > { %v4674_v16 = vld [vmem:[%s14228_s19 + $0xe0] sm:$0xff] }
 0xd97   : > { %6846 = vmatpush1.bf16.msra.mxu1 %v11798_v12  ;;  %v4921_v12 = vld [vmem:[%s14228_s19 + $0x898] sm:$0xff] }
 0xd98   : > { %6932 = vmatpush1.bf16.msra.mxu0 %v11800_v13  ;;  %6847 = vmatprep.subr.bf16.mxu1 %v11815_v54  ;;  %v4929_v13 = vld [vmem:[%s14228_s19 + $0x8d8] sm:$0xff]  ;;  %v11894_v54 = vcombine.low %v4904_v3, %v4912_v4  ;;  %v11659_v3 = vcombine.high %v4666_v61, %v4674_v16  ;;  %v4682_v4 = vld [vmem:[%s14228_s19 + $0x120] sm:$0xff] }
 0xd99   : > { %6933 = vmatprep.subr.bf16.mxu0 %v11817_v20  ;;  %v11896_v20 = vcombine.low %v4905_v60, %v4913_v5  ;;  %v11913_v26 = vcombine.high %v4921_v12, %v4929_v13  ;;  %v4690_v60 = vld [vmem:[%s14228_s19 + $0x160] sm:$0xff] }
 0xd9b   : > { %6848 = vmatpush1.bf16.msra.mxu1 %v11814_v34  ;;  %v4937_v34 = vld [vmem:[%s14228_s19 + $0x918] sm:$0xff] }
 0xd9c   : > { %6934 = vmatpush1.bf16.msra.mxu0 %v11816_v44  ;;  %6849 = vmatprep.subr.bf16.mxu1 %v11831_v46  ;;  %v4945_v44 = vld [vmem:[%s14228_s19 + $0x958] sm:$0xff]  ;;  %v11910_v46 = vcombine.low %v4920_v8, %v4928_v10  ;;  %v11675_v8 = vcombine.high %v4682_v4, %v4690_v60 }
 0xd9d   : > { %6935 = vmatprep.subr.bf16.mxu0 %v11833_v31  ;;  %v11912_v31 = vcombine.low %v4921_v12, %v4929_v13  ;;  %v11929_v47 = vcombine.high %v4937_v34, %v4945_v44  ;;  %v4698_v12 = vld [vmem:[%s14228_s19 + $0x1a0] sm:$0xff] }
 0xd9e   : > { %v4706_v13 = vld [vmem:[%s14228_s19 + $0x1e0] sm:$0xff] }
 0xd9f   : > { %6850 = vmatpush1.bf16.msra.mxu1 %v11830_v40  ;;  %v4953_v40 = vld [vmem:[%s14228_s19 + $0x998] sm:$0xff] }
 0xda0   : > { %6936 = vmatpush1.bf16.msra.mxu0 %v11832_v42  ;;  %6851 = vmatprep.subr.bf16.mxu1 %v11847_v50  ;;  %v4961_v42 = vld [vmem:[%s14228_s19 + $0x9d8] sm:$0xff]  ;;  %v11926_v50 = vcombine.low %v4936_v30, %v4944_v32  ;;  %v11691_v30 = vcombine.high %v4698_v12, %v4706_v13 }
 0xda1   : > { %6937 = vmatprep.subr.bf16.mxu0 %v11849_v58  ;;  %v11928_v58 = vcombine.low %v4937_v34, %v4945_v44  ;;  %v11945_v19 = vcombine.high %v4953_v40, %v4961_v42  ;;  %v4714_v34 = vld [vmem:[%s14228_s19 + $0x220] sm:$0xff] }
 0xda2   : > { %v4722_v44 = vld [vmem:[%s14228_s19 + $0x260] sm:$0xff] }
 0xda3   : > { %6852 = vmatpush1.bf16.msra.mxu1 %v11846_v52  ;;  %v4651_v52 = vld [vmem:[%s14228_s19 + $0x28] sm:$0xff] }
 0xda4   : > { %6938 = vmatpush1.bf16.msra.mxu0 %v11848_v38  ;;  %6853 = vmatprep.subr.bf16.mxu1 %v11863_v62  ;;  %v4659_v38 = vld [vmem:[%s14228_s19 + $0x68] sm:$0xff]  ;;  %v11942_v62 = vcombine.low %v4952_v21, %v4960_v24  ;;  %v11707_v21 = vcombine.high %v4714_v34, %v4722_v44 }
 0xda5   : > { %6939 = vmatprep.subr.bf16.mxu0 %v11865_v59  ;;  %v11944_v59 = vcombine.low %v4953_v40, %v4961_v42  ;;  %v11645_v0 = vcombine.high %v4651_v52, %v4659_v38  ;;  %v4730_v40 = vld [vmem:[%s14228_s19 + $0x2a0] sm:$0xff] }
 0xda6   : > { %v4738_v42 = vld [vmem:[%s14228_s19 + $0x2e0] sm:$0xff] }
 0xda7   : > { %6854 = vmatpush1.bf16.msra.mxu1 %v11862_v63  ;;  %v11642_v63 = vcombine.low %v4650_v33, %v4658_v56  ;;  %v11723_v33 = vcombine.high %v4730_v40, %v4738_v42 }
 0xda8   : > { %6940 = vmatpush1.bf16.msra.mxu0 %v11864_v51  ;;  %6855 = vmatprep.subr.bf16.mxu1 %v11879_v1  ;;  %v4667_v51 = vld [vmem:[%s14228_s19 + $0xa8] sm:$0xff] }
 0xda9   : > { %6941 = vmatprep.subr.bf16.mxu0 %v11881_v2  ;;  %v4675_v1 = vld [vmem:[%s14228_s19 + $0xe8] sm:$0xff]  ;;  %v11644_v2 = vcombine.low %v4651_v52, %v4659_v38  ;;  %v4746_v52 = vld [vmem:[%s14228_s19 + $0x320] sm:$0xff] }
 0xdaa   : > { %v11661_v5 = vcombine.high %v4667_v51, %v4675_v1  ;;  %v4754_v38 = vld [vmem:[%s14228_s19 + $0x360] sm:$0xff] }
 0xdab   : > { %6856 = vmatpush1.bf16.msra.mxu1 %v11878_v41  ;;  %v4683_v41 = vld [vmem:[%s14228_s19 + $0x128] sm:$0xff] }
 0xdac   : > { %6942 = vmatpush1.bf16.msra.mxu0 %v11880_v6  ;;  %6868 = vmatprep.subr.bf16.mxu1 %v11895_v55  ;;  %v4691_v6 = vld [vmem:[%s14228_s19 + $0x168] sm:$0xff]  ;;  %v11658_v55 = vcombine.low %v4666_v61, %v4674_v16  ;;  %v11739_v61 = vcombine.high %v4746_v52, %v4754_v38 }
 0xdad   : > { %6954 = vmatprep.subr.bf16.mxu0 %v11897_v7  ;;  %v11660_v7 = vcombine.low %v4667_v51, %v4675_v1  ;;  %v11677_v10 = vcombine.high %v4683_v41, %v4691_v6  ;;  %v4770_v51 = vld [vmem:[%s14228_s19 + $0x3e0] sm:$0xff]  ;;  %v4763_v1 = vld [vmem:[%s14228_s19 + $0x3a8] sm:$0xff] }
 0xdae   : > { %6858 = vmatmul.mubr.bf16.vlgmr.msra.gmra.mrb[52].mxu1 %v15010_v23 }
 0xdaf   : > { %6944 = vmatmul.mubr.bf16.vlgmr.msra.gmra.mrb[60].mxu0 %v15010_v23  ;;  %6869 = vmatpush1.bf16.msra.mxu1 %v11894_v54  ;;  %v4699_v54 = vld [vmem:[%s14228_s19 + $0x1a8] sm:$0xff] }
 0xdb0   : > { %6955 = vmatpush1.bf16.msra.mxu0 %v11896_v20  ;;  %6870 = vmatprep.subr.bf16.mxu1 %v11911_v25  ;;  %v4707_v20 = vld [vmem:[%s14228_s19 + $0x1e8] sm:$0xff]  ;;  %v11674_v25 = vcombine.low %v4682_v4, %v4690_v60 }
 0xdb1   : > { %6956 = vmatprep.subr.bf16.mxu0 %v11913_v26  ;;  %6900 = vmatprep.mubr.bf16.mxu1 %v14063_v9  ;;  %v11676_v26 = vcombine.low %v4683_v41, %v4691_v6  ;;  %v11693_v32 = vcombine.high %v4699_v54, %v4707_v20  ;;  %v4778_v41 = vld [vmem:[%s14228_s19 + $0x420] sm:$0xff] }
 0xdb2   : > { %6986 = vmatprep.mubr.bf16.mxu0 %v14063_v9  ;;  %v4786_v6 = vld [vmem:[%s14228_s19 + $0x460] sm:$0xff] }
 0xdb3   : > { %6871 = vmatpush1.bf16.msra.mxu1 %v11910_v46  ;;  %v4715_v46 = vld [vmem:[%s14228_s19 + $0x228] sm:$0xff] }
 0xdb4   : > { %6957 = vmatpush1.bf16.msra.mxu0 %v11912_v31  ;;  %6872 = vmatprep.subr.bf16.mxu1 %v11927_v48  ;;  %v4723_v31 = vld [vmem:[%s14228_s19 + $0x268] sm:$0xff]  ;;  %v11690_v48 = vcombine.low %v4698_v12, %v4706_v13  ;;  %v11771_v12 = vcombine.high %v4778_v41, %v4786_v6 }
 0xdb5   : > { %6958 = vmatprep.subr.bf16.mxu0 %v11929_v47  ;;  %v11692_v47 = vcombine.low %v4699_v54, %v4707_v20  ;;  %v11709_v24 = vcombine.high %v4715_v46, %v4723_v31  ;;  %v4794_v54 = vld [vmem:[%s14228_s19 + $0x4a0] sm:$0xff] }
 0xdb6   : > { %v4802_v20 = vld [vmem:[%s14228_s19 + $0x4e0] sm:$0xff] }
 0xdb7   : > { %6873 = vmatpush1.bf16.msra.mxu1 %v11926_v50  ;;  %v4731_v50 = vld [vmem:[%s14228_s19 + $0x2a8] sm:$0xff] }
 0xdb8   : > { %6959 = vmatpush1.bf16.msra.mxu0 %v11928_v58  ;;  %6874 = vmatprep.subr.bf16.mxu1 %v11943_v18  ;;  %v4739_v58 = vld [vmem:[%s14228_s19 + $0x2e8] sm:$0xff]  ;;  %v11706_v18 = vcombine.low %v4714_v34, %v4722_v44  ;;  %v11787_v34 = vcombine.high %v4794_v54, %v4802_v20 }
 0xdb9   : > { %6960 = vmatprep.subr.bf16.mxu0 %v11945_v19  ;;  %v11708_v19 = vcombine.low %v4715_v46, %v4723_v31  ;;  %v11725_v56 = vcombine.high %v4731_v50, %v4739_v58  ;;  %v4810_v46 = vld [vmem:[%s14228_s19 + $0x520] sm:$0xff] }
 0xdba   : > { %v4818_v31 = vld [vmem:[%s14228_s19 + $0x560] sm:$0xff] }
 0xdbb   : > { %6875 = vmatpush1.bf16.msra.mxu1 %v11942_v62  ;;  %v4747_v62 = vld [vmem:[%s14228_s19 + $0x328] sm:$0xff] }
 0xdbc   : > { %6961 = vmatpush1.bf16.msra.mxu0 %v11944_v59  ;;  %6997 = vmatprep.subr.bf16.mxu1 %v11643_v37  ;;  %v4755_v59 = vld [vmem:[%s14228_s19 + $0x368] sm:$0xff]  ;;  %v11722_v37 = vcombine.low %v4730_v40, %v4738_v42  ;;  %v11803_v40 = vcombine.high %v4810_v46, %v4818_v31 }
 0xdbd   : > { %7083 = vmatprep.subr.bf16.mxu0 %v11645_v0  ;;  %v11724_v0 = vcombine.low %v4731_v50, %v4739_v58  ;;  %v11741_v16 = vcombine.high %v4747_v62, %v4755_v59  ;;  %v11740_v4 = vcombine.low %v4747_v62, %v4755_v59  ;;  %v4826_v50 = vld [vmem:[%s14228_s19 + $0x5a0] sm:$0xff] }
 0xdbe   : > { %11956 = vmatmul.mubr.msk.bf16.vlgmr.msra.gmra.mrb[52].mxu1 %vm2313_vm1, %v15045_v53  ;;  %v4834_v58 = vld [vmem:[%s14228_s19 + $0x5e0] sm:$0xff] }
 0xdbf   : > { %11957 = vmatmul.mubr.msk.bf16.vlgmr.msra.gmra.mrb[60].mxu0 %vm2313_vm1, %v15045_v53  ;;  %6998 = vmatpush1.bf16.msra.mxu1 %v11642_v63  ;;  %v4762_v63 = vld [vmem:[%s14228_s19 + $0x3a0] sm:$0xff] }
 0xdc0   : > { %7029 = vmatprep.mubr.bf16.mxu1 %v15006_v39  ;;  %7084 = vmatpush1.bf16.msra.mxu0 %v11644_v2  ;;  %v4771_v2 = vld [vmem:[%s14228_s19 + $0x3e8] sm:$0xff]  ;;  %v11755_v60 = vcombine.high %v4762_v63, %v4770_v51  ;;  %v4842_v62 = vld [vmem:[%s14228_s19 + $0x620] sm:$0xff] }
 0xdc1   : > { %7115 = vmatprep.mubr.bf16.mxu0 %v15006_v39  ;;  %6999 = vmatprep.subr.bf16.mxu1 %v11659_v3  ;;  %v11738_v3 = vcombine.low %v4746_v52, %v4754_v38  ;;  %v11819_v52 = vcombine.high %v4826_v50, %v4834_v58  ;;  %v4850_v59 = vld [vmem:[%s14228_s19 + $0x660] sm:$0xff] }
 0xdc2   : > { %7085 = vmatprep.subr.bf16.mxu0 %v11661_v5  ;;  %v11757_v5 = vcombine.high %v4763_v1, %v4771_v2 }
 0xdc3   : > { %7000 = vmatpush1.bf16.msra.mxu1 %v11658_v55  ;;  %v4779_v55 = vld [vmem:[%s14228_s19 + $0x428] sm:$0xff] }
 0xdc4   : > { %7086 = vmatpush1.bf16.msra.mxu0 %v11660_v7  ;;  %7001 = vmatprep.subr.bf16.mxu1 %v11675_v8  ;;  %v4787_v7 = vld [vmem:[%s14228_s19 + $0x468] sm:$0xff]  ;;  %v11754_v8 = vcombine.low %v4762_v63, %v4770_v51  ;;  %v11835_v63 = vcombine.high %v4842_v62, %v4850_v59 }
 0xdc5   : > { %7087 = vmatprep.subr.bf16.mxu0 %v11677_v10  ;;  %v11756_v10 = vcombine.low %v4763_v1, %v4771_v2  ;;  %v11773_v13 = vcombine.high %v4779_v55, %v4787_v7  ;;  %v4858_v1 = vld [vmem:[%s14228_s19 + $0x6a0] sm:$0xff] }
 0xdc6   : > { %v4866_v2 = vld [vmem:[%s14228_s19 + $0x6e0] sm:$0xff] }
 0xdc7   : > { %7002 = vmatpush1.bf16.msra.mxu1 %v11674_v25  ;;  %v4795_v25 = vld [vmem:[%s14228_s19 + $0x4a8] sm:$0xff] }
 0xdc8   : > { %7088 = vmatpush1.bf16.msra.mxu0 %v11676_v26  ;;  %7003 = vmatprep.subr.bf16.mxu1 %v11691_v30  ;;  %v4803_v26 = vld [vmem:[%s14228_s19 + $0x4e8] sm:$0xff]  ;;  %v11770_v30 = vcombine.low %v4778_v41, %v4786_v6  ;;  %v11851_v41 = vcombine.high %v4858_v1, %v4866_v2 }
 0xdc9   : > { %7089 = vmatprep.subr.bf16.mxu0 %v11693_v32  ;;  %v11772_v32 = vcombine.low %v4779_v55, %v4787_v7  ;;  %v11789_v44 = vcombine.high %v4795_v25, %v4803_v26  ;;  %v4874_v55 = vld [vmem:[%s14228_s19 + $0x720] sm:$0xff] }
 0xdca   : > { %v4882_v7 = vld [vmem:[%s14228_s19 + $0x760] sm:$0xff] }
 0xdcb   : > { %7004 = vmatpush1.bf16.msra.mxu1 %v11690_v48  ;;  %v4811_v48 = vld [vmem:[%s14228_s19 + $0x528] sm:$0xff] }
 0xdcc   : > { %7090 = vmatpush1.bf16.msra.mxu0 %v11692_v47  ;;  %7005 = vmatprep.subr.bf16.mxu1 %v11707_v21  ;;  %v4819_v47 = vld [vmem:[%s14228_s19 + $0x568] sm:$0xff]  ;;  %v11786_v21 = vcombine.low %v4794_v54, %v4802_v20  ;;  %v11867_v54 = vcombine.high %v4874_v55, %v4882_v7 }
 0xdcd   : > { %7091 = vmatprep.subr.bf16.mxu0 %v11709_v24  ;;  %v11788_v24 = vcombine.low %v4795_v25, %v4803_v26  ;;  %v11805_v42 = vcombine.high %v4811_v48, %v4819_v47  ;;  %v4890_v25 = vld [vmem:[%s14228_s19 + $0x7a0] sm:$0xff] }
 0xdce   : > { %v4898_v26 = vld [vmem:[%s14228_s19 + $0x7e0] sm:$0xff] }
 0xdcf   : > { %7006 = vmatpush1.bf16.msra.mxu1 %v11706_v18  ;;  %v4827_v18 = vld [vmem:[%s14228_s19 + $0x5a8] sm:$0xff] }
 0xdd0   : > { %7092 = vmatpush1.bf16.msra.mxu0 %v11708_v19  ;;  %7007 = vmatprep.subr.bf16.mxu1 %v11723_v33  ;;  %v4835_v19 = vld [vmem:[%s14228_s19 + $0x5e8] sm:$0xff]  ;;  %v11802_v33 = vcombine.low %v4810_v46, %v4818_v31  ;;  %v11883_v46 = vcombine.high %v4890_v25, %v4898_v26 }
 0xdd1   : > { %7093 = vmatprep.subr.bf16.mxu0 %v11725_v56  ;;  %v11804_v56 = vcombine.low %v4811_v48, %v4819_v47  ;;  %v11821_v38 = vcombine.high %v4827_v18, %v4835_v19  ;;  %v4906_v48 = vld [vmem:[%s14228_s19 + $0x820] sm:$0xff] }
 0xdd2   : > { %v4914_v47 = vld [vmem:[%s14228_s19 + $0x860] sm:$0xff] }
 0xdd3   : > { %7008 = vmatpush1.bf16.msra.mxu1 %v11722_v37  ;;  %v4843_v37 = vld [vmem:[%s14228_s19 + $0x628] sm:$0xff] }
 0xdd4   : > { %7094 = vmatpush1.bf16.msra.mxu0 %v11724_v0  ;;  %7009 = vmatprep.subr.bf16.mxu1 %v11739_v61  ;;  %v4851_v0 = vld [vmem:[%s14228_s19 + $0x668] sm:$0xff]  ;;  %v11818_v61 = vcombine.low %v4826_v50, %v4834_v58  ;;  %v11899_v50 = vcombine.high %v4906_v48, %v4914_v47 }
 0xdd5   : > { %7095 = vmatprep.subr.bf16.mxu0 %v11741_v16  ;;  %v11820_v16 = vcombine.low %v4827_v18, %v4835_v19  ;;  %v11837_v51 = vcombine.high %v4843_v37, %v4851_v0  ;;  %v4922_v18 = vld [vmem:[%s14228_s19 + $0x8a0] sm:$0xff] }
 0xdd6   : > { %v4930_v19 = vld [vmem:[%s14228_s19 + $0x8e0] sm:$0xff] }
 0xdd7   : > { %7010 = vmatpush1.bf16.msra.mxu1 %v11738_v3  ;;  %v4859_v3 = vld [vmem:[%s14228_s19 + $0x6a8] sm:$0xff] }
 0xdd8   : > { %7096 = vmatpush1.bf16.msra.mxu0 %v11740_v4  ;;  %7011 = vmatprep.subr.bf16.mxu1 %v11755_v60  ;;  %v4867_v4 = vld [vmem:[%s14228_s19 + $0x6e8] sm:$0xff]  ;;  %v11834_v60 = vcombine.low %v4842_v62, %v4850_v59  ;;  %v11915_v62 = vcombine.high %v4922_v18, %v4930_v19 }
 0xdd9   : > { %7097 = vmatprep.subr.bf16.mxu0 %v11757_v5  ;;  %v11836_v5 = vcombine.low %v4843_v37, %v4851_v0  ;;  %v11853_v6 = vcombine.high %v4859_v3, %v4867_v4  ;;  %v4938_v37 = vld [vmem:[%s14228_s19 + $0x920] sm:$0xff] }
 0xdda   : > { %v4946_v0 = vld [vmem:[%s14228_s19 + $0x960] sm:$0xff] }
 0xddb   : > { %7012 = vmatpush1.bf16.msra.mxu1 %v11754_v8  ;;  %v4875_v8 = vld [vmem:[%s14228_s19 + $0x728] sm:$0xff] }
 0xddc   : > { %7098 = vmatpush1.bf16.msra.mxu0 %v11756_v10  ;;  %7013 = vmatprep.subr.bf16.mxu1 %v11771_v12  ;;  %v4883_v10 = vld [vmem:[%s14228_s19 + $0x768] sm:$0xff]  ;;  %v11850_v12 = vcombine.low %v4858_v1, %v4866_v2  ;;  %v11931_v1 = vcombine.high %v4938_v37, %v4946_v0 }
 0xddd   : > { %7099 = vmatprep.subr.bf16.mxu0 %v11773_v13  ;;  %v11852_v13 = vcombine.low %v4859_v3, %v4867_v4  ;;  %v11869_v20 = vcombine.high %v4875_v8, %v4883_v10  ;;  %v4954_v3 = vld [vmem:[%s14228_s19 + $0x9a0] sm:$0xff] }
 0xdde   : > { %v4962_v4 = vld [vmem:[%s14228_s19 + $0x9e0] sm:$0xff] }
 0xddf   : > { %7014 = vmatpush1.bf16.msra.mxu1 %v11770_v30  ;;  %v4891_v30 = vld [vmem:[%s14228_s19 + $0x7a8] sm:$0xff] }
 0xde0   : > { %7100 = vmatpush1.bf16.msra.mxu0 %v11772_v32  ;;  %7015 = vmatprep.subr.bf16.mxu1 %v11787_v34  ;;  %v4899_v32 = vld [vmem:[%s14228_s19 + $0x7e8] sm:$0xff]  ;;  %v11866_v34 = vcombine.low %v4874_v55, %v4882_v7  ;;  %v11947_v55 = vcombine.high %v4954_v3, %v4962_v4 }
 0xde1   : > { %7101 = vmatprep.subr.bf16.mxu0 %v11789_v44  ;;  %v11868_v44 = vcombine.low %v4875_v8, %v4883_v10  ;;  %v11885_v31 = vcombine.high %v4891_v30, %v4899_v32  ;;  %v4652_v8 = vld [vmem:[%s14228_s19 + $0x30] sm:$0xff] }
 0xde2   : > { %v4660_v10 = vld [vmem:[%s14228_s19 + $0x70] sm:$0xff] }
 0xde3   : > { %7016 = vmatpush1.bf16.msra.mxu1 %v11786_v21  ;;  %v4907_v21 = vld [vmem:[%s14228_s19 + $0x828] sm:$0xff] }
 0xde4   : > { %7102 = vmatpush1.bf16.msra.mxu0 %v11788_v24  ;;  %7017 = vmatprep.subr.bf16.mxu1 %v11803_v40  ;;  %v4915_v24 = vld [vmem:[%s14228_s19 + $0x868] sm:$0xff]  ;;  %v11882_v40 = vcombine.low %v4890_v25, %v4898_v26  ;;  %v11647_v25 = vcombine.high %v4652_v8, %v4660_v10 }
 0xde5   : > { %7103 = vmatprep.subr.bf16.mxu0 %v11805_v42  ;;  %v11884_v42 = vcombine.low %v4891_v30, %v4899_v32  ;;  %v11901_v58 = vcombine.high %v4907_v21, %v4915_v24  ;;  %v4668_v30 = vld [vmem:[%s14228_s19 + $0xb0] sm:$0xff] }
 0xde6   : > { %v4676_v32 = vld [vmem:[%s14228_s19 + $0xf0] sm:$0xff] }
 0xde7   : > { %7018 = vmatpush1.bf16.msra.mxu1 %v11802_v33  ;;  %v4923_v33 = vld [vmem:[%s14228_s19 + $0x8a8] sm:$0xff] }
 0xde8   : > { %7104 = vmatpush1.bf16.msra.mxu0 %v11804_v56  ;;  %7019 = vmatprep.subr.bf16.mxu1 %v11819_v52  ;;  %v4931_v56 = vld [vmem:[%s14228_s19 + $0x8e8] sm:$0xff]  ;;  %v11898_v52 = vcombine.low %v4906_v48, %v4914_v47  ;;  %v11663_v48 = vcombine.high %v4668_v30, %v4676_v32  ;;  %v4684_v47 = vld [vmem:[%s14228_s19 + $0x130] sm:$0xff] }
 0xde9   : > { %7105 = vmatprep.subr.bf16.mxu0 %v11821_v38  ;;  %v11900_v38 = vcombine.low %v4907_v21, %v4915_v24  ;;  %v11917_v59 = vcombine.high %v4923_v33, %v4931_v56  ;;  %v4692_v21 = vld [vmem:[%s14228_s19 + $0x170] sm:$0xff] }
 0xdeb   : > { %7020 = vmatpush1.bf16.msra.mxu1 %v11818_v61  ;;  %v4939_v61 = vld [vmem:[%s14228_s19 + $0x928] sm:$0xff] }
 0xdec   : > { %7106 = vmatpush1.bf16.msra.mxu0 %v11820_v16  ;;  %7021 = vmatprep.subr.bf16.mxu1 %v11835_v63  ;;  %v4947_v16 = vld [vmem:[%s14228_s19 + $0x968] sm:$0xff]  ;;  %v11914_v63 = vcombine.low %v4922_v18, %v4930_v19  ;;  %v11679_v18 = vcombine.high %v4684_v47, %v4692_v21 }
 0xded   : > { %7107 = vmatprep.subr.bf16.mxu0 %v11837_v51  ;;  %v11916_v51 = vcombine.low %v4923_v33, %v4931_v56  ;;  %v11933_v2 = vcombine.high %v4939_v61, %v4947_v16  ;;  %v4700_v33 = vld [vmem:[%s14228_s19 + $0x1b0] sm:$0xff] }
 0xdee   : > { %v4708_v56 = vld [vmem:[%s14228_s19 + $0x1f0] sm:$0xff] }
 0xdef   : > { %7022 = vmatpush1.bf16.msra.mxu1 %v11834_v60  ;;  %v4955_v60 = vld [vmem:[%s14228_s19 + $0x9a8] sm:$0xff] }
 0xdf0   : > { %7108 = vmatpush1.bf16.msra.mxu0 %v11836_v5  ;;  %7023 = vmatprep.subr.bf16.mxu1 %v11851_v41  ;;  %v4963_v5 = vld [vmem:[%s14228_s19 + $0x9e8] sm:$0xff]  ;;  %v11930_v41 = vcombine.low %v4938_v37, %v4946_v0  ;;  %v11695_v37 = vcombine.high %v4700_v33, %v4708_v56  ;;  %v4716_v0 = vld [vmem:[%s14228_s19 + $0x230] sm:$0xff] }
 0xdf1   : > { %7109 = vmatprep.subr.bf16.mxu0 %v11853_v6  ;;  %v11932_v6 = vcombine.low %v4939_v61, %v4947_v16  ;;  %v11949_v7 = vcombine.high %v4955_v60, %v4963_v5  ;;  %v4724_v61 = vld [vmem:[%s14228_s19 + $0x270] sm:$0xff]  ;;  %v4717_v16 = vld [vmem:[%s14228_s19 + $0x238] sm:$0xff] }
 0xdf3   : > { %7024 = vmatpush1.bf16.msra.mxu1 %v11850_v12  ;;  %v4653_v12 = vld [vmem:[%s14228_s19 + $0x38] sm:$0xff] }
 0xdf4   : > { %7110 = vmatpush1.bf16.msra.mxu0 %v11852_v13  ;;  %7025 = vmatprep.subr.bf16.mxu1 %v11867_v54  ;;  %v4661_v13 = vld [vmem:[%s14228_s19 + $0x78] sm:$0xff]  ;;  %v11946_v54 = vcombine.low %v4954_v3, %v4962_v4  ;;  %v4732_v4 = vld [vmem:[%s14228_s19 + $0x2b0] sm:$0xff] }
 0xdf5   : > { %7111 = vmatprep.subr.bf16.mxu0 %v11869_v20  ;;  %v11948_v20 = vcombine.low %v4955_v60, %v4963_v5  ;;  %v11649_v26 = vcombine.high %v4653_v12, %v4661_v13  ;;  %v4740_v60 = vld [vmem:[%s14228_s19 + $0x2f0] sm:$0xff]  ;;  %v4733_v5 = vld [vmem:[%s14228_s19 + $0x2b8] sm:$0xff] }
 0xdf7   : > { %7026 = vmatpush1.bf16.msra.mxu1 %v11866_v34  ;;  %v11646_v34 = vcombine.low %v4652_v8, %v4660_v10  ;;  %v4748_v10 = vld [vmem:[%s14228_s19 + $0x330] sm:$0xff] }
 0xdf8   : > { %7112 = vmatpush1.bf16.msra.mxu0 %v11868_v44  ;;  %7027 = vmatprep.subr.bf16.mxu1 %v11883_v46  ;;  %v4669_v44 = vld [vmem:[%s14228_s19 + $0xb8] sm:$0xff] }
 0xdf9   : > { %7113 = vmatprep.subr.bf16.mxu0 %v11885_v31  ;;  %v4677_v46 = vld [vmem:[%s14228_s19 + $0xf8] sm:$0xff]  ;;  %v11648_v31 = vcombine.low %v4653_v12, %v4661_v13  ;;  %v4756_v12 = vld [vmem:[%s14228_s19 + $0x370] sm:$0xff] }
 0xdfa   : > { %v11665_v24 = vcombine.high %v4669_v44, %v4677_v46  ;;  %v4749_v13 = vld [vmem:[%s14228_s19 + $0x338] sm:$0xff] }
 0xdfb   : > { %7028 = vmatpush1.bf16.msra.mxu1 %v11882_v40  ;;  %v4685_v40 = vld [vmem:[%s14228_s19 + $0x138] sm:$0xff] }
 0xdfc   : > { %7114 = vmatpush1.bf16.msra.mxu0 %v11884_v42  ;;  %7040 = vmatprep.subr.bf16.mxu1 %v11899_v50  ;;  %v4693_v42 = vld [vmem:[%s14228_s19 + $0x178] sm:$0xff]  ;;  %v11662_v50 = vcombine.low %v4668_v30, %v4676_v32  ;;  %v4764_v32 = vld [vmem:[%s14228_s19 + $0x3b0] sm:$0xff] }
 0xdfd   : > { %7126 = vmatprep.subr.bf16.mxu0 %v11901_v58  ;;  %v11664_v58 = vcombine.low %v4669_v44, %v4677_v46  ;;  %v11681_v19 = vcombine.high %v4685_v40, %v4693_v42  ;;  %v4765_v44 = vld [vmem:[%s14228_s19 + $0x3b8] sm:$0xff] }
 0xdfe   : > { %7030 = vmatmul.mubr.bf16.vlgmr.msra.gmra.mrb[56].mxu1 %v15010_v23  ;;  %v4773_v46 = vld [vmem:[%s14228_s19 + $0x3f8] sm:$0xff] }
 0xdff   : > { %7116 = vmatmul.mubr.bf16.vlgmr.msra.gmra.mrb[64].mxu0 %v15010_v23  ;;  %7041 = vmatpush1.bf16.msra.mxu1 %v11898_v52  ;;  %v4701_v52 = vld [vmem:[%s14228_s19 + $0x1b8] sm:$0xff] }
 0xe00   : > { %7127 = vmatpush1.bf16.msra.mxu0 %v11900_v38  ;;  %7042 = vmatprep.subr.bf16.mxu1 %v11915_v62  ;;  %v4709_v38 = vld [vmem:[%s14228_s19 + $0x1f8] sm:$0xff]  ;;  %v11678_v62 = vcombine.low %v4684_v47, %v4692_v21  ;;  %v11761_v21 = vcombine.high %v4765_v44, %v4773_v46 }
 0xe01   : > { %7128 = vmatprep.subr.bf16.mxu0 %v11917_v59  ;;  %7072 = vmatprep.mubr.bf16.mxu1 %v14063_v9  ;;  %v11680_v59 = vcombine.low %v4685_v40, %v4693_v42  ;;  %v4788_v40 = vld [vmem:[%s14228_s19 + $0x470] sm:$0xff]  ;;  %v4781_v42 = vld [vmem:[%s14228_s19 + $0x438] sm:$0xff] }
 0xe02   : > { %7158 = vmatprep.mubr.bf16.mxu0 %v14063_v9 }
 0xe03   : > { %7043 = vmatpush1.bf16.msra.mxu1 %v11914_v63  ;;  %v4725_v63 = vld [vmem:[%s14228_s19 + $0x278] sm:$0xff] }
 0xe04   : > { %7129 = vmatpush1.bf16.msra.mxu0 %v11916_v51  ;;  %7044 = vmatprep.subr.bf16.mxu1 %v11931_v1  ;;  %v11694_v51 = vcombine.low %v4700_v33, %v4708_v56  ;;  %v11696_v1 = vcombine.low %v4701_v52, %v4709_v38  ;;  %v11713_v3 = vcombine.high %v4717_v16, %v4725_v63  ;;  %v4796_v56 = vld [vmem:[%s14228_s19 + $0x4b0] sm:$0xff] }
 0xe05   : > { %7130 = vmatprep.subr.bf16.mxu0 %v11933_v2  ;;  %v11711_v2 = vcombine.high %v4716_v0, %v4724_v61 }
 0xe07   : > { %7045 = vmatpush1.bf16.msra.mxu1 %v11930_v41  ;;  %v4741_v41 = vld [vmem:[%s14228_s19 + $0x2f8] sm:$0xff] }
 0xe08   : > { %7131 = vmatpush1.bf16.msra.mxu0 %v11932_v6  ;;  %7046 = vmatprep.subr.bf16.mxu1 %v11947_v55  ;;  %v11710_v6 = vcombine.low %v4716_v0, %v4724_v61  ;;  %v11712_v55 = vcombine.low %v4717_v16, %v4725_v63  ;;  %v11729_v8 = vcombine.high %v4733_v5, %v4741_v41  ;;  %v4812_v61 = vld [vmem:[%s14228_s19 + $0x530] sm:$0xff]  ;;  %v4813_v63 = vld [vmem:[%s14228_s19 + $0x538] sm:$0xff] }
 0xe09   : > { %7132 = vmatprep.subr.bf16.mxu0 %v11949_v7  ;;  %v11727_v7 = vcombine.high %v4732_v4, %v4740_v60  ;;  %v4820_v16 = vld [vmem:[%s14228_s19 + $0x570] sm:$0xff] }
 0xe0b   : > { %7047 = vmatpush1.bf16.msra.mxu1 %v11946_v54  ;;  %v4757_v54 = vld [vmem:[%s14228_s19 + $0x378] sm:$0xff] }
 0xe0c   : > { %7133 = vmatpush1.bf16.msra.mxu0 %v11948_v20  ;;  %7169 = vmatprep.subr.bf16.mxu1 %v11647_v25  ;;  %v11726_v20 = vcombine.low %v4732_v4, %v4740_v60  ;;  %v11728_v25 = vcombine.low %v4733_v5, %v4741_v41  ;;  %v11745_v30 = vcombine.high %v4749_v13, %v4757_v54  ;;  %v4828_v60 = vld [vmem:[%s14228_s19 + $0x5b0] sm:$0xff]  ;;  %v4829_v41 = vld [vmem:[%s14228_s19 + $0x5b8] sm:$0xff] }
 0xe0d   : > { %7255 = vmatprep.subr.bf16.mxu0 %v11649_v26  ;;  %v11743_v26 = vcombine.high %v4748_v10, %v4756_v12  ;;  %v4836_v5 = vld [vmem:[%s14228_s19 + $0x5f0] sm:$0xff] }
 0xe0e   : > { %11958 = vmatmul.mubr.msk.bf16.vlgmr.msra.gmra.mrb[56].mxu1 %vm2313_vm1, %v15045_v53 }
 0xe0f   : > { %11959 = vmatmul.mubr.msk.bf16.vlgmr.msra.gmra.mrb[64].mxu0 %vm2313_vm1, %v15045_v53  ;;  %7170 = vmatpush1.bf16.msra.mxu1 %v11646_v34  ;;  %v4772_v34 = vld [vmem:[%s14228_s19 + $0x3f0] sm:$0xff] }
 0xe10   : > { %7201 = vmatprep.mubr.bf16.mxu1 %v15006_v39  ;;  %7256 = vmatpush1.bf16.msra.mxu0 %v11648_v31  ;;  %v11742_v31 = vcombine.low %v4748_v10, %v4756_v12  ;;  %v11759_v47 = vcombine.high %v4764_v32, %v4772_v34  ;;  %v4844_v12 = vld [vmem:[%s14228_s19 + $0x630] sm:$0xff] }
 0xe11   : > { %7287 = vmatprep.mubr.bf16.mxu0 %v15006_v39  ;;  %7171 = vmatprep.subr.bf16.mxu1 %v11663_v48  ;;  %v11697_v39 = vcombine.high %v4701_v52, %v4709_v38  ;;  %v11744_v48 = vcombine.low %v4749_v13, %v4757_v54  ;;  %v4804_v52 = vld [vmem:[%s14228_s19 + $0x4f0] sm:$0xff]  ;;  %v4797_v38 = vld [vmem:[%s14228_s19 + $0x4b8] sm:$0xff] }
 0xe12   : > { %7257 = vmatprep.subr.bf16.mxu0 %v11665_v24  ;;  %v4780_v24 = vld [vmem:[%s14228_s19 + $0x430] sm:$0xff]  ;;  %v4845_v54 = vld [vmem:[%s14228_s19 + $0x638] sm:$0xff] }
 0xe13   : > { %7172 = vmatpush1.bf16.msra.mxu1 %v11662_v50  ;;  %v4789_v50 = vld [vmem:[%s14228_s19 + $0x478] sm:$0xff]  ;;  %v4852_v13 = vld [vmem:[%s14228_s19 + $0x670] sm:$0xff] }
 0xe14   : > { %7258 = vmatpush1.bf16.msra.mxu0 %v11664_v58  ;;  %7173 = vmatprep.subr.bf16.mxu1 %v11679_v18  ;;  %v11758_v58 = vcombine.low %v4764_v32, %v4772_v34  ;;  %v11760_v18 = vcombine.low %v4765_v44, %v4773_v46  ;;  %v11777_v33 = vcombine.high %v4781_v42, %v4789_v50  ;;  %v4860_v34 = vld [vmem:[%s14228_s19 + $0x6b0] sm:$0xff]  ;;  %v4861_v46 = vld [vmem:[%s14228_s19 + $0x6b8] sm:$0xff] }
 0xe15   : > { %7259 = vmatprep.subr.bf16.mxu0 %v11681_v19  ;;  %v11775_v19 = vcombine.high %v4780_v24, %v4788_v40  ;;  %v4868_v44 = vld [vmem:[%s14228_s19 + $0x6f0] sm:$0xff] }
 0xe17   : > { %7174 = vmatpush1.bf16.msra.mxu1 %v11678_v62  ;;  %v4805_v62 = vld [vmem:[%s14228_s19 + $0x4f8] sm:$0xff] }
 0xe18   : > { %7260 = vmatpush1.bf16.msra.mxu0 %v11680_v59  ;;  %7175 = vmatprep.subr.bf16.mxu1 %v11695_v37  ;;  %v11774_v59 = vcombine.low %v4780_v24, %v4788_v40  ;;  %v11776_v37 = vcombine.low %v4781_v42, %v4789_v50  ;;  %v11793_v0 = vcombine.high %v4797_v38, %v4805_v62  ;;  %v4876_v42 = vld [vmem:[%s14228_s19 + $0x730] sm:$0xff] }
 0xe19   : > { %7261 = vmatprep.subr.bf16.mxu0 %v11697_v39  ;;  %v11791_v39 = vcombine.high %v4796_v56, %v4804_v52  ;;  %v11855_v24 = vcombine.high %v4860_v34, %v4868_v44  ;;  %v4884_v50 = vld [vmem:[%s14228_s19 + $0x770] sm:$0xff] }
 0xe1b   : > { %7176 = vmatpush1.bf16.msra.mxu1 %v11694_v51  ;;  %v4821_v51 = vld [vmem:[%s14228_s19 + $0x578] sm:$0xff] }
 0xe1c   : > { %7262 = vmatpush1.bf16.msra.mxu0 %v11696_v1  ;;  %7177 = vmatprep.subr.bf16.mxu1 %v11711_v2  ;;  %v11790_v1 = vcombine.low %v4796_v56, %v4804_v52  ;;  %v11792_v2 = vcombine.low %v4797_v38, %v4805_v62  ;;  %v11809_v4 = vcombine.high %v4813_v63, %v4821_v51 }
 0xe1d   : > { %7263 = vmatprep.subr.bf16.mxu0 %v11713_v3  ;;  %v11807_v3 = vcombine.high %v4812_v61, %v4820_v16  ;;  %v11854_v38 = vcombine.low %v4860_v34, %v4868_v44  ;;  %v4908_v34 = vld [vmem:[%s14228_s19 + $0x830] sm:$0xff] }
 0xe1e   : > { %v4916_v44 = vld [vmem:[%s14228_s19 + $0x870] sm:$0xff] }
 0xe1f   : > { %7178 = vmatpush1.bf16.msra.mxu1 %v11710_v6  ;;  %v4837_v6 = vld [vmem:[%s14228_s19 + $0x5f8] sm:$0xff] }
 0xe20   : > { %7264 = vmatpush1.bf16.msra.mxu0 %v11712_v55  ;;  %7179 = vmatprep.subr.bf16.mxu1 %v11727_v7  ;;  %v11806_v55 = vcombine.low %v4812_v61, %v4820_v16  ;;  %v11808_v7 = vcombine.low %v4813_v63, %v4821_v51  ;;  %v11825_v10 = vcombine.high %v4829_v41, %v4837_v6 }
 0xe21   : > { %7265 = vmatprep.subr.bf16.mxu0 %v11729_v8  ;;  %v11823_v8 = vcombine.high %v4828_v60, %v4836_v5 }
 0xe23   : > { %7180 = vmatpush1.bf16.msra.mxu1 %v11726_v20  ;;  %v4853_v20 = vld [vmem:[%s14228_s19 + $0x678] sm:$0xff] }
 0xe24   : > { %7266 = vmatpush1.bf16.msra.mxu0 %v11728_v25  ;;  %7181 = vmatprep.subr.bf16.mxu1 %v11743_v26  ;;  %v11822_v25 = vcombine.low %v4828_v60, %v4836_v5  ;;  %v11824_v26 = vcombine.low %v4829_v41, %v4837_v6  ;;  %v11841_v32 = vcombine.high %v4845_v54, %v4853_v20  ;;  %v4901_v60 = vld [vmem:[%s14228_s19 + $0x7f8] sm:$0xff] }
 0xe25   : > { %7267 = vmatprep.subr.bf16.mxu0 %v11745_v30  ;;  %v11839_v30 = vcombine.high %v4844_v12, %v4852_v13 }
 0xe27   : > { %7182 = vmatpush1.bf16.msra.mxu1 %v11742_v31  ;;  %v4869_v31 = vld [vmem:[%s14228_s19 + $0x6f8] sm:$0xff] }
 0xe28   : > { %7268 = vmatpush1.bf16.msra.mxu0 %v11744_v48  ;;  %7183 = vmatprep.subr.bf16.mxu1 %v11759_v47  ;;  %v11838_v48 = vcombine.low %v4844_v12, %v4852_v13  ;;  %v15282_v47 = vld [vmem:[%s15974_s25] sm:$0xff]  ;;  %v11857_v40 = vcombine.high %v4861_v46, %v4869_v31  ;;  %v11856_v62 = vcombine.low %v4861_v46, %v4869_v31 }
 0xe29   : > { %7269 = vmatprep.subr.bf16.mxu0 %v11761_v21  ;;  %v11840_v21 = vcombine.low %v4845_v54, %v4853_v20  ;;  %v4977_v56 = vrot.slane %v15282_v47, %v14617_v14  ;;  %v4985_v52 = vrot.slane %v15282_v47, %v14561_v57 }
 0xe2b   : > { %7184 = vmatpush1.bf16.msra.mxu1 %v11758_v58  ;;  %v4973_v58 = vrot.slane %v15282_v47, %v14593_v45 }
 0xe2c   : > { %7270 = vmatpush1.bf16.msra.mxu0 %v11760_v18  ;;  %7185 = vmatprep.subr.bf16.mxu1 %v11775_v19  ;;  %v4981_v18 = vrot.slane %v15282_v47, %v14555_v22  ;;  %v4877_v19 = vld [vmem:[%s14228_s19 + $0x738] sm:$0xff] }
 0xe2d   : > { %7271 = vmatprep.subr.bf16.mxu0 %v11777_v33  ;;  %v4885_v33 = vld [vmem:[%s14228_s19 + $0x778] sm:$0xff] }
 0xe2e   : > { %v11873_v16 = vcombine.high %v4877_v19, %v4885_v33 }
 0xe2f   : > { %7186 = vmatpush1.bf16.msra.mxu1 %v11774_v59  ;;  %v11871_v59 = vcombine.high %v4876_v42, %v4884_v50 }
 0xe30   : > { %7272 = vmatpush1.bf16.msra.mxu0 %v11776_v37  ;;  %7187 = vmatprep.subr.bf16.mxu1 %v11791_v39  ;;  %v4892_v37 = vld [vmem:[%s14228_s19 + $0x7b0] sm:$0xff] }
 0xe31   : > { %7273 = vmatprep.subr.bf16.mxu0 %v11793_v0  ;;  %v4900_v39 = vld [vmem:[%s14228_s19 + $0x7f0] sm:$0xff] }
 0xe32   : > { %v11887_v20 = vcombine.high %v4892_v37, %v4900_v39 }
 0xe33   : > { %7188 = vmatpush1.bf16.msra.mxu1 %v11790_v1 }
 0xe34   : > { %7274 = vmatpush1.bf16.msra.mxu0 %v11792_v2  ;;  %7189 = vmatprep.subr.bf16.mxu1 %v11807_v3  ;;  %v11870_v3 = vcombine.low %v4876_v42, %v4884_v50 }
 0xe35   : > { %7275 = vmatprep.subr.bf16.mxu0 %v11809_v4  ;;  %v4893_v4 = vld [vmem:[%s14228_s19 + $0x7b8] sm:$0xff] }
 0xe37   : > { %7190 = vmatpush1.bf16.msra.mxu1 %v11806_v55 }
 0xe38   : > { %7276 = vmatpush1.bf16.msra.mxu0 %v11808_v7  ;;  %7191 = vmatprep.subr.bf16.mxu1 %v11823_v8  ;;  %v11872_v7 = vcombine.low %v4877_v19, %v4885_v33  ;;  %v11886_v8 = vcombine.low %v4892_v37, %v4900_v39  ;;  %v4932_v37 = vld [vmem:[%s14228_s19 + $0x8f0] sm:$0xff]  ;;  %v4925_v39 = vld [vmem:[%s14228_s19 + $0x8b8] sm:$0xff] }
 0xe39   : > { %7277 = vmatprep.subr.bf16.mxu0 %v11825_v10 }
 0xe3b   : > { %7192 = vmatpush1.bf16.msra.mxu1 %v11822_v25 }
 0xe3c   : > { %7278 = vmatpush1.bf16.msra.mxu0 %v11824_v26  ;;  %7193 = vmatprep.subr.bf16.mxu1 %v11839_v30  ;;  %v11888_v30 = vcombine.low %v4893_v4, %v4901_v60 }
 0xe3d   : > { %7279 = vmatprep.subr.bf16.mxu0 %v11841_v32  ;;  %v11889_v32 = vcombine.high %v4893_v4, %v4901_v60  ;;  %v4949_v4 = vld [vmem:[%s14228_s19 + $0x978] sm:$0xff] }
 0xe3f   : > { %7194 = vmatpush1.bf16.msra.mxu1 %v11838_v48 }
 0xe40   : > { %7280 = vmatpush1.bf16.msra.mxu0 %v11840_v21  ;;  %7195 = vmatprep.subr.bf16.mxu1 %v11855_v24  ;;  %v4909_v24 = vld [vmem:[%s14228_s19 + $0x838] sm:$0xff] }
 0xe41   : > { %v6730_v0 = vpop.f32.mrb[48].mxu1  ;;  %v6816_v61 = vpop.f32.mrb[56].mxu0  ;;  %7281 = vmatprep.subr.bf16.mxu0 %v11857_v40  ;;  %v4917_v40 = vld [vmem:[%s14228_s19 + $0x878] sm:$0xff] }
 0xe42   : > { %v12816_v63 = vadd.f32 %v6730_v0, %v4973_v58  ;;  %v12820_v51 = vadd.f32 %v6816_v61, %v4981_v18  ;;  %v6732_v1 = vpop.f32.mrb[49].mxu1  ;;  %v6818_v2 = vpop.f32.mrb[57].mxu0  ;;  %v4933_v0 = vld [vmem:[%s14228_s19 + $0x8f8] sm:$0xff]  ;;  %v11902_v61 = vcombine.low %v4908_v34, %v4916_v44 }
 0xe43   : > { %v12817_v5 = vadd.f32 %v6732_v1, %v4977_v56  ;;  %v12821_v41 = vadd.f32 %v6818_v2, %v4985_v52  ;;  %v6734_v6 = vpop.f32.mrb[50].mxu1  ;;  %v6820_v55 = vpop.f32.mrb[58].mxu0  ;;  %7196 = vmatpush1.bf16.msra.mxu1 %v11854_v38  ;;  %v4940_v1 = vld [vmem:[%s14228_s19 + $0x930] sm:$0xff] }
 0xe44   : > { %v12818_v10 = vadd.f32 %v6734_v6, %v4973_v58  ;;  %v12822_v12 = vadd.f32 %v6820_v55, %v4981_v18  ;;  %7282 = vmatpush1.bf16.msra.mxu0 %v11856_v62  ;;  %v6736_v13 = vpop.f32.mrb[51].mxu1  ;;  %v6822_v54 = vpop.f32.mrb[59].mxu0  ;;  %7197 = vmatprep.subr.bf16.mxu1 %v11871_v59  ;;  %v7341_v46 = vmax.f32 %v12816_v63, 0.0  ;;  %v7343_v31 = vmax.f32 %v12820_v51, 0.0  ;;  %v4924_v59 = vld [vmem:[%s14228_s19 + $0x8b0] sm:$0xff] }
 0xe45   : > { %v12819_v25 = vadd.f32 %v6736_v13, %v4977_v56  ;;  %v12823_v26 = vadd.f32 %v6822_v54, %v4985_v52  ;;  %7283 = vmatprep.subr.bf16.mxu0 %v11873_v16  ;;  %v7342_v42 = vmax.f32 %v12817_v5, 0.0  ;;  %v7344_v50 = vmax.f32 %v12821_v41, 0.0  ;;  %v4948_v2 = vld [vmem:[%s14228_s19 + $0x970] sm:$0xff] }
 0xe46   : > { %v7357_v48 = vmax.f32 %v12818_v10, 0.0  ;;  %v7359_v21 = vmax.f32 %v12822_v12, 0.0  ;;  %v11903_v56 = vcombine.high %v4908_v34, %v4916_v44  ;;  %v11905_v62 = vcombine.high %v4909_v24, %v4917_v40  ;;  %v4956_v55 = vld [vmem:[%s14228_s19 + $0x9b0] sm:$0xff]  ;;  %v4965_v10 = vld [vmem:[%s14228_s19 + $0x9f8] sm:$0xff]  ;;  %v13469_v44 = vld [vmem:[%s14237_s14 + $0xe0] ss:$12 sps:$4 sm:$0xff]  }
 0xe47   : > { %v7358_v58 = vmax.f32 %v12819_v25, 0.0  ;;  %v7360_v18 = vmax.f32 %v12823_v26, 0.0  ;;  %7198 = vmatpush1.bf16.msra.mxu1 %v11870_v3  ;;  %v11904_v16 = vcombine.low %v4909_v24, %v4917_v40  ;;  %v11919_v63 = vcombine.high %v4924_v59, %v4932_v37  ;;  %v4941_v3 = vld [vmem:[%s14228_s19 + $0x938] sm:$0xff]  ;;  %v13464_v26 = vld [vmem:[%s14237_s14 + $0xc8] ss:$12 sps:$4 sm:$0xff]  }
 0xe48   : > { %v15304_v19 = vpack.c.bf16 %v7357_v48, %v7341_v46  ;;  %v15306_v33 = vpack.c.bf16 %v7359_v21, %v7343_v31  ;;  %7284 = vmatpush1.bf16.msra.mxu0 %v11872_v7  ;;  %7199 = vmatprep.subr.bf16.mxu1 %v11887_v20  ;;  %v11921_v51 = vcombine.high %v4925_v39, %v4933_v0  ;;  %v4964_v7 = vld [vmem:[%s14228_s19 + $0x9f0] sm:$0xff]  ;;  %v13468_v34 = vld [vmem:[%s14237_s14 + $0x1c] ss:$12 sps:$4 sm:$0xff]   ;;  %v13466_v46 = vld [vmem:[%s14237_s14 + $0x18] ss:$12 sps:$4 sm:$0xff]  }
 0xe49   : > { %v15308_v52 = vpack.c.bf16 %v7358_v58, %v7342_v42  ;;  %v15310_v38 = vpack.c.bf16 %v7360_v18, %v7344_v50  ;;  %7285 = vmatprep.subr.bf16.mxu0 %v11889_v32  ;;  %v11918_v60 = vcombine.low %v4924_v59, %v4932_v37  ;;  %v11920_v5 = vcombine.low %v4925_v39, %v4933_v0  ;;  %v13465_v32 = vld [vmem:[%s14237_s14 + $0x8] ss:$12 sps:$4 sm:$0xff]   ;;  %v13470_v31 = vld [vmem:[%s14237_s14 + $0x20] ss:$12 sps:$4 sm:$0xff]   ;;  %v13474_v21 = vld [vmem:[%s14237_s14 + $0xf8] ss:$12 sps:$4 sm:$0xff]  }
 0xe4a   : > { %v11935_v41 = vcombine.high %v4940_v1, %v4948_v2  ;;  %v11937_v6 = vcombine.high %v4941_v3, %v4949_v4  ;;  %v11936_v12 = vcombine.low %v4941_v3, %v4949_v4  ;;  %v11951_v13 = vcombine.high %v4956_v55, %v4964_v7  ;;  %v13473_v48 = vld [vmem:[%s14237_s14 + $0x34] ss:$12 sps:$4 sm:$0xff]   ;;  %v13475_v24 = vld [vmem:[%s14237_s14 + $0x38] ss:$12 sps:$4 sm:$0xff]   ;;  %v13479_v42 = vld [vmem:[%s14237_s14 + $0x110] ss:$12 sps:$4 sm:$0xff]  }
 0xe4b   : > { %7200 = vmatpush1.bf16.msra.mxu1 %v11886_v8  ;;  %v4957_v8 = vld [vmem:[%s14228_s19 + $0x9b8] sm:$0xff]  ;;  %v11950_v20 = vcombine.low %v4956_v55, %v4964_v7  ;;  %v13476_v50 = vld [vmem:[%s14237_s14 + $0x48] ss:$12 sps:$4 sm:$0xff]   ;;  %v13483_v18 = vld [vmem:[%s14237_s14 + $0x64] ss:$12 sps:$4 sm:$0xff]  }
 0xe4c   : > { %7286 = vmatpush1.bf16.msra.mxu0 %v11888_v30  ;;  %7212 = vmatprep.subr.bf16.mxu1 %v11903_v56  ;;  %v11953_v54 = vcombine.high %v4957_v8, %v4965_v10  ;;  %v11952_v25 = vcombine.low %v4957_v8, %v4965_v10  ;;  %v13461_v30 = vld [vmem:[%s14237_s14] ss:$12 sps:$4 sm:$0xff]   ;;  %v13480_v58 = vld [vmem:[%s14237_s14 + $0x50] ss:$12 sps:$4 sm:$0xff]   ;;  %v13484_v56 = vld [vmem:[%s14237_s14 + $0x128] ss:$12 sps:$4 sm:$0xff]  }
 0xe4d   : > { %7298 = vmatprep.subr.bf16.mxu0 %v11905_v62  ;;  %v13478_v40 = vld [vmem:[%s14237_s14 + $0x4c] ss:$12 sps:$4 sm:$0xff]   ;;  %v13485_v62 = vld [vmem:[%s14237_s14 + $0x68] ss:$12 sps:$4 sm:$0xff]   ;;  %v13500_v4 = vld [vmem:[%s14237_s14 + $0xb0] ss:$12 sps:$4 sm:$0xff]  }
 0xe4e   : > { %7202 = vmatmul.mubr.bf16.vlgmr.msra.gmra.mrb[60].mxu1 %v15010_v23  ;;  %v13488_v59 = vld [vmem:[%s14237_s14 + $0x7c] ss:$12 sps:$4 sm:$0xff]   ;;  %v13489_v37 = vld [vmem:[%s14237_s14 + $0x140] ss:$12 sps:$4 sm:$0xff]   ;;  %v13486_v39 = vld [vmem:[%s14237_s14 + $0x78] ss:$12 sps:$4 sm:$0xff]  }
 0xe4f   : > { %7288 = vmatmul.mubr.bf16.vlgmr.msra.gmra.mrb[68].mxu0 %v15010_v23  ;;  %7213 = vmatpush1.bf16.msra.mxu1 %v11902_v61  ;;  %v11934_v23 = vcombine.low %v4940_v1, %v4948_v2  ;;  %v13490_v0 = vld [vmem:[%s14237_s14 + $0x80] ss:$12 sps:$4 sm:$0xff]   ;;  %v13499_v2 = vld [vmem:[%s14237_s14 + $0x170] ss:$12 sps:$4 sm:$0xff]   ;;  %v13496_v3 = vld [vmem:[%s14237_s14 + $0xa8] ss:$12 sps:$4 sm:$0xff]  }
 0xe50   : > { %7299 = vmatpush1.bf16.msra.mxu0 %v11904_v16  ;;  %7214 = vmatprep.subr.bf16.mxu1 %v11919_v63  ;;  %v13493_v61 = vld [vmem:[%s14237_s14 + $0x94] ss:$12 sps:$4 sm:$0xff]   ;;  %v13494_v16 = vld [vmem:[%s14237_s14 + $0x158] ss:$12 sps:$4 sm:$0xff]   ;;  %v13491_v63 = vld [vmem:[%s14237_s14 + $0x90] ss:$12 sps:$4 sm:$0xff]  }
 0xe51   : > { %7300 = vmatprep.subr.bf16.mxu0 %v11921_v51  ;;  %7244 = vmatprep.mubr.bf16.mxu1 %v14063_v9  ;;  %v13495_v51 = vld [vmem:[%s14237_s14 + $0x98] ss:$12 sps:$4 sm:$0xff]   ;;  %v13508_v55 = vld [vmem:[%s14237_s14 + $0xdc] ss:$12 sps:$4 sm:$0xff]   ;;  %v13509_v7 = vld [vmem:[%s14237_s14 + $0x260] ss:$12 sps:$4 sm:$0xff]  }
 0xe52   : > { %7330 = vmatprep.mubr.bf16.mxu0 %v14063_v9  ;;  %v13463_v9 = vld [vmem:[%s14237_s14 + $0x4] ss:$12 sps:$4 sm:$0xff]   ;;  %v13498_v1 = vld [vmem:[%s14237_s14 + $0xac] ss:$12 sps:$4 sm:$0xff]  }
 0xe53   : > { %7215 = vmatpush1.bf16.msra.mxu1 %v11918_v60  ;;  %v13503_v60 = vld [vmem:[%s14237_s14 + $0xc4] ss:$12 sps:$4 sm:$0xff]   ;;  %v13510_v10 = vld [vmem:[%s14237_s14 + $0x1a0] ss:$12 sps:$4 sm:$0xff]  }
 0xe54   : > { %7301 = vmatpush1.bf16.msra.mxu0 %v11920_v5  ;;  %7216 = vmatprep.subr.bf16.mxu1 %v11935_v41  ;;  %v13504_v5 = vld [vmem:[%s14237_s14 + $0x248] ss:$12 sps:$4 sm:$0xff]   ;;  %v13501_v41 = vld [vmem:[%s14237_s14 + $0xc0] ss:$12 sps:$4 sm:$0xff]   ;;  %v13506_v8 = vld [vmem:[%s14237_s14 + $0xd8] ss:$12 sps:$4 sm:$0xff]  }
 0xe55   : > { %7302 = vmatprep.subr.bf16.mxu0 %v11937_v6  ;;  %v13505_v6 = vld [vmem:[%s14237_s14 + $0x188] ss:$12 sps:$4 sm:$0xff]  }
 0xe57   : > { %7217 = vmatpush1.bf16.msra.mxu1 %v11934_v23  ;;  %v13513_v23 = vld [vmem:[%s14237_s14 + $0xf4] ss:$12 sps:$4 sm:$0xff]  }
 0xe58   : > { %7303 = vmatpush1.bf16.msra.mxu0 %v11936_v12  ;;  %7218 = vmatprep.subr.bf16.mxu1 %v11951_v13  ;;  %v13514_v12 = vld [vmem:[%s14237_s14 + $0x278] ss:$12 sps:$4 sm:$0xff]   ;;  %v13511_v13 = vld [vmem:[%s14237_s14 + $0xf0] ss:$12 sps:$4 sm:$0xff]  }
 0xe59   : > { %7304 = vmatprep.subr.bf16.mxu0 %v11953_v54  ;;  %v13515_v54 = vld [vmem:[%s14237_s14 + $0x1b8] ss:$12 sps:$4 sm:$0xff]  }
 0xe5b   : > { %7219 = vmatpush1.bf16.msra.mxu1 %v11950_v20  ;;  %v13518_v20 = vld [vmem:[%s14237_s14 + $0x10c] ss:$12 sps:$4 sm:$0xff]  }
 0xe5c   : > { %7305 = vmatpush1.bf16.msra.mxu0 %v11952_v25  ;;  %9966 = vmatprep.subr.bf16.mxu1 %v13463_v9  ;;  %v13519_v25 = vld [vmem:[%s14237_s14 + $0x290] ss:$12 sps:$4 sm:$0xff]   ;;  %v13516_v9 = vld [vmem:[%s14237_s14 + $0x108] ss:$12 sps:$4 sm:$0xff]  }
 0xe5d   : > { %12473 = vmatprep.subr.bf16.mxu0 %v13464_v26  ;;  %v13520_v26 = vld [vmem:[%s14237_s14 + $0x1d0] ss:$12 sps:$4 sm:$0xff]  }
 0xe5e   : > { %11960 = vmatmul.mubr.msk.bf16.vlgmr.msra.gmra.mrb[60].mxu1 %vm2313_vm1, %v15045_v53 }
 0xe5f   : > { %11961 = vmatmul.mubr.msk.bf16.vlgmr.msra.gmra.mrb[68].mxu0 %vm2313_vm1, %v15045_v53  ;;  %9967 = vmatpush1.bf16.msra.mxu1 %v13461_v30  ;;  %v13471_v53 = vld [vmem:[%s14237_s14 + $0x30] ss:$12 sps:$4 sm:$0xff]  }
 0xe60   : > { %9998 = vmatprep.mubr.bf16.mxu1 %v15308_v52  ;;  %12474 = vmatpush3.bf16.msra.mxu0 %v13465_v32  ;;  %v13523_v30 = vld [vmem:[%s14237_s14 + $0x124] ss:$12 sps:$4 sm:$0xff]   ;;  %v13524_v32 = vld [vmem:[%s14237_s14 + $0x2a8] ss:$12 sps:$4 sm:$0xff]  }
 0xe61   : > { %10342 = vmatprep.mubr.bf16.mxu0 %v15308_v52  ;;  %9968 = vmatprep.subr.bf16.mxu1 %v13468_v34  ;;  %v13481_v52 = vld [vmem:[%s14237_s14 + $0x60] ss:$12 sps:$4 sm:$0xff]  }
 0xe62   : > { %12475 = vmatprep.subr.bf16.mxu0 %v13469_v44  ;;  %v13521_v34 = vld [vmem:[%s14237_s14 + $0x120] ss:$12 sps:$4 sm:$0xff]   ;;  %v13525_v44 = vld [vmem:[%s14237_s14 + $0x1e8] ss:$12 sps:$4 sm:$0xff]  }
 0xe63   : > { %9969 = vmatpush1.bf16.msra.mxu1 %v13466_v46  ;;  %v13528_v46 = vld [vmem:[%s14237_s14 + $0x13c] ss:$12 sps:$4 sm:$0xff]  }
 0xe64   : > { %12476 = vmatpush3.bf16.msra.mxu0 %v13470_v31  ;;  %9970 = vmatprep.subr.bf16.mxu1 %v13473_v48  ;;  %v13529_v31 = vld [vmem:[%s14237_s14 + $0x2c0] ss:$12 sps:$4 sm:$0xff]   ;;  %v4989_v48 = vrot.slane %v15282_v47, %v14588_v43 }
 0xe65   : > { %12477 = vmatprep.subr.bf16.mxu0 %v13474_v21  ;;  %v4997_v21 = vrot.slane %v15282_v47, %v14675_v29 }
 0xe67   : > { %9971 = vmatpush1.bf16.msra.mxu1 %v13471_v53  ;;  %v4993_v53 = vrot.slane %v15282_v47, %v14642_v17 }
 0xe68   : > { %12478 = vmatpush3.bf16.msra.mxu0 %v13475_v24  ;;  %9972 = vmatprep.subr.bf16.mxu1 %v13478_v40  ;;  %v13526_v24 = vld [vmem:[%s14237_s14 + $0x138] ss:$12 sps:$4 sm:$0xff]   ;;  %v5001_v40 = vrot.slane %v15282_v47, %v14708_v27 }
 0xe69   : > { %12479 = vmatprep.subr.bf16.mxu0 %v13479_v42  ;;  %v13530_v42 = vld [vmem:[%s14237_s14 + $0x200] ss:$12 sps:$4 sm:$0xff]  }
 0xe6b   : > { %9973 = vmatpush1.bf16.msra.mxu1 %v13476_v50  ;;  %v13533_v50 = vld [vmem:[%s14237_s14 + $0x154] ss:$12 sps:$4 sm:$0xff]  }
 0xe6c   : > { %12480 = vmatpush3.bf16.msra.mxu0 %v13480_v58  ;;  %9974 = vmatprep.subr.bf16.mxu1 %v13483_v18  ;;  %v13534_v18 = vld [vmem:[%s14237_s14 + $0x2d8] ss:$12 sps:$4 sm:$0xff]  }
 0xe6d   : > { %12481 = vmatprep.subr.bf16.mxu0 %v13484_v56 }
 0xe6f   : > { %9975 = vmatpush1.bf16.msra.mxu1 %v13481_v52 }
 0xe70   : > { %12482 = vmatpush3.bf16.msra.mxu0 %v13485_v62  ;;  %9976 = vmatprep.subr.bf16.mxu1 %v13488_v59 }
 0xe71   : > { %12483 = vmatprep.subr.bf16.mxu0 %v13489_v37 }
 0xe73   : > { %9977 = vmatpush1.bf16.msra.mxu1 %v13486_v39 }
 0xe74   : > { %12484 = vmatpush3.bf16.msra.mxu0 %v13490_v0  ;;  %9978 = vmatprep.subr.bf16.mxu1 %v13493_v61  ;;  %v13531_v61 = vld [vmem:[%s14237_s14 + $0x150] ss:$12 sps:$4 sm:$0xff]  }
 0xe75   : > { %12485 = vmatprep.subr.bf16.mxu0 %v13494_v16 }
 0xe77   : > { %9979 = vmatpush1.bf16.msra.mxu1 %v13491_v63 }
 0xe78   : > { %12486 = vmatpush3.bf16.msra.mxu0 %v13495_v51  ;;  %9980 = vmatprep.subr.bf16.mxu1 %v13498_v1  ;;  %v13535_v1 = vld [vmem:[%s14237_s14 + $0x218] ss:$12 sps:$4 sm:$0xff]  }
 0xe79   : > { %12487 = vmatprep.subr.bf16.mxu0 %v13499_v2  ;;  %v13538_v2 = vld [vmem:[%s14237_s14 + $0x16c] ss:$12 sps:$4 sm:$0xff]  }
 0xe7b   : > { %9981 = vmatpush1.bf16.msra.mxu1 %v13496_v3 }
 0xe7c   : > { %12488 = vmatpush3.bf16.msra.mxu0 %v13500_v4  ;;  %9982 = vmatprep.subr.bf16.mxu1 %v13503_v60 }
 0xe7d   : > { %12495 = vmatprep.subr.bf16.mxu0 %v13504_v5  ;;  %v13539_v5 = vld [vmem:[%s14237_s14 + $0x2f0] ss:$12 sps:$4 sm:$0xff]  }
 0xe7f   : > { %10343 = vmatmul.mubr.bf16.vlgmr.msra.gmra.mrb[72].mxu0 %v15304_v19  ;;  %9983 = vmatpush1.bf16.msra.mxu1 %v13501_v41 }
 0xe80   : > { %12496 = vmatpush3.bf16.msra.mxu0 %v13505_v6  ;;  %10383 = vmatprep.mubr.bf16.mxu0 %v15310_v38 }
 0xe81   : > { %9984 = vmatprep.subr.bf16.mxu1 %v13508_v55  ;;  %12497 = vmatprep.subr.bf16.mxu0 %v13509_v7 }
 0xe83   : > { %9985 = vmatpush1.bf16.msra.mxu1 %v13506_v8 }
 0xe84   : > { %12498 = vmatpush3.bf16.msra.mxu0 %v13510_v10  ;;  %9986 = vmatprep.subr.bf16.mxu1 %v13513_v23 }
 0xe85   : > { %12499 = vmatprep.subr.bf16.mxu0 %v13514_v12  ;;  %v13536_v12 = vld [vmem:[%s14237_s14 + $0x168] ss:$12 sps:$4 sm:$0xff]  }
 0xe87   : > { %9987 = vmatpush1.bf16.msra.mxu1 %v13511_v13 }
 0xe88   : > { %12500 = vmatpush3.bf16.msra.mxu0 %v13515_v54  ;;  %9988 = vmatprep.subr.bf16.mxu1 %v13518_v20 }
 0xe89   : > { %12501 = vmatprep.subr.bf16.mxu0 %v13519_v25  ;;  %v13540_v25 = vld [vmem:[%s14237_s14 + $0x230] ss:$12 sps:$4 sm:$0xff]  }
 0xe8b   : > { %9989 = vmatpush1.bf16.msra.mxu1 %v13516_v9  ;;  %v13543_v9 = vld [vmem:[%s14237_s14 + $0x184] ss:$12 sps:$4 sm:$0xff]  }
 0xe8c   : > { %12502 = vmatpush3.bf16.msra.mxu0 %v13520_v26  ;;  %9990 = vmatprep.subr.bf16.mxu1 %v13523_v30 }
 0xe8d   : > { %12503 = vmatprep.subr.bf16.mxu0 %v13524_v32  ;;  %v13544_v32 = vld [vmem:[%s14237_s14 + $0x3c8] ss:$12 sps:$4 sm:$0xff]  }
 0xe8f   : > { %9991 = vmatpush1.bf16.msra.mxu1 %v13521_v34 }
 0xe90   : > { %12504 = vmatpush3.bf16.msra.mxu0 %v13525_v44  ;;  %9992 = vmatprep.subr.bf16.mxu1 %v13528_v46  ;;  %v13541_v44 = vld [vmem:[%s14237_s14 + $0x180] ss:$12 sps:$4 sm:$0xff]   ;;  %v13545_v46 = vld [vmem:[%s14237_s14 + $0x308] ss:$12 sps:$4 sm:$0xff]  }
 0xe91   : > { %v6902_v58 = vpop.f32.mrb[52].mxu1  ;;  %12505 = vmatprep.subr.bf16.mxu0 %v13529_v31  ;;  %v13548_v31 = vld [vmem:[%s14237_s14 + $0x19c] ss:$12 sps:$4 sm:$0xff]  }
 0xe92   : > { %v12824_v56 = vadd.f32 %v6902_v58, %v4989_v48  ;;  %v6988_v52 = vpop.f32.mrb[60].mxu0  ;;  %v6904_v62 = vpop.f32.mrb[53].mxu1  ;;  %v13556_v58 = vld [vmem:[%s14237_s14 + $0x1c8] ss:$12 sps:$4 sm:$0xff]  }
 0xe93   : > { %v12828_v59 = vadd.f32 %v6988_v52, %v4997_v21  ;;  %v12825_v37 = vadd.f32 %v6904_v62, %v4993_v53  ;;  %v6990_v39 = vpop.f32.mrb[61].mxu0  ;;  %v6906_v0 = vpop.f32.mrb[54].mxu1  ;;  %9993 = vmatpush1.bf16.msra.mxu1 %v13526_v24  ;;  %v13553_v24 = vld [vmem:[%s14237_s14 + $0x1b4] ss:$12 sps:$4 sm:$0xff]  }
 0xe94   : > { %v12829_v16 = vadd.f32 %v6990_v39, %v5001_v40  ;;  %v12826_v47 = vadd.f32 %v6906_v0, %v4989_v48  ;;  %v6992_v63 = vpop.f32.mrb[62].mxu0  ;;  %12506 = vmatpush3.bf16.msra.mxu0 %v13530_v42  ;;  %v6908_v51 = vpop.f32.mrb[55].mxu1  ;;  %9994 = vmatprep.subr.bf16.mxu1 %v13533_v50  ;;  %v7345_v41 = vmax.f32 %v12824_v56, 0.0  ;;  %v13549_v48 = vld [vmem:[%s14237_s14 + $0x3e0] ss:$12 sps:$4 sm:$0xff]  }
 0xe95   : > { %v12830_v3 = vadd.f32 %v6992_v63, %v4997_v21  ;;  %v12827_v4 = vadd.f32 %v6908_v51, %v4993_v53  ;;  %v6994_v60 = vpop.f32.mrb[63].mxu0  ;;  %12507 = vmatprep.subr.bf16.mxu0 %v13534_v18  ;;  %v7347_v7 = vmax.f32 %v12828_v59, 0.0  ;;  %v7346_v8 = vmax.f32 %v12825_v37, 0.0  ;;  %v13546_v21 = vld [vmem:[%s14237_s14 + $0x198] ss:$12 sps:$4 sm:$0xff]  }
 0xe96   : > { %v7361_v6 = vmax.f32 %v12826_v47, 0.0  ;;  %v12831_v55 = vadd.f32 %v6994_v60, %v5001_v40  ;;  %v7348_v13 = vmax.f32 %v12829_v16, 0.0  ;;  %v13550_v53 = vld [vmem:[%s14237_s14 + $0x320] ss:$12 sps:$4 sm:$0xff]   ;;  %v13551_v40 = vld [vmem:[%s14237_s14 + $0x1b0] ss:$12 sps:$4 sm:$0xff]  }
 0xe97   : > { %v7363_v10 = vmax.f32 %v12830_v3, 0.0  ;;  %v7362_v23 = vmax.f32 %v12827_v4, 0.0  ;;  %9995 = vmatpush1.bf16.msra.mxu1 %v13531_v61  ;;  %v13555_v42 = vld [vmem:[%s14237_s14 + $0x338] ss:$12 sps:$4 sm:$0xff]   ;;  %v13559_v50 = vld [vmem:[%s14237_s14 + $0x410] ss:$12 sps:$4 sm:$0xff]  }
 0xe98   : > { %v15407_v54 = vpack.c.bf16 %v7361_v6, %v7345_v41  ;;  %v7364_v20 = vmax.f32 %v12831_v55, 0.0  ;;  %12508 = vmatpush3.bf16.msra.mxu0 %v13535_v1  ;;  %9996 = vmatprep.subr.bf16.mxu1 %v13538_v2  ;;  %v13560_v18 = vld [vmem:[%s14237_s14 + $0x350] ss:$12 sps:$4 sm:$0xff]   ;;  %v13564_v52 = vld [vmem:[%s14237_s14 + $0x428] ss:$12 sps:$4 sm:$0xff]  }
 0xe99   : > { %v15411_v26 = vpack.c.bf16 %v7363_v10, %v7347_v7  ;;  %v15413_v30 = vpack.c.bf16 %v7362_v23, %v7346_v8  ;;  %12509 = vmatprep.subr.bf16.mxu0 %v13539_v5  ;;  %v13563_v56 = vld [vmem:[%s14237_s14 + $0x1e4] ss:$12 sps:$4 sm:$0xff]   ;;  %v13561_v62 = vld [vmem:[%s14237_s14 + $0x1e0] ss:$12 sps:$4 sm:$0xff]   ;;  %v13565_v59 = vld [vmem:[%s14237_s14 + $0x368] ss:$12 sps:$4 sm:$0xff]  }
 0xe9a   : > { %v15416_v34 = vpack.c.bf16 %v7364_v20, %v7348_v13  ;;  %v13568_v37 = vld [vmem:[%s14237_s14 + $0x1fc] ss:$12 sps:$4 sm:$0xff]   ;;  %v13569_v39 = vld [vmem:[%s14237_s14 + $0x440] ss:$12 sps:$4 sm:$0xff]   ;;  %v13566_v0 = vld [vmem:[%s14237_s14 + $0x1f8] ss:$12 sps:$4 sm:$0xff]  }
 0xe9b   : > { %9997 = vmatpush1.bf16.msra.mxu1 %v13536_v12  ;;  %v13570_v61 = vld [vmem:[%s14237_s14 + $0x380] ss:$12 sps:$4 sm:$0xff]   ;;  %v13574_v47 = vld [vmem:[%s14237_s14 + $0x458] ss:$12 sps:$4 sm:$0xff]   ;;  %v13571_v63 = vld [vmem:[%s14237_s14 + $0x210] ss:$12 sps:$4 sm:$0xff]  }
 0xe9c   : > { %12510 = vmatpush3.bf16.msra.mxu0 %v13540_v25  ;;  %10009 = vmatprep.subr.bf16.mxu1 %v13543_v9  ;;  %v13573_v16 = vld [vmem:[%s14237_s14 + $0x214] ss:$12 sps:$4 sm:$0xff]   ;;  %v13575_v51 = vld [vmem:[%s14237_s14 + $0x398] ss:$12 sps:$4 sm:$0xff]   ;;  %v13579_v2 = vld [vmem:[%s14237_s14 + $0x470] ss:$12 sps:$4 sm:$0xff]  }
 0xe9d   : > { %12517 = vmatprep.subr.bf16.mxu0 %v13544_v32  ;;  %v13578_v1 = vld [vmem:[%s14237_s14 + $0x22c] ss:$12 sps:$4 sm:$0xff]   ;;  %v13576_v3 = vld [vmem:[%s14237_s14 + $0x228] ss:$12 sps:$4 sm:$0xff]   ;;  %v13580_v4 = vld [vmem:[%s14237_s14 + $0x3b0] ss:$12 sps:$4 sm:$0xff]  }
 0xe9e   : > { %9999 = vmatmul.mubr.bf16.vlgmr.msra.gmra.mrb[64].mxu1 %v15304_v19  ;;  %v13554_v19 = vld [vmem:[%s14237_s14 + $0x3f8] ss:$12 sps:$4 sm:$0xff]   ;;  %v13584_v5 = vld [vmem:[%s14237_s14 + $0x548] ss:$12 sps:$4 sm:$0xff]   ;;  %v13581_v41 = vld [vmem:[%s14237_s14 + $0x240] ss:$12 sps:$4 sm:$0xff]  }
 0xe9f   : > { %10384 = vmatmul.mubr.bf16.vlgmr.msra.gmra.mrb[76].mxu0 %v15306_v33  ;;  %10010 = vmatpush1.bf16.msra.mxu1 %v13541_v44  ;;  %v13583_v60 = vld [vmem:[%s14237_s14 + $0x244] ss:$12 sps:$4 sm:$0xff]   ;;  %v13585_v6 = vld [vmem:[%s14237_s14 + $0x488] ss:$12 sps:$4 sm:$0xff]   ;;  %v13589_v7 = vld [vmem:[%s14237_s14 + $0x560] ss:$12 sps:$4 sm:$0xff]  }
 0xea0   : > { %10041 = vmatprep.mubr.bf16.mxu1 %v15310_v38  ;;  %12518 = vmatpush3.bf16.msra.mxu0 %v13545_v46  ;;  %v13558_v38 = vld [vmem:[%s14237_s14 + $0x1cc] ss:$12 sps:$4 sm:$0xff]   ;;  %v13588_v55 = vld [vmem:[%s14237_s14 + $0x25c] ss:$12 sps:$4 sm:$0xff]   ;;  %v13593_v23 = vld [vmem:[%s14237_s14 + $0x274] ss:$12 sps:$4 sm:$0xff]  }
 0xea1   : > { %10424 = vmatprep.mubr.bf16.mxu0 %v15413_v30  ;;  %10011 = vmatprep.subr.bf16.mxu1 %v13548_v31  ;;  %v13586_v8 = vld [vmem:[%s14237_s14 + $0x258] ss:$12 sps:$4 sm:$0xff]   ;;  %v13590_v10 = vld [vmem:[%s14237_s14 + $0x4a0] ss:$12 sps:$4 sm:$0xff]   ;;  %v13591_v13 = vld [vmem:[%s14237_s14 + $0x270] ss:$12 sps:$4 sm:$0xff]  }
 0xea2   : > { %12519 = vmatprep.subr.bf16.mxu0 %v13549_v48  ;;  %v13594_v12 = vld [vmem:[%s14237_s14 + $0x578] ss:$12 sps:$4 sm:$0xff]   ;;  %v13599_v9 = vld [vmem:[%s14237_s14 + $0x590] ss:$12 sps:$4 sm:$0xff]   ;;  %v13596_v32 = vld [vmem:[%s14237_s14 + $0x288] ss:$12 sps:$4 sm:$0xff]  }
 0xea3   : > { %10012 = vmatpush1.bf16.msra.mxu1 %v13546_v21  ;;  %v13595_v20 = vld [vmem:[%s14237_s14 + $0x4b8] ss:$12 sps:$4 sm:$0xff]   ;;  %v13600_v44 = vld [vmem:[%s14237_s14 + $0x4d0] ss:$12 sps:$4 sm:$0xff]   ;;  %v13604_v31 = vld [vmem:[%s14237_s14 + $0x5a8] ss:$12 sps:$4 sm:$0xff]  }
 0xea4   : > { %12520 = vmatpush3.bf16.msra.mxu0 %v13550_v53  ;;  %10013 = vmatprep.subr.bf16.mxu1 %v13553_v24  ;;  %v13598_v25 = vld [vmem:[%s14237_s14 + $0x28c] ss:$12 sps:$4 sm:$0xff]   ;;  %v13603_v46 = vld [vmem:[%s14237_s14 + $0x2a4] ss:$12 sps:$4 sm:$0xff]   ;;  %v13605_v21 = vld [vmem:[%s14237_s14 + $0x4e8] ss:$12 sps:$4 sm:$0xff]  }
 0xea5   : > { %12521 = vmatprep.subr.bf16.mxu0 %v13554_v19  ;;  %v13601_v48 = vld [vmem:[%s14237_s14 + $0x2a0] ss:$12 sps:$4 sm:$0xff]   ;;  %v13608_v53 = vld [vmem:[%s14237_s14 + $0x2bc] ss:$12 sps:$4 sm:$0xff]   ;;  %v13606_v19 = vld [vmem:[%s14237_s14 + $0x2b8] ss:$12 sps:$4 sm:$0xff]  }
 0xea6   : > { %v13609_v24 = vld [vmem:[%s14237_s14 + $0x5c0] ss:$12 sps:$4 sm:$0xff]  }
 0xea7   : > { %10014 = vmatpush1.bf16.msra.mxu1 %v13551_v40  ;;  %v13610_v40 = vld [vmem:[%s14237_s14 + $0x500] ss:$12 sps:$4 sm:$0xff]  }
 0xea8   : > { %12522 = vmatpush3.bf16.msra.mxu0 %v13555_v42  ;;  %10015 = vmatprep.subr.bf16.mxu1 %v13558_v38  ;;  %v13613_v42 = vld [vmem:[%s14237_s14 + $0x2d4] ss:$12 sps:$4 sm:$0xff]   ;;  %v13614_v38 = vld [vmem:[%s14237_s14 + $0x5d8] ss:$12 sps:$4 sm:$0xff]  }
 0xea9   : > { %12523 = vmatprep.subr.bf16.mxu0 %v13559_v50  ;;  %v13611_v50 = vld [vmem:[%s14237_s14 + $0x2d0] ss:$12 sps:$4 sm:$0xff]  }
 0xeab   : > { %10016 = vmatpush1.bf16.msra.mxu1 %v13556_v58  ;;  %v13615_v58 = vld [vmem:[%s14237_s14 + $0x518] ss:$12 sps:$4 sm:$0xff]  }
 0xeac   : > { %12524 = vmatpush3.bf16.msra.mxu0 %v13560_v18  ;;  %10017 = vmatprep.subr.bf16.mxu1 %v13563_v56  ;;  %v13618_v18 = vld [vmem:[%s14237_s14 + $0x2ec] ss:$12 sps:$4 sm:$0xff]   ;;  %v13619_v56 = vld [vmem:[%s14237_s14 + $0x5f0] ss:$12 sps:$4 sm:$0xff]  }
 0xead   : > { %12525 = vmatprep.subr.bf16.mxu0 %v13564_v52  ;;  %v13616_v52 = vld [vmem:[%s14237_s14 + $0x2e8] ss:$12 sps:$4 sm:$0xff]  }
 0xeaf   : > { %10018 = vmatpush1.bf16.msra.mxu1 %v13561_v62  ;;  %v13620_v62 = vld [vmem:[%s14237_s14 + $0x530] ss:$12 sps:$4 sm:$0xff]  }
 0xeb0   : > { %12526 = vmatpush3.bf16.msra.mxu0 %v13565_v59  ;;  %10019 = vmatprep.subr.bf16.mxu1 %v13568_v37  ;;  %v13623_v59 = vld [vmem:[%s14237_s14 + $0x304] ss:$12 sps:$4 sm:$0xff]   ;;  %v13624_v37 = vld [vmem:[%s14237_s14 + $0x6c8] ss:$12 sps:$4 sm:$0xff]  }
 0xeb1   : > { %12527 = vmatprep.subr.bf16.mxu0 %v13569_v39  ;;  %v13621_v39 = vld [vmem:[%s14237_s14 + $0x300] ss:$12 sps:$4 sm:$0xff]  }
 0xeb3   : > { %10020 = vmatpush1.bf16.msra.mxu1 %v13566_v0  ;;  %v15490_v0 = vld [vmem:[%s15974_s25 + $0x8] sm:$0xff] }
 0xeb4   : > { %12528 = vmatpush3.bf16.msra.mxu0 %v13570_v61  ;;  %10021 = vmatprep.subr.bf16.mxu1 %v13573_v16  ;;  %v13625_v61 = vld [vmem:[%s14237_s14 + $0x608] ss:$12 sps:$4 sm:$0xff]  }
 0xeb5   : > { %12529 = vmatprep.subr.bf16.mxu0 %v13574_v47  ;;  %v13628_v16 = vld [vmem:[%s14237_s14 + $0x31c] ss:$12 sps:$4 sm:$0xff]   ;;  %v13629_v47 = vld [vmem:[%s14237_s14 + $0x6e0] ss:$12 sps:$4 sm:$0xff]  }
 0xeb7   : > { %10022 = vmatpush1.bf16.msra.mxu1 %v13571_v63  ;;  %v5005_v63 = vrot.slane %v15490_v0, %v14593_v45 }
 0xeb8   : > { %12530 = vmatpush3.bf16.msra.mxu0 %v13575_v51  ;;  %10023 = vmatprep.subr.bf16.mxu1 %v13578_v1  ;;  %v5013_v51 = vrot.slane %v15490_v0, %v14555_v22  ;;  %v5009_v1 = vrot.slane %v15490_v0, %v14617_v14 }
 0xeb9   : > { %12531 = vmatprep.subr.bf16.mxu0 %v13579_v2  ;;  %v13626_v2 = vld [vmem:[%s14237_s14 + $0x318] ss:$12 sps:$4 sm:$0xff]  }
 0xebb   : > { %10024 = vmatpush1.bf16.msra.mxu1 %v13576_v3  ;;  %v13630_v3 = vld [vmem:[%s14237_s14 + $0x620] ss:$12 sps:$4 sm:$0xff]  }
 0xebc   : > { %12532 = vmatpush3.bf16.msra.mxu0 %v13580_v4  ;;  %10025 = vmatprep.subr.bf16.mxu1 %v13583_v60  ;;  %v13633_v4 = vld [vmem:[%s14237_s14 + $0x334] ss:$12 sps:$4 sm:$0xff]  }
 0xebd   : > { %12539 = vmatprep.subr.bf16.mxu0 %v13584_v5  ;;  %v13634_v5 = vld [vmem:[%s14237_s14 + $0x6f8] ss:$12 sps:$4 sm:$0xff]  }
 0xebf   : > { %10425 = vmatmul.mubr.bf16.vlgmr.msra.gmra.mrb[80].mxu0 %v15407_v54  ;;  %10026 = vmatpush1.bf16.msra.mxu1 %v13581_v41 }
 0xec0   : > { %12540 = vmatpush3.bf16.msra.mxu0 %v13585_v6  ;;  %10465 = vmatprep.mubr.bf16.mxu0 %v15416_v34 }
 0xec1   : > { %10027 = vmatprep.subr.bf16.mxu1 %v13588_v55  ;;  %12541 = vmatprep.subr.bf16.mxu0 %v13589_v7 }
 0xec3   : > { %10028 = vmatpush1.bf16.msra.mxu1 %v13586_v8 }
 0xec4   : > { %12542 = vmatpush3.bf16.msra.mxu0 %v13590_v10  ;;  %10029 = vmatprep.subr.bf16.mxu1 %v13593_v23  ;;  %v13631_v23 = vld [vmem:[%s14237_s14 + $0x330] ss:$12 sps:$4 sm:$0xff]  }
 0xec5   : > { %12543 = vmatprep.subr.bf16.mxu0 %v13594_v12 }
 0xec7   : > { %10030 = vmatpush1.bf16.msra.mxu1 %v13591_v13 }
 0xec8   : > { %12544 = vmatpush3.bf16.msra.mxu0 %v13595_v20  ;;  %10031 = vmatprep.subr.bf16.mxu1 %v13598_v25  ;;  %v13635_v25 = vld [vmem:[%s14237_s14 + $0x638] ss:$12 sps:$4 sm:$0xff]  }
 0xec9   : > { %12545 = vmatprep.subr.bf16.mxu0 %v13599_v9  ;;  %v13638_v9 = vld [vmem:[%s14237_s14 + $0x34c] ss:$12 sps:$4 sm:$0xff]  }
 0xecb   : > { %10032 = vmatpush1.bf16.msra.mxu1 %v13596_v32 }
 0xecc   : > { %12546 = vmatpush3.bf16.msra.mxu0 %v13600_v44  ;;  %10033 = vmatprep.subr.bf16.mxu1 %v13603_v46 }
 0xecd   : > { %12547 = vmatprep.subr.bf16.mxu0 %v13604_v31  ;;  %v13639_v31 = vld [vmem:[%s14237_s14 + $0x710] ss:$12 sps:$4 sm:$0xff]  }
 0xecf   : > { %10034 = vmatpush1.bf16.msra.mxu1 %v13601_v48 }
 0xed0   : > { %12548 = vmatpush3.bf16.msra.mxu0 %v13605_v21  ;;  %10035 = vmatprep.subr.bf16.mxu1 %v13608_v53 }
 0xed1   : > { %12549 = vmatprep.subr.bf16.mxu0 %v13609_v24 }
 0xed3   : > { %10036 = vmatpush1.bf16.msra.mxu1 %v13606_v19 }
 0xed4   : > { %12550 = vmatpush3.bf16.msra.mxu0 %v13610_v40  ;;  %10037 = vmatprep.subr.bf16.mxu1 %v13613_v42 }
 0xed5   : > { %12551 = vmatprep.subr.bf16.mxu0 %v13614_v38  ;;  %v13636_v38 = vld [vmem:[%s14237_s14 + $0x348] ss:$12 sps:$4 sm:$0xff]  }
 0xed7   : > { %10038 = vmatpush1.bf16.msra.mxu1 %v13611_v50 }
 0xed8   : > { %12552 = vmatpush3.bf16.msra.mxu0 %v13615_v58  ;;  %10039 = vmatprep.subr.bf16.mxu1 %v13618_v18 }
 0xed9   : > { %12553 = vmatprep.subr.bf16.mxu0 %v13619_v56  ;;  %v13640_v56 = vld [vmem:[%s14237_s14 + $0x650] ss:$12 sps:$4 sm:$0xff]  }
 0xedb   : > { %10040 = vmatpush1.bf16.msra.mxu1 %v13616_v52  ;;  %v13643_v52 = vld [vmem:[%s14237_s14 + $0x364] ss:$12 sps:$4 sm:$0xff]  }
 0xedc   : > { %12554 = vmatpush3.bf16.msra.mxu0 %v13620_v62  ;;  %10052 = vmatprep.subr.bf16.mxu1 %v13623_v59 }
 0xedd   : > { %12561 = vmatprep.subr.bf16.mxu0 %v13624_v37  ;;  %v13644_v37 = vld [vmem:[%s14237_s14 + $0x728] ss:$12 sps:$4 sm:$0xff]  }
 0xede   : > { %10042 = vmatmul.mubr.bf16.vlgmr.msra.gmra.mrb[64].mxu1 %v15306_v33  ;;  %v5017_v33 = vrot.slane %v15490_v0, %v14561_v57 }
 0xedf   : > { %10466 = vmatmul.mubr.bf16.vlgmr.msra.gmra.mrb[84].mxu0 %v15411_v26  ;;  %10053 = vmatpush1.bf16.msra.mxu1 %v13621_v39 }
 0xee0   : > { %10084 = vmatprep.mubr.bf16.mxu1 %v15413_v30  ;;  %12562 = vmatpush3.bf16.msra.mxu0 %v13625_v61  ;;  %v13641_v61 = vld [vmem:[%s14237_s14 + $0x360] ss:$12 sps:$4 sm:$0xff]  }
 0xee1   : > { %v7074_v60 = vpop.f32.mrb[56].mxu1  ;;  %10054 = vmatprep.subr.bf16.mxu1 %v13628_v16  ;;  %12563 = vmatprep.subr.bf16.mxu0 %v13629_v47  ;;  %v13645_v16 = vld [vmem:[%s14237_s14 + $0x668] ss:$12 sps:$4 sm:$0xff]  }
 0xee2   : > { %v12832_v41 = vadd.f32 %v7074_v60, %v5005_v63  ;;  %v7160_v6 = vpop.f32.mrb[64].mxu0  ;;  %v7076_v55 = vpop.f32.mrb[57].mxu1  ;;  %v13648_v47 = vld [vmem:[%s14237_s14 + $0x37c] ss:$12 sps:$4 sm:$0xff]   ;;  %v13658_v60 = vld [vmem:[%s14237_s14 + $0x3ac] ss:$12 sps:$4 sm:$0xff]  }
 0xee3   : > { %v12836_v7 = vadd.f32 %v7160_v6, %v5013_v51  ;;  %v12833_v8 = vadd.f32 %v7076_v55, %v5009_v1  ;;  %v7162_v10 = vpop.f32.mrb[65].mxu0  ;;  %v7078_v30 = vpop.f32.mrb[58].mxu1  ;;  %10055 = vmatpush1.bf16.msra.mxu1 %v13626_v2  ;;  %v13653_v2 = vld [vmem:[%s14237_s14 + $0x394] ss:$12 sps:$4 sm:$0xff]   ;;  %v13660_v6 = vld [vmem:[%s14237_s14 + $0x6b0] ss:$12 sps:$4 sm:$0xff]  }
 0xee4   : > { %v12837_v12 = vadd.f32 %v7162_v10, %v5017_v33  ;;  %v12834_v57 = vadd.f32 %v7078_v30, %v5005_v63  ;;  %v7164_v13 = vpop.f32.mrb[66].mxu0  ;;  %12564 = vmatpush3.bf16.msra.mxu0 %v13630_v3  ;;  %v7080_v20 = vpop.f32.mrb[59].mxu1  ;;  %10056 = vmatprep.subr.bf16.mxu1 %v13633_v4  ;;  %v7349_v48 = vmax.f32 %v12832_v41, 0.0  ;;  %v13649_v63 = vld [vmem:[%s14237_s14 + $0x740] ss:$12 sps:$4 sm:$0xff]  }
 0xee5   : > { %v12838_v32 = vadd.f32 %v7164_v13, %v5013_v51  ;;  %v12835_v44 = vadd.f32 %v7080_v20, %v5009_v1  ;;  %v7166_v46 = vpop.f32.mrb[67].mxu0  ;;  %12565 = vmatprep.subr.bf16.mxu0 %v13634_v5  ;;  %v7351_v24 = vmax.f32 %v12836_v7, 0.0  ;;  %v7350_v19 = vmax.f32 %v12833_v8, 0.0  ;;  %v13646_v51 = vld [vmem:[%s14237_s14 + $0x378] ss:$12 sps:$4 sm:$0xff]  }
 0xee6   : > { %v7365_v21 = vmax.f32 %v12834_v57, 0.0  ;;  %v12839_v53 = vadd.f32 %v7166_v46, %v5017_v33  ;;  %v7352_v50 = vmax.f32 %v12837_v12, 0.0  ;;  %v13650_v1 = vld [vmem:[%s14237_s14 + $0x680] ss:$12 sps:$4 sm:$0xff]   ;;  %v13654_v33 = vld [vmem:[%s14237_s14 + $0x758] ss:$12 sps:$4 sm:$0xff]  }
 0xee7   : > { %v7367_v40 = vmax.f32 %v12838_v32, 0.0  ;;  %v7366_v42 = vmax.f32 %v12835_v44, 0.0  ;;  %10057 = vmatpush1.bf16.msra.mxu1 %v13631_v23  ;;  %v13651_v3 = vld [vmem:[%s14237_s14 + $0x390] ss:$12 sps:$4 sm:$0xff]   ;;  %v13655_v4 = vld [vmem:[%s14237_s14 + $0x698] ss:$12 sps:$4 sm:$0xff]  }
 0xee8   : > { %v15515_v58 = vpack.c.bf16 %v7365_v21, %v7349_v48  ;;  %v7368_v18 = vmax.f32 %v12839_v53, 0.0  ;;  %12566 = vmatpush3.bf16.msra.mxu0 %v13635_v25  ;;  %10058 = vmatprep.subr.bf16.mxu1 %v13638_v9  ;;  %v13659_v5 = vld [vmem:[%s14237_s14 + $0x770] ss:$12 sps:$4 sm:$0xff]   ;;  %v13656_v41 = vld [vmem:[%s14237_s14 + $0x3a8] ss:$12 sps:$4 sm:$0xff]  }
 0xee9   : > { %v15519_v62 = vpack.c.bf16 %v7367_v40, %v7351_v24  ;;  %v15521_v59 = vpack.c.bf16 %v7366_v42, %v7350_v19  ;;  %12567 = vmatprep.subr.bf16.mxu0 %v13639_v31  ;;  %v13663_v55 = vld [vmem:[%s14237_s14 + $0x3c4] ss:$12 sps:$4 sm:$0xff]   ;;  %v13664_v7 = vld [vmem:[%s14237_s14 + $0x848] ss:$12 sps:$4 sm:$0xff]   ;;  %v13661_v8 = vld [vmem:[%s14237_s14 + $0x3c0] ss:$12 sps:$4 sm:$0xff]  }
 0xeea   : > { %v15524_v39 = vpack.c.bf16 %v7368_v18, %v7352_v50  ;;  %v13665_v10 = vld [vmem:[%s14237_s14 + $0x788] ss:$12 sps:$4 sm:$0xff]   ;;  %v13669_v23 = vld [vmem:[%s14237_s14 + $0x860] ss:$12 sps:$4 sm:$0xff]   ;;  %v13666_v12 = vld [vmem:[%s14237_s14 + $0x3d8] ss:$12 sps:$4 sm:$0xff]  }
 0xeeb   : > { %10059 = vmatpush1.bf16.msra.mxu1 %v13636_v38  ;;  %10506 = vmatprep.mubr.bf16.mxu0 %v15521_v59  ;;  %v13668_v30 = vld [vmem:[%s14237_s14 + $0x3dc] ss:$12 sps:$4 sm:$0xff]   ;;  %v13670_v57 = vld [vmem:[%s14237_s14 + $0x7a0] ss:$12 sps:$4 sm:$0xff]   ;;  %v13674_v20 = vld [vmem:[%s14237_s14 + $0x878] ss:$12 sps:$4 sm:$0xff]  }
 0xeec   : > { %12568 = vmatpush3.bf16.msra.mxu0 %v13640_v56  ;;  %10060 = vmatprep.subr.bf16.mxu1 %v13643_v52  ;;  %v13673_v13 = vld [vmem:[%s14237_s14 + $0x3f4] ss:$12 sps:$4 sm:$0xff]   ;;  %v13671_v25 = vld [vmem:[%s14237_s14 + $0x3f0] ss:$12 sps:$4 sm:$0xff]   ;;  %v13675_v9 = vld [vmem:[%s14237_s14 + $0x7b8] ss:$12 sps:$4 sm:$0xff]  }
 0xeed   : > { %12569 = vmatprep.subr.bf16.mxu0 %v13644_v37  ;;  %v13678_v32 = vld [vmem:[%s14237_s14 + $0x40c] ss:$12 sps:$4 sm:$0xff]   ;;  %v13679_v44 = vld [vmem:[%s14237_s14 + $0x890] ss:$12 sps:$4 sm:$0xff]   ;;  %v13676_v46 = vld [vmem:[%s14237_s14 + $0x408] ss:$12 sps:$4 sm:$0xff]  }
 0xeee   : > { %v13680_v31 = vld [vmem:[%s14237_s14 + $0x7d0] ss:$12 sps:$4 sm:$0xff]   ;;  %v13684_v21 = vld [vmem:[%s14237_s14 + $0x8a8] ss:$12 sps:$4 sm:$0xff]   ;;  %v13681_v53 = vld [vmem:[%s14237_s14 + $0x420] ss:$12 sps:$4 sm:$0xff]  }
 0xeef   : > { %10061 = vmatpush1.bf16.msra.mxu1 %v13641_v61  ;;  %v13683_v48 = vld [vmem:[%s14237_s14 + $0x424] ss:$12 sps:$4 sm:$0xff]   ;;  %v13685_v24 = vld [vmem:[%s14237_s14 + $0x7e8] ss:$12 sps:$4 sm:$0xff]   ;;  %v13689_v40 = vld [vmem:[%s14237_s14 + $0x8c0] ss:$12 sps:$4 sm:$0xff]  }
 0xef0   : > { %12570 = vmatpush3.bf16.msra.mxu0 %v13645_v16  ;;  %10062 = vmatprep.subr.bf16.mxu1 %v13648_v47  ;;  %v13688_v19 = vld [vmem:[%s14237_s14 + $0x43c] ss:$12 sps:$4 sm:$0xff]   ;;  %v13686_v42 = vld [vmem:[%s14237_s14 + $0x438] ss:$12 sps:$4 sm:$0xff]   ;;  %v13690_v38 = vld [vmem:[%s14237_s14 + $0x800] ss:$12 sps:$4 sm:$0xff]  }
 0xef1   : > { %12571 = vmatprep.subr.bf16.mxu0 %v13649_v63  ;;  %v13693_v50 = vld [vmem:[%s14237_s14 + $0x454] ss:$12 sps:$4 sm:$0xff]   ;;  %v13694_v18 = vld [vmem:[%s14237_s14 + $0x8d8] ss:$12 sps:$4 sm:$0xff]   ;;  %v13691_v56 = vld [vmem:[%s14237_s14 + $0x450] ss:$12 sps:$4 sm:$0xff]  }
 0xef2   : > { %v13695_v52 = vld [vmem:[%s14237_s14 + $0x818] ss:$12 sps:$4 sm:$0xff]   ;;  %v13699_v61 = vld [vmem:[%s14237_s14 + $0x8f0] ss:$12 sps:$4 sm:$0xff]   ;;  %v13696_v16 = vld [vmem:[%s14237_s14 + $0x468] ss:$12 sps:$4 sm:$0xff]  }
 0xef3   : > { %10063 = vmatpush1.bf16.msra.mxu1 %v13646_v51  ;;  %v13698_v37 = vld [vmem:[%s14237_s14 + $0x46c] ss:$12 sps:$4 sm:$0xff]   ;;  %v13700_v47 = vld [vmem:[%s14237_s14 + $0x830] ss:$12 sps:$4 sm:$0xff]   ;;  %v13704_v51 = vld [vmem:[%s14237_s14 + $0x9c8] ss:$12 sps:$4 sm:$0xff]  }
 0xef4   : > { %12572 = vmatpush3.bf16.msra.mxu0 %v13650_v1  ;;  %10064 = vmatprep.subr.bf16.mxu1 %v13653_v2  ;;  %v13703_v63 = vld [vmem:[%s14237_s14 + $0x484] ss:$12 sps:$4 sm:$0xff]   ;;  %v13701_v1 = vld [vmem:[%s14237_s14 + $0x480] ss:$12 sps:$4 sm:$0xff]   ;;  %v13705_v2 = vld [vmem:[%s14237_s14 + $0x908] ss:$12 sps:$4 sm:$0xff]  }
 0xef5   : > { %12573 = vmatprep.subr.bf16.mxu0 %v13654_v33  ;;  %v13708_v33 = vld [vmem:[%s14237_s14 + $0x49c] ss:$12 sps:$4 sm:$0xff]  }
 0xef7   : > { %10065 = vmatpush1.bf16.msra.mxu1 %v13651_v3  ;;  %v13709_v3 = vld [vmem:[%s14237_s14 + $0x9e0] ss:$12 sps:$4 sm:$0xff]  }
 0xef8   : > { %12574 = vmatpush3.bf16.msra.mxu0 %v13655_v4  ;;  %10066 = vmatprep.subr.bf16.mxu1 %v13658_v60  ;;  %v13706_v4 = vld [vmem:[%s14237_s14 + $0x498] ss:$12 sps:$4 sm:$0xff]   ;;  %v13710_v60 = vld [vmem:[%s14237_s14 + $0x920] ss:$12 sps:$4 sm:$0xff]  }
 0xef9   : > { %12575 = vmatprep.subr.bf16.mxu0 %v13659_v5  ;;  %v13713_v5 = vld [vmem:[%s14237_s14 + $0x4b4] ss:$12 sps:$4 sm:$0xff]  }
 0xefb   : > { %10067 = vmatpush1.bf16.msra.mxu1 %v13656_v41  ;;  %v13714_v41 = vld [vmem:[%s14237_s14 + $0x9f8] ss:$12 sps:$4 sm:$0xff]  }
 0xefc   : > { %12576 = vmatpush3.bf16.msra.mxu0 %v13660_v6  ;;  %10068 = vmatprep.subr.bf16.mxu1 %v13663_v55  ;;  %v13715_v6 = vld [vmem:[%s14237_s14 + $0x938] ss:$12 sps:$4 sm:$0xff]  }
 0xefd   : > { %12583 = vmatprep.subr.bf16.mxu0 %v13664_v7  ;;  %v13718_v55 = vld [vmem:[%s14237_s14 + $0x4cc] ss:$12 sps:$4 sm:$0xff]   ;;  %v13716_v7 = vld [vmem:[%s14237_s14 + $0x4c8] ss:$12 sps:$4 sm:$0xff]  }
 0xeff   : > { %10507 = vmatmul.mubr.bf16.vlgmr.msra.gmra.mrb[88].mxu0 %v15515_v58  ;;  %10069 = vmatpush1.bf16.msra.mxu1 %v13661_v8  ;;  %v13720_v8 = vld [vmem:[%s14237_s14 + $0x950] ss:$12 sps:$4 sm:$0xff]  }
 0xf00   : > { %12584 = vmatpush3.bf16.msra.mxu0 %v13665_v10  ;;  %10547 = vmatprep.mubr.bf16.mxu0 %v15524_v39  ;;  %v13723_v10 = vld [vmem:[%s14237_s14 + $0x4e4] ss:$12 sps:$4 sm:$0xff]  }
 0xf01   : > { %10070 = vmatprep.subr.bf16.mxu1 %v13668_v30  ;;  %12585 = vmatprep.subr.bf16.mxu0 %v13669_v23  ;;  %v13724_v30 = vld [vmem:[%s14237_s14 + $0xa28] ss:$12 sps:$4 sm:$0xff]   ;;  %v13721_v23 = vld [vmem:[%s14237_s14 + $0x4e0] ss:$12 sps:$4 sm:$0xff]  }
 0xf03   : > { %10071 = vmatpush1.bf16.msra.mxu1 %v13666_v12  ;;  %v13725_v12 = vld [vmem:[%s14237_s14 + $0x968] ss:$12 sps:$4 sm:$0xff]  }
 0xf04   : > { %12586 = vmatpush3.bf16.msra.mxu0 %v13670_v57  ;;  %10072 = vmatprep.subr.bf16.mxu1 %v13673_v13  ;;  %v13728_v57 = vld [vmem:[%s14237_s14 + $0x4fc] ss:$12 sps:$4 sm:$0xff]   ;;  %v13729_v13 = vld [vmem:[%s14237_s14 + $0xa40] ss:$12 sps:$4 sm:$0xff]  }
 0xf05   : > { %12587 = vmatprep.subr.bf16.mxu0 %v13674_v20  ;;  %v5021_v20 = vrot.slane %v15490_v0, %v14588_v43 }
 0xf07   : > { %10073 = vmatpush1.bf16.msra.mxu1 %v13671_v25  ;;  %v5029_v25 = vrot.slane %v15490_v0, %v14675_v29 }
 0xf08   : > { %12588 = vmatpush3.bf16.msra.mxu0 %v13675_v9  ;;  %10074 = vmatprep.subr.bf16.mxu1 %v13678_v32  ;;  %v5025_v9 = vrot.slane %v15490_v0, %v14642_v17  ;;  %v13726_v32 = vld [vmem:[%s14237_s14 + $0x4f8] ss:$12 sps:$4 sm:$0xff]  }
 0xf09   : > { %12589 = vmatprep.subr.bf16.mxu0 %v13679_v44  ;;  %v5033_v44 = vrot.slane %v15490_v0, %v14708_v27 }
 0xf0b   : > { %10075 = vmatpush1.bf16.msra.mxu1 %v13676_v46  ;;  %v13730_v46 = vld [vmem:[%s14237_s14 + $0x980] ss:$12 sps:$4 sm:$0xff]  }
 0xf0c   : > { %12590 = vmatpush3.bf16.msra.mxu0 %v13680_v31  ;;  %10076 = vmatprep.subr.bf16.mxu1 %v13683_v48  ;;  %v13733_v31 = vld [vmem:[%s14237_s14 + $0x514] ss:$12 sps:$4 sm:$0xff]  }
 0xf0d   : > { %12591 = vmatprep.subr.bf16.mxu0 %v13684_v21  ;;  %v13734_v21 = vld [vmem:[%s14237_s14 + $0xa58] ss:$12 sps:$4 sm:$0xff]  }
 0xf0f   : > { %10077 = vmatpush1.bf16.msra.mxu1 %v13681_v53 }
 0xf10   : > { %12592 = vmatpush3.bf16.msra.mxu0 %v13685_v24  ;;  %10078 = vmatprep.subr.bf16.mxu1 %v13688_v19 }
 0xf11   : > { %12593 = vmatprep.subr.bf16.mxu0 %v13689_v40 }
 0xf13   : > { %10079 = vmatpush1.bf16.msra.mxu1 %v13686_v42  ;;  %v13731_v42 = vld [vmem:[%s14237_s14 + $0x510] ss:$12 sps:$4 sm:$0xff]  }
 0xf14   : > { %12594 = vmatpush3.bf16.msra.mxu0 %v13690_v38  ;;  %10080 = vmatprep.subr.bf16.mxu1 %v13693_v50 }
 0xf15   : > { %12595 = vmatprep.subr.bf16.mxu0 %v13694_v18  ;;  %v13735_v18 = vld [vmem:[%s14237_s14 + $0x998] ss:$12 sps:$4 sm:$0xff]  }
 0xf17   : > { %10081 = vmatpush1.bf16.msra.mxu1 %v13691_v56  ;;  %v13738_v56 = vld [vmem:[%s14237_s14 + $0x52c] ss:$12 sps:$4 sm:$0xff]  }
 0xf18   : > { %12596 = vmatpush3.bf16.msra.mxu0 %v13695_v52  ;;  %10082 = vmatprep.subr.bf16.mxu1 %v13698_v37 }
 0xf19   : > { %12597 = vmatprep.subr.bf16.mxu0 %v13699_v61 }
 0xf1b   : > { %10083 = vmatpush1.bf16.msra.mxu1 %v13696_v16  ;;  %v13739_v16 = vld [vmem:[%s14237_s14 + $0xa70] ss:$12 sps:$4 sm:$0xff]  }
 0xf1c   : > { %12598 = vmatpush3.bf16.msra.mxu0 %v13700_v47  ;;  %10095 = vmatprep.subr.bf16.mxu1 %v13703_v63 }
 0xf1d   : > { %12605 = vmatprep.subr.bf16.mxu0 %v13704_v51 }
 0xf1e   : > { %10085 = vmatmul.mubr.bf16.vlgmr.msra.gmra.mrb[64].mxu1 %v15407_v54  ;;  %v13711_v54 = vld [vmem:[%s14237_s14 + $0x4b0] ss:$12 sps:$4 sm:$0xff]  }
 0xf1f   : > { %10548 = vmatmul.mubr.bf16.vlgmr.msra.gmra.mrb[92].mxu0 %v15519_v62  ;;  %10096 = vmatpush1.bf16.msra.mxu1 %v13701_v1 }
 0xf20   : > { %10127 = vmatprep.mubr.bf16.mxu1 %v15416_v34  ;;  %12606 = vmatpush3.bf16.msra.mxu0 %v13705_v2  ;;  %v13719_v34 = vld [vmem:[%s14237_s14 + $0xa10] ss:$12 sps:$4 sm:$0xff]  }
 0xf21   : > { %10097 = vmatprep.subr.bf16.mxu1 %v13708_v33  ;;  %12607 = vmatprep.subr.bf16.mxu0 %v13709_v3 }
 0xf23   : > { %10098 = vmatpush1.bf16.msra.mxu1 %v13706_v4  ;;  %v13736_v4 = vld [vmem:[%s14237_s14 + $0x528] ss:$12 sps:$4 sm:$0xff]  }
 0xf24   : > { %12608 = vmatpush3.bf16.msra.mxu0 %v13710_v60  ;;  %10099 = vmatprep.subr.bf16.mxu1 %v13713_v5 }
 0xf25   : > { %12609 = vmatprep.subr.bf16.mxu0 %v13714_v41 }
 0xf27   : > { %10100 = vmatpush1.bf16.msra.mxu1 %v13711_v54  ;;  %v13740_v54 = vld [vmem:[%s14237_s14 + $0x9b0] ss:$12 sps:$4 sm:$0xff]  }
 0xf28   : > { %12610 = vmatpush3.bf16.msra.mxu0 %v13715_v6  ;;  %10101 = vmatprep.subr.bf16.mxu1 %v13718_v55  ;;  %v13743_v6 = vld [vmem:[%s14237_s14 + $0x544] ss:$12 sps:$4 sm:$0xff]  }
 0xf29   : > { %12611 = vmatprep.subr.bf16.mxu0 %v13719_v34 }
 0xf2b   : > { %10102 = vmatpush1.bf16.msra.mxu1 %v13716_v7  ;;  %v13744_v7 = vld [vmem:[%s14237_s14 + $0xb48] ss:$12 sps:$4 sm:$0xff]  }
 0xf2c   : > { %12612 = vmatpush3.bf16.msra.mxu0 %v13720_v8  ;;  %10103 = vmatprep.subr.bf16.mxu1 %v13723_v10  ;;  %v13741_v10 = vld [vmem:[%s14237_s14 + $0x540] ss:$12 sps:$4 sm:$0xff]  }
 0xf2d   : > { %12613 = vmatprep.subr.bf16.mxu0 %v13724_v30  ;;  %v13745_v30 = vld [vmem:[%s14237_s14 + $0xa88] ss:$12 sps:$4 sm:$0xff]  }
 0xf2f   : > { %10104 = vmatpush1.bf16.msra.mxu1 %v13721_v23  ;;  %v13748_v23 = vld [vmem:[%s14237_s14 + $0x55c] ss:$12 sps:$4 sm:$0xff]  }
 0xf30   : > { %12614 = vmatpush3.bf16.msra.mxu0 %v13725_v12  ;;  %10105 = vmatprep.subr.bf16.mxu1 %v13728_v57  ;;  %v13749_v12 = vld [vmem:[%s14237_s14 + $0xb60] ss:$12 sps:$4 sm:$0xff]   ;;  %v13746_v57 = vld [vmem:[%s14237_s14 + $0x558] ss:$12 sps:$4 sm:$0xff]  }
 0xf31   : > { %v7246_v48 = vpop.f32.mrb[60].mxu1  ;;  %12615 = vmatprep.subr.bf16.mxu0 %v13729_v13  ;;  %v13750_v13 = vld [vmem:[%s14237_s14 + $0xaa0] ss:$12 sps:$4 sm:$0xff]  }
 0xf32   : > { %v12840_v43 = vadd.f32 %v7246_v48, %v5021_v20  ;;  %v7332_v53 = vpop.f32.mrb[68].mxu0  ;;  %v7248_v29 = vpop.f32.mrb[61].mxu1  ;;  %v13760_v48 = vld [vmem:[%s14237_s14 + $0xad0] ss:$12 sps:$4 sm:$0xff]  }
 0xf33   : > { %v12844_v24 = vadd.f32 %v7332_v53, %v5029_v25  ;;  %v12841_v19 = vadd.f32 %v7248_v29, %v5025_v9  ;;  %v7334_v17 = vpop.f32.mrb[69].mxu0  ;;  %v7250_v40 = vpop.f32.mrb[62].mxu1  ;;  %10106 = vmatpush1.bf16.msra.mxu1 %v13726_v32  ;;  %v13755_v32 = vld [vmem:[%s14237_s14 + $0xab8] ss:$12 sps:$4 sm:$0xff]   ;;  %v13761_v53 = vld [vmem:[%s14237_s14 + $0x5a0] ss:$12 sps:$4 sm:$0xff]  }
 0xf34   : > { %v12845_v38 = vadd.f32 %v7334_v17, %v5033_v44  ;;  %v12842_v27 = vadd.f32 %v7250_v40, %v5021_v20  ;;  %v7336_v0 = vpop.f32.mrb[70].mxu0  ;;  %12616 = vmatpush3.bf16.msra.mxu0 %v13730_v46  ;;  %v7252_v50 = vpop.f32.mrb[63].mxu1  ;;  %10107 = vmatprep.subr.bf16.mxu1 %v13733_v31  ;;  %v7353_v47 = vmax.f32 %v12840_v43, 0.0  ;;  %v13753_v20 = vld [vmem:[%s14237_s14 + $0x574] ss:$12 sps:$4 sm:$0xff]  }
 0xf35   : > { %v12846_v52 = vadd.f32 %v7336_v0, %v5029_v25  ;;  %v12843_v37 = vadd.f32 %v7252_v50, %v5025_v9  ;;  %v7338_v61 = vpop.f32.mrb[71].mxu0  ;;  %12617 = vmatprep.subr.bf16.mxu0 %v13734_v21  ;;  %v7355_v1 = vmax.f32 %v12844_v24, 0.0  ;;  %v7354_v2 = vmax.f32 %v12841_v19, 0.0  ;;  %v13754_v25 = vld [vmem:[%s14237_s14 + $0xb78] ss:$12 sps:$4 sm:$0xff]  }
 0xf36   : > { %v7369_v63 = vmax.f32 %v12842_v27, 0.0  ;;  %v12847_v51 = vadd.f32 %v7338_v61, %v5033_v44  ;;  %v7356_v60 = vmax.f32 %v12845_v38, 0.0  ;;  %v13751_v9 = vld [vmem:[%s14237_s14 + $0x570] ss:$12 sps:$4 sm:$0xff]   ;;  %v13758_v44 = vld [vmem:[%s14237_s14 + $0x58c] ss:$12 sps:$4 sm:$0xff]  }
 0xf37   : > { %v7371_v33 = vmax.f32 %v12846_v52, 0.0  ;;  %v7370_v3 = vmax.f32 %v12843_v37, 0.0  ;;  %10108 = vmatpush1.bf16.msra.mxu1 %v13731_v42  ;;  %v13759_v46 = vld [vmem:[%s14237_s14 + $0xb90] ss:$12 sps:$4 sm:$0xff]   ;;  %v13756_v31 = vld [vmem:[%s14237_s14 + $0x588] ss:$12 sps:$4 sm:$0xff]  }
 0xf38   : > { %v15617_v5 = vpack.c.bf16 %v7369_v63, %v7353_v47  ;;  %v7372_v41 = vmax.f32 %v12847_v51, 0.0  ;;  %12618 = vmatpush3.bf16.msra.mxu0 %v13735_v18  ;;  %10109 = vmatprep.subr.bf16.mxu1 %v13738_v56  ;;  %v13763_v21 = vld [vmem:[%s14237_s14 + $0x5a4] ss:$12 sps:$4 sm:$0xff]   ;;  %v13764_v43 = vld [vmem:[%s14237_s14 + $0xba8] ss:$12 sps:$4 sm:$0xff]  }
 0xf39   : > { %v15621_v55 = vpack.c.bf16 %v7371_v33, %v7355_v1  ;;  %v15623_v34 = vpack.c.bf16 %v7370_v3, %v7354_v2  ;;  %12619 = vmatprep.subr.bf16.mxu0 %v13739_v16  ;;  %v13765_v29 = vld [vmem:[%s14237_s14 + $0xae8] ss:$12 sps:$4 sm:$0xff]   ;;  %v13769_v19 = vld [vmem:[%s14237_s14 + $0xbc0] ss:$12 sps:$4 sm:$0xff]   ;;  %v13766_v17 = vld [vmem:[%s14237_s14 + $0x5b8] ss:$12 sps:$4 sm:$0xff]  }
 0xf3a   : > { %v15626_v8 = vpack.c.bf16 %v7372_v41, %v7356_v60  ;;  %v13768_v24 = vld [vmem:[%s14237_s14 + $0x5bc] ss:$12 sps:$4 sm:$0xff]   ;;  %v13770_v40 = vld [vmem:[%s14237_s14 + $0xb00] ss:$12 sps:$4 sm:$0xff]   ;;  %v13774_v38 = vld [vmem:[%s14237_s14 + $0xbd8] ss:$12 sps:$4 sm:$0xff]  }
 0xf3b   : > { %10110 = vmatpush1.bf16.msra.mxu1 %v13736_v4  ;;  %10588 = vmatprep.mubr.bf16.mxu0 %v15623_v34  ;;  %v13773_v42 = vld [vmem:[%s14237_s14 + $0x5d4] ss:$12 sps:$4 sm:$0xff]   ;;  %v13771_v50 = vld [vmem:[%s14237_s14 + $0x5d0] ss:$12 sps:$4 sm:$0xff]   ;;  %v13775_v52 = vld [vmem:[%s14237_s14 + $0xb18] ss:$12 sps:$4 sm:$0xff]  }
 0xf3c   : > { %12620 = vmatpush3.bf16.msra.mxu0 %v13740_v54  ;;  %10111 = vmatprep.subr.bf16.mxu1 %v13743_v6  ;;  %v13778_v37 = vld [vmem:[%s14237_s14 + $0x5ec] ss:$12 sps:$4 sm:$0xff]   ;;  %v13779_v16 = vld [vmem:[%s14237_s14 + $0xbf0] ss:$12 sps:$4 sm:$0xff]   ;;  %v13776_v63 = vld [vmem:[%s14237_s14 + $0x5e8] ss:$12 sps:$4 sm:$0xff]  }
 0xf3d   : > { %12627 = vmatprep.subr.bf16.mxu0 %v13744_v7  ;;  %v13780_v51 = vld [vmem:[%s14237_s14 + $0xb30] ss:$12 sps:$4 sm:$0xff]   ;;  %v13781_v2 = vld [vmem:[%s14237_s14 + $0x600] ss:$12 sps:$4 sm:$0xff]   ;;  %v13784_v3 = vld [vmem:[%s14237_s14 + $0x618] ss:$12 sps:$4 sm:$0xff]  }
 0xf3e   : > { %v13783_v1 = vld [vmem:[%s14237_s14 + $0x604] ss:$12 sps:$4 sm:$0xff]   ;;  %v13786_v33 = vld [vmem:[%s14237_s14 + $0x61c] ss:$12 sps:$4 sm:$0xff]   ;;  %v13789_v4 = vld [vmem:[%s14237_s14 + $0x634] ss:$12 sps:$4 sm:$0xff]  }
 0xf3f   : > { %10589 = vmatmul.mubr.bf16.vlgmr.msra.gmra.mrb[96].mxu0 %v15617_v5  ;;  %10112 = vmatpush1.bf16.msra.mxu1 %v13741_v10  ;;  %v13787_v60 = vld [vmem:[%s14237_s14 + $0x630] ss:$12 sps:$4 sm:$0xff]   ;;  %v13792_v41 = vld [vmem:[%s14237_s14 + $0x64c] ss:$12 sps:$4 sm:$0xff]   ;;  %v13790_v54 = vld [vmem:[%s14237_s14 + $0x648] ss:$12 sps:$4 sm:$0xff]  }
 0xf40   : > { %12628 = vmatpush3.bf16.msra.mxu0 %v13745_v30  ;;  %10629 = vmatprep.mubr.bf16.mxu0 %v15626_v8  ;;  %v13793_v6 = vld [vmem:[%s14237_s14 + $0x660] ss:$12 sps:$4 sm:$0xff]   ;;  %v13798_v7 = vld [vmem:[%s14237_s14 + $0x67c] ss:$12 sps:$4 sm:$0xff]   ;;  %v13796_v10 = vld [vmem:[%s14237_s14 + $0x678] ss:$12 sps:$4 sm:$0xff]  }
 0xf41   : > { %10113 = vmatprep.subr.bf16.mxu1 %v13748_v23  ;;  %12629 = vmatprep.subr.bf16.mxu0 %v13749_v12  ;;  %v13801_v23 = vld [vmem:[%s14237_s14 + $0x694] ss:$12 sps:$4 sm:$0xff]  }
 0xf43   : > { %10114 = vmatpush1.bf16.msra.mxu1 %v13746_v57 }
 0xf44   : > { %12630 = vmatpush3.bf16.msra.mxu0 %v13750_v13  ;;  %10115 = vmatprep.subr.bf16.mxu1 %v13753_v20  ;;  %v13799_v13 = vld [vmem:[%s14237_s14 + $0x690] ss:$12 sps:$4 sm:$0xff]  }
 0xf45   : > { %12631 = vmatprep.subr.bf16.mxu0 %v13754_v25 }
 0xf47   : > { %10116 = vmatpush1.bf16.msra.mxu1 %v13751_v9 }
 0xf48   : > { %12632 = vmatpush3.bf16.msra.mxu0 %v13755_v32  ;;  %10117 = vmatprep.subr.bf16.mxu1 %v13758_v44  ;;  %v13804_v32 = vld [vmem:[%s14237_s14 + $0x6ac] ss:$12 sps:$4 sm:$0xff]  }
 0xf49   : > { %12633 = vmatprep.subr.bf16.mxu0 %v13759_v46 }
 0xf4b   : > { %10118 = vmatpush1.bf16.msra.mxu1 %v13756_v31 }
 0xf4c   : > { %12634 = vmatpush3.bf16.msra.mxu0 %v13760_v48  ;;  %10119 = vmatprep.subr.bf16.mxu1 %v13763_v21  ;;  %v13802_v21 = vld [vmem:[%s14237_s14 + $0x6a8] ss:$12 sps:$4 sm:$0xff]  }
 0xf4d   : > { %12635 = vmatprep.subr.bf16.mxu0 %v13764_v43 }
 0xf4f   : > { %10120 = vmatpush1.bf16.msra.mxu1 %v13761_v53  ;;  %v13807_v53 = vld [vmem:[%s14237_s14 + $0x6c4] ss:$12 sps:$4 sm:$0xff]  }
 0xf50   : > { %12636 = vmatpush3.bf16.msra.mxu0 %v13765_v29  ;;  %10121 = vmatprep.subr.bf16.mxu1 %v13768_v24  ;;  %v13805_v29 = vld [vmem:[%s14237_s14 + $0x6c0] ss:$12 sps:$4 sm:$0xff]   ;;  %v13810_v24 = vld [vmem:[%s14237_s14 + $0x6dc] ss:$12 sps:$4 sm:$0xff]  }
 0xf51   : > { %12637 = vmatprep.subr.bf16.mxu0 %v13769_v19  ;;  %v13808_v19 = vld [vmem:[%s14237_s14 + $0x6d8] ss:$12 sps:$4 sm:$0xff]  }
 0xf52   : > { %v12489_v27 = vpop.f32.mrb[72].mxu0 }
 0xf53   : > { %v12490_v0 = vpop.f32.mrb[73].mxu0  ;;  %10122 = vmatpush1.bf16.msra.mxu1 %v13766_v17  ;;  %v13813_v17 = vld [vmem:[%s14237_s14 + $0x6f4] ss:$12 sps:$4 sm:$0xff]  }
 0xf54   : > { %v12491_v18 = vadd.f32 %v12490_v0, %v12489_v27  ;;  %v12492_v56 = vpop.f32.mrb[74].mxu0  ;;  %12638 = vmatpush3.bf16.msra.mxu0 %v13770_v40  ;;  %10123 = vmatprep.subr.bf16.mxu1 %v13773_v42  ;;  %v13811_v40 = vld [vmem:[%s14237_s14 + $0x6f0] ss:$12 sps:$4 sm:$0xff]   ;;  %v13816_v42 = vld [vmem:[%s14237_s14 + $0x70c] ss:$12 sps:$4 sm:$0xff]  }
 0xf55   : > { %v12493_v61 = vpop.f32.mrb[75].mxu0  ;;  %12639 = vmatprep.subr.bf16.mxu0 %v13774_v38  ;;  %v13814_v38 = vld [vmem:[%s14237_s14 + $0x708] ss:$12 sps:$4 sm:$0xff]   ;;  %v13819_v27 = vld [vmem:[%s14237_s14 + $0x724] ss:$12 sps:$4 sm:$0xff]  }
 0xf56   : > { %v12494_v47 = vadd.f32 %v12493_v61, %v12492_v56  ;;  %v13817_v0 = vld [vmem:[%s14237_s14 + $0x720] ss:$12 sps:$4 sm:$0xff]   ;;  %v13823_v61 = vld [vmem:[%s14237_s14 + $0x750] ss:$12 sps:$4 sm:$0xff]  }
 0xf57   : > { %10124 = vmatpush1.bf16.msra.mxu1 %v13771_v50  ;;  %v13822_v50 = vld [vmem:[%s14237_s14 + $0x73c] ss:$12 sps:$4 sm:$0xff]   ;;  %v13825_v56 = vld [vmem:[%s14237_s14 + $0x754] ss:$12 sps:$4 sm:$0xff]  }
 0xf58   : > { %12640 = vmatpush3.bf16.msra.mxu0 %v13775_v52  ;;  %10125 = vmatprep.subr.bf16.mxu1 %v13778_v37 }
 0xf59   : > { %12641 = vmatprep.subr.bf16.mxu0 %v13779_v16 }
 0xf5b   : > { %10126 = vmatpush1.bf16.msra.mxu1 %v13776_v63  ;;  %v13828_v63 = vld [vmem:[%s14237_s14 + $0x76c] ss:$12 sps:$4 sm:$0xff]  }
 0xf5c   : > { %12642 = vmatpush3.bf16.msra.mxu0 %v13780_v51  ;;  %10138 = vmatprep.subr.bf16.mxu1 %v13783_v1 }
 0xf5e   : > { %10128 = vmatmul.mubr.bf16.vlgmr.msra.gmra.mrb[64].mxu1 %v15411_v26  ;;  %v13795_v26 = vld [vmem:[%s14237_s14 + $0x664] ss:$12 sps:$4 sm:$0xff]  }
 0xf5f   : > { %10630 = vmatmul.mubr.bf16.vlgmr.msra.gmra.mrb[100].mxu0 %v15621_v55  ;;  %10139 = vmatpush1.bf16.msra.mxu1 %v13781_v2 }
 0xf60   : > { %10170 = vmatprep.mubr.bf16.mxu1 %v15521_v59  ;;  %10140 = vmatprep.subr.bf16.mxu1 %v13786_v33  ;;  %v15680_v59 = vld [vmem:[%s777_s21] sm:$0x7]  ;;  %v13826_v33 = vld [vmem:[%s14237_s14 + $0x768] ss:$12 sps:$4 sm:$0xff]  }
 0xf61   : > { %v7914_v30 = vrot.slane %v15680_v59, %v14555_v22 }
 0xf63   : > { %10141 = vmatpush1.bf16.msra.mxu1 %v13784_v3  ;;  %v10345_v20 = vadd.f32 %v12491_v18, %v7914_v30  ;;  %v10348_v46 = vadd.f32 %v12494_v47, %v7914_v30  ;;  %v13820_v18 = vld [vmem:[%s14237_s14 + $0x738] ss:$12 sps:$4 sm:$0xff]  }
 0xf64   : > { %10142 = vmatprep.subr.bf16.mxu1 %v13789_v4  ;;  %v13831_v4 = vld [vmem:[%s14237_s14 + $0x784] ss:$12 sps:$4 sm:$0xff]  }
 0xf65   : > { %v13843_v30 = vld [vmem:[%s14237_s14 + $0x7e4] ss:$12 sps:$4 sm:$0xff]  }
 0xf67   : > { %10143 = vmatpush1.bf16.msra.mxu1 %v13787_v60  ;;  %v13829_v60 = vld [vmem:[%s14237_s14 + $0x780] ss:$12 sps:$4 sm:$0xff]  }
 0xf68   : > { %10144 = vmatprep.subr.bf16.mxu1 %v13792_v41  ;;  %v13834_v41 = vld [vmem:[%s14237_s14 + $0x79c] ss:$12 sps:$4 sm:$0xff]  }
 0xf6b   : > { %10145 = vmatpush1.bf16.msra.mxu1 %v13790_v54  ;;  %v13832_v54 = vld [vmem:[%s14237_s14 + $0x798] ss:$12 sps:$4 sm:$0xff]  }
 0xf6c   : > { %10146 = vmatprep.subr.bf16.mxu1 %v13795_v26  ;;  %v13837_v26 = vld [vmem:[%s14237_s14 + $0x7b4] ss:$12 sps:$4 sm:$0xff]  }
 0xf6f   : > { %10147 = vmatpush1.bf16.msra.mxu1 %v13793_v6  ;;  %v13835_v6 = vld [vmem:[%s14237_s14 + $0x7b0] ss:$12 sps:$4 sm:$0xff]  }
 0xf70   : > { %10148 = vmatprep.subr.bf16.mxu1 %v13798_v7  ;;  %v13840_v7 = vld [vmem:[%s14237_s14 + $0x7cc] ss:$12 sps:$4 sm:$0xff]  }
 0xf72   : > { %v12511_v12 = vpop.f32.mrb[76].mxu0 }
 0xf73   : > { %v12512_v57 = vpop.f32.mrb[77].mxu0  ;;  %10149 = vmatpush1.bf16.msra.mxu1 %v13796_v10  ;;  %v13838_v10 = vld [vmem:[%s14237_s14 + $0x7c8] ss:$12 sps:$4 sm:$0xff]  }
 0xf74   : > { %v12513_v25 = vadd.f32 %v12512_v57, %v12511_v12  ;;  %v12514_v9 = vpop.f32.mrb[78].mxu0  ;;  %10150 = vmatprep.subr.bf16.mxu1 %v13801_v23  ;;  %v13846_v23 = vld [vmem:[%s14237_s14 + $0x7fc] ss:$12 sps:$4 sm:$0xff]   ;;  %v13849_v12 = vld [vmem:[%s14237_s14 + $0x814] ss:$12 sps:$4 sm:$0xff]  }
 0xf75   : > { %v12515_v44 = vpop.f32.mrb[79].mxu0 }
 0xf76   : > { %v10386_v31 = vadd.f32 %v12513_v25, %v10345_v20  ;;  %v12516_v48 = vadd.f32 %v12515_v44, %v12514_v9  ;;  %v13847_v20 = vld [vmem:[%s14237_s14 + $0x810] ss:$12 sps:$4 sm:$0xff]  }
 0xf77   : > { %10151 = vmatpush1.bf16.msra.mxu1 %v13799_v13 }
 0xf78   : > { %v10389_v43 = vadd.f32 %v12516_v48, %v10348_v46  ;;  %10152 = vmatprep.subr.bf16.mxu1 %v13804_v32  ;;  %v13852_v32 = vld [vmem:[%s14237_s14 + $0x82c] ss:$12 sps:$4 sm:$0xff]   ;;  %v13850_v48 = vld [vmem:[%s14237_s14 + $0x828] ss:$12 sps:$4 sm:$0xff]  }
 0xf7b   : > { %10153 = vmatpush1.bf16.msra.mxu1 %v13802_v21 }
 0xf7c   : > { %10154 = vmatprep.subr.bf16.mxu1 %v13807_v53  ;;  %v13853_v53 = vld [vmem:[%s14237_s14 + $0x840] ss:$12 sps:$4 sm:$0xff]  }
 0xf7f   : > { %10155 = vmatpush1.bf16.msra.mxu1 %v13805_v29  ;;  %v13858_v29 = vld [vmem:[%s14237_s14 + $0x85c] ss:$12 sps:$4 sm:$0xff]  }
 0xf80   : > { %10156 = vmatprep.subr.bf16.mxu1 %v13810_v24  ;;  %v13856_v24 = vld [vmem:[%s14237_s14 + $0x858] ss:$12 sps:$4 sm:$0xff]  }
 0xf83   : > { %10157 = vmatpush1.bf16.msra.mxu1 %v13808_v19  ;;  %v13861_v19 = vld [vmem:[%s14237_s14 + $0x874] ss:$12 sps:$4 sm:$0xff]  }
 0xf84   : > { %10158 = vmatprep.subr.bf16.mxu1 %v13813_v17  ;;  %v13859_v17 = vld [vmem:[%s14237_s14 + $0x870] ss:$12 sps:$4 sm:$0xff]  }
 0xf87   : > { %10159 = vmatpush1.bf16.msra.mxu1 %v13811_v40  ;;  %v13864_v40 = vld [vmem:[%s14237_s14 + $0x88c] ss:$12 sps:$4 sm:$0xff]  }
 0xf88   : > { %10160 = vmatprep.subr.bf16.mxu1 %v13816_v42  ;;  %v13862_v42 = vld [vmem:[%s14237_s14 + $0x888] ss:$12 sps:$4 sm:$0xff]  }
 0xf8b   : > { %10161 = vmatpush1.bf16.msra.mxu1 %v13814_v38  ;;  %v13867_v38 = vld [vmem:[%s14237_s14 + $0x8a4] ss:$12 sps:$4 sm:$0xff]  }
 0xf8c   : > { %10162 = vmatprep.subr.bf16.mxu1 %v13819_v27  ;;  %v13865_v27 = vld [vmem:[%s14237_s14 + $0x8a0] ss:$12 sps:$4 sm:$0xff]  }
 0xf8f   : > { %10163 = vmatpush1.bf16.msra.mxu1 %v13817_v0  ;;  %v13870_v0 = vld [vmem:[%s14237_s14 + $0x8bc] ss:$12 sps:$4 sm:$0xff]  }
 0xf90   : > { %10164 = vmatprep.subr.bf16.mxu1 %v13822_v50  ;;  %v13868_v50 = vld [vmem:[%s14237_s14 + $0x8b8] ss:$12 sps:$4 sm:$0xff]  }
 0xf92   : > { %v12533_v52 = vpop.f32.mrb[80].mxu0 }
 0xf93   : > { %v12534_v37 = vpop.f32.mrb[81].mxu0  ;;  %10165 = vmatpush1.bf16.msra.mxu1 %v13820_v18  ;;  %v13873_v18 = vld [vmem:[%s14237_s14 + $0x8d4] ss:$12 sps:$4 sm:$0xff]  }
 0xf94   : > { %v12535_v16 = vadd.f32 %v12534_v37, %v12533_v52  ;;  %v12536_v47 = vpop.f32.mrb[82].mxu0  ;;  %10166 = vmatprep.subr.bf16.mxu1 %v13825_v56  ;;  %v13871_v37 = vld [vmem:[%s14237_s14 + $0x8d0] ss:$12 sps:$4 sm:$0xff]  }
 0xf95   : > { %v12537_v51 = vpop.f32.mrb[83].mxu0 }
 0xf96   : > { %v10427_v1 = vadd.f32 %v12535_v16, %v10386_v31  ;;  %v12538_v2 = vadd.f32 %v12537_v51, %v12536_v47  ;;  %v13876_v47 = vld [vmem:[%s14237_s14 + $0x8ec] ss:$12 sps:$4 sm:$0xff]  }
 0xf97   : > { %10167 = vmatpush1.bf16.msra.mxu1 %v13823_v61 }
 0xf98   : > { %v10430_v3 = vadd.f32 %v12538_v2, %v10389_v43  ;;  %10168 = vmatprep.subr.bf16.mxu1 %v13828_v63  ;;  %v13855_v43 = vld [vmem:[%s14237_s14 + $0x844] ss:$12 sps:$4 sm:$0xff]   ;;  %v13874_v2 = vld [vmem:[%s14237_s14 + $0x8e8] ss:$12 sps:$4 sm:$0xff]  }
 0xf9b   : > { %10169 = vmatpush1.bf16.msra.mxu1 %v13826_v33 }
 0xf9c   : > { %10181 = vmatprep.subr.bf16.mxu1 %v13831_v4  ;;  %v13877_v4 = vld [vmem:[%s14237_s14 + $0x900] ss:$12 sps:$4 sm:$0xff]  }
 0xf9e   : > { %10171 = vmatmul.mubr.bf16.vlgmr.msra.gmra.mrb[64].mxu1 %v15515_v58  ;;  %v13841_v58 = vld [vmem:[%s14237_s14 + $0x7e0] ss:$12 sps:$4 sm:$0xff]  }
 0xf9f   : > { %10182 = vmatpush1.bf16.msra.mxu1 %v13829_v60  ;;  %10213 = vmatprep.mubr.bf16.mxu1 %v15524_v39  ;;  %v13844_v39 = vld [vmem:[%s14237_s14 + $0x7f8] ss:$12 sps:$4 sm:$0xff]   ;;  %v13882_v60 = vld [vmem:[%s14237_s14 + $0x91c] ss:$12 sps:$4 sm:$0xff]  }
 0xfa0   : > { %10183 = vmatprep.subr.bf16.mxu1 %v13834_v41  ;;  %v13880_v41 = vld [vmem:[%s14237_s14 + $0x918] ss:$12 sps:$4 sm:$0xff]  }
 0xfa3   : > { %10184 = vmatpush1.bf16.msra.mxu1 %v13832_v54  ;;  %v13885_v54 = vld [vmem:[%s14237_s14 + $0x934] ss:$12 sps:$4 sm:$0xff]  }
 0xfa4   : > { %10185 = vmatprep.subr.bf16.mxu1 %v13837_v26  ;;  %v13883_v26 = vld [vmem:[%s14237_s14 + $0x930] ss:$12 sps:$4 sm:$0xff]  }
 0xfa7   : > { %10186 = vmatpush1.bf16.msra.mxu1 %v13835_v6  ;;  %v13888_v6 = vld [vmem:[%s14237_s14 + $0x94c] ss:$12 sps:$4 sm:$0xff]  }
 0xfa8   : > { %10187 = vmatprep.subr.bf16.mxu1 %v13840_v7  ;;  %v13886_v7 = vld [vmem:[%s14237_s14 + $0x948] ss:$12 sps:$4 sm:$0xff]  }
 0xfab   : > { %10188 = vmatpush1.bf16.msra.mxu1 %v13838_v10  ;;  %v13891_v10 = vld [vmem:[%s14237_s14 + $0x964] ss:$12 sps:$4 sm:$0xff]  }
 0xfac   : > { %10189 = vmatprep.subr.bf16.mxu1 %v13843_v30  ;;  %v13894_v30 = vld [vmem:[%s14237_s14 + $0x97c] ss:$12 sps:$4 sm:$0xff]  }
 0xfaf   : > { %10190 = vmatpush1.bf16.msra.mxu1 %v13841_v58  ;;  %v13897_v58 = vld [vmem:[%s14237_s14 + $0x994] ss:$12 sps:$4 sm:$0xff]  }
 0xfb0   : > { %10191 = vmatprep.subr.bf16.mxu1 %v13846_v23 }
 0xfb2   : > { %v12555_v57 = vpop.f32.mrb[84].mxu0 }
 0xfb3   : > { %v12556_v13 = vpop.f32.mrb[85].mxu0  ;;  %10192 = vmatpush1.bf16.msra.mxu1 %v13844_v39 }
 0xfb4   : > { %v12557_v25 = vadd.f32 %v12556_v13, %v12555_v57  ;;  %v12558_v9 = vpop.f32.mrb[86].mxu0  ;;  %10193 = vmatprep.subr.bf16.mxu1 %v13849_v12  ;;  %v13895_v12 = vld [vmem:[%s14237_s14 + $0x990] ss:$12 sps:$4 sm:$0xff]  }
 0xfb5   : > { %v12559_v44 = vpop.f32.mrb[87].mxu0 }
 0xfb6   : > { %v10468_v46 = vadd.f32 %v12557_v25, %v10427_v1  ;;  %v12560_v31 = vadd.f32 %v12559_v44, %v12558_v9  ;;  %v13898_v44 = vld [vmem:[%s14237_s14 + $0x9a8] ss:$12 sps:$4 sm:$0xff]  }
 0xfb7   : > { %10194 = vmatpush1.bf16.msra.mxu1 %v13847_v20  ;;  %v13900_v20 = vld [vmem:[%s14237_s14 + $0x9ac] ss:$12 sps:$4 sm:$0xff]  }
 0xfb8   : > { %v10471_v21 = vadd.f32 %v12560_v31, %v10430_v3  ;;  %10195 = vmatprep.subr.bf16.mxu1 %v13852_v32  ;;  %v13879_v3 = vld [vmem:[%s14237_s14 + $0x904] ss:$12 sps:$4 sm:$0xff]  }
 0xfb9   : > { %v13903_v31 = vld [vmem:[%s14237_s14 + $0x9c4] ss:$12 sps:$4 sm:$0xff]  }
 0xfbb   : > { %10196 = vmatpush1.bf16.msra.mxu1 %v13850_v48  ;;  %v13901_v48 = vld [vmem:[%s14237_s14 + $0x9c0] ss:$12 sps:$4 sm:$0xff]  }
 0xfbc   : > { %10197 = vmatprep.subr.bf16.mxu1 %v13855_v43  ;;  %v13904_v43 = vld [vmem:[%s14237_s14 + $0x9d8] ss:$12 sps:$4 sm:$0xff]  }
 0xfbf   : > { %10198 = vmatpush1.bf16.msra.mxu1 %v13853_v53  ;;  %v13909_v53 = vld [vmem:[%s14237_s14 + $0x9f4] ss:$12 sps:$4 sm:$0xff]  }
 0xfc0   : > { %10199 = vmatprep.subr.bf16.mxu1 %v13858_v29  ;;  %v13907_v29 = vld [vmem:[%s14237_s14 + $0x9f0] ss:$12 sps:$4 sm:$0xff]  }
 0xfc3   : > { %10200 = vmatpush1.bf16.msra.mxu1 %v13856_v24  ;;  %v13912_v24 = vld [vmem:[%s14237_s14 + $0xa0c] ss:$12 sps:$4 sm:$0xff]  }
 0xfc4   : > { %10201 = vmatprep.subr.bf16.mxu1 %v13861_v19  ;;  %v13910_v19 = vld [vmem:[%s14237_s14 + $0xa08] ss:$12 sps:$4 sm:$0xff]  }
 0xfc7   : > { %10202 = vmatpush1.bf16.msra.mxu1 %v13859_v17  ;;  %v13915_v17 = vld [vmem:[%s14237_s14 + $0xa24] ss:$12 sps:$4 sm:$0xff]  }
 0xfc8   : > { %10203 = vmatprep.subr.bf16.mxu1 %v13864_v40  ;;  %v13913_v40 = vld [vmem:[%s14237_s14 + $0xa20] ss:$12 sps:$4 sm:$0xff]  }
 0xfcb   : > { %10204 = vmatpush1.bf16.msra.mxu1 %v13862_v42  ;;  %v13918_v42 = vld [vmem:[%s14237_s14 + $0xa3c] ss:$12 sps:$4 sm:$0xff]  }
 0xfcc   : > { %10205 = vmatprep.subr.bf16.mxu1 %v13867_v38  ;;  %v13916_v38 = vld [vmem:[%s14237_s14 + $0xa38] ss:$12 sps:$4 sm:$0xff]  }
 0xfcf   : > { %10206 = vmatpush1.bf16.msra.mxu1 %v13865_v27  ;;  %v13921_v27 = vld [vmem:[%s14237_s14 + $0xa54] ss:$12 sps:$4 sm:$0xff]  }
 0xfd0   : > { %10207 = vmatprep.subr.bf16.mxu1 %v13870_v0 }
 0xfd2   : > { %v12577_v56 = vpop.f32.mrb[88].mxu0 }
 0xfd3   : > { %v12578_v52 = vpop.f32.mrb[89].mxu0  ;;  %10208 = vmatpush1.bf16.msra.mxu1 %v13868_v50 }
 0xfd4   : > { %v12579_v61 = vadd.f32 %v12578_v52, %v12577_v56  ;;  %v12580_v16 = vpop.f32.mrb[90].mxu0  ;;  %10209 = vmatprep.subr.bf16.mxu1 %v13873_v18  ;;  %v13919_v18 = vld [vmem:[%s14237_s14 + $0xa50] ss:$12 sps:$4 sm:$0xff]  }
 0xfd5   : > { %v12581_v63 = vpop.f32.mrb[91].mxu0 }
 0xfd6   : > { %v10509_v51 = vadd.f32 %v12579_v61, %v10468_v46  ;;  %v12582_v1 = vadd.f32 %v12581_v63, %v12580_v16  ;;  %v13922_v63 = vld [vmem:[%s14237_s14 + $0xa68] ss:$12 sps:$4 sm:$0xff]  }
 0xfd7   : > { %10210 = vmatpush1.bf16.msra.mxu1 %v13871_v37  ;;  %v13924_v37 = vld [vmem:[%s14237_s14 + $0xa6c] ss:$12 sps:$4 sm:$0xff]  }
 0xfd8   : > { %v10512_v33 = vadd.f32 %v12582_v1, %v10471_v21  ;;  %10211 = vmatprep.subr.bf16.mxu1 %v13876_v47  ;;  %v13906_v21 = vld [vmem:[%s14237_s14 + $0x9dc] ss:$12 sps:$4 sm:$0xff]   ;;  %v13927_v1 = vld [vmem:[%s14237_s14 + $0xa84] ss:$12 sps:$4 sm:$0xff]  }
 0xfdb   : > { %10212 = vmatpush1.bf16.msra.mxu1 %v13874_v2  ;;  %v13925_v2 = vld [vmem:[%s14237_s14 + $0xa80] ss:$12 sps:$4 sm:$0xff]  }
 0xfdc   : > { %10224 = vmatprep.subr.bf16.mxu1 %v13879_v3  ;;  %v13928_v3 = vld [vmem:[%s14237_s14 + $0xa98] ss:$12 sps:$4 sm:$0xff]  }
 0xfde   : > { %10214 = vmatmul.mubr.bf16.vlgmr.msra.gmra.mrb[64].mxu1 %v15519_v62  ;;  %v13889_v62 = vld [vmem:[%s14237_s14 + $0x960] ss:$12 sps:$4 sm:$0xff]  }
 0xfdf   : > { %10225 = vmatpush1.bf16.msra.mxu1 %v13877_v4  ;;  %10256 = vmatprep.mubr.bf16.mxu1 %v15623_v34  ;;  %v13892_v34 = vld [vmem:[%s14237_s14 + $0x978] ss:$12 sps:$4 sm:$0xff]   ;;  %v13933_v4 = vld [vmem:[%s14237_s14 + $0xab4] ss:$12 sps:$4 sm:$0xff]  }
 0xfe0   : > { %10226 = vmatprep.subr.bf16.mxu1 %v13882_v60  ;;  %v13931_v60 = vld [vmem:[%s14237_s14 + $0xab0] ss:$12 sps:$4 sm:$0xff]  }
 0xfe3   : > { %10227 = vmatpush1.bf16.msra.mxu1 %v13880_v41  ;;  %v13936_v41 = vld [vmem:[%s14237_s14 + $0xacc] ss:$12 sps:$4 sm:$0xff]  }
 0xfe4   : > { %10228 = vmatprep.subr.bf16.mxu1 %v13885_v54  ;;  %v13934_v54 = vld [vmem:[%s14237_s14 + $0xac8] ss:$12 sps:$4 sm:$0xff]  }
 0xfe7   : > { %10229 = vmatpush1.bf16.msra.mxu1 %v13883_v26  ;;  %v13939_v26 = vld [vmem:[%s14237_s14 + $0xae4] ss:$12 sps:$4 sm:$0xff]  }
 0xfe8   : > { %10230 = vmatprep.subr.bf16.mxu1 %v13888_v6  ;;  %v13942_v6 = vld [vmem:[%s14237_s14 + $0xafc] ss:$12 sps:$4 sm:$0xff]  }
 0xfeb   : > { %10231 = vmatpush1.bf16.msra.mxu1 %v13886_v7  ;;  %v13945_v7 = vld [vmem:[%s14237_s14 + $0xb14] ss:$12 sps:$4 sm:$0xff]  }
 0xfec   : > { %10232 = vmatprep.subr.bf16.mxu1 %v13891_v10 }
 0xfef   : > { %10233 = vmatpush1.bf16.msra.mxu1 %v13889_v62 }
 0xff0   : > { %10234 = vmatprep.subr.bf16.mxu1 %v13894_v30  ;;  %v13943_v30 = vld [vmem:[%s14237_s14 + $0xb10] ss:$12 sps:$4 sm:$0xff]  }
 0xff2   : > { %v12599_v23 = vpop.f32.mrb[92].mxu0 }
 0xff3   : > { %v12600_v39 = vpop.f32.mrb[93].mxu0  ;;  %10235 = vmatpush1.bf16.msra.mxu1 %v13892_v34 }
 0xff4   : > { %v12601_v57 = vadd.f32 %v12600_v39, %v12599_v23  ;;  %v12602_v13 = vpop.f32.mrb[94].mxu0  ;;  %10236 = vmatprep.subr.bf16.mxu1 %v13897_v58  ;;  %v13948_v23 = vld [vmem:[%s14237_s14 + $0xb2c] ss:$12 sps:$4 sm:$0xff]  }
 0xff5   : > { %v12603_v25 = vpop.f32.mrb[95].mxu0 }
 0xff6   : > { %v10550_v9 = vadd.f32 %v12601_v57, %v10509_v51  ;;  %v12604_v32 = vadd.f32 %v12603_v25, %v12602_v13  ;;  %v13946_v13 = vld [vmem:[%s14237_s14 + $0xb28] ss:$12 sps:$4 sm:$0xff]   ;;  %v13951_v25 = vld [vmem:[%s14237_s14 + $0xb44] ss:$12 sps:$4 sm:$0xff]  }
 0xff7   : > { %10237 = vmatpush1.bf16.msra.mxu1 %v13895_v12 }
 0xff8   : > { %v10553_v46 = vadd.f32 %v12604_v32, %v10512_v33  ;;  %10238 = vmatprep.subr.bf16.mxu1 %v13900_v20  ;;  %v13930_v33 = vld [vmem:[%s14237_s14 + $0xa9c] ss:$12 sps:$4 sm:$0xff]  }
 0xff9   : > { %v13954_v32 = vld [vmem:[%s14237_s14 + $0xb5c] ss:$12 sps:$4 sm:$0xff]  }
 0xffb   : > { %10239 = vmatpush1.bf16.msra.mxu1 %v13898_v44  ;;  %v13952_v44 = vld [vmem:[%s14237_s14 + $0xb58] ss:$12 sps:$4 sm:$0xff]  }
 0xffc   : > { %10240 = vmatprep.subr.bf16.mxu1 %v13903_v31  ;;  %v13955_v31 = vld [vmem:[%s14237_s14 + $0xb70] ss:$12 sps:$4 sm:$0xff]  }
 0xfff   : > { %10241 = vmatpush1.bf16.msra.mxu1 %v13901_v48  ;;  %v13960_v48 = vld [vmem:[%s14237_s14 + $0xb8c] ss:$12 sps:$4 sm:$0xff]  }
0x1000   : > { %10242 = vmatprep.subr.bf16.mxu1 %v13906_v21  ;;  %v13958_v21 = vld [vmem:[%s14237_s14 + $0xb88] ss:$12 sps:$4 sm:$0xff]  }
0x1003   : > { %10243 = vmatpush1.bf16.msra.mxu1 %v13904_v43  ;;  %v13963_v43 = vld [vmem:[%s14237_s14 + $0xba4] ss:$12 sps:$4 sm:$0xff]  }
0x1004   : > { %10244 = vmatprep.subr.bf16.mxu1 %v13909_v53  ;;  %v13961_v53 = vld [vmem:[%s14237_s14 + $0xba0] ss:$12 sps:$4 sm:$0xff]  }
0x1007   : > { %10245 = vmatpush1.bf16.msra.mxu1 %v13907_v29  ;;  %v13966_v29 = vld [vmem:[%s14237_s14 + $0xbbc] ss:$12 sps:$4 sm:$0xff]  }
0x1008   : > { %10246 = vmatprep.subr.bf16.mxu1 %v13912_v24  ;;  %v13964_v24 = vld [vmem:[%s14237_s14 + $0xbb8] ss:$12 sps:$4 sm:$0xff]  }
0x100b   : > { %10247 = vmatpush1.bf16.msra.mxu1 %v13910_v19  ;;  %v13969_v19 = vld [vmem:[%s14237_s14 + $0xbd4] ss:$12 sps:$4 sm:$0xff]  }
0x100c   : > { %10248 = vmatprep.subr.bf16.mxu1 %v13915_v17  ;;  %v13967_v17 = vld [vmem:[%s14237_s14 + $0xbd0] ss:$12 sps:$4 sm:$0xff]  }
0x100f   : > { %10249 = vmatpush1.bf16.msra.mxu1 %v13913_v40  ;;  %v13972_v40 = vld [vmem:[%s14237_s14 + $0xbec] ss:$12 sps:$4 sm:$0xff]  }
0x1010   : > { %10250 = vmatprep.subr.bf16.mxu1 %v13918_v42  ;;  %v13970_v42 = vld [vmem:[%s14237_s14 + $0xbe8] ss:$12 sps:$4 sm:$0xff]  }
0x1012   : > { %v12621_v0 = vpop.f32.mrb[96].mxu0 }
0x1013   : > { %v12622_v50 = vpop.f32.mrb[97].mxu0  ;;  %10251 = vmatpush1.bf16.msra.mxu1 %v13916_v38  ;;  %v7906_v38 = vrot.slane %v15680_v59, %v14593_v45 }
0x1014   : > { %v12623_v56 = vadd.f32 %v12622_v50, %v12621_v0  ;;  %v12624_v52 = vpop.f32.mrb[98].mxu0  ;;  %10252 = vmatprep.subr.bf16.mxu1 %v13921_v27  ;;  %v7910_v27 = vrot.slane %v15680_v59, %v14617_v14 }
0x1015   : > { %v12625_v61 = vpop.f32.mrb[99].mxu0 }
0x1016   : > { %v10591_v16 = vadd.f32 %v12623_v56, %v10550_v9  ;;  %v12626_v47 = vadd.f32 %v12625_v61, %v12624_v52  ;;  %v13949_v9 = vld [vmem:[%s14237_s14 + $0xb40] ss:$12 sps:$4 sm:$0xff]  }
0x1017   : > { %10253 = vmatpush1.bf16.msra.mxu1 %v13919_v18 }
0x1018   : > { %v10594_v51 = vadd.f32 %v12626_v47, %v10553_v46  ;;  %10254 = vmatprep.subr.bf16.mxu1 %v13924_v37  ;;  %v13957_v46 = vld [vmem:[%s14237_s14 + $0xb74] ss:$12 sps:$4 sm:$0xff]  }
0x101b   : > { %10255 = vmatpush1.bf16.msra.mxu1 %v13922_v63 }
0x101c   : > { %10267 = vmatprep.subr.bf16.mxu1 %v13927_v1 }
0x101e   : > { %10257 = vmatmul.mubr.bf16.vlgmr.msra.gmra.mrb[64].mxu1 %v15617_v5  ;;  %v13937_v5 = vld [vmem:[%s14237_s14 + $0xae0] ss:$12 sps:$4 sm:$0xff]  }
0x101f   : > { %10268 = vmatpush1.bf16.msra.mxu1 %v13925_v2  ;;  %10299 = vmatprep.mubr.bf16.mxu1 %v15626_v8  ;;  %v13940_v8 = vld [vmem:[%s14237_s14 + $0xaf8] ss:$12 sps:$4 sm:$0xff]  }
0x1020   : > { %10269 = vmatprep.subr.bf16.mxu1 %v13930_v33 }
0x1023   : > { %10270 = vmatpush1.bf16.msra.mxu1 %v13928_v3 }
0x1024   : > { %10271 = vmatprep.subr.bf16.mxu1 %v13933_v4 }
0x1027   : > { %10272 = vmatpush1.bf16.msra.mxu1 %v13931_v60 }
0x1028   : > { %10273 = vmatprep.subr.bf16.mxu1 %v13936_v41 }
0x102b   : > { %10274 = vmatpush1.bf16.msra.mxu1 %v13934_v54 }
0x102c   : > { %10275 = vmatprep.subr.bf16.mxu1 %v13939_v26 }
0x102f   : > { %10276 = vmatpush1.bf16.msra.mxu1 %v13937_v5 }
0x1030   : > { %10277 = vmatprep.subr.bf16.mxu1 %v13942_v6 }
0x1032   : > { %v12643_v10 = vpop.f32.mrb[100].mxu0 }
0x1033   : > { %v12644_v62 = vpop.f32.mrb[101].mxu0  ;;  %10278 = vmatpush1.bf16.msra.mxu1 %v13940_v8 }
0x1034   : > { %v12645_v34 = vadd.f32 %v12644_v62, %v12643_v10  ;;  %v12646_v58 = vpop.f32.mrb[102].mxu0  ;;  %10279 = vmatprep.subr.bf16.mxu1 %v13945_v7 }
0x1035   : > { %v12647_v39 = vpop.f32.mrb[103].mxu0 }
0x1036   : > { %v10632_v12 = vadd.f32 %v12645_v34, %v10591_v16  ;;  %v12648_v57 = vadd.f32 %v12647_v39, %v12646_v58 }
0x1037   : > { %10280 = vmatpush1.bf16.msra.mxu1 %v13943_v30 }
0x1038   : > { %v10635_v20 = vadd.f32 %v12648_v57, %v10594_v51  ;;  %10281 = vmatprep.subr.bf16.mxu1 %v13948_v23  ;;  %v10640_v47 = vadd.f32 %v10632_v12, %v15038_v35 }
0x103a   : > { %v10643_v1 = vadd.f32 %v10635_v20, %v15035_v28  ;;  %v10645_v33 = vsel %vm2313_vm1, %v10640_v47, 0.0 }
0x103b   : > { %10282 = vmatpush1.bf16.msra.mxu1 %v13946_v13 }
0x103c   : > { %10283 = vmatprep.subr.bf16.mxu1 %v13951_v25 }
0x103f   : > { %10284 = vmatpush1.bf16.msra.mxu1 %v13949_v9 }
0x1040   : > { %10285 = vmatprep.subr.bf16.mxu1 %v13954_v32 }
0x1043   : > { %10286 = vmatpush1.bf16.msra.mxu1 %v13952_v44 }
0x1044   : > { %10287 = vmatprep.subr.bf16.mxu1 %v13957_v46 }
0x1047   : > { %10288 = vmatpush1.bf16.msra.mxu1 %v13955_v31  ;;  %v10690_v31 = vld [vmem:[%s755_s10] sm:$0x7] }
0x1048   : > { %10289 = vmatprep.subr.bf16.mxu1 %v13960_v48  ;;  %v10713_v48 = vld [vmem:[%s759_s3] sm:$0x7]  ;;  %s15976_s3 = sld [smem:[#allocation16_spill]] (!%p12346_p6) }
0x104b   : > { %10290 = vmatpush1.bf16.msra.mxu1 %v13958_v21  ;;  %v10695_v21 = vrot.slane %v10690_v31, %v14593_v45 }
0x104c   : > { %10291 = vmatprep.subr.bf16.mxu1 %v13963_v43  ;;  %v10699_v43 = vrot.slane %v10690_v31, %v14617_v14 }
0x104f   : > { %10292 = vmatpush1.bf16.msra.mxu1 %v13961_v53  ;;  %v10703_v53 = vrot.slane %v10690_v31, %v14555_v22 }
0x1050   : > { %10293 = vmatprep.subr.bf16.mxu1 %v13966_v29 }
0x1053   : > { %10294 = vmatpush1.bf16.msra.mxu1 %v13964_v24  ;;  %v10718_v24 = vrot.slane %v10713_v48, %v14593_v45 }
0x1054   : > { %10295 = vmatprep.subr.bf16.mxu1 %v13969_v19  ;;  %v10722_v19 = vrot.slane %v10713_v48, %v14617_v14 }
0x1057   : > { %10296 = vmatpush1.bf16.msra.mxu1 %v13967_v17 }
0x1058   : > { %10297 = vmatprep.subr.bf16.mxu1 %v13972_v40  ;;  %v10726_v40 = vrot.slane %v10713_v48, %v14555_v22 }
0x105b   : > { %10298 = vmatpush1.bf16.msra.mxu1 %v13970_v42 }
0x105e   : > { %10300 = vmatmul.mubr.bf16.vlgmr.msra.gmra.mrb[64].mxu1 %v15621_v55 }
0x1131   : > { %v10301_v0 = vpop.f32.mrb[64].mxu1 }
0x1132   : > { %v12848_v50 = vadd.f32 %v10301_v0, %v7906_v38  ;;  %v10303_v18 = vpop.f32.mrb[65].mxu1 }
0x1133   : > { %v12849_v56 = vadd.f32 %v10303_v18, %v7910_v27  ;;  %v10305_v52 = vpop.f32.mrb[66].mxu1 }
0x1134   : > { %v10638_v37 = vadd.f32 %v12848_v50, %v14993_v11  ;;  %v12850_v61 = vadd.f32 %v10305_v52, %v7906_v38  ;;  %v10307_v16 = vpop.f32.mrb[67].mxu1  ;;  %v10650_v11 = vsel %vm2313_vm1, %v10643_v1, 0.0 }
0x1135   : > { %v10639_v63 = vadd.f32 %v12849_v56, %v14995_v49  ;;  %v12851_v55 = vadd.f32 %v10307_v16, %v7910_v27 }
0x1136   : > { %v10641_v51 = vadd.f32 %v12850_v61, %v14997_v15 }
0x1137   : > { %v10642_v59 = vadd.f32 %v12851_v55, %v14999_v36  ;;  %v10644_v2 = vadd.f32 %v10639_v63, %v10638_v37 }
0x1139   : > { %v10646_v3 = vadd.f32 %v10645_v33, %v10644_v2  ;;  %v10649_v4 = vadd.f32 %v10642_v59, %v10641_v51  ;;  %v14020_v2 = vld [vmem:[%s15975_s17] sm:$0xff] (!%p12346_p6)   ;;  %v14066_v33 = vmov (!%p12346_p6), 0.0  }
0x113a   : > { %12772 = vmatprep.subr.bf16.mxu1 (!%p12346_p6), %v14066_v33  ;;  %12780 = vmatprep.mubr.msk.bf16.mxu1 (!%p12346_p6), %vm14067_vm5, %v14066_v33 }
0x113b   : > { %10647 = vadd.xlane.f32.xlu0 %v10646_v3  ;;  %v10651_v60 = vadd.f32 %v10650_v11, %v10649_v4  ;;  %v14021_v3 = vld [vmem:[%s15975_s17 + $0x48] sm:$0xff] (!%p12346_p6)   ;;  %v14023_v11 = vld [vmem:[%s15975_s17 + $0x50] sm:$0xff] (!%p12346_p6)  }
0x113c   : > { %v14022_v4 = vld [vmem:[%s15975_s17 + $0x8] sm:$0xff] (!%p12346_p6)  }
0x113d   : > { %10652 = vadd.xlane.f32.xlu1 %v10651_v60  ;;  %v14024_v60 = vld [vmem:[%s15975_s17 + $0x10] sm:$0xff] (!%p12346_p6)  }
0x11c8   : > { %v10648_v35 = vpop.xlane.xlu0 %10647 }
0x11c9   : > { %v10654_v41 = vmul.f32 0.003125, %v10648_v35  ;;  %v14025_v35 = vld [vmem:[%s15975_s17 + $0x58] sm:$0xff] (!%p12346_p6)  }
0x11ca   : > { %v10653_v49 = vpop.xlane.xlu1 %10652 }
0x11cb   : > { %v10656_v54 = vsub.f32 %v10638_v37, %v10654_v41  ;;  %v10657_v26 = vsub.f32 %v10639_v63, %v10654_v41  ;;  %v10658_v15 = vsub.f32 %v10640_v47, %v10654_v41  ;;  %v10655_v5 = vmul.f32 0.003125, %v10653_v49  ;;  %v14029_v41 = vld [vmem:[%s15975_s17 + $0x80] sm:$0xff] (!%p12346_p6)   ;;  %v14026_v49 = vld [vmem:[%s15975_s17 + $0x18] sm:$0xff] (!%p12346_p6)  }
0x11cc   : > { %12773 = vmatpush3.bf16.msra.mxu1 (!%p12346_p6), %v14029_v41 }
0x11cd   : > { %v10659_v28 = vsub.f32 %v10641_v51, %v10655_v5  ;;  %v10660_v6 = vsub.f32 %v10642_v59, %v10655_v5  ;;  %v10661_v36 = vsub.f32 %v10643_v1, %v10655_v5  ;;  %v10662_v8 = vmul.f32 %v10656_v54, %v10656_v54  ;;  %v14019_v1 = vld [vmem:[%s15975_s17 + $0x40] sm:$0xff] (!%p12346_p6)   ;;  %12774 = vmatprep.subr.bf16.mxu1 (!%p12346_p6), %v14066_v33  ;;  %v14030_v5 = vld [vmem:[%s15975_s17 + $0x68] sm:$0xff] (!%p12346_p6)  }
0x11ce   : > { %v10663_v7 = vmul.f32 %v10657_v26, %v10657_v26  ;;  %v10664_v10 = vmul.f32 %v10658_v15, %v10658_v15  ;;  %12649 = vmatprep.subr.bf16.mxu0 (!%p12346_p6), %v14019_v1 }
0x11cf   : > { %v10665_v62 = vmul.f32 %v10659_v28, %v10659_v28  ;;  %v10666_v30 = vmul.f32 %v10660_v6, %v10660_v6  ;;  %v10667_v34 = vmul.f32 %v10661_v36, %v10661_v36  ;;  %12650 = vmatpush3.bf16.msra.mxu0 (!%p12346_p6), %v14020_v2 }
0x11d0   : > { %v10668_v58 = vadd.f32 %v10663_v7, %v10662_v8  ;;  %v10669_v23 = vsel %vm2313_vm1, %v10664_v10, 0.0  ;;  %12651 = vmatprep.subr.bf16.mxu0 (!%p12346_p6), %v14021_v3  ;;  %v14038_v8 = vld [vmem:[%s15975_s17 + $0x98] sm:$0xff] (!%p12346_p6)   ;;  %v14034_v7 = vld [vmem:[%s15975_s17 + $0x30] sm:$0xff] (!%p12346_p6)  }
0x11d1   : > { %v10673_v39 = vadd.f32 %v10666_v30, %v10665_v62  ;;  %v10674_v12 = vsel %vm2313_vm1, %v10667_v34, 0.0  ;;  %v14036_v62 = vld [vmem:[%s15975_s17 + $0x78] sm:$0xff] (!%p12346_p6)  }
0x11d2   : > { %v10670_v57 = vadd.f32 %v10669_v23, %v10668_v58  ;;  %v14037_v30 = vld [vmem:[%s15975_s17 + $0x38] sm:$0xff] (!%p12346_p6)   ;;  %v11037_v58 = vld [vmem:[#allocation4] sm:$0x1] (!%p12346_p6) }
0x11d3   : > { %v10675_v13 = vadd.f32 %v10674_v12, %v10673_v39  ;;  %12652 = vmatpush3.bf16.msra.mxu0 (!%p12346_p6), %v14022_v4  ;;  %12942 = vpush (!%p12346_p6), %v11037_v58 }
0x11d4   : > { %10671 = vadd.xlane.f32.xlu0 %v10670_v57  ;;  %12653 = vmatprep.subr.bf16.mxu0 (!%p12346_p6), %v14023_v11 }
0x11d5   : > { %10676 = vadd.xlane.f32.xlu1 %v10675_v13 }
0x11d7   : > { %12654 = vmatpush3.bf16.msra.mxu0 (!%p12346_p6), %v14024_v60 }
0x11d8   : > { %12655 = vmatprep.subr.bf16.mxu0 (!%p12346_p6), %v14025_v35 }
0x11db   : > { %12656 = vmatpush3.bf16.msra.mxu0 (!%p12346_p6), %v14026_v49 }
0x1204   : > { %s12943_s28 = spop (!%p12346_p6), %12942 }
0x1261   : > { %v10672_v20 = vpop.xlane.xlu0 %10671 }
0x1262   : > { %v10678_v25 = vmul.f32 0.003125, %v10672_v20  ;;  %v10677_v9 = vpop.xlane.xlu1 %10676 }
0x1263   : > { %v10679_v32 = vmul.f32 0.003125, %v10677_v9 }
0x1264   : > { %v10680_v44 = vadd.f32 1e-05, %v10678_v25  ;;  %v12347_v25 = vld [vmem:[%s15976_s3] ss:$0 sm:$0xff] (!%p12346_p6) }
0x1265   : > { %v10681_v46 = vadd.f32 1e-05, %v10679_v32 }
0x1266   : > { %14009 = vrsqrt.f32 %v10680_v44 }
0x1267   : > { %14011 = vrsqrt.f32 %v10681_v46 }
0x1270   : > { %v14010_v29 = vpop.eup %14009 }
0x1271   : > { %v14012_v17 = vpop.eup %14011  ;;  %v10684_v42 = vmul.f32 %v14010_v29, %v10656_v54  ;;  %v10685_v38 = vmul.f32 %v14010_v29, %v10657_v26  ;;  %v10686_v27 = vmul.f32 %v14010_v29, %v10658_v15  ;;  %v14027_v54 = vld [vmem:[%s15975_s17 + $0x60] sm:$0xff] (!%p12346_p6)   ;;  %v14032_v26 = vld [vmem:[%s15975_s17 + $0x88] sm:$0xff] (!%p12346_p6)  }
0x1272   : > { %v10687_v0 = vmul.f32 %v14012_v17, %v10659_v28  ;;  %v10688_v50 = vmul.f32 %v14012_v17, %v10660_v6  ;;  %v10689_v18 = vmul.f32 %v14012_v17, %v10661_v36  ;;  %v14028_v15 = vld [vmem:[%s15975_s17 + $0x20] sm:$0xff] (!%p12346_p6)   ;;  %12657 = vmatprep.subr.bf16.mxu0 (!%p12346_p6), %v14027_v54  ;;  %12775 = vmatpush3.bf16.msra.mxu1 (!%p12346_p6), %v14032_v26  ;;  %v14035_v28 = vld [vmem:[%s15975_s17 + $0x90] sm:$0xff] (!%p12346_p6)   ;;  %v14031_v6 = vld [vmem:[%s15975_s17 + $0x28] sm:$0xff] (!%p12346_p6)  }
0x1273   : > { %v10707_v56 = vmul.f32 %v10695_v21, %v10684_v42  ;;  %v10708_v52 = vmul.f32 %v10699_v43, %v10685_v38  ;;  %v10709_v37 = vmul.f32 %v10703_v53, %v10686_v27  ;;  %10745 = sbr.rel (%p12346_p6) target bundleno = 5126 (0x1406), region = 96  ;;  %12776 = vmatprep.subr.bf16.mxu1 (!%p12346_p6), %v14066_v33  ;;  %12658 = vmatpush3.bf16.msra.mxu0 (!%p12346_p6), %v14028_v15  ;;  %v14033_v36 = vld [vmem:[%s15975_s17 + $0x70] sm:$0xff] (!%p12346_p6)  }
0x1274   : > { %v10710_v61 = vmul.f32 %v10695_v21, %v10687_v0  ;;  %v10711_v16 = vmul.f32 %v10699_v43, %v10688_v50  ;;  %v10712_v47 = vmul.f32 %v10703_v53, %v10689_v18  ;;  %12659 = vmatprep.subr.bf16.mxu0 (!%p12346_p6), %v14030_v5 }
0x1275   : > { %v15838_v63 = vadd.f32 %v10718_v24, %v10707_v56  ;;  %v10731_v45 = vadd.f32 %v10722_v19, %v10708_v52  ;;  %v10732_v55 = vadd.f32 %v10726_v40, %v10709_v37 }
0x1276   : > { %v15840_v14 = vadd.f32 %v10718_v24, %v10710_v61  ;;  %v10734_v51 = vadd.f32 %v10722_v19, %v10711_v16  ;;  %v10735_v22 = vadd.f32 %v10726_v40, %v10712_v47  ;;  %12777 = vmatpush3.bf16.msra.mxu1 (!%p12346_p6), %v14035_v28  ;;  %v12369_v16 = vld [vmem:[%s15977_s23] ss:$0 sm:$0xff] (!%p12346_p6) }
0x1277   : > { %10736 = vst [vmem:[#allocation2] sm:$0xff] %v15838_v63  ;;  %10737 = vst [vmem:[#allocation2 + $0x8] sm:$0xff] %v10731_v45  ;;  %12778 = vmatprep.subr.bf16.mxu1 (!%p12346_p6), %v14066_v33  ;;  %12660 = vmatpush3.bf16.msra.mxu0 (!%p12346_p6), %v14031_v6 }
0x1278   : > { %10738 = vst.msk [vmem:[#allocation2 + $0x10] sm:$0xff] %vm2313_vm1, %v10732_v55  ;;  %10739 = vst [vmem:[#allocation2 + $0x18] sm:$0xff] %v15840_v14  ;;  %v10747_v59 = vpack.c.bf16 (!%p12346_p6), %v10734_v51, %v10731_v45  ;;  %v10748_v10 = vpack.c.bf16 (!%p12346_p6), %v10735_v22, %v10732_v55  ;;  %12661 = vmatprep.subr.bf16.mxu0 (!%p12346_p6), %v14033_v36  ;;  %v10746_v34 = vpack.c.bf16 (!%p12346_p6), %v15840_v14, %v15838_v63 }
0x1279   : > { %10740 = vst [vmem:[#allocation2 + $0x20] sm:$0xff] %v10734_v51  ;;  %10741 = vst.msk [vmem:[#allocation2 + $0x28] sm:$0xff] %vm2313_vm1, %v10735_v22  ;;  %v11039_v51 = vstv (!%p12346_p6), %s12943_s28 }
0x127a   : > { %10951 = vmatprep.mubr.bf16.mxu0 %v10747_v59  ;;  %12779 = vmatpush3.bf16.msra.mxu1 %v14038_v8 }
0x127b   : > { %12662 = vmatpush3.bf16.msra.mxu0 %v14034_v7 }
0x127c   : > { %12663 = vmatprep.subr.bf16.mxu0 %v14036_v62 }
0x127d   : > { %12781 = vmatmul.mubr.msk.bf16.vlgmr.msra.gmra.mrb[0].mxu1 %vm2313_vm1, %v10748_v10 }
0x127f   : > { %12664 = vmatpush3.bf16.msra.mxu0 %v14037_v30 }
0x1282   : > { %10952 = vmatmul.mubr.bf16.vlgmr.msra.gmra.mrb[0].mxu0 %v10746_v34 }
0x1350   : > { %v10994_v23 = vpop.f32.mrb[0].mxu1 }
0x1351   : > { %v12782_v39 = vpop.f32.mrb[1].mxu1 }
0x1352   : > { %v10997_v12 = vpop.f32.mrb[2].mxu1 }
0x1353   : > { %v12783_v57 = vpop.f32.mrb[3].mxu1 }
0x1355   : > { %v12665_v13 = vpop.f32.mrb[0].mxu0 }
0x1356   : > { %v12666_v20 = vpop.f32.mrb[1].mxu0 }
0x1357   : > { %v12667_v9 = vadd.f32 %v12666_v20, %v12665_v13  ;;  %v12668_v32 = vpop.f32.mrb[2].mxu0 }
0x1358   : > { %v12669_v44 = vpop.f32.mrb[3].mxu0 }
0x1359   : > { %v10954_v46 = vadd.f32 %v12667_v9, %v12347_v25  ;;  %v12670_v31 = vadd.f32 %v12669_v44, %v12668_v32 }
0x135b   : > { %v10995_v48 = vadd.f32 %v10994_v23, %v10954_v46  ;;  %v10957_v21 = vadd.f32 %v12670_v31, %v12347_v25 }
0x135d   : > { %v11001_v43 = vmax.f32 %v10995_v48, 0.0  ;;  %v10998_v53 = vadd.f32 %v10997_v12, %v10957_v21 }
0x135f   : > { %v11003_v29 = vrot.slane %v11001_v43, 4  ;;  %v11002_v24 = vmax.f32 %v10998_v53, 0.0 }
0x1361   : > { %v11004_v19 = vadd.f32 %v11003_v29, %v11001_v43  ;;  %v11009_v17 = vrot.slane %v11002_v24, 4 }
0x1363   : > { %v11005_v40 = vrot.slane %v11004_v19, 2  ;;  %v11010_v42 = vadd.f32 %v11009_v17, %v11002_v24 }
0x1365   : > { %v11006_v38 = vadd.f32 %v11005_v40, %v11004_v19  ;;  %v11011_v27 = vrot.slane %v11010_v42, 2 }
0x1367   : > { %v11007_v0 = vrot.slane %v11006_v38, 1  ;;  %v11012_v50 = vadd.f32 %v11011_v27, %v11010_v42 }
0x1369   : > { %v11008_v18 = vadd.f32 %v11007_v0, %v11006_v38  ;;  %v11013_v56 = vrot.slane %v11012_v50, 1 }
0x136b   : > { %v11014_v52 = vadd.f32 %v11013_v56, %v11012_v50  ;;  %v11016_v61 = vmul.f32 0.125, %v11008_v18 }
0x136d   : > { %v11017_v37 = vmul.f32 0.125, %v11014_v52  ;;  %v11025_v63 = vmul.f32 %v12369_v16, %v11016_v61 }
0x136f   : > { %v11026_v47 = vmul.f32 %v12369_v16, %v11017_v37 }
0x1371   : > { %v11029_v45 = vrot.slane %v11026_v47, 7 }
0x1373   : > { %v11031_v55 = vsel %vm11030_vm6, %v11029_v45, %v11025_v63 }
0x1374   : > { %v11034_v14 = vsel %vm11033_vm7, %v11031_v55, 0.0 }
0x1375   : > { %11035 = vadd.xlane.f32.xlu0 %v11034_v14 }
0x1402   : > { %v11036_v22 = vpop.xlane.xlu0 %11035 }
0x1403   : > { %v11040_v1 = vadd.f32 %v11039_v51, %v11036_v22 }
0x1405   : > { %11042 = vst.msk [vmem:[%s15978_s2] sm:$0x3] %vm11041_vm8, %v11040_v1 }
0x1406 PF: > { %s15979_s27 = sld [smem:[#allocation6_spill]]  ;;  %s15980_s26 = sld [smem:[#allocation5_spill]] }
0x140c   : > { %s29_s28 = sadd.s32 1, %s15979_s27   ;;  %s15981_s27 = sld [smem:[#allocation7_spill]] }
0x140d   : > { %p26_p7 = scmp.ge.s32.totalorder %s29_s28, 4  }
0x140f   :  { %28 = sbr.rel (!%p26_p7) target bundleno = 10 (0xa), region = 162 }

</bundles_post_ra>
